<compile_context>
chip_gen: v7x
topology: tpu7x:2x2x1
jax: 0.10.0
libtpu: 0.0.40
codegen_flags: <defaults>
</compile_context>

<pallas_src>
import numpy as np
import jax
import jax.numpy as jnp
from jax import lax
from jax.experimental import pallas as pl
from jax.experimental.pallas import tpu as pltpu


_CHUNK = 8                       # neighbour-scan chunk (one sublane tile)
_VMEM_LIMIT = 32 * 1024 * 1024   # raise v5e's 16 MiB scoped default; fits all gens


def _lstm_scan(xp_ref, mask_ref, whh, n_src, td, d):
    """Masked LSTM over source nodes (gate layout [i | f | o | g], see wrapper).

    xp_ref   : (n_src, 4d) VMEM scratch holding x @ W_ih + b (hoisted)
    mask_ref : (n_src, td)  adj^T block: mask_ref[s, dst] > 0  iff edge s -> dst
    whh      : (d, 4d)      fused recurrent weights (loaded once, loop-invariant)
    returns  : (td, d)      final hidden state per destination node
    """
    h0 = jnp.zeros((td, d), jnp.float32)
    c0 = jnp.zeros((td, d), jnp.float32)
    n_chunks = n_src // _CHUNK

    def chunk_step(j, carry):
        h, c = carry
        base = pl.multiple_of(j * _CHUNK, _CHUNK)
        xp_c = xp_ref[pl.ds(base, _CHUNK), :]           # (8, 4d) hoisted input term
        m_c = mask_ref[pl.ds(base, _CHUNK), :]          # (8, td)
        m_ct = jnp.transpose(m_c) > 0.0                 # (td, 8): one transpose+cmp / 8 steps
        for s in range(_CHUNK):                         # fully unrolled inner steps
            pre = xp_c[s:s + 1, :] + jnp.dot(h, whh,
                                             preferred_element_type=jnp.float32)
            sig = jax.nn.sigmoid(pre[:, 0:3 * d])       # fused sigmoid over [i | f | o]
            i_g = sig[:, 0 * d:1 * d]
            f_g = sig[:, 1 * d:2 * d]
            o_g = sig[:, 2 * d:3 * d]
            g_g = jnp.tanh(pre[:, 3 * d:4 * d])
            c_new = f_g * c + i_g * g_g
            h_new = o_g * jnp.tanh(c_new)
            m = m_ct[:, s:s + 1]                        # (td, 1): is src (8j+s) a neighbour?
            h = jnp.where(m, h_new, h)                  # only real neighbours advance state
            c = jnp.where(m, c_new, c)
        return h, c

    h, _ = lax.fori_loop(0, n_chunks, chunk_step, (h0, c0))
    return h


def _make_sage_kernel(apply_relu, n, td, d_in):
    def kernel(x_ref, mask_ref, wih_ref, whh_ref, b_ref,
               ws_ref, wn_ref, bias_ref, out_ref, xp_ref):
        # Hoisted LSTM input projection for ALL source nodes (dst-independent).
        # Recomputed per dst tile (O(1/td) of the scan cost) so the kernel is
        # correct under "parallel" multi-core grid sharding.
        xp_ref[...] = (
            jnp.dot(x_ref[...], wih_ref[...], preferred_element_type=jnp.float32)
            + b_ref[...])

        whh = whh_ref[...]                               # hoisted recurrent weights
        h_neigh = _lstm_scan(xp_ref, mask_ref, whh, n, td, d_in)

        row0 = pl.multiple_of(pl.program_id(0) * td, td)
        x_dst = x_ref[pl.ds(row0, td), :]                # this dst tile's own features
        out = (jnp.dot(x_dst, ws_ref[...], preferred_element_type=jnp.float32)       # fc_self
               + jnp.dot(h_neigh, wn_ref[...], preferred_element_type=jnp.float32)   # fc_neigh
               + bias_ref[...])
        if apply_relu:
            out = jnp.maximum(out, 0.0)                  # F.relu
        out_ref[...] = out
    return kernel


def _reorder_gates(w, d):
    """Permute fused gate columns [i|f|g|o] (PyTorch order) -> [i|f|o|g]."""
    return jnp.concatenate([w[:, 0:2 * d], w[:, 3 * d:4 * d], w[:, 2 * d:3 * d]],
                           axis=1)


def sage_conv_lstm(x, mask_t, wih, whh, b, ws, wn, bias, *, apply_relu, td):
    """One SAGEConv('lstm') layer, dst-tiled over a parallel grid."""
    n, d_in = x.shape
    d_out = ws.shape[1]
    assert n % td == 0 and n % _CHUNK == 0

    # Reorder gates once on the host so the kernel sees [i|f|o|g] (see docstring).
    wih = _reorder_gates(wih, d_in)
    whh = _reorder_gates(whh, d_in)
    b = _reorder_gates(b, d_in)

    flops = 8 * n * n * d_in * d_in + 4 * n * d_in * d_out
    transc = 5 * d_in * n * n
    bytes_acc = 4 * (n * n + 2 * n * d_in + n * d_out
                     + 9 * d_in * d_in + 2 * d_in * d_out)

    return pl.pallas_call(
        _make_sage_kernel(apply_relu, n, td, d_in),
        out_shape=jax.ShapeDtypeStruct((n, d_out), jnp.float32),
        grid_spec=pltpu.PrefetchScalarGridSpec(
            num_scalar_prefetch=0,
            grid=(n // td,),
            in_specs=[
                pl.BlockSpec((n, d_in), lambda i: (0, 0)),         # x (all src nodes)
                pl.BlockSpec((n, td), lambda i: (0, i)),           # adj^T, dst tile
                pl.BlockSpec((d_in, 4 * d_in), lambda i: (0, 0)),  # W_ih fused [i|f|o|g]
                pl.BlockSpec((d_in, 4 * d_in), lambda i: (0, 0)),  # W_hh fused
                pl.BlockSpec((1, 4 * d_in), lambda i: (0, 0)),     # lstm bias fused
                pl.BlockSpec((d_in, d_out), lambda i: (0, 0)),     # fc_self
                pl.BlockSpec((d_in, d_out), lambda i: (0, 0)),     # fc_neigh
                pl.BlockSpec((1, d_out), lambda i: (0, 0)),        # layer bias
            ],
            out_specs=pl.BlockSpec((td, d_out), lambda i: (i, 0)),
            scratch_shapes=[pltpu.VMEM((n, 4 * d_in), jnp.float32)],  # hoisted x@W_ih
        ),
        compiler_params=pltpu.CompilerParams(
            dimension_semantics=("parallel",),
            vmem_limit_bytes=_VMEM_LIMIT),
        cost_estimate=pl.CostEstimate(flops=flops, transcendentals=transc,
                                      bytes_accessed=bytes_acc),
    )(x, mask_t, wih, whh, b, ws, wn, bias)


def _aggregate_kernel(adjt_ref, h_ref, out_ref):
    # update_all(copy_u / u_mul_e, sum): out[dst] = sum_src agg[dst, src] * h[src]
    # contracting the src axis of the (src, dst) mask -> no transposed copy needed.
    out_ref[...] = lax.dot_general(
        adjt_ref[...], h_ref[...],
        dimension_numbers=(((0,), (0,)), ((), ())),
        preferred_element_type=jnp.float32)


def aggregate(adj_t, h, *, td):
    n = adj_t.shape[0]
    c = h.shape[1]
    return pl.pallas_call(
        _aggregate_kernel,
        out_shape=jax.ShapeDtypeStruct((n, c), jnp.float32),
        grid_spec=pltpu.PrefetchScalarGridSpec(
            num_scalar_prefetch=0,
            grid=(n // td,),
            in_specs=[pl.BlockSpec((n, td), lambda i: (0, i)),   # agg^T, dst tile
                      pl.BlockSpec((n, c), lambda i: (0, 0))],   # h2 (all src nodes)
            out_specs=pl.BlockSpec((td, c), lambda i: (i, 0)),
        ),
        compiler_params=pltpu.CompilerParams(
            dimension_semantics=("parallel",),
            vmem_limit_bytes=_VMEM_LIMIT),
        cost_estimate=pl.CostEstimate(flops=2 * n * n * c, transcendentals=0,
                                      bytes_accessed=4 * (n * n + 2 * n * c)),
    )(adj_t, h)


def _pad_cols(a, width):
    return jnp.pad(a, ((0, 0), (0, width - a.shape[1])))


def gnn_forward(feat, adj, params, eweight_adj=None):
    n = feat.shape[0]
    num_class = params["ws2"].shape[1]
    td = 128 if n % 128 == 0 else n                   # dst tile (lane-aligned when possible)
    c_pad = max(128, -(-num_class // 128) * 128)      # lane-dense output width

    mask_t = jnp.transpose(adj).astype(jnp.float32)   # (src, dst): the single N^2 input

    h1 = sage_conv_lstm(
        feat.astype(jnp.float32), mask_t,
        params["wih1"], params["whh1"], params["b1"],
        params["ws1"], params["wn1"], params["bias1"],
        apply_relu=True, td=td)

    h2 = sage_conv_lstm(
        h1, mask_t,
        params["wih2"], params["whh2"], params["b2"],
        _pad_cols(params["ws2"], c_pad), _pad_cols(params["wn2"], c_pad),
        _pad_cols(params["bias2"], c_pad),
        apply_relu=False, td=td)

    agg_t = (mask_t if eweight_adj is None
             else jnp.transpose(adj * eweight_adj).astype(jnp.float32))
    out = aggregate(agg_t, h2, td=td)
    return out[:, :num_class]                         # drop zero-padded class lanes


def init_params(key, in_feats, h_feats, num_class):
    ks = jax.random.split(key, 6)

    def lstm_params(k, d):
        k1, k2, k3 = jax.random.split(k, 3)
        wih = 0.2 * jax.random.normal(k1, (d, 4 * d), jnp.float32)  # fused gates [i|f|g|o]
        whh = 0.2 * jax.random.normal(k2, (d, 4 * d), jnp.float32)
        b = 0.1 * jax.random.normal(k3, (1, 4 * d), jnp.float32)    # b_ih + b_hh combined
        return wih, whh, b

    wih1, whh1, b1 = lstm_params(ks[0], in_feats)
    wih2, whh2, b2 = lstm_params(ks[1], h_feats)
    return dict(
        wih1=wih1, whh1=whh1, b1=b1,
        ws1=0.2 * jax.random.normal(ks[2], (in_feats, h_feats), jnp.float32),  # fc_self^T
        wn1=0.2 * jax.random.normal(ks[3], (in_feats, h_feats), jnp.float32),  # fc_neigh^T
        bias1=jnp.zeros((1, h_feats), jnp.float32),                            # DGL bias init = 0
        wih2=wih2, whh2=whh2, b2=b2,
        ws2=0.2 * jax.random.normal(ks[4], (h_feats, num_class), jnp.float32),
        wn2=0.2 * jax.random.normal(ks[5], (h_feats, num_class), jnp.float32),
        bias2=jnp.zeros((1, num_class), jnp.float32),
    )


def gnn_reference(feat, adj, params, eweight_adj=None):
    """Pure-JAX reference with identical semantics (PyTorch gate order [i,f,g,o])."""
    def lstm_agg(x, wih, whh, b):
        n, d = x.shape
        xp = x @ wih + b

        def step(t, carry):
            h, c = carry
            pre = xp[t][None, :] + h @ whh
            i_g = jax.nn.sigmoid(pre[:, 0:d])
            f_g = jax.nn.sigmoid(pre[:, d:2 * d])
            g_g = jnp.tanh(pre[:, 2 * d:3 * d])
            o_g = jax.nn.sigmoid(pre[:, 3 * d:4 * d])
            c_new = f_g * c + i_g * g_g
            h_new = o_g * jnp.tanh(c_new)
            m = adj[:, t][:, None] > 0
            return jnp.where(m, h_new, h), jnp.where(m, c_new, c)

        h, _ = lax.fori_loop(0, n, step, (jnp.zeros((n, d), jnp.float32),
                                          jnp.zeros((n, d), jnp.float32)))
        return h

    n1 = lstm_agg(feat, params["wih1"], params["whh1"], params["b1"])
    h1 = jnp.maximum(feat @ params["ws1"] + n1 @ params["wn1"] + params["bias1"], 0.0)
    n2 = lstm_agg(h1, params["wih2"], params["whh2"], params["b2"])
    h2 = h1 @ params["ws2"] + n2 @ params["wn2"] + params["bias2"]
    agg = adj if eweight_adj is None else adj * eweight_adj
    return agg @ h2


if __name__ == "__main__":
    N, in_feats, h_feats, num_class = 256, 32, 32, 8
    key = jax.random.PRNGKey(0)
    k_feat, k_adj, k_par = jax.random.split(key, 3)

    feat = jax.random.normal(k_feat, (N, in_feats), jnp.float32)
    adj = (jax.random.uniform(k_adj, (N, N)) < 0.1).astype(jnp.float32)
    # guarantee every node has >= 1 in-neighbour (DGL SAGEConv rejects
    # zero-in-degree nodes by default)
    adj = adj.at[jnp.arange(N), (jnp.arange(N) + 1) % N].set(1.0)

    params = init_params(k_par, in_feats, h_feats, num_class)

    out = gnn_forward(feat, adj, params)          # eweight=None path (copy_u + sum)
    out = jax.block_until_ready(out)

    ref = gnn_reference(feat, adj, params)
    assert out.shape == (N, num_class)
    np.testing.assert_allclose(np.asarray(out), np.asarray(ref), rtol=2e-3, atol=2e-3)
    print("KERNEL_OK")
</pallas_src>

<mosaic_0001>
module attributes {stable_mosaic.version = 11 : i64} {
  func.func @kernel(%arg0: i32, %arg1: memref<256x32xf32, #tpu.memory_space<vmem>>, %arg2: memref<256x128xf32, #tpu.memory_space<vmem>>, %arg3: memref<32x128xf32, #tpu.memory_space<vmem>>, %arg4: memref<32x128xf32, #tpu.memory_space<vmem>>, %arg5: memref<1x128xf32, #tpu.memory_space<vmem>>, %arg6: memref<32x32xf32, #tpu.memory_space<vmem>>, %arg7: memref<32x32xf32, #tpu.memory_space<vmem>>, %arg8: memref<1x32xf32, #tpu.memory_space<vmem>>, %arg9: memref<128x32xf32, #tpu.memory_space<vmem>>, %arg10: memref<256x128xf32, #tpu.memory_space<vmem>>) attributes {dimension_semantics = [#tpu.dimension_semantics<parallel>], iteration_bounds = array<i64: 2>, scalar_prefetch = 0 : i64, scratch_operands = 1 : i64, tpu.core_type = #tpu.core_type<tc>, window_params = [{pipeline_mode = #tpu.pipeline_mode<synchronous>, transform_indices = @transform_0, window_bounds = array<i64: 256, 32>}, {transform_indices = @transform_1, window_bounds = array<i64: 256, 128>}, {pipeline_mode = #tpu.pipeline_mode<synchronous>, transform_indices = @transform_2, window_bounds = array<i64: 32, 128>}, {pipeline_mode = #tpu.pipeline_mode<synchronous>, transform_indices = @transform_3, window_bounds = array<i64: 32, 128>}, {pipeline_mode = #tpu.pipeline_mode<synchronous>, transform_indices = @transform_4, window_bounds = array<i64: 1, 128>}, {pipeline_mode = #tpu.pipeline_mode<synchronous>, transform_indices = @transform_5, window_bounds = array<i64: 32, 32>}, {pipeline_mode = #tpu.pipeline_mode<synchronous>, transform_indices = @transform_6, window_bounds = array<i64: 32, 32>}, {pipeline_mode = #tpu.pipeline_mode<synchronous>, transform_indices = @transform_7, window_bounds = array<i64: 1, 32>}, {transform_indices = @transform_8, window_bounds = array<i64: 128, 32>}]} {
    %c0 = arith.constant 0 : index
    %c0_0 = arith.constant 0 : index
    %0 = vector.load %arg1[%c0, %c0_0] : memref<256x32xf32, #tpu.memory_space<vmem>>, vector<256x32xf32>
    %c0_1 = arith.constant 0 : index
    %c0_2 = arith.constant 0 : index
    %1 = vector.load %arg3[%c0_1, %c0_2] : memref<32x128xf32, #tpu.memory_space<vmem>>, vector<32x128xf32>
    %cst = arith.constant dense<0.000000e+00> : vector<256x128xf32>
    %2 = tpu.matmul %0, %1, %cst {dimension_numbers = #tpu.dot_dimension_numbers<[1], [0], [0], [1], [0, 0, 1, 1], [], []>} : vector<256x32xf32>, vector<32x128xf32>, vector<256x128xf32> -> vector<256x128xf32>
    %c0_3 = arith.constant 0 : index
    %c0_4 = arith.constant 0 : index
    %3 = vector.load %arg5[%c0_3, %c0_4] : memref<1x128xf32, #tpu.memory_space<vmem>>, vector<1x128xf32>
    %4 = vector.broadcast %3 : vector<1x128xf32> to vector<256x128xf32>
    %5 = arith.addf %2, %4 : vector<256x128xf32>
    %c0_5 = arith.constant 0 : index
    %c0_6 = arith.constant 0 : index
    %6 = vector.load %arg10[%c0_5, %c0_6] : memref<256x128xf32, #tpu.memory_space<vmem>>, vector<256x128xf32>
    tpu.vector_store %arg10[%c0_5, %c0_6], %5 {strides = array<i32>} : memref<256x128xf32, #tpu.memory_space<vmem>>, vector<256x128xf32>,
    %c0_7 = arith.constant 0 : index
    %c0_8 = arith.constant 0 : index
    %7 = vector.load %arg4[%c0_7, %c0_8] : memref<32x128xf32, #tpu.memory_space<vmem>>, vector<32x128xf32>
    %cst_9 = arith.constant 0.000000e+00 : f32
    %8 = vector.broadcast %cst_9 : f32 to vector<128x32xf32>
    %cst_10 = arith.constant 0.000000e+00 : f32
    %9 = vector.broadcast %cst_10 : f32 to vector<128x32xf32>
    %c0_i32 = arith.constant 0 : i32
    %c32_i32 = arith.constant 32 : i32
    %10 = arith.addi %c0_i32, %c32_i32 : i32
    %c1_i32 = arith.constant 1 : i32
    %11:2 = scf.for %arg11 = %c0_i32 to %10 step %c1_i32 iter_args(%arg12 = %8, %arg13 = %9) -> (vector<128x32xf32>, vector<128x32xf32>)  : i32 {
      %c8_i32 = arith.constant 8 : i32
      %27 = arith.muli %arg11, %c8_i32 : i32
      %28 = tpu.assume_multiple %27, 8 : i32
      %29 = arith.index_cast %28 : i32 to index
      %c0_24 = arith.constant 0 : index
      %30 = vector.load %arg10[%29, %c0_24] : memref<256x128xf32, #tpu.memory_space<vmem>>, vector<8x128xf32>
      %31 = arith.index_cast %28 : i32 to index
      %c0_25 = arith.constant 0 : index
      %32 = vector.load %arg2[%31, %c0_25] : memref<256x128xf32, #tpu.memory_space<vmem>>, vector<8x128xf32>
      %33 = tpu.transpose %32, [1, 0] : vector<8x128xf32> -> vector<128x8xf32>
      %cst_26 = arith.constant 0.000000e+00 : f32
      %34 = vector.broadcast %cst_26 : f32 to vector<128x8xf32>
      %35 = arith.cmpf ogt, %33, %34 : vector<128x8xf32>
      %36 = vector.extract_strided_slice %30 {offsets = [0, 0], sizes = [1, 128], strides = [1, 1]} : vector<8x128xf32> to vector<1x128xf32>
      %cst_27 = arith.constant dense<0.000000e+00> : vector<128x128xf32>
      %37 = tpu.matmul %arg12, %7, %cst_27 {dimension_numbers = #tpu.dot_dimension_numbers<[1], [0], [0], [1], [0, 0, 1, 1], [], []>} : vector<128x32xf32>, vector<32x128xf32>, vector<128x128xf32> -> vector<128x128xf32>
      %38 = vector.broadcast %36 : vector<1x128xf32> to vector<128x128xf32>
      %39 = arith.addf %38, %37 : vector<128x128xf32>
      %40 = vector.extract_strided_slice %39 {offsets = [0, 0], sizes = [128, 96], strides = [1, 1]} : vector<128x128xf32> to vector<128x96xf32>
      %41 = arith.negf %40 : vector<128x96xf32>
      %42 = math.exp %41 : vector<128x96xf32>
      %cst_28 = arith.constant 1.000000e+00 : f32
      %43 = vector.broadcast %cst_28 : f32 to vector<128x96xf32>
      %44 = arith.addf %43, %42 : vector<128x96xf32>
      %45 = arith.divf %43, %44 : vector<128x96xf32>
      %46 = vector.extract_strided_slice %45 {offsets = [0, 0], sizes = [128, 32], strides = [1, 1]} : vector<128x96xf32> to vector<128x32xf32>
      %47 = vector.extract_strided_slice %45 {offsets = [0, 32], sizes = [128, 32], strides = [1, 1]} : vector<128x96xf32> to vector<128x32xf32>
      %48 = vector.extract_strided_slice %45 {offsets = [0, 64], sizes = [128, 32], strides = [1, 1]} : vector<128x96xf32> to vector<128x32xf32>
      %49 = vector.extract_strided_slice %39 {offsets = [0, 96], sizes = [128, 32], strides = [1, 1]} : vector<128x128xf32> to vector<128x32xf32>
      %50 = math.tanh %49 : vector<128x32xf32>
      %51 = arith.mulf %47, %arg13 : vector<128x32xf32>
      %52 = arith.mulf %46, %50 : vector<128x32xf32>
      %53 = arith.addf %51, %52 : vector<128x32xf32>
      %54 = math.tanh %53 : vector<128x32xf32>
      %55 = arith.mulf %48, %54 : vector<128x32xf32>
      %56 = vector.extract_strided_slice %35 {offsets = [0, 0], sizes = [128, 1], strides = [1, 1]} : vector<128x8xi1> to vector<128x1xi1>
      %57 = vector.shape_cast %56 : vector<128x1xi1> to vector<128x1xi1>
      %58 = vector.broadcast %57 : vector<128x1xi1> to vector<128x32xi1>
      %59 = arith.select %58, %55, %arg12 : vector<128x32xi1>, vector<128x32xf32>
      %60 = vector.shape_cast %56 : vector<128x1xi1> to vector<128x1xi1>
      %61 = vector.broadcast %60 : vector<128x1xi1> to vector<128x32xi1>
      %62 = arith.select %61, %53, %arg13 : vector<128x32xi1>, vector<128x32xf32>
      %63 = vector.extract_strided_slice %30 {offsets = [1, 0], sizes = [1, 128], strides = [1, 1]} : vector<8x128xf32> to vector<1x128xf32>
      %cst_29 = arith.constant dense<0.000000e+00> : vector<128x128xf32>
      %64 = tpu.matmul %59, %7, %cst_29 {dimension_numbers = #tpu.dot_dimension_numbers<[1], [0], [0], [1], [0, 0, 1, 1], [], []>} : vector<128x32xf32>, vector<32x128xf32>, vector<128x128xf32> -> vector<128x128xf32>
      %65 = vector.broadcast %63 : vector<1x128xf32> to vector<128x128xf32>
      %66 = arith.addf %65, %64 : vector<128x128xf32>
      %67 = vector.extract_strided_slice %66 {offsets = [0, 0], sizes = [128, 96], strides = [1, 1]} : vector<128x128xf32> to vector<128x96xf32>
      %68 = arith.negf %67 : vector<128x96xf32>
      %69 = math.exp %68 : vector<128x96xf32>
      %cst_30 = arith.constant 1.000000e+00 : f32
      %70 = vector.broadcast %cst_30 : f32 to vector<128x96xf32>
      %71 = arith.addf %70, %69 : vector<128x96xf32>
      %72 = arith.divf %70, %71 : vector<128x96xf32>
      %73 = vector.extract_strided_slice %72 {offsets = [0, 0], sizes = [128, 32], strides = [1, 1]} : vector<128x96xf32> to vector<128x32xf32>
      %74 = vector.extract_strided_slice %72 {offsets = [0, 32], sizes = [128, 32], strides = [1, 1]} : vector<128x96xf32> to vector<128x32xf32>
      %75 = vector.extract_strided_slice %72 {offsets = [0, 64], sizes = [128, 32], strides = [1, 1]} : vector<128x96xf32> to vector<128x32xf32>
      %76 = vector.extract_strided_slice %66 {offsets = [0, 96], sizes = [128, 32], strides = [1, 1]} : vector<128x128xf32> to vector<128x32xf32>
      %77 = math.tanh %76 : vector<128x32xf32>
      %78 = arith.mulf %74, %62 : vector<128x32xf32>
      %79 = arith.mulf %73, %77 : vector<128x32xf32>
      %80 = arith.addf %78, %79 : vector<128x32xf32>
      %81 = math.tanh %80 : vector<128x32xf32>
      %82 = arith.mulf %75, %81 : vector<128x32xf32>
      %83 = vector.extract_strided_slice %35 {offsets = [0, 1], sizes = [128, 1], strides = [1, 1]} : vector<128x8xi1> to vector<128x1xi1>
      %84 = vector.shape_cast %83 : vector<128x1xi1> to vector<128x1xi1>
      %85 = vector.broadcast %84 : vector<128x1xi1> to vector<128x32xi1>
      %86 = arith.select %85, %82, %59 : vector<128x32xi1>, vector<128x32xf32>
      %87 = vector.shape_cast %83 : vector<128x1xi1> to vector<128x1xi1>
      %88 = vector.broadcast %87 : vector<128x1xi1> to vector<128x32xi1>
      %89 = arith.select %88, %80, %62 : vector<128x32xi1>, vector<128x32xf32>
      %90 = vector.extract_strided_slice %30 {offsets = [2, 0], sizes = [1, 128], strides = [1, 1]} : vector<8x128xf32> to vector<1x128xf32>
      %cst_31 = arith.constant dense<0.000000e+00> : vector<128x128xf32>
      %91 = tpu.matmul %86, %7, %cst_31 {dimension_numbers = #tpu.dot_dimension_numbers<[1], [0], [0], [1], [0, 0, 1, 1], [], []>} : vector<128x32xf32>, vector<32x128xf32>, vector<128x128xf32> -> vector<128x128xf32>
      %92 = vector.broadcast %90 : vector<1x128xf32> to vector<128x128xf32>
      %93 = arith.addf %92, %91 : vector<128x128xf32>
      %94 = vector.extract_strided_slice %93 {offsets = [0, 0], sizes = [128, 96], strides = [1, 1]} : vector<128x128xf32> to vector<128x96xf32>
      %95 = arith.negf %94 : vector<128x96xf32>
      %96 = math.exp %95 : vector<128x96xf32>
      %cst_32 = arith.constant 1.000000e+00 : f32
      %97 = vector.broadcast %cst_32 : f32 to vector<128x96xf32>
      %98 = arith.addf %97, %96 : vector<128x96xf32>
      %99 = arith.divf %97, %98 : vector<128x96xf32>
      %100 = vector.extract_strided_slice %99 {offsets = [0, 0], sizes = [128, 32], strides = [1, 1]} : vector<128x96xf32> to vector<128x32xf32>
      %101 = vector.extract_strided_slice %99 {offsets = [0, 32], sizes = [128, 32], strides = [1, 1]} : vector<128x96xf32> to vector<128x32xf32>
      %102 = vector.extract_strided_slice %99 {offsets = [0, 64], sizes = [128, 32], strides = [1, 1]} : vector<128x96xf32> to vector<128x32xf32>
      %103 = vector.extract_strided_slice %93 {offsets = [0, 96], sizes = [128, 32], strides = [1, 1]} : vector<128x128xf32> to vector<128x32xf32>
      %104 = math.tanh %103 : vector<128x32xf32>
      %105 = arith.mulf %101, %89 : vector<128x32xf32>
      %106 = arith.mulf %100, %104 : vector<128x32xf32>
      %107 = arith.addf %105, %106 : vector<128x32xf32>
      %108 = math.tanh %107 : vector<128x32xf32>
      %109 = arith.mulf %102, %108 : vector<128x32xf32>
      %110 = vector.extract_strided_slice %35 {offsets = [0, 2], sizes = [128, 1], strides = [1, 1]} : vector<128x8xi1> to vector<128x1xi1>
      %111 = vector.shape_cast %110 : vector<128x1xi1> to vector<128x1xi1>
      %112 = vector.broadcast %111 : vector<128x1xi1> to vector<128x32xi1>
      %113 = arith.select %112, %109, %86 : vector<128x32xi1>, vector<128x32xf32>
      %114 = vector.shape_cast %110 : vector<128x1xi1> to vector<128x1xi1>
      %115 = vector.broadcast %114 : vector<128x1xi1> to vector<128x32xi1>
      %116 = arith.select %115, %107, %89 : vector<128x32xi1>, vector<128x32xf32>
      %117 = vector.extract_strided_slice %30 {offsets = [3, 0], sizes = [1, 128], strides = [1, 1]} : vector<8x128xf32> to vector<1x128xf32>
      %cst_33 = arith.constant dense<0.000000e+00> : vector<128x128xf32>
      %118 = tpu.matmul %113, %7, %cst_33 {dimension_numbers = #tpu.dot_dimension_numbers<[1], [0], [0], [1], [0, 0, 1, 1], [], []>} : vector<128x32xf32>, vector<32x128xf32>, vector<128x128xf32> -> vector<128x128xf32>
      %119 = vector.broadcast %117 : vector<1x128xf32> to vector<128x128xf32>
      %120 = arith.addf %119, %118 : vector<128x128xf32>
      %121 = vector.extract_strided_slice %120 {offsets = [0, 0], sizes = [128, 96], strides = [1, 1]} : vector<128x128xf32> to vector<128x96xf32>
      %122 = arith.negf %121 : vector<128x96xf32>
      %123 = math.exp %122 : vector<128x96xf32>
      %cst_34 = arith.constant 1.000000e+00 : f32
      %124 = vector.broadcast %cst_34 : f32 to vector<128x96xf32>
      %125 = arith.addf %124, %123 : vector<128x96xf32>
      %126 = arith.divf %124, %125 : vector<128x96xf32>
      %127 = vector.extract_strided_slice %126 {offsets = [0, 0], sizes = [128, 32], strides = [1, 1]} : vector<128x96xf32> to vector<128x32xf32>
      %128 = vector.extract_strided_slice %126 {offsets = [0, 32], sizes = [128, 32], strides = [1, 1]} : vector<128x96xf32> to vector<128x32xf32>
      %129 = vector.extract_strided_slice %126 {offsets = [0, 64], sizes = [128, 32], strides = [1, 1]} : vector<128x96xf32> to vector<128x32xf32>
      %130 = vector.extract_strided_slice %120 {offsets = [0, 96], sizes = [128, 32], strides = [1, 1]} : vector<128x128xf32> to vector<128x32xf32>
      %131 = math.tanh %130 : vector<128x32xf32>
      %132 = arith.mulf %128, %116 : vector<128x32xf32>
      %133 = arith.mulf %127, %131 : vector<128x32xf32>
      %134 = arith.addf %132, %133 : vector<128x32xf32>
      %135 = math.tanh %134 : vector<128x32xf32>
      %136 = arith.mulf %129, %135 : vector<128x32xf32>
      %137 = vector.extract_strided_slice %35 {offsets = [0, 3], sizes = [128, 1], strides = [1, 1]} : vector<128x8xi1> to vector<128x1xi1>
      %138 = vector.shape_cast %137 : vector<128x1xi1> to vector<128x1xi1>
      %139 = vector.broadcast %138 : vector<128x1xi1> to vector<128x32xi1>
      %140 = arith.select %139, %136, %113 : vector<128x32xi1>, vector<128x32xf32>
      %141 = vector.shape_cast %137 : vector<128x1xi1> to vector<128x1xi1>
      %142 = vector.broadcast %141 : vector<128x1xi1> to vector<128x32xi1>
      %143 = arith.select %142, %134, %116 : vector<128x32xi1>, vector<128x32xf32>
      %144 = vector.extract_strided_slice %30 {offsets = [4, 0], sizes = [1, 128], strides = [1, 1]} : vector<8x128xf32> to vector<1x128xf32>
      %cst_35 = arith.constant dense<0.000000e+00> : vector<128x128xf32>
      %145 = tpu.matmul %140, %7, %cst_35 {dimension_numbers = #tpu.dot_dimension_numbers<[1], [0], [0], [1], [0, 0, 1, 1], [], []>} : vector<128x32xf32>, vector<32x128xf32>, vector<128x128xf32> -> vector<128x128xf32>
      %146 = vector.broadcast %144 : vector<1x128xf32> to vector<128x128xf32>
      %147 = arith.addf %146, %145 : vector<128x128xf32>
      %148 = vector.extract_strided_slice %147 {offsets = [0, 0], sizes = [128, 96], strides = [1, 1]} : vector<128x128xf32> to vector<128x96xf32>
      %149 = arith.negf %148 : vector<128x96xf32>
      %150 = math.exp %149 : vector<128x96xf32>
      %cst_36 = arith.constant 1.000000e+00 : f32
      %151 = vector.broadcast %cst_36 : f32 to vector<128x96xf32>
      %152 = arith.addf %151, %150 : vector<128x96xf32>
      %153 = arith.divf %151, %152 : vector<128x96xf32>
      %154 = vector.extract_strided_slice %153 {offsets = [0, 0], sizes = [128, 32], strides = [1, 1]} : vector<128x96xf32> to vector<128x32xf32>
      %155 = vector.extract_strided_slice %153 {offsets = [0, 32], sizes = [128, 32], strides = [1, 1]} : vector<128x96xf32> to vector<128x32xf32>
      %156 = vector.extract_strided_slice %153 {offsets = [0, 64], sizes = [128, 32], strides = [1, 1]} : vector<128x96xf32> to vector<128x32xf32>
      %157 = vector.extract_strided_slice %147 {offsets = [0, 96], sizes = [128, 32], strides = [1, 1]} : vector<128x128xf32> to vector<128x32xf32>
      %158 = math.tanh %157 : vector<128x32xf32>
      %159 = arith.mulf %155, %143 : vector<128x32xf32>
      %160 = arith.mulf %154, %158 : vector<128x32xf32>
      %161 = arith.addf %159, %160 : vector<128x32xf32>
      %162 = math.tanh %161 : vector<128x32xf32>
      %163 = arith.mulf %156, %162 : vector<128x32xf32>
      %164 = vector.extract_strided_slice %35 {offsets = [0, 4], sizes = [128, 1], strides = [1, 1]} : vector<128x8xi1> to vector<128x1xi1>
      %165 = vector.shape_cast %164 : vector<128x1xi1> to vector<128x1xi1>
      %166 = vector.broadcast %165 : vector<128x1xi1> to vector<128x32xi1>
      %167 = arith.select %166, %163, %140 : vector<128x32xi1>, vector<128x32xf32>
      %168 = vector.shape_cast %164 : vector<128x1xi1> to vector<128x1xi1>
      %169 = vector.broadcast %168 : vector<128x1xi1> to vector<128x32xi1>
      %170 = arith.select %169, %161, %143 : vector<128x32xi1>, vector<128x32xf32>
      %171 = vector.extract_strided_slice %30 {offsets = [5, 0], sizes = [1, 128], strides = [1, 1]} : vector<8x128xf32> to vector<1x128xf32>
      %cst_37 = arith.constant dense<0.000000e+00> : vector<128x128xf32>
      %172 = tpu.matmul %167, %7, %cst_37 {dimension_numbers = #tpu.dot_dimension_numbers<[1], [0], [0], [1], [0, 0, 1, 1], [], []>} : vector<128x32xf32>, vector<32x128xf32>, vector<128x128xf32> -> vector<128x128xf32>
      %173 = vector.broadcast %171 : vector<1x128xf32> to vector<128x128xf32>
      %174 = arith.addf %173, %172 : vector<128x128xf32>
      %175 = vector.extract_strided_slice %174 {offsets = [0, 0], sizes = [128, 96], strides = [1, 1]} : vector<128x128xf32> to vector<128x96xf32>
      %176 = arith.negf %175 : vector<128x96xf32>
      %177 = math.exp %176 : vector<128x96xf32>
      %cst_38 = arith.constant 1.000000e+00 : f32
      %178 = vector.broadcast %cst_38 : f32 to vector<128x96xf32>
      %179 = arith.addf %178, %177 : vector<128x96xf32>
      %180 = arith.divf %178, %179 : vector<128x96xf32>
      %181 = vector.extract_strided_slice %180 {offsets = [0, 0], sizes = [128, 32], strides = [1, 1]} : vector<128x96xf32> to vector<128x32xf32>
      %182 = vector.extract_strided_slice %180 {offsets = [0, 32], sizes = [128, 32], strides = [1, 1]} : vector<128x96xf32> to vector<128x32xf32>
      %183 = vector.extract_strided_slice %180 {offsets = [0, 64], sizes = [128, 32], strides = [1, 1]} : vector<128x96xf32> to vector<128x32xf32>
      %184 = vector.extract_strided_slice %174 {offsets = [0, 96], sizes = [128, 32], strides = [1, 1]} : vector<128x128xf32> to vector<128x32xf32>
      %185 = math.tanh %184 : vector<128x32xf32>
      %186 = arith.mulf %182, %170 : vector<128x32xf32>
      %187 = arith.mulf %181, %185 : vector<128x32xf32>
      %188 = arith.addf %186, %187 : vector<128x32xf32>
      %189 = math.tanh %188 : vector<128x32xf32>
      %190 = arith.mulf %183, %189 : vector<128x32xf32>
      %191 = vector.extract_strided_slice %35 {offsets = [0, 5], sizes = [128, 1], strides = [1, 1]} : vector<128x8xi1> to vector<128x1xi1>
      %192 = vector.shape_cast %191 : vector<128x1xi1> to vector<128x1xi1>
      %193 = vector.broadcast %192 : vector<128x1xi1> to vector<128x32xi1>
      %194 = arith.select %193, %190, %167 : vector<128x32xi1>, vector<128x32xf32>
      %195 = vector.shape_cast %191 : vector<128x1xi1> to vector<128x1xi1>
      %196 = vector.broadcast %195 : vector<128x1xi1> to vector<128x32xi1>
      %197 = arith.select %196, %188, %170 : vector<128x32xi1>, vector<128x32xf32>
      %198 = vector.extract_strided_slice %30 {offsets = [6, 0], sizes = [1, 128], strides = [1, 1]} : vector<8x128xf32> to vector<1x128xf32>
      %cst_39 = arith.constant dense<0.000000e+00> : vector<128x128xf32>
      %199 = tpu.matmul %194, %7, %cst_39 {dimension_numbers = #tpu.dot_dimension_numbers<[1], [0], [0], [1], [0, 0, 1, 1], [], []>} : vector<128x32xf32>, vector<32x128xf32>, vector<128x128xf32> -> vector<128x128xf32>
      %200 = vector.broadcast %198 : vector<1x128xf32> to vector<128x128xf32>
      %201 = arith.addf %200, %199 : vector<128x128xf32>
      %202 = vector.extract_strided_slice %201 {offsets = [0, 0], sizes = [128, 96], strides = [1, 1]} : vector<128x128xf32> to vector<128x96xf32>
      %203 = arith.negf %202 : vector<128x96xf32>
      %204 = math.exp %203 : vector<128x96xf32>
      %cst_40 = arith.constant 1.000000e+00 : f32
      %205 = vector.broadcast %cst_40 : f32 to vector<128x96xf32>
      %206 = arith.addf %205, %204 : vector<128x96xf32>
      %207 = arith.divf %205, %206 : vector<128x96xf32>
      %208 = vector.extract_strided_slice %207 {offsets = [0, 0], sizes = [128, 32], strides = [1, 1]} : vector<128x96xf32> to vector<128x32xf32>
      %209 = vector.extract_strided_slice %207 {offsets = [0, 32], sizes = [128, 32], strides = [1, 1]} : vector<128x96xf32> to vector<128x32xf32>
      %210 = vector.extract_strided_slice %207 {offsets = [0, 64], sizes = [128, 32], strides = [1, 1]} : vector<128x96xf32> to vector<128x32xf32>
      %211 = vector.extract_strided_slice %201 {offsets = [0, 96], sizes = [128, 32], strides = [1, 1]} : vector<128x128xf32> to vector<128x32xf32>
      %212 = math.tanh %211 : vector<128x32xf32>
      %213 = arith.mulf %209, %197 : vector<128x32xf32>
      %214 = arith.mulf %208, %212 : vector<128x32xf32>
      %215 = arith.addf %213, %214 : vector<128x32xf32>
      %216 = math.tanh %215 : vector<128x32xf32>
      %217 = arith.mulf %210, %216 : vector<128x32xf32>
      %218 = vector.extract_strided_slice %35 {offsets = [0, 6], sizes = [128, 1], strides = [1, 1]} : vector<128x8xi1> to vector<128x1xi1>
      %219 = vector.shape_cast %218 : vector<128x1xi1> to vector<128x1xi1>
      %220 = vector.broadcast %219 : vector<128x1xi1> to vector<128x32xi1>
      %221 = arith.select %220, %217, %194 : vector<128x32xi1>, vector<128x32xf32>
      %222 = vector.shape_cast %218 : vector<128x1xi1> to vector<128x1xi1>
      %223 = vector.broadcast %222 : vector<128x1xi1> to vector<128x32xi1>
      %224 = arith.select %223, %215, %197 : vector<128x32xi1>, vector<128x32xf32>
      %225 = vector.extract_strided_slice %30 {offsets = [7, 0], sizes = [1, 128], strides = [1, 1]} : vector<8x128xf32> to vector<1x128xf32>
      %cst_41 = arith.constant dense<0.000000e+00> : vector<128x128xf32>
      %226 = tpu.matmul %221, %7, %cst_41 {dimension_numbers = #tpu.dot_dimension_numbers<[1], [0], [0], [1], [0, 0, 1, 1], [], []>} : vector<128x32xf32>, vector<32x128xf32>, vector<128x128xf32> -> vector<128x128xf32>
      %227 = vector.broadcast %225 : vector<1x128xf32> to vector<128x128xf32>
      %228 = arith.addf %227, %226 : vector<128x128xf32>
      %229 = vector.extract_strided_slice %228 {offsets = [0, 0], sizes = [128, 96], strides = [1, 1]} : vector<128x128xf32> to vector<128x96xf32>
      %230 = arith.negf %229 : vector<128x96xf32>
      %231 = math.exp %230 : vector<128x96xf32>
      %cst_42 = arith.constant 1.000000e+00 : f32
      %232 = vector.broadcast %cst_42 : f32 to vector<128x96xf32>
      %233 = arith.addf %232, %231 : vector<128x96xf32>
      %234 = arith.divf %232, %233 : vector<128x96xf32>
      %235 = vector.extract_strided_slice %234 {offsets = [0, 0], sizes = [128, 32], strides = [1, 1]} : vector<128x96xf32> to vector<128x32xf32>
      %236 = vector.extract_strided_slice %234 {offsets = [0, 32], sizes = [128, 32], strides = [1, 1]} : vector<128x96xf32> to vector<128x32xf32>
      %237 = vector.extract_strided_slice %234 {offsets = [0, 64], sizes = [128, 32], strides = [1, 1]} : vector<128x96xf32> to vector<128x32xf32>
      %238 = vector.extract_strided_slice %228 {offsets = [0, 96], sizes = [128, 32], strides = [1, 1]} : vector<128x128xf32> to vector<128x32xf32>
      %239 = math.tanh %238 : vector<128x32xf32>
      %240 = arith.mulf %236, %224 : vector<128x32xf32>
      %241 = arith.mulf %235, %239 : vector<128x32xf32>
      %242 = arith.addf %240, %241 : vector<128x32xf32>
      %243 = math.tanh %242 : vector<128x32xf32>
      %244 = arith.mulf %237, %243 : vector<128x32xf32>
      %245 = vector.extract_strided_slice %35 {offsets = [0, 7], sizes = [128, 1], strides = [1, 1]} : vector<128x8xi1> to vector<128x1xi1>
      %246 = vector.shape_cast %245 : vector<128x1xi1> to vector<128x1xi1>
      %247 = vector.broadcast %246 : vector<128x1xi1> to vector<128x32xi1>
      %248 = arith.select %247, %244, %221 : vector<128x32xi1>, vector<128x32xf32>
      %249 = vector.shape_cast %245 : vector<128x1xi1> to vector<128x1xi1>
      %250 = vector.broadcast %249 : vector<128x1xi1> to vector<128x32xi1>
      %251 = arith.select %250, %242, %224 : vector<128x32xi1>, vector<128x32xf32>
      scf.yield %248, %251 : vector<128x32xf32>, vector<128x32xf32>
    }
    %c32_i32_11 = arith.constant 32 : i32
    %c128_i32 = arith.constant 128 : i32
    %12 = arith.muli %arg0, %c128_i32 : i32
    %13 = tpu.assume_multiple %12, 128 : i32
    %14 = arith.index_cast %13 : i32 to index
    %c0_12 = arith.constant 0 : index
    %15 = vector.load %arg1[%14, %c0_12] : memref<256x32xf32, #tpu.memory_space<vmem>>, vector<128x32xf32>
    %c0_13 = arith.constant 0 : index
    %c0_14 = arith.constant 0 : index
    %16 = vector.load %arg6[%c0_13, %c0_14] : memref<32x32xf32, #tpu.memory_space<vmem>>, vector<32x32xf32>
    %cst_15 = arith.constant dense<0.000000e+00> : vector<128x32xf32>
    %17 = tpu.matmul %15, %16, %cst_15 {dimension_numbers = #tpu.dot_dimension_numbers<[1], [0], [0], [1], [0, 0, 1, 1], [], []>} : vector<128x32xf32>, vector<32x32xf32>, vector<128x32xf32> -> vector<128x32xf32>
    %c0_16 = arith.constant 0 : index
    %c0_17 = arith.constant 0 : index
    %18 = vector.load %arg7[%c0_16, %c0_17] : memref<32x32xf32, #tpu.memory_space<vmem>>, vector<32x32xf32>
    %cst_18 = arith.constant dense<0.000000e+00> : vector<128x32xf32>
    %19 = tpu.matmul %11#0, %18, %cst_18 {dimension_numbers = #tpu.dot_dimension_numbers<[1], [0], [0], [1], [0, 0, 1, 1], [], []>} : vector<128x32xf32>, vector<32x32xf32>, vector<128x32xf32> -> vector<128x32xf32>
    %20 = arith.addf %17, %19 : vector<128x32xf32>
    %c0_19 = arith.constant 0 : index
    %c0_20 = arith.constant 0 : index
    %21 = vector.load %arg8[%c0_19, %c0_20] : memref<1x32xf32, #tpu.memory_space<vmem>>, vector<1x32xf32>
    %22 = vector.broadcast %21 : vector<1x32xf32> to vector<128x32xf32>
    %23 = arith.addf %20, %22 : vector<128x32xf32>
    %cst_21 = arith.constant 0.000000e+00 : f32
    %24 = vector.broadcast %cst_21 : f32 to vector<128x32xf32>
    %25 = arith.maximumf %23, %24 : vector<128x32xf32>
    %c0_22 = arith.constant 0 : index
    %c0_23 = arith.constant 0 : index
    %26 = vector.load %arg9[%c0_22, %c0_23] : memref<128x32xf32, #tpu.memory_space<vmem>>, vector<128x32xf32>
    tpu.vector_store %arg9[%c0_22, %c0_23], %25 {strides = array<i32>} : memref<128x32xf32, #tpu.memory_space<vmem>>, vector<128x32xf32>,
    return
  }
  func.func @transform_0(%arg0: i32) -> (i32, i32) {
    %c0_i32 = arith.constant 0 : i32
    %c0_i32_0 = arith.constant 0 : i32
    %c0_i32_1 = arith.constant 0 : i32
    return %c0_i32, %c0_i32_0 : i32, i32
  }
  func.func @transform_1(%arg0: i32) -> (i32, i32) {
    %c0_i32 = arith.constant 0 : i32
    %c0_i32_0 = arith.constant 0 : i32
    return %c0_i32, %arg0 : i32, i32
  }
  func.func @transform_2(%arg0: i32) -> (i32, i32) {
    %c0_i32 = arith.constant 0 : i32
    %c0_i32_0 = arith.constant 0 : i32
    %c0_i32_1 = arith.constant 0 : i32
    return %c0_i32, %c0_i32_0 : i32, i32
  }
  func.func @transform_3(%arg0: i32) -> (i32, i32) {
    %c0_i32 = arith.constant 0 : i32
    %c0_i32_0 = arith.constant 0 : i32
    %c0_i32_1 = arith.constant 0 : i32
    return %c0_i32, %c0_i32_0 : i32, i32
  }
  func.func @transform_4(%arg0: i32) -> (i32, i32) {
    %c0_i32 = arith.constant 0 : i32
    %c0_i32_0 = arith.constant 0 : i32
    %c0_i32_1 = arith.constant 0 : i32
    return %c0_i32, %c0_i32_0 : i32, i32
  }
  func.func @transform_5(%arg0: i32) -> (i32, i32) {
    %c0_i32 = arith.constant 0 : i32
    %c0_i32_0 = arith.constant 0 : i32
    %c0_i32_1 = arith.constant 0 : i32
    return %c0_i32, %c0_i32_0 : i32, i32
  }
  func.func @transform_6(%arg0: i32) -> (i32, i32) {
    %c0_i32 = arith.constant 0 : i32
    %c0_i32_0 = arith.constant 0 : i32
    %c0_i32_1 = arith.constant 0 : i32
    return %c0_i32, %c0_i32_0 : i32, i32
  }
  func.func @transform_7(%arg0: i32) -> (i32, i32) {
    %c0_i32 = arith.constant 0 : i32
    %c0_i32_0 = arith.constant 0 : i32
    %c0_i32_1 = arith.constant 0 : i32
    return %c0_i32, %c0_i32_0 : i32, i32
  }
  func.func @transform_8(%arg0: i32) -> (i32, i32) {
    %c0_i32 = arith.constant 0 : i32
    %c0_i32_0 = arith.constant 0 : i32
    return %arg0, %c0_i32 : i32, i32
  }
}

</mosaic_0001>

<bundles_post_ra>
// kernel: tpu_custom_call.1
= control target key start
LH: loop header
LB: loop body
LE: loop exit
PB: predicated region body
PF: predicated region fallthrough
CT: control target
= control target key end

     0   :  { %13 = vsyncpa [#allocation4], 0  ;;  %s15405_s0 = inlined_call_operand.vmem [shape: f32[256,32], index: 0, kind: input, shape index: {}]   ;;  %s15406_s1 = inlined_call_operand.hbm [shape: f32[256,256], index: 1, kind: input, shape index: {}]   ;;  %s15407_s2 = inlined_call_operand.vmem [shape: f32[32,128], index: 2, kind: input, shape index: {}]   ;;  %s15408_s3 = inlined_call_operand.vmem [shape: f32[32,128], index: 3, kind: input, shape index: {}]   ;;  %s15409_s4 = inlined_call_operand.vmem [shape: f32[1,128], index: 4, kind: input, shape index: {}]   ;;  %s15410_s5 = inlined_call_operand.vmem [shape: f32[32,32], index: 5, kind: input, shape index: {}]   ;;  %s15411_s6 = inlined_call_operand.vmem [shape: f32[32,32], index: 6, kind: input, shape index: {}]   ;;  %s15412_s7 = inlined_call_operand.vmem [shape: f32[1,32], index: 7, kind: input, shape index: {}]   ;;  %s15413_s8 = inlined_call_operand.vmem [shape: f32[256,32], index: 8, kind: output, shape index: {}]  }
   0x1   :  { %15 = vsyncpa [#allocation4 + $0x1], 0  ;;  %s10115_s27 = smov 0   ;;  %s10117_s28 = smov 0  }
   0x2   :  { %s10119_s29 = smov 0   ;;  %s10121_s30 = smov 0  }
   0x3 LB: > { %s10134_s9 = sadd.s32 4294967295, %s9921_s30   ;;  %s10137_s10 = sadd.s32 1, %s9921_s30   ;;  %s9921_s30 = sphi %s10121_s30, %s16477_s30   ;;  %s9917_s29 = sphi %s10119_s29, %s16476_s29   ;;  %s9913_s28 = sphi %s10117_s28, %s16475_s28   ;;  %s9909_s27 = sphi %s10115_s27, %s16474_s27  }
   0x4   : > { %s46_s11 = ssub.s32 %s9921_s30, %s10137_s10  ;;  %s49_s12 = sadd.s32 1, %s9917_s29 }
   0x5   : > { %p47_p0 = scmp.eq.s32.totalorder %s46_s11, 0  ;;  %p56_p1 = scmp.ne.s32.totalorder %s9917_s29, %s9913_s28 }
   0x6   : > { %p57_p2 = scmp.eq.s32.totalorder %s9921_s30, 0  ;;  %p62_p3 = scmp.ne.s32.totalorder %s9913_s28, %s9909_s27 }
   0x7   : > { %s10147_s13 = scalar_select %p47_p0, %s9917_s29, %s49_s12  }
   0x8   : > { %p58_p4 = por %p57_p2, %p56_p1  ;;  %p63_p5 = scmp.eq.s32.totalorder %s10134_s9, 0 }
   0x9   : > { %p8369_p6 = scmp.lt.s32.totalorder %s9921_s30, 2  ;;  %s259_s15 = sand.u32 1, %s9917_s29  }
   0xa   : > { %p10151_p7 = por %p63_p5, %p62_p3  ;;  %s7311_s16 = sshll.u32 %s259_s15, 8 }
   0xb   : > { %s7312_s17 = sshll.u32 %s9921_s30, 7  ;;  %s263_s21 = scalar_lea.vmem [#allocation3], %s7311_s16 }
   0xc   : > { %s10160_s20 = scalar_lea.hbm %s15406_s1, %s7312_s17  ;;  %s269_s22 = sshll.u32 %s263_s21, 4  ;;  %s10162_s22 = int_to_ptr.vmem [resolvable:$true] %s269_s22 }
   0xd   : > { %p10164_p8 = pnand %p8369_p6, %p58_p4  ;;  %s10168_s24 = scalar_lea.sflag [#allocation4], %s259_s15 }
   0xe   : > { %s9725_s25 = scalar_lea.hbm %s10160_s20, 4096  ;;  %s9730_s11 = scalar_lea.hbm %s15406_s1, 8192 }
   0xf   : > { %p9726_p9 = scmp.ne.s32.totalorder %s10160_s20, %s9725_s25  ;;  %p9727_p10 = pneg %p10164_p8 }
  0x10   : > { %p9731_p13 = scmp.lt.u32.totalorder %s10160_s20, %s15406_s1  ;;  %p9732_p0 = scmp.lt.u32.totalorder %s9730_s11, %s9725_s25 }
  0x11   : > { %p9728_p11 = pnand %p9727_p10, %p9726_p9  ;;  %p9734_p2 = scmp.lt.u32.totalorder %s9725_s25, %s10160_s20 }
  0x12   : > { %p9733_p1 = por %p9732_p0, %p9731_p13 }
  0x13   : > { %p9729_p12 = pneg %p9728_p11 }
  0x14   : > { %p9735_p3 = por %p9734_p2, %p9733_p1 }
  0x16   : > { %p9736_p4 = pnand %p9735_p3, %p9729_p12 }
  0x18   : > { %9739 = shalt.err (!%p9736_p4)
}
  0x19   : > { %s9740_s15 = scalar_lea.vmem %s10162_s22, 4096  ;;  %s10055_s17 = smov [#allocation3]  }
  0x1a   : > { %p9741_p5 = scmp.ne.s32.totalorder %s10162_s22, %s9740_s15  ;;  %s9745_s18 = sshll.u32 %s10055_s17, 4  ;;  %s9746_s18 = int_to_ptr.vmem [resolvable:$false] %s9745_s18 }
  0x1b   : > { %s9747_s19 = scalar_lea.vmem %s9746_s18, 8192  ;;  %p9748_p11 = scmp.lt.s32.totalorder %s10162_s22, %s9746_s18 }
  0x1c   : > { %p9743_p6 = pnand %p9741_p5, %p9727_p10  ;;  %p9749_p13 = scmp.lt.s32.totalorder %s9747_s19, %s9740_s15 }
  0x1e   : > { %p9744_p9 = pneg %p9743_p6  ;;  %p9750_p0 = por %p9749_p13, %p9748_p11 }
  0x20   : > { %p9751_p1 = pnand %p9750_p0, %p9744_p9 }
  0x22   : > { %9754 = shalt.err (!%p9751_p1)
}
  0x23   : > { %s10056_s21 = smov 256   ;;  %s10057_s25 = smov 128  }
  0x24   : > { %s10058_s26 = smov 8   ;;  %p7313_p10 = scmp.ge.s32.totalorder %s9921_s30, 1 }
  0x25   : > { %8368 = dma.hbm_to_vmem [thread:$0]  (!%p10164_p8), %s10160_s20, 4096, %s10162_s22, %s10168_s24, %s10056_s21, %s10057_s25, %s10058_s26  }
  0x26   : > { %p277_p12 = scmp.lt.s32.totalorder %s9921_s30, 3 }
  0x28   : > { %p278_p2 = pnand %p7313_p10, %p277_p12 }
  0x2a   : > { %281 = sbr.rel (%p278_p2) target bundleno = 6552 (0x1998), region = 52 }
  0x31   : > { %s283_s27 = sand.u32 1, %s9913_s28  }
  0x32   : > { %s10199_s11 = sshll.u32 %s283_s27, 8  ;;  %s284_s12 = scalar_lea.sflag [#allocation4], %s283_s27 }
  0x33   : > { %s287_s16 = scalar_lea.vmem [#allocation3], %s10199_s11 }
  0x34   : > { %9904 = dma.done.wait (%p10151_p7), %s284_s12, 4096  }
  0x35   : > { %9906 = vsyncadd (%p10151_p7), %s284_s12, 4294963200  ;;  %s7315_s23 = sshll.u32 %s10134_s9, 4  ;;  %v10215_v0 = vld [vmem:[%s15408_s3] sm:$0xff]  ;;  %v10220_v1 = vld [vmem:[%s15408_s3 + $0x8] sm:$0xff]  ;;  %vm15749_vm0 = vcmask 261120   ;;  %s10473_s20 = smov 0  }
  0x36   : > { %p321_p8 = scmp.lt.s32.totalorder %s7315_s23, 31  ;;  %15752 = vst [vmem:[#allocation6_spill] sm:$0xff] %v10215_v0  ;;  %15753 = vst [vmem:[#allocation7_spill] sm:$0xff] %v10220_v1  ;;  %v10225_v2 = vld [vmem:[%s15408_s3 + $0x10] sm:$0xff]  ;;  %v10230_v3 = vld [vmem:[%s15408_s3 + $0x18] sm:$0xff] }
  0x37   : > { %15754 = vst [vmem:[#allocation8_spill] sm:$0xff] %v10225_v2  ;;  %15755 = vst [vmem:[#allocation9_spill] sm:$0xff] %v10230_v3  ;;  %v358_v4 = vld [vmem:[%s15407_s2] sm:$0xff]  ;;  %v359_v5 = vld [vmem:[%s15407_s2 + $0x8] sm:$0xff] }
  0x38   : > { %s16479_s23 = smov (!%p321_p8, %s7315_s23), 31  ;;  %v8255_v6 = vpack.c.bf16 %v359_v5, %v358_v4  ;;  %v360_v7 = vld [vmem:[%s15407_s2 + $0x10] sm:$0xff]  ;;  %v361_v8 = vld [vmem:[%s15407_s2 + $0x18] sm:$0xff]  ;;  %v326_v9 = vld [vmem:[%s15405_s0] sm:$0xff] }
  0x39   : > { %s7316_s30 = sshll.u32 %s16479_s23, 3  ;;  %v8259_v10 = vpack.c.bf16 %v361_v8, %v360_v7  ;;  %7887 = vmatprep.mubr.msk.f32.mxu0 %vm15749_vm0, %v326_v9  ;;  %v342_v11 = vld [vmem:[%s15405_s0 + $0x80] sm:$0xff]  ;;  %v327_v12 = vld [vmem:[%s15405_s0 + $0x8] sm:$0xff]  ;;  %v328_v14 = vld [vmem:[%s15405_s0 + $0x10] sm:$0xff] }
  0x3a   : > { %s10210_s24 = scalar_lea.vmem %s15413_s8, %s7316_s30  ;;  %8256 = vmatprep.subr.bf16.mxu0 %v8255_v6  ;;  %8343 = vmatprep.subr.bf16.mxu1 %v8255_v6  ;;  %v343_v13 = vld [vmem:[%s15405_s0 + $0x88] sm:$0xff]  ;;  %v344_v15 = vld [vmem:[%s15405_s0 + $0x90] sm:$0xff]  ;;  %v329_v16 = vld [vmem:[%s15405_s0 + $0x18] sm:$0xff] }
  0x3b   : > { %8258 = vmatpush3.bf16.msra.mxu0 %v8255_v6  ;;  %8345 = vmatpush3.bf16.msra.mxu1 %v8255_v6  ;;  %v345_v17 = vld [vmem:[%s15405_s0 + $0x98] sm:$0xff]  ;;  %v330_v18 = vld [vmem:[%s15405_s0 + $0x20] sm:$0xff]  ;;  %v331_v20 = vld [vmem:[%s15405_s0 + $0x28] sm:$0xff] }
  0x3c   : > { %8260 = vmatprep.subr.bf16.mxu0 %v8259_v10  ;;  %8344 = vmatprep.subr.bf16.mxu1 %v8259_v10  ;;  %v346_v19 = vld [vmem:[%s15405_s0 + $0xa0] sm:$0xff]  ;;  %v347_v21 = vld [vmem:[%s15405_s0 + $0xa8] sm:$0xff]  ;;  %v332_v22 = vld [vmem:[%s15405_s0 + $0x30] sm:$0xff] }
  0x3d   : > { %7911 = vmatprep.mubr.msk.f32.mxu1 %vm15749_vm0, %v342_v11  ;;  %v348_v23 = vld [vmem:[%s15405_s0 + $0xb0] sm:$0xff]  ;;  %v333_v24 = vld [vmem:[%s15405_s0 + $0x38] sm:$0xff]  ;;  %v334_v26 = vld [vmem:[%s15405_s0 + $0x40] sm:$0xff] }
  0x3e   : > { %v349_v25 = vld [vmem:[%s15405_s0 + $0xb8] sm:$0xff]  ;;  %v350_v27 = vld [vmem:[%s15405_s0 + $0xc0] sm:$0xff]  ;;  %v335_v28 = vld [vmem:[%s15405_s0 + $0x48] sm:$0xff] }
  0x3f   : > { %8262 = vmatpush3.bf16.msra.mxu0 %v8259_v10  ;;  %8346 = vmatpush3.bf16.msra.mxu1 %v8259_v10  ;;  %v351_v29 = vld [vmem:[%s15405_s0 + $0xc8] sm:$0xff]  ;;  %v336_v30 = vld [vmem:[%s15405_s0 + $0x50] sm:$0xff]  ;;  %v337_v32 = vld [vmem:[%s15405_s0 + $0x58] sm:$0xff] }
  0x40   : > { %v352_v31 = vld [vmem:[%s15405_s0 + $0xd0] sm:$0xff]  ;;  %v353_v33 = vld [vmem:[%s15405_s0 + $0xd8] sm:$0xff]  ;;  %v338_v34 = vld [vmem:[%s15405_s0 + $0x60] sm:$0xff] }
  0x41   : > { %v354_v35 = vld [vmem:[%s15405_s0 + $0xe0] sm:$0xff]  ;;  %v339_v36 = vld [vmem:[%s15405_s0 + $0x68] sm:$0xff]  ;;  %v340_v38 = vld [vmem:[%s15405_s0 + $0x70] sm:$0xff] }
  0x42   : > { %7888 = vmatmul.mubr.msk.f32.vlgmr.msra.gmra.mrb[0].mxu0 %vm15749_vm0, %v327_v12  ;;  %7912 = vmatmul.mubr.msk.f32.vlgmr.msra.gmra.mrb[0].mxu1 %vm15749_vm0, %v343_v13  ;;  %v355_v37 = vld [vmem:[%s15405_s0 + $0xe8] sm:$0xff]  ;;  %v356_v39 = vld [vmem:[%s15405_s0 + $0xf0] sm:$0xff]  ;;  %v341_v40 = vld [vmem:[%s15405_s0 + $0x78] sm:$0xff] }
  0x43   : > { %7890 = vmatprep.mubr.msk.f32.mxu0 %vm15749_vm0, %v328_v14  ;;  %7914 = vmatprep.mubr.msk.f32.mxu1 %vm15749_vm0, %v344_v15  ;;  %v357_v41 = vld [vmem:[%s15405_s0 + $0xf8] sm:$0xff]  ;;  %v10375_v42 = vld [vmem:[%s15409_s4] ss:$0 sm:$0xff] }
  0x46   : > { %7891 = vmatmul.mubr.msk.f32.gmra.mrb[2].mxu0 %vm15749_vm0, %v329_v16  ;;  %7915 = vmatmul.mubr.msk.f32.gmra.mrb[2].mxu1 %vm15749_vm0, %v345_v17 }
  0x47   : > { %7893 = vmatprep.mubr.msk.f32.mxu0 %vm15749_vm0, %v330_v18  ;;  %7917 = vmatprep.mubr.msk.f32.mxu1 %vm15749_vm0, %v346_v19 }
  0x4a   : > { %7894 = vmatmul.mubr.msk.f32.gmra.mrb[4].mxu0 %vm15749_vm0, %v331_v20  ;;  %7918 = vmatmul.mubr.msk.f32.gmra.mrb[4].mxu1 %vm15749_vm0, %v347_v21 }
  0x4b   : > { %7896 = vmatprep.mubr.msk.f32.mxu0 %vm15749_vm0, %v332_v22  ;;  %7920 = vmatprep.mubr.msk.f32.mxu1 %vm15749_vm0, %v348_v23 }
  0x4e   : > { %7897 = vmatmul.mubr.msk.f32.gmra.mrb[6].mxu0 %vm15749_vm0, %v333_v24  ;;  %7921 = vmatmul.mubr.msk.f32.gmra.mrb[6].mxu1 %vm15749_vm0, %v349_v25 }
  0x4f   : > { %7899 = vmatprep.mubr.msk.f32.mxu0 %vm15749_vm0, %v334_v26  ;;  %7923 = vmatprep.mubr.msk.f32.mxu1 %vm15749_vm0, %v350_v27 }
  0x52   : > { %7900 = vmatmul.mubr.msk.f32.gmra.mrb[8].mxu0 %vm15749_vm0, %v335_v28  ;;  %7924 = vmatmul.mubr.msk.f32.gmra.mrb[8].mxu1 %vm15749_vm0, %v351_v29 }
  0x53   : > { %7902 = vmatprep.mubr.msk.f32.mxu0 %vm15749_vm0, %v336_v30  ;;  %7926 = vmatprep.mubr.msk.f32.mxu1 %vm15749_vm0, %v352_v31 }
  0x56   : > { %7903 = vmatmul.mubr.msk.f32.gmra.mrb[10].mxu0 %vm15749_vm0, %v337_v32  ;;  %7927 = vmatmul.mubr.msk.f32.gmra.mrb[10].mxu1 %vm15749_vm0, %v353_v33 }
  0x57   : > { %7905 = vmatprep.mubr.msk.f32.mxu0 %vm15749_vm0, %v338_v34  ;;  %7929 = vmatprep.mubr.msk.f32.mxu1 %vm15749_vm0, %v354_v35 }
  0x5a   : > { %7906 = vmatmul.mubr.msk.f32.gmra.mrb[12].mxu0 %vm15749_vm0, %v339_v36  ;;  %7930 = vmatmul.mubr.msk.f32.gmra.mrb[12].mxu1 %vm15749_vm0, %v355_v37 }
  0x5b   : > { %7908 = vmatprep.mubr.msk.f32.mxu0 %vm15749_vm0, %v340_v38  ;;  %7932 = vmatprep.mubr.msk.f32.mxu1 %vm15749_vm0, %v356_v39 }
  0x5e   : > { %7909 = vmatmul.mubr.msk.f32.gmra.mrb[14].mxu0 %vm15749_vm0, %v341_v40  ;;  %7933 = vmatmul.mubr.msk.f32.gmra.mrb[14].mxu1 %vm15749_vm0, %v357_v41 }
 0x115   : > { %v7889_v43 = vpop.f32.mrb[0].mxu0  ;;  %v7913_v44 = vpop.f32.mrb[0].mxu1 }
 0x116   : > { %v538_v45 = vadd.f32 %v7889_v43, %v10375_v42  ;;  %v618_v46 = vadd.f32 %v7913_v44, %v10375_v42  ;;  %v532_v47 = vpop.f32.mrb[1].mxu0  ;;  %v612_v48 = vpop.f32.mrb[1].mxu1 }
 0x117   : > { %v533_v49 = vadd.f32 %v10375_v42, %v532_v47  ;;  %v613_v50 = vadd.f32 %v10375_v42, %v612_v48  ;;  %v10409_v48 = vmov 0.0  }
 0x118   : > { %692 = vst [vmem:[#allocation2 + $0x8] sm:$0xff] %v538_v45  ;;  %708 = vst [vmem:[#allocation2 + $0x88] sm:$0xff] %v618_v46 }
 0x119   : > { %691 = vst [vmem:[#allocation2] sm:$0xff] %v533_v49  ;;  %707 = vst [vmem:[#allocation2 + $0x80] sm:$0xff] %v613_v50  ;;  %v7892_v51 = vpop.f32.mrb[2].mxu0  ;;  %v7916_v52 = vpop.f32.mrb[2].mxu1  ;;  %v10411_v49 = vmov 0.0   ;;  %v10413_v50 = vmov 0.0  }
 0x11a   : > { %v548_v53 = vadd.f32 %v7892_v51, %v10375_v42  ;;  %v628_v54 = vadd.f32 %v7916_v52, %v10375_v42  ;;  %v542_v55 = vpop.f32.mrb[3].mxu0  ;;  %v622_v56 = vpop.f32.mrb[3].mxu1  ;;  %v10415_v51 = vmov 0.0   ;;  %v10417_v52 = vmov 0.0  }
 0x11b   : > { %v543_v57 = vadd.f32 %v10375_v42, %v542_v55  ;;  %v623_v58 = vadd.f32 %v10375_v42, %v622_v56  ;;  %v10423_v55 = vmov 0.0   ;;  %v10427_v56 = vmov 0.0  }
 0x11c   : > { %694 = vst [vmem:[#allocation2 + $0x18] sm:$0xff] %v548_v53  ;;  %710 = vst [vmem:[#allocation2 + $0x98] sm:$0xff] %v628_v54  ;;  %v10419_v53 = vmov 0.0   ;;  %v10421_v54 = vmov 0.0  }
 0x11d   : > { %693 = vst [vmem:[#allocation2 + $0x10] sm:$0xff] %v543_v57  ;;  %709 = vst [vmem:[#allocation2 + $0x90] sm:$0xff] %v623_v58  ;;  %v7895_v59 = vpop.f32.mrb[4].mxu0  ;;  %v7919_v60 = vpop.f32.mrb[4].mxu1  ;;  %v10429_v57 = vmov 0.0   ;;  %v10431_v58 = vmov 0.0  }
 0x11e   : > { %v558_v61 = vadd.f32 %v7895_v59, %v10375_v42  ;;  %v638_v62 = vadd.f32 %v7919_v60, %v10375_v42  ;;  %v552_v63 = vpop.f32.mrb[5].mxu0  ;;  %v632_v4 = vpop.f32.mrb[5].mxu1  ;;  %v10433_v59 = vmov 0.0   ;;  %v10435_v60 = vmov 0.0  }
 0x11f   : > { %v553_v5 = vadd.f32 %v10375_v42, %v552_v63  ;;  %v633_v6 = vadd.f32 %v10375_v42, %v632_v4  ;;  %v10441_v63 = vmov 0.0   ;;  %v10443_v4 = vmov 0.0  }
 0x120   : > { %696 = vst [vmem:[#allocation2 + $0x28] sm:$0xff] %v558_v61  ;;  %712 = vst [vmem:[#allocation2 + $0xa8] sm:$0xff] %v638_v62  ;;  %v10437_v61 = vmov 0.0   ;;  %v10439_v62 = vmov 0.0  }
 0x121   : > { %695 = vst [vmem:[#allocation2 + $0x20] sm:$0xff] %v553_v5  ;;  %711 = vst [vmem:[#allocation2 + $0xa0] sm:$0xff] %v633_v6  ;;  %v7898_v7 = vpop.f32.mrb[6].mxu0  ;;  %v7922_v8 = vpop.f32.mrb[6].mxu1  ;;  %v10445_v5 = vmov 0.0   ;;  %v10447_v6 = vmov 0.0  }
 0x122   : > { %v568_v9 = vadd.f32 %v7898_v7, %v10375_v42  ;;  %v648_v10 = vadd.f32 %v7922_v8, %v10375_v42  ;;  %v562_v11 = vpop.f32.mrb[7].mxu0  ;;  %v642_v12 = vpop.f32.mrb[7].mxu1  ;;  %v10449_v7 = vmov 0.0   ;;  %v10451_v8 = vmov 0.0  }
 0x123   : > { %v563_v13 = vadd.f32 %v10375_v42, %v562_v11  ;;  %v643_v14 = vadd.f32 %v10375_v42, %v642_v12  ;;  %v10457_v11 = vmov 0.0   ;;  %v10459_v12 = vmov 0.0  }
 0x124   : > { %698 = vst [vmem:[#allocation2 + $0x38] sm:$0xff] %v568_v9  ;;  %714 = vst [vmem:[#allocation2 + $0xb8] sm:$0xff] %v648_v10  ;;  %v10453_v9 = vmov 0.0   ;;  %v10455_v10 = vmov 0.0  }
 0x125   : > { %697 = vst [vmem:[#allocation2 + $0x30] sm:$0xff] %v563_v13  ;;  %713 = vst [vmem:[#allocation2 + $0xb0] sm:$0xff] %v643_v14  ;;  %v7901_v15 = vpop.f32.mrb[8].mxu0  ;;  %v7925_v16 = vpop.f32.mrb[8].mxu1  ;;  %v10461_v13 = vmov 0.0   ;;  %v10463_v14 = vmov 0.0  }
 0x126   : > { %v578_v17 = vadd.f32 %v7901_v15, %v10375_v42  ;;  %v658_v18 = vadd.f32 %v7925_v16, %v10375_v42  ;;  %v572_v19 = vpop.f32.mrb[9].mxu0  ;;  %v652_v20 = vpop.f32.mrb[9].mxu1  ;;  %v10465_v15 = vmov 0.0   ;;  %v10467_v16 = vmov 0.0  }
 0x127   : > { %v573_v21 = vadd.f32 %v10375_v42, %v572_v19  ;;  %v653_v22 = vadd.f32 %v10375_v42, %v652_v20 }
 0x128   : > { %700 = vst [vmem:[#allocation2 + $0x48] sm:$0xff] %v578_v17  ;;  %716 = vst [vmem:[#allocation2 + $0xc8] sm:$0xff] %v658_v18  ;;  %v10469_v17 = vmov 0.0   ;;  %v10471_v18 = vmov 0.0  }
 0x129   : > { %699 = vst [vmem:[#allocation2 + $0x40] sm:$0xff] %v573_v21  ;;  %715 = vst [vmem:[#allocation2 + $0xc0] sm:$0xff] %v653_v22  ;;  %v7904_v23 = vpop.f32.mrb[10].mxu0  ;;  %v7928_v24 = vpop.f32.mrb[10].mxu1 }
 0x12a   : > { %v588_v25 = vadd.f32 %v7904_v23, %v10375_v42  ;;  %v668_v26 = vadd.f32 %v7928_v24, %v10375_v42  ;;  %v582_v27 = vpop.f32.mrb[11].mxu0  ;;  %v662_v28 = vpop.f32.mrb[11].mxu1 }
 0x12b   : > { %v583_v29 = vadd.f32 %v10375_v42, %v582_v27  ;;  %v663_v30 = vadd.f32 %v10375_v42, %v662_v28 }
 0x12c   : > { %702 = vst [vmem:[#allocation2 + $0x58] sm:$0xff] %v588_v25  ;;  %718 = vst [vmem:[#allocation2 + $0xd8] sm:$0xff] %v668_v26 }
 0x12d   : > { %701 = vst [vmem:[#allocation2 + $0x50] sm:$0xff] %v583_v29  ;;  %717 = vst [vmem:[#allocation2 + $0xd0] sm:$0xff] %v663_v30  ;;  %v7907_v31 = vpop.f32.mrb[12].mxu0  ;;  %v7931_v32 = vpop.f32.mrb[12].mxu1 }
 0x12e   : > { %v598_v33 = vadd.f32 %v7907_v31, %v10375_v42  ;;  %v678_v34 = vadd.f32 %v7931_v32, %v10375_v42  ;;  %v592_v35 = vpop.f32.mrb[13].mxu0  ;;  %v672_v36 = vpop.f32.mrb[13].mxu1 }
 0x12f   : > { %v593_v37 = vadd.f32 %v10375_v42, %v592_v35  ;;  %v673_v38 = vadd.f32 %v10375_v42, %v672_v36 }
 0x130   : > { %704 = vst [vmem:[#allocation2 + $0x68] sm:$0xff] %v598_v33  ;;  %720 = vst [vmem:[#allocation2 + $0xe8] sm:$0xff] %v678_v34 }
 0x131   : > { %703 = vst [vmem:[#allocation2 + $0x60] sm:$0xff] %v593_v37  ;;  %719 = vst [vmem:[#allocation2 + $0xe0] sm:$0xff] %v673_v38  ;;  %v7910_v39 = vpop.f32.mrb[14].mxu0  ;;  %v7934_v40 = vpop.f32.mrb[14].mxu1 }
 0x132   : > { %v608_v41 = vadd.f32 %v7910_v39, %v10375_v42  ;;  %v688_v43 = vadd.f32 %v7934_v40, %v10375_v42  ;;  %v602_v44 = vpop.f32.mrb[15].mxu0  ;;  %v682_v45 = vpop.f32.mrb[15].mxu1 }
 0x133   : > { %v603_v46 = vadd.f32 %v10375_v42, %v602_v44  ;;  %v683_v47 = vadd.f32 %v10375_v42, %v682_v45  ;;  %v10425_v42 = vmov 0.0  }
 0x134   : > { %706 = vst [vmem:[#allocation2 + $0x78] sm:$0xff] %v608_v41  ;;  %722 = vst [vmem:[#allocation2 + $0xf8] sm:$0xff] %v688_v43 }
 0x135   : > { %705 = vst [vmem:[#allocation2 + $0x70] sm:$0xff] %v603_v46  ;;  %721 = vst [vmem:[#allocation2 + $0xf0] sm:$0xff] %v683_v47 }
 0x136 LB: >> { %15756 = vst [vmem:[#allocation10_spill] sm:$0xff] %v9925_v48  ;;  %15757 = vst [vmem:[#allocation11_spill] sm:$0xff] %v9929_v49  ;;  %s10059_s22 = smov 64   ;;  %v15770_v0 = vld [vmem:[#allocation6_spill] sm:$0xff]  ;;  %v15771_v1 = vld [vmem:[#allocation7_spill] sm:$0xff]  ;;  %vm15776_vm0 = vcmask 261120   ;;  %v1043_v37 = vlaneseq  ;;  %s10053_s20 = sphi %s10473_s20, %s16427_s20   ;;  %v10049_v18 = vphi %v10471_v18, %v16426_v18   ;;  %v10045_v17 = vphi %v10469_v17, %v16425_v17   ;;  %v10041_v16 = vphi %v10467_v16, %v16424_v16   ;;  %v10037_v15 = vphi %v10465_v15, %v16423_v15   ;;  %v10033_v14 = vphi %v10463_v14, %v16422_v14   ;;  %v10029_v13 = vphi %v10461_v13, %v16421_v13   ;;  %v10025_v12 = vphi %v10459_v12, %v16420_v12   ;;  %v10021_v11 = vphi %v10457_v11, %v16419_v11   ;;  %v10017_v10 = vphi %v10455_v10, %v16418_v10   ;;  %v10013_v9 = vphi %v10453_v9, %v16417_v9   ;;  %v10009_v8 = vphi %v10451_v8, %v16416_v8   ;;  %v10005_v7 = vphi %v10449_v7, %v16415_v7   ;;  %v10001_v6 = vphi %v10447_v6, %v16414_v6   ;;  %v9997_v5 = vphi %v10445_v5, %v16413_v5   ;;  %v9993_v4 = vphi %v10443_v4, %v16412_v4   ;;  %v9989_v63 = vphi %v10441_v63, %v16411_v63   ;;  %v9985_v62 = vphi %v10439_v62, %v16410_v62   ;;  %v9981_v61 = vphi %v10437_v61, %v16409_v61   ;;  %v9977_v60 = vphi %v10435_v60, %v16408_v60   ;;  %v9973_v59 = vphi %v10433_v59, %v16407_v59   ;;  %v9969_v58 = vphi %v10431_v58, %v16406_v58   ;;  %v9965_v57 = vphi %v10429_v57, %v16405_v57   ;;  %v9961_v56 = vphi %v10427_v56, %v16404_v56   ;;  %v9957_v42 = vphi %v10425_v42, %v16403_v42   ;;  %v9953_v55 = vphi %v10423_v55, %v16402_v55   ;;  %v9949_v54 = vphi %v10421_v54, %v16401_v54   ;;  %v9945_v53 = vphi %v10419_v53, %v16400_v53   ;;  %v9941_v52 = vphi %v10417_v52, %v16399_v52   ;;  %v9937_v51 = vphi %v10415_v51, %v16398_v51   ;;  %v9933_v50 = vphi %v10413_v50, %v6631_v50   ;;  %v9929_v49 = vphi %v10411_v49, %v16397_v49   ;;  %v9925_v48 = vphi %v10409_v48, %v16396_v48  }
 0x137   : >> { %15758 = vst [vmem:[#allocation12_spill] sm:$0xff] %v9933_v50  ;;  %15759 = vst [vmem:[#allocation13_spill] sm:$0xff] %v9937_v51  ;;  %834 = vrot.lane.b32.xlu0 %v10049_v18, %s10059_s22  ;;  %838 = vrot.lane.b32.xlu1 %v10041_v16, %s10059_s22  ;;  %v10584_v19 = vpack.c.bf16 %v15771_v1, %v15770_v0  ;;  %v15773_v2 = vld [vmem:[#allocation8_spill] sm:$0xff]  ;;  %v15774_v3 = vld [vmem:[#allocation9_spill] sm:$0xff]  ;;  %s7350_s15 = sshll.u32 %s10053_s20, 3  ;;  %s10060_s18 = smov 32  }
 0x138   : >> { %15760 = vst [vmem:[#allocation14_spill] sm:$0xff] %v9941_v52  ;;  %15761 = vst [vmem:[#allocation15_spill] sm:$0xff] %v9945_v53  ;;  %v10588_v20 = vpack.c.bf16 %v15774_v3, %v15773_v2  ;;  %v10645_v38 = vshrl.u32 %v1043_v37, 7  ;;  %s10650_s17 = scalar_lea.vmem [#allocation2], %s7350_s15  ;;  %s768_s19 = scalar_lea.vmem %s287_s16, %s7350_s15 [#allocation3] }
 0x139   : >> { %15762 = vst [vmem:[#allocation16_spill] sm:$0xff] %v9949_v54  ;;  %15763 = vst [vmem:[#allocation17_spill] sm:$0xff] %v9953_v55  ;;  %8264 = vmatprep.subr.bf16.mxu0 %v10584_v19  ;;  %8272 = vmatprep.subr.bf16.mxu1 %v10584_v19  ;;  %s732_s14 = sadd.s32 1, %s10053_s20  }
 0x13a   : >> { %15764 = vst [vmem:[#allocation18_spill] sm:$0xff] %v9957_v42  ;;  %15765 = vst [vmem:[#allocation19_spill] sm:$0xff] %v9961_v56  ;;  %8266 = vmatpush3.bf16.msra.mxu0 %v10584_v19  ;;  %8274 = vmatpush3.bf16.msra.mxu1 %v10584_v19  ;;  %v1045_v39 = vsub.s32 0, %v10645_v38  ;;  %p15115_p7 = scmp.ge.s32.totalorder %s732_s14, 32   ;;  %s16427_s20 = smov %s732_s14 }
 0x13b   : >> { %15766 = vst [vmem:[#allocation20_spill] sm:$0xff] %v9965_v57  ;;  %15767 = vst [vmem:[#allocation21_spill] sm:$0xff] %v9969_v58  ;;  %836 = vrot.lane.b32.xlu0 %v10045_v17, %s10059_s22  ;;  %840 = vrot.lane.b32.xlu1 %v10037_v15, %s10059_s22  ;;  %s10069_s15 = smov (%p15115_p7), 64  }
 0x13c   : >> { %15768 = vst [vmem:[#allocation22_spill] sm:$0xff] %v9981_v61  ;;  %15769 = vst [vmem:[#allocation23_spill] sm:$0xff] %v9989_v63  ;;  %8268 = vmatprep.subr.bf16.mxu0 %v10588_v20  ;;  %8276 = vmatprep.subr.bf16.mxu1 %v10588_v20  ;;  %v767_v40 = vld [vmem:[%s10650_s17] sm:$0xff] }
 0x13d   : >> { %15772 = vst [vmem:[#allocation24_spill] sm:$0xff] %v10584_v19  ;;  %15775 = vst [vmem:[#allocation25_spill] sm:$0xff] %v10588_v20  ;;  %v10653_v41 = vrot.slane %v767_v40, %v1045_v39 }
 0x13e   : >> { %8270 = vmatpush3.bf16.msra.mxu0 %v10588_v20  ;;  %8278 = vmatpush3.bf16.msra.mxu1 %v10588_v20  ;;  %15777 = vst [vmem:[#allocation26_spill] sm:$0xff] %v10645_v38 }
 0x13f   : >> { %842 = vrot.lane.b32.xlu0 %v10033_v14, %s10059_s22  ;;  %844 = vrot.lane.b32.xlu1 %v10029_v13, %s10059_s22 }
 0x140   : >> { %8280 = vmatprep.subr.bf16.mxu0 %v10584_v19  ;;  %8288 = vmatprep.subr.bf16.mxu1 %v10584_v19 }
 0x143   : >> { %846 = vrot.lane.b32.xlu0 %v10025_v12, %s10059_s22  ;;  %848 = vrot.lane.b32.xlu1 %v10021_v11, %s10059_s22 }
 0x147   : >> { %850 = vrot.lane.b32.xlu0 %v10017_v10, %s10059_s22  ;;  %852 = vrot.lane.b32.xlu1 %v10013_v9, %s10059_s22 }
 0x14b   : >> { %854 = vrot.lane.b32.xlu0 %v10009_v8, %s10059_s22  ;;  %856 = vrot.lane.b32.xlu1 %v10005_v7, %s10059_s22 }
 0x14f   : >> { %858 = vrot.lane.b32.xlu0 %v10001_v6, %s10059_s22  ;;  %860 = vrot.lane.b32.xlu1 %v9997_v5, %s10059_s22 }
 0x153   : >> { %862 = vrot.lane.b32.xlu0 %v9993_v4, %s10059_s22  ;;  %864 = vrot.lane.b32.xlu1 %v9989_v63, %s10059_s22 }
 0x1a9   : >> { %v835_v21 = vpop.permute.xlu0 %834  ;;  %v839_v22 = vpop.permute.xlu1 %838 }
 0x1aa   : >> { %7943 = vmatprep.mubr.msk.f32.mxu0 %vm15776_vm0, %v835_v21 }
 0x1ad   : >> { %v837_v23 = vpop.permute.xlu0 %836  ;;  %v841_v24 = vpop.permute.xlu1 %840 }
 0x1ae   : >> { %7944 = vmatmul.mubr.msk.f32.vlgmr.msra.gmra.mrb[0].mxu0 %vm15776_vm0, %v837_v23 }
 0x1af   : >> { %7946 = vmatprep.mubr.msk.f32.mxu0 %vm15776_vm0, %v839_v22  ;;  %8282 = vmatpush3.bf16.msra.mxu0 %v10584_v19 }
 0x1b0   : >> { %8284 = vmatprep.subr.bf16.mxu0 %v10588_v20 }
 0x1b1   : >> { %v843_v25 = vpop.permute.xlu0 %842  ;;  %v845_v26 = vpop.permute.xlu1 %844 }
 0x1b2   : >> { %7947 = vmatmul.mubr.msk.f32.gmra.mrb[2].mxu0 %vm15776_vm0, %v841_v24 }
 0x1b3   : >> { %7949 = vmatprep.mubr.msk.f32.mxu0 %vm15776_vm0, %v843_v25  ;;  %8286 = vmatpush3.bf16.msra.mxu0 %v10588_v20 }
 0x1b4   : >> { %8296 = vmatprep.subr.bf16.mxu0 %v10584_v19 }
 0x1b5   : >> { %v847_v27 = vpop.permute.xlu0 %846  ;;  %v849_v28 = vpop.permute.xlu1 %848 }
 0x1b6   : >> { %7950 = vmatmul.mubr.msk.f32.gmra.mrb[4].mxu0 %vm15776_vm0, %v845_v26 }
 0x1b7   : >> { %7952 = vmatprep.mubr.msk.f32.mxu0 %vm15776_vm0, %v847_v27 }
 0x1b9   : >> { %v851_v29 = vpop.permute.xlu0 %850  ;;  %v853_v30 = vpop.permute.xlu1 %852 }
 0x1ba   : >> { %7953 = vmatmul.mubr.msk.f32.gmra.mrb[6].mxu0 %vm15776_vm0, %v849_v28 }
 0x1bb   : >> { %7955 = vmatprep.mubr.msk.f32.mxu0 %vm15776_vm0, %v851_v29 }
 0x1bd   : >> { %v855_v31 = vpop.permute.xlu0 %854  ;;  %v857_v32 = vpop.permute.xlu1 %856 }
 0x1be   : >> { %7956 = vmatmul.mubr.msk.f32.gmra.mrb[8].mxu0 %vm15776_vm0, %v853_v30 }
 0x1bf   : >> { %7958 = vmatprep.mubr.msk.f32.mxu0 %vm15776_vm0, %v855_v31 }
 0x1c1   : >> { %v859_v33 = vpop.permute.xlu0 %858  ;;  %v861_v34 = vpop.permute.xlu1 %860 }
 0x1c2   : >> { %7959 = vmatmul.mubr.msk.f32.gmra.mrb[10].mxu0 %vm15776_vm0, %v857_v32 }
 0x1c3   : >> { %7961 = vmatprep.mubr.msk.f32.mxu0 %vm15776_vm0, %v859_v33 }
 0x1c5   : >> { %v863_v35 = vpop.permute.xlu0 %862  ;;  %v865_v36 = vpop.permute.xlu1 %864 }
 0x1c6   : >> { %7962 = vmatmul.mubr.msk.f32.gmra.mrb[12].mxu0 %vm15776_vm0, %v861_v34 }
 0x1c7   : >> { %7964 = vmatprep.mubr.msk.f32.mxu0 %vm15776_vm0, %v863_v35 }
 0x1ca   : >> { %7965 = vmatmul.mubr.msk.f32.gmra.mrb[14].mxu0 %vm15776_vm0, %v865_v36 }
 0x281   : >> { %v7945_v43 = vpop.f32.mrb[0].mxu0 }
 0x282   : >> { %v10656_v44 = vadd.f32 %v7945_v43, %v10653_v41  ;;  %v964_v45 = vpop.f32.mrb[1].mxu0 }
 0x283   : >> { %v10659_v46 = vadd.f32 %v10653_v41, %v964_v45 }
 0x284   : >> { %8697 = vtanh.f32 %v10656_v44 }
 0x285   : >> { %8699 = vtanh.f32 %v10659_v46  ;;  %v7948_v47 = vpop.f32.mrb[2].mxu0 }
 0x286   : >> { %v10664_v21 = vadd.f32 %v7948_v47, %v10653_v41  ;;  %v974_v22 = vpop.f32.mrb[3].mxu0 }
 0x287   : >> { %v10667_v23 = vadd.f32 %v10653_v41, %v974_v22 }
 0x288   : >> { %8701 = vtanh.f32 %v10664_v21 }
 0x289   : >> { %8703 = vtanh.f32 %v10667_v23  ;;  %v7951_v24 = vpop.f32.mrb[4].mxu0 }
 0x28a   : >> { %v10672_v25 = vadd.f32 %v7951_v24, %v10653_v41  ;;  %v984_v26 = vpop.f32.mrb[5].mxu0 }
 0x28b   : >> { %v10675_v27 = vadd.f32 %v10653_v41, %v984_v26 }
 0x28c   : >> { %8705 = vtanh.f32 %v10672_v25 }
 0x28d   : >> { %8707 = vtanh.f32 %v10675_v27  ;;  %v7954_v28 = vpop.f32.mrb[6].mxu0 }
 0x28e   : >> { %v8698_v29 = vpop.eup %8697  ;;  %v10680_v30 = vadd.f32 %v7954_v28, %v10653_v41  ;;  %v994_v31 = vpop.f32.mrb[7].mxu0 }
 0x28f   : >> { %v8700_v32 = vpop.eup %8699  ;;  %v10683_v33 = vadd.f32 %v10653_v41, %v994_v31  ;;  %1209 = vrot.lane.b32.xlu1 %v8698_v29, %s10060_s18 }
 0x290   : >> { %8709 = vtanh.f32 %v10680_v30  ;;  %1207 = vrot.lane.b32.xlu0 %v8700_v32, %s10060_s18 }
 0x291   : >> { %8711 = vtanh.f32 %v10683_v33  ;;  %v7957_v34 = vpop.f32.mrb[8].mxu0 }
 0x292   : >> { %v8702_v35 = vpop.eup %8701  ;;  %v1004_v36 = vpop.f32.mrb[9].mxu0  ;;  %v10692_v39 = vadd.f32 %v7957_v34, %v10653_v41 }
 0x293   : >> { %v8704_v37 = vpop.eup %8703  ;;  %1213 = vrot.lane.b32.xlu1 %v8702_v35, %s10060_s18  ;;  %v10698_v22 = vadd.f32 %v10653_v41, %v1004_v36 }
 0x294   : >> { %1211 = vrot.lane.b32.xlu0 %v8704_v37, %s10060_s18  ;;  %8713 = vtanh.f32 %v10692_v39 }
 0x295   : >> { %v7960_v40 = vpop.f32.mrb[10].mxu0  ;;  %8715 = vtanh.f32 %v10698_v22 }
 0x296   : >> { %v8706_v43 = vpop.eup %8705  ;;  %v1014_v45 = vpop.f32.mrb[11].mxu0  ;;  %v10702_v31 = vadd.f32 %v7960_v40, %v10653_v41 }
 0x297   : >> { %v8708_v47 = vpop.eup %8707  ;;  %1217 = vrot.lane.b32.xlu1 %v8706_v43, %s10060_s18  ;;  %v10708_v35 = vadd.f32 %v10653_v41, %v1014_v45 }
 0x298   : >> { %1215 = vrot.lane.b32.xlu0 %v8708_v47, %s10060_s18  ;;  %8717 = vtanh.f32 %v10702_v31 }
 0x299   : >> { %v7963_v24 = vpop.f32.mrb[12].mxu0  ;;  %8719 = vtanh.f32 %v10708_v35 }
 0x29a   : >> { %v8710_v26 = vpop.eup %8709  ;;  %v1024_v28 = vpop.f32.mrb[13].mxu0  ;;  %v10711_v36 = vadd.f32 %v7963_v24, %v10653_v41 }
 0x29b   : >> { %v8712_v29 = vpop.eup %8711  ;;  %1221 = vrot.lane.b32.xlu1 %v8710_v26, %s10060_s18  ;;  %v10716_v40 = vadd.f32 %v10653_v41, %v1024_v28 }
 0x29c   : >> { %1219 = vrot.lane.b32.xlu0 %v8712_v29, %s10060_s18  ;;  %8721 = vtanh.f32 %v10711_v36 }
 0x29d   : >> { %v7966_v32 = vpop.f32.mrb[14].mxu0  ;;  %8723 = vtanh.f32 %v10716_v40 }
 0x29e   : >> { %v1034_v34 = vpop.f32.mrb[15].mxu0  ;;  %v8714_v37 = vpop.eup %8713  ;;  %v10720_v47 = vadd.f32 %v7966_v32, %v10653_v41 }
 0x29f   : >> { %1225 = vrot.lane.b32.xlu1 %v8714_v37, %s10060_s18  ;;  %v8716_v43 = vpop.eup %8715  ;;  %v10725_v24 = vadd.f32 %v10653_v41, %v1034_v34  ;;  %v7368_v34 = vmul.f32 -1.442695, %v10656_v44  ;;  %v7367_v37 = vmul.f32 -1.442695, %v10659_v46  ;;  %v7373_v44 = vmul.f32 -1.442695, %v10683_v33 }
 0x2a0   : >> { %1223 = vrot.lane.b32.xlu0 %v8716_v43, %s10060_s18  ;;  %8725 = vtanh.f32 %v10720_v47  ;;  %v7370_v43 = vmul.f32 -1.442695, %v10664_v21 }
 0x2a1   : >> { %8727 = vtanh.f32 %v10725_v24 }
 0x2a2   : >> { %v8718_v45 = vpop.eup %8717  ;;  %8729 = vpow2.f32 %v7368_v34 }
 0x2a3   : >> { %1229 = vrot.lane.b32.xlu1 %v8718_v45, %s10060_s18  ;;  %v8720_v26 = vpop.eup %8719  ;;  %8731 = vpow2.f32 %v7367_v37  ;;  %v7369_v45 = vmul.f32 -1.442695, %v10667_v23  ;;  %v7376_v37 = vmul.f32 -1.442695, %v10692_v39 }
 0x2a4   : >> { %1227 = vrot.lane.b32.xlu0 %v8720_v26, %s10060_s18  ;;  %8733 = vpow2.f32 %v7370_v43  ;;  %v7372_v26 = vmul.f32 -1.442695, %v10672_v25 }
 0x2a5   : >> { %8735 = vpow2.f32 %v7369_v45 }
 0x2a6   : >> { %v8722_v28 = vpop.eup %8721  ;;  %8737 = vpow2.f32 %v7372_v26 }
 0x2a7   : >> { %1233 = vrot.lane.b32.xlu1 %v8722_v28, %s10060_s18  ;;  %v8724_v29 = vpop.eup %8723  ;;  %v7371_v28 = vmul.f32 -1.442695, %v10675_v27 }
 0x2a8   : >> { %1231 = vrot.lane.b32.xlu0 %v8724_v29, %s10060_s18  ;;  %v7374_v29 = vmul.f32 -1.442695, %v10680_v30  ;;  %v7375_v30 = vmul.f32 -1.442695, %v10698_v22  ;;  %v7377_v22 = vmul.f32 -1.442695, %v10708_v35 }
 0x2a9   : >> { %8739 = vpow2.f32 %v7371_v28 }
 0x2aa   : >> { %v8726_v32 = vpop.eup %8725  ;;  %8741 = vpow2.f32 %v7374_v29 }
 0x2ab   : >> { %1237 = vrot.lane.b32.xlu1 %v8726_v32, %s10060_s18  ;;  %v8728_v41 = vpop.eup %8727  ;;  %8743 = vpow2.f32 %v7373_v44  ;;  %v7378_v44 = vmul.f32 -1.442695, %v10702_v31  ;;  %v7380_v31 = vmul.f32 -1.442695, %v10711_v36 }
 0x2ac   : >> { %1235 = vrot.lane.b32.xlu0 %v8728_v41, %s10060_s18  ;;  %v8730_v32 = vpop.eup %8729 }
 0x2ad   : >> { %v8732_v46 = vpop.eup %8731  ;;  %v1112_v41 = vadd.f32 1.0, %v8730_v32 }
 0x2ae   : >> { %v8734_v21 = vpop.eup %8733  ;;  %v1111_v34 = vadd.f32 1.0, %v8732_v46 }
 0x2af   : >> { %v8736_v23 = vpop.eup %8735  ;;  %8745 = vrcp.f32 %v1112_v41  ;;  %v1114_v25 = vadd.f32 1.0, %v8734_v21 }
 0x2b0   : >> { %v8738_v43 = vpop.eup %8737  ;;  %8747 = vrcp.f32 %v1111_v34  ;;  %v1113_v27 = vadd.f32 1.0, %v8736_v23 }
 0x2b1   : >> { %8749 = vpow2.f32 %v7376_v37  ;;  %v1116_v33 = vadd.f32 1.0, %v8738_v43 }
 0x2b2   : >> { %8751 = vrcp.f32 %v1114_v25 }
 0x2b3   : >> { %v8740_v45 = vpop.eup %8739  ;;  %8753 = vrcp.f32 %v1113_v27 }
 0x2b4   : >> { %v8742_v26 = vpop.eup %8741  ;;  %v1115_v28 = vadd.f32 1.0, %v8740_v45  ;;  %8755 = vpow2.f32 %v7375_v30 }
 0x2b5   : >> { %v8744_v29 = vpop.eup %8743  ;;  %8757 = vrcp.f32 %v1116_v33  ;;  %v1118_v39 = vadd.f32 1.0, %v8742_v26  ;;  %v7379_v33 = vmul.f32 -1.442695, %v10716_v40 }
 0x2b6   : >> { %8759 = vrcp.f32 %v1115_v28  ;;  %v1117_v32 = vadd.f32 1.0, %v8744_v29 }
 0x2b7   : >> { %8761 = vpow2.f32 %v7378_v44 }
 0x2b8   : >> { %8763 = vrcp.f32 %v1118_v39 }
 0x2b9   : >> { %v10746_v46 = vpop.eup %8745  ;;  %8765 = vrcp.f32 %v1117_v32 }
 0x2ba   : >> { %v10748_v21 = vpop.eup %8747  ;;  %8767 = vpow2.f32 %v7377_v22 }
 0x2bb   : >> { %v8750_v25 = vpop.eup %8749  ;;  %8769 = vpow2.f32 %v7380_v31 }
 0x2bc   : >> { %v10755_v43 = vpop.eup %8751  ;;  %v1120_v29 = vadd.f32 1.0, %v8750_v25  ;;  %8771 = vpow2.f32 %v7379_v33 }
 0x2bd   : >> { %v10758_v45 = vpop.eup %8753 }
 0x2be   : >> { %v8756_v28 = vpop.eup %8755  ;;  %8773 = vrcp.f32 %v1120_v29 }
 0x2bf   : >> { %v10764_v36 = vpop.eup %8757 }
 0x2c0   : >> { %v10767_v39 = vpop.eup %8759 }
 0x2c1   : >> { %v8762_v22 = vpop.eup %8761 }
 0x301   : >> { %v1210_v41 = vpop.permute.xlu1 %1209 }
 0x302   : >> { %v1256_v34 = vmul.f32 %v10746_v46, %v1210_v41  ;;  %v1208_v23 = vpop.permute.xlu0 %1207 }
 0x303   : >> { %v1255_v37 = vmul.f32 %v10748_v21, %v1208_v23  ;;  %v10772_v23 = vpop.eup %8763 }
 0x304   : >> { %1289 = vrot.lane.b32.xlu1 %v1256_v34, %s10060_s18  ;;  %v1119_v34 = vadd.f32 1.0, %v8756_v28  ;;  %v10775_v25 = vpop.eup %8765 }
 0x305   : >> { %1287 = vrot.lane.b32.xlu0 %v1255_v37, %s10060_s18  ;;  %v1214_v27 = vpop.permute.xlu1 %1213  ;;  %v8768_v33 = vpop.eup %8767 }
 0x306   : >> { %v1258_v35 = vmul.f32 %v10755_v43, %v1214_v27  ;;  %v1212_v30 = vpop.permute.xlu0 %1211  ;;  %8775 = vrcp.f32 %v1119_v34  ;;  %v1121_v28 = vadd.f32 1.0, %v8768_v33  ;;  %v15447_v33 = vmov 0  }
 0x307   : >> { %v1257_v26 = vmul.f32 %v10758_v45, %v1212_v30  ;;  %8681 = vset.pattern.permute.xlu1 %v15447_v33 }
 0x308   : >> { %1293 = vrot.lane.b32.xlu1 %v1258_v35, %s10060_s18  ;;  %v1122_v35 = vadd.f32 1.0, %v8762_v22 }
 0x309   : >> { %1291 = vrot.lane.b32.xlu0 %v1257_v26, %s10060_s18  ;;  %v1218_v44 = vpop.permute.xlu1 %1217  ;;  %v8770_v26 = vpop.eup %8769 }
 0x30a   : >> { %v1260_v32 = vmul.f32 %v10764_v36, %v1218_v44  ;;  %v1216_v41 = vpop.permute.xlu0 %1215  ;;  %8777 = vrcp.f32 %v1122_v35  ;;  %v8772_v29 = vpop.eup %8771  ;;  %v1124_v44 = vadd.f32 1.0, %v8770_v26 }
 0x30b   : >> { %v1259_v40 = vmul.f32 %v10767_v39, %v1216_v41  ;;  %8779 = vrcp.f32 %v1121_v28  ;;  %v1123_v22 = vadd.f32 1.0, %v8772_v29 }
 0x30c   : >> { %1297 = vrot.lane.b32.xlu1 %v1260_v32, %s10060_s18  ;;  %v10781_v32 = vpop.eup %8773  ;;  %8781 = vrcp.f32 %v1124_v44 }
 0x30d   : >> { %1295 = vrot.lane.b32.xlu0 %v1259_v40, %s10060_s18  ;;  %v1222_v37 = vpop.permute.xlu1 %1221  ;;  %8783 = vrcp.f32 %v1123_v22 }
 0x30e   : >> { %v1262_v31 = vmul.f32 %v10772_v23, %v1222_v37  ;;  %v1220_v27 = vpop.permute.xlu0 %1219 }
 0x30f   : >> { %v1261_v30 = vmul.f32 %v10775_v25, %v1220_v27 }
 0x310   : >> { %1301 = vrot.lane.b32.xlu1 %v1262_v31, %s10060_s18  ;;  %v10785_v34 = vpop.eup %8775 }
 0x311   : >> { %1299 = vrot.lane.b32.xlu0 %v1261_v30, %s10060_s18  ;;  %v1226_v41 = vpop.permute.xlu1 %1225 }
 0x312   : >> { %v1264_v40 = vmul.f32 %v10781_v32, %v1226_v41  ;;  %v1224_v37 = vpop.permute.xlu0 %1223 }
 0x313   : >> { %v1263_v31 = vmul.f32 %v10785_v34, %v1224_v37 }
 0x314   : >> { %1305 = vrot.lane.b32.xlu1 %v1264_v40, %s10060_s18  ;;  %v10788_v27 = vpop.eup %8777 }
 0x315   : >> { %1303 = vrot.lane.b32.xlu0 %v1263_v31, %s10060_s18  ;;  %v1230_v35 = vpop.permute.xlu1 %1229  ;;  %v10794_v26 = vpop.eup %8779 }
 0x316   : >> { %v1266_v30 = vmul.f32 %v10788_v27, %v1230_v35  ;;  %v1228_v28 = vpop.permute.xlu0 %1227  ;;  %v10797_v44 = vpop.eup %8781  ;;  %v769_v35 = vld [vmem:[%s768_s19] sm:$0xff] }
 0x317   : >> { %v1265_v29 = vmul.f32 %v10794_v26, %v1228_v28  ;;  %v10801_v22 = vpop.eup %8783 }
 0x318   : >> { %1309 = vrot.lane.b32.xlu1 %v1266_v30, %s10060_s18 }
 0x319   : >> { %v1234_v41 = vpop.permute.xlu1 %1233  ;;  %1307 = vrot.lane.b32.xlu0 %v1265_v29, %s10060_s18 }
 0x31a   : >> { %v1268_v40 = vmul.f32 %v10797_v44, %v1234_v41  ;;  %v1232_v37 = vpop.permute.xlu0 %1231 }
 0x31b   : >> { %v1267_v31 = vmul.f32 %v10801_v22, %v1232_v37 }
 0x31c   : >> { %1313 = vrot.lane.b32.xlu1 %v1268_v40, %s10060_s18 }
 0x31d   : >> { %1311 = vrot.lane.b32.xlu0 %v1267_v31, %s10060_s18 }
 0x31e   : >> { %v10811_v30 = vpop.permute.xlu0 %1235 }
 0x33b   : >> { %770 = vxpose.xlu0.b32.start.end [1/1] (short) %v769_v35, 128 }
 0x364   : >> { %8682 = vset.pattern.permute.xlu0 %v15447_v33 }
 0x377   : >> { %v10813_v28 = vpop.permute.xlu0 %1287 }
 0x37b   : >> { %v10815_v29 = vpop.permute.xlu0 %1291 }
 0x37f   : >> { %v10817_v41 = vpop.permute.xlu0 %1295 }
 0x383   : >> { %v10819_v40 = vpop.permute.xlu0 %1299 }
 0x387   : >> { %v10821_v37 = vpop.permute.xlu0 %1303 }
 0x38b   : >> { %v10823_v31 = vpop.permute.xlu0 %1307 }
 0x38f   : >> { %v10825_v0 = vpop.permute.xlu0 %1311 }
 0x3bb   : >> { %v786_v1 = vpop.trf.xlu0 }
 0x3bc   : >> { %vm802_vm1 = vcmp.gt.f32.partialorder %v786_v1, 0.0 }
 0x3bd   : >> { %v10828_v35 = vsel %vm802_vm1, 1, %v15447_v33 }
 0x3be   : >> { %15778 = vst [vmem:[#allocation27_spill] sm:$0xff] %v10828_v35  ;;  %1464 = vperm.xlu1 %8681, %v10828_v35  }
 0x3bf   : >> { %v787_v2 = vpop.trf.xlu0 }
 0x3c0   : >> { %vm803_vm2 = vcmp.gt.f32.partialorder %v787_v2, 0.0 }
 0x3c1   : >> { %v10832_v3 = vsel %vm803_vm2, 1, %v15447_v33 }
 0x3c2   : >> { %15779 = vst [vmem:[#allocation28_spill] sm:$0xff] %v10832_v3  ;;  %1467 = vperm.xlu1 %8681, %v10832_v3  }
 0x3c3   : >> { %v788_v38 = vpop.trf.xlu0 }
 0x3c4   : >> { %vm804_vm3 = vcmp.gt.f32.partialorder %v788_v38, 0.0 }
 0x3c5   : >> { %v10836_v20 = vsel %vm804_vm3, 1, %v15447_v33 }
 0x3c6   : >> { %15780 = vst [vmem:[#allocation29_spill] sm:$0xff] %v10836_v20  ;;  %1470 = vperm.xlu1 %8681, %v10836_v20   ;;  %v7382_v20 = vmul.f32 -1.442695, %v10720_v47 }
 0x3c7   : >> { %v789_v1 = vpop.trf.xlu0 }
 0x3c8   : >> { %vm805_vm4 = vcmp.gt.f32.partialorder %v789_v1, 0.0  ;;  %8785 = vpow2.f32 %v7382_v20 }
 0x3c9   : >> { %v10840_v19 = vsel %vm805_vm4, 1, %v15447_v33 }
 0x3ca   : >> { %15781 = vst [vmem:[#allocation30_spill] sm:$0xff] %v10840_v19  ;;  %1473 = vperm.xlu1 %8681, %v10840_v19  }
 0x3cb   : >> { %v790_v2 = vpop.trf.xlu0 }
 0x3cc   : >> { %vm806_vm5 = vcmp.gt.f32.partialorder %v790_v2, 0.0 }
 0x3cd   : >> { %v10844_v35 = vsel %vm806_vm5, 1, %v15447_v33 }
 0x3ce   : >> { %15782 = vst [vmem:[#allocation31_spill] sm:$0xff] %v10844_v35  ;;  %1476 = vperm.xlu0 %8682, %v10844_v35   ;;  %v7381_v35 = vmul.f32 -1.442695, %v10725_v24 }
 0x3cf   : >> { %v791_v38 = vpop.trf.xlu0 }
 0x3d0   : >> { %vm807_vm6 = vcmp.gt.f32.partialorder %v791_v38, 0.0  ;;  %8787 = vpow2.f32 %v7381_v35 }
 0x3d1   : >> { %v10848_v3 = vsel %vm807_vm6, 1, %v15447_v33 }
 0x3d2   : >> { %15783 = vst [vmem:[#allocation32_spill] sm:$0xff] %v10848_v3  ;;  %1479 = vperm.xlu1 %8681, %v10848_v3   ;;  %v8786_v24 = vpop.eup %8785 }
 0x3d3   : >> { %v792_v1 = vpop.trf.xlu0 }
 0x3d4   : >> { %vm808_vm7 = vcmp.gt.f32.partialorder %v792_v1, 0.0 }
 0x3d5   : >> { %v10853_v19 = vsel %vm808_vm7, 1, %v15447_v33 }
 0x3d6   : >> { %15784 = vst [vmem:[#allocation33_spill] sm:$0xff] %v10853_v19  ;;  %1482 = vperm.xlu1 %8681, %v10853_v19   ;;  %v1126_v19 = vadd.f32 1.0, %v8786_v24 }
 0x3d7   : >> { %v793_v2 = vpop.trf.xlu0 }
 0x3d8   : >> { %vm809_vm8 = vcmp.gt.f32.partialorder %v793_v2, 0.0  ;;  %8789 = vrcp.f32 %v1126_v19 }
 0x3d9   : >> { %v10858_v38 = vsel %vm809_vm8, 1, %v15447_v33 }
 0x3da   : >> { %15785 = vst [vmem:[#allocation34_spill] sm:$0xff] %v10858_v38  ;;  %1485 = vperm.xlu1 %8681, %v10858_v38  }
 0x3db   : >> { %v794_v3 = vpop.trf.xlu0 }
 0x3dc   : >> { %vm810_vm9 = vcmp.gt.f32.partialorder %v794_v3, 0.0  ;;  %v8788_v3 = vpop.eup %8787 }
 0x3dd   : >> { %v10862_v47 = vsel %vm810_vm9, 1, %v15447_v33 }
 0x3de   : >> { %15786 = vst [vmem:[#allocation35_spill] sm:$0xff] %v10862_v47  ;;  %1488 = vperm.xlu1 %8681, %v10862_v47   ;;  %v1125_v47 = vadd.f32 1.0, %v8788_v3 }
 0x3df   : >> { %v795_v1 = vpop.trf.xlu0 }
 0x3e0   : >> { %vm811_vm10 = vcmp.gt.f32.partialorder %v795_v1, 0.0  ;;  %8791 = vrcp.f32 %v1125_v47  ;;  %v1176_v47 = vmul.f32 %v9981_v61, %v10746_v46 }
 0x3e1   : >> { %v10866_v20 = vsel %vm811_vm10, 1, %v15447_v33 }
 0x3e2   : >> { %15787 = vst [vmem:[#allocation36_spill] sm:$0xff] %v10866_v20  ;;  %1491 = vperm.xlu1 %8681, %v10866_v20   ;;  %v1238_v20 = vpop.permute.xlu1 %1237  ;;  %v10885_v19 = vpop.eup %8789 }
 0x3e3   : >> { %v796_v2 = vpop.trf.xlu0 }
 0x3e4   : >> { %vm812_vm11 = vcmp.gt.f32.partialorder %v796_v2, 0.0 }
 0x3e5   : >> { %v10870_v38 = vsel %vm812_vm11, 1, %v15447_v33 }
 0x3e6   : >> { %15788 = vst [vmem:[#allocation37_spill] sm:$0xff] %v10870_v38  ;;  %1494 = vperm.xlu1 %8681, %v10870_v38  }
 0x3e7   : >> { %v797_v35 = vpop.trf.xlu0 }
 0x3e8   : >> { %vm813_vm12 = vcmp.gt.f32.partialorder %v797_v35, 0.0 }
 0x3e9   : >> { %v10874_v1 = vsel %vm813_vm12, 1, %v15447_v33 }
 0x3ea   : >> { %15789 = vst [vmem:[#allocation38_spill] sm:$0xff] %v10874_v1  ;;  %1497 = vperm.xlu1 %8681, %v10874_v1   ;;  %v1270_v1 = vmul.f32 %v10885_v19, %v1238_v20 }
 0x3eb   : >> { %v798_v63 = vpop.trf.xlu0 }
 0x3ec   : >> { %vm814_vm13 = vcmp.gt.f32.partialorder %v798_v63, 0.0  ;;  %v1290_v63 = vpop.permute.xlu1 %1289 }
 0x3ed   : >> { %v10878_v24 = vsel %vm814_vm13, 1, %v15447_v33  ;;  %v10893_v38 = vadd.f32 %v1290_v63, %v1176_v47 }
 0x3ee   : >> { %15790 = vst [vmem:[#allocation39_spill] sm:$0xff] %v10878_v24  ;;  %1500 = vperm.xlu1 %8681, %v10878_v24   ;;  %v10891_v24 = vpop.eup %8791 }
 0x3ef   : >> { %v799_v2 = vpop.trf.xlu0  ;;  %8793 = vtanh.f32 %v10893_v38 }
 0x3f0   : >> { %vm815_vm14 = vcmp.gt.f32.partialorder %v799_v2, 0.0  ;;  %v1269_v2 = vmul.f32 %v10891_v24, %v10811_v30  ;;  %v1294_v63 = vpop.permute.xlu1 %1293  ;;  %v1178_v30 = vmul.f32 %v9973_v59, %v10755_v43 }
 0x3f1   : >> { %v10882_v35 = vsel %vm815_vm14, 1, %v15447_v33  ;;  %v1175_v33 = vmul.f32 %v9985_v62, %v10748_v21 }
 0x3f2   : >> { %15791 = vst [vmem:[#allocation40_spill] sm:$0xff] %v10882_v35  ;;  %1503 = vperm.xlu1 %8681, %v10882_v35  }
 0x3f3   : >> { %v800_v3 = vpop.trf.xlu0  ;;  %v10902_v20 = vadd.f32 %v10813_v28, %v1175_v33  ;;  %v1177_v33 = vmul.f32 %v9977_v60, %v10758_v45 }
 0x3f4   : >> { %vm816_vm15 = vcmp.gt.f32.partialorder %v800_v3, 0.0  ;;  %v10911_v3 = vadd.f32 %v1294_v63, %v1178_v30  ;;  %v1179_v30 = vmul.f32 %v9969_v58, %v10767_v39 }
 0x3f5   : >> { %8795 = vtanh.f32 %v10902_v20  ;;  %v10921_v28 = vadd.f32 %v10815_v29, %v1177_v33 }
 0x3f6   : >> { %1317 = vrot.lane.b32.xlu1 %v1270_v1, %s10060_s18  ;;  %v15792_v1 = vmov 0   ;;  %8797 = vtanh.f32 %v10911_v3  ;;  %v10934_v29 = vadd.f32 %v10817_v41, %v1179_v30 }
 0x3f7   : >> { %v801_v35 = vpop.trf.xlu0  ;;  %v10905_v61 = vsel %vm816_vm15, 1, %v15792_v1  ;;  %8799 = vtanh.f32 %v10921_v28 }
 0x3f8   : >> { %15793 = vst [vmem:[#allocation41_spill] sm:$0xff] %v10905_v61  ;;  %vm817_vm1 = vcmp.gt.f32.partialorder %v801_v35, 0.0  ;;  %v1298_v35 = vpop.permute.xlu1 %1297  ;;  %15796 = vst [vmem:[#allocation44_spill] sm:$0xff] %v10934_v29 }
 0x3f9   : >> { %v10914_v47 = vsel %vm817_vm1, 1, %v15792_v1 }
 0x3fa   : >> { %1315 = vrot.lane.b32.xlu1 %v1269_v2, %s10060_s18  ;;  %15794 = vst [vmem:[#allocation42_spill] sm:$0xff] %v10914_v47  ;;  %v8794_v2 = vpop.eup %8793 }
 0x3fc   : >> { %v1302_v33 = vpop.permute.xlu1 %1301 }
 0x3fe   : >> { %1506 = vperm.xlu1 %8681, %v10905_v61   ;;  %v1180_v61 = vmul.f32 %v9965_v57, %v10764_v36 }
 0x3ff   : >> { %v8796_v63 = vpop.eup %8795 }
 0x400   : >> { %v10927_v1 = vadd.f32 %v1298_v35, %v1180_v61  ;;  %v1306_v30 = vpop.permute.xlu1 %1305 }
 0x402   : >> { %1509 = vperm.xlu1 %8681, %v10914_v47   ;;  %15795 = vst [vmem:[#allocation43_spill] sm:$0xff] %v10927_v1  ;;  %8801 = vtanh.f32 %v10927_v1  ;;  %v8798_v47 = vpop.eup %8797 }
 0x403   : >> { %8803 = vtanh.f32 %v10934_v29  ;;  %v8800_v35 = vpop.eup %8799 }
 0x406   : >> { %1385 = vrot.lane.b32.xlu1 %v8794_v2, %s10060_s18  ;;  %v1182_v2 = vmul.f32 %v9957_v42, %v10772_v23 }
 0x408   : >> { %v10940_v61 = vadd.f32 %v1302_v33, %v1182_v2 }
 0x40a   : >> { %1383 = vrot.lane.b32.xlu1 %v8796_v63, %s10060_s18  ;;  %15797 = vst [vmem:[#allocation45_spill] sm:$0xff] %v10940_v61  ;;  %v1181_v63 = vmul.f32 %v9961_v56, %v10775_v25  ;;  %8805 = vtanh.f32 %v10940_v61 }
 0x40c   : >> { %v10947_v41 = vadd.f32 %v10819_v40, %v1181_v63  ;;  %v8802_v1 = vpop.eup %8801  ;;  %v1310_v63 = vpop.permute.xlu1 %1309 }
 0x40d   : >> { %v8804_v2 = vpop.eup %8803 }
 0x40e   : >> { %1389 = vrot.lane.b32.xlu1 %v8798_v47, %s10060_s18  ;;  %15798 = vst [vmem:[#allocation46_spill] sm:$0xff] %v10947_v41  ;;  %v1184_v47 = vmul.f32 %v9949_v54, %v10781_v32  ;;  %8807 = vtanh.f32 %v10947_v41 }
 0x410   : >> { %v10953_v33 = vadd.f32 %v1306_v30, %v1184_v47 }
 0x412   : >> { %1387 = vrot.lane.b32.xlu1 %v8800_v35, %s10060_s18  ;;  %15799 = vst [vmem:[#allocation47_spill] sm:$0xff] %v10953_v33  ;;  %v1183_v35 = vmul.f32 %v9953_v55, %v10785_v34  ;;  %8809 = vtanh.f32 %v10953_v33 }
 0x414   : >> { %v10960_v40 = vadd.f32 %v10821_v37, %v1183_v35  ;;  %v8806_v61 = vpop.eup %8805  ;;  %v1314_v35 = vpop.permute.xlu1 %1313 }
 0x416   : >> { %1393 = vrot.lane.b32.xlu1 %v8802_v1, %s10060_s18  ;;  %15800 = vst [vmem:[#allocation48_spill] sm:$0xff] %v10960_v40  ;;  %v1186_v1 = vmul.f32 %v9941_v52, %v10788_v27  ;;  %8811 = vtanh.f32 %v10960_v40  ;;  %v1189_v52 = vmul.f32 %v9929_v49, %v10891_v24  ;;  %v1190_v40 = vmul.f32 %v9925_v48, %v10885_v19 }
 0x418   : >> { %v10966_v30 = vadd.f32 %v1310_v63, %v1186_v1  ;;  %v8808_v47 = vpop.eup %8807 }
 0x41a   : >> { %1391 = vrot.lane.b32.xlu1 %v8804_v2, %s10060_s18  ;;  %15801 = vst [vmem:[#allocation49_spill] sm:$0xff] %v10966_v30  ;;  %v1185_v2 = vmul.f32 %v9945_v53, %v10794_v26  ;;  %8813 = vtanh.f32 %v10966_v30 }
 0x41c   : >> { %v10973_v37 = vadd.f32 %v10823_v31, %v1185_v2  ;;  %v8810_v33 = vpop.eup %8809 }
 0x41e   : >> { %1397 = vrot.lane.b32.xlu1 %v8806_v61, %s10060_s18  ;;  %15802 = vst [vmem:[#allocation50_spill] sm:$0xff] %v10973_v37  ;;  %v1188_v61 = vmul.f32 %v9933_v50, %v10797_v44  ;;  %8815 = vtanh.f32 %v10973_v37 }
 0x420   : >> { %v10979_v63 = vadd.f32 %v1314_v35, %v1188_v61  ;;  %v8812_v1 = vpop.eup %8811 }
 0x422   : >> { %1395 = vrot.lane.b32.xlu1 %v8808_v47, %s10060_s18  ;;  %15803 = vst [vmem:[#allocation51_spill] sm:$0xff] %v10979_v63  ;;  %v1187_v47 = vmul.f32 %v9937_v51, %v10801_v22  ;;  %8817 = vtanh.f32 %v10979_v63 }
 0x424   : >> { %v10986_v31 = vadd.f32 %v10825_v0, %v1187_v47  ;;  %v8814_v2 = vpop.eup %8813 }
 0x426   : >> { %1401 = vrot.lane.b32.xlu1 %v8810_v33, %s10060_s18  ;;  %15804 = vst [vmem:[#allocation52_spill] sm:$0xff] %v10986_v31  ;;  %8819 = vtanh.f32 %v10986_v31 }
 0x428   : >> { %v8816_v33 = vpop.eup %8815 }
 0x42a   : >> { %1399 = vrot.lane.b32.xlu1 %v8812_v1, %s10060_s18 }
 0x42c   : >> { %v8818_v35 = vpop.eup %8817 }
 0x42e   : >> { %1405 = vrot.lane.b32.xlu1 %v8814_v2, %s10060_s18 }
 0x430   : >> { %v8820_v61 = vpop.eup %8819 }
 0x432   : >> { %1403 = vrot.lane.b32.xlu1 %v8816_v33, %s10060_s18 }
 0x436   : >> { %1409 = vrot.lane.b32.xlu1 %v8818_v35, %s10060_s18 }
 0x43a   : >> { %1407 = vrot.lane.b32.xlu1 %v8820_v61, %s10060_s18 }
 0x43d   : >> { %v10993_v1 = vpop.permute.xlu1 %1464 }
 0x43e   : >> { %vm1511_vm2 = vcmp.eq.s32.totalorder %v10993_v1, 1 }
 0x441   : >> { %v10995_v51 = vpop.permute.xlu1 %1467 }
 0x442   : >> { %vm1512_vm3 = vcmp.eq.s32.totalorder %v10995_v51, 1 }
 0x445   : >> { %v10997_v0 = vpop.permute.xlu1 %1470 }
 0x446   : >> { %vm1513_vm5 = vcmp.eq.s32.totalorder %v10997_v0, 1  ;;  %v15832_v0 = vld [vmem:[#allocation21_spill] sm:$0xff] }
 0x447   : >> { %v11396_v51 = vsel %vm1513_vm5, %v10921_v28, %v9977_v60  ;;  %v15831_v28 = vld [vmem:[#allocation38_spill] sm:$0xff] }
 0x449   : >> { %v10999_v47 = vpop.permute.xlu1 %1473 }
 0x44a   : >> { %vm1514_vm4 = vcmp.eq.s32.totalorder %v10999_v47, 1 }
 0x44b   : >> { %v11404_v1 = vsel %vm1514_vm4, %v10911_v3, %v9973_v59 }
 0x451   : >> { %v11001_v2 = vpop.permute.xlu1 %1479 }
 0x452   : >> { %vm1516_vm6 = vcmp.eq.s32.totalorder %v11001_v2, 1 }
 0x455   : >> { %v11003_v31 = vpop.permute.xlu1 %1482 }
 0x456   : >> { %vm1517_vm9 = vcmp.eq.s32.totalorder %v11003_v31, 1 }
 0x459   : >> { %v11005_v63 = vpop.permute.xlu1 %1485 }
 0x45a   : >> { %vm1518_vm8 = vcmp.eq.s32.totalorder %v11005_v63, 1 }
 0x45d   : >> { %v11007_v33 = vpop.permute.xlu1 %1488 }
 0x45e   : >> { %vm1519_vm11 = vcmp.eq.s32.totalorder %v11007_v33, 1 }
 0x461   : >> { %v11009_v35 = vpop.permute.xlu1 %1491 }
 0x462   : >> { %vm1520_vm10 = vcmp.eq.s32.totalorder %v11009_v35, 1  ;;  %v15857_v35 = vld [vmem:[#allocation14_spill] sm:$0xff] }
 0x465   : >> { %v11011_v50 = vpop.permute.xlu1 %1494 }
 0x466   : >> { %vm1521_vm13 = vcmp.eq.s32.totalorder %v11011_v50, 1  ;;  %v15866_v50 = vld [vmem:[#allocation12_spill] sm:$0xff] }
 0x469   : >> { %v11013_v61 = vpop.permute.xlu1 %1497 }
 0x46a   : >> { %vm1522_vm12 = vcmp.eq.s32.totalorder %v11013_v61, 1 }
 0x46d   : >> { %v11015_v37 = vpop.permute.xlu1 %1500 }
 0x46e   : >> { %vm15478_vm15 = vcmp.eq.s32.totalorder %v11015_v37, 1 }
 0x471   : >> { %v11017_v53 = vpop.permute.xlu1 %1503 }
 0x472   : >> { %vm1524_vm14 = vcmp.eq.s32.totalorder %v11017_v53, 1 }
 0x475   : >> { %v1318_v30 = vpop.permute.xlu1 %1317 }
 0x476   : >> { %v11025_v42 = vadd.f32 %v1318_v30, %v1190_v40 }
 0x479   : >> { %v1316_v54 = vpop.permute.xlu1 %1315 }
 0x47a   : >> { %v11023_v55 = vadd.f32 %v1316_v54, %v1189_v52 }
 0x47c   : >> { %8821 = vtanh.f32 %v11023_v55 }
 0x47d   : >> { %v11028_v41 = vpop.permute.xlu1 %1506  ;;  %8823 = vtanh.f32 %v11025_v42 }
 0x47e   : >> { %vm1525_vm1 = vcmp.eq.s32.totalorder %v11028_v41, 1 }
 0x481   : >> { %v11031_v56 = vpop.permute.xlu1 %1509 }
 0x485   : >> { %v1386_v57 = vpop.permute.xlu1 %1385 }
 0x486   : >> { %v8822_v29 = vpop.eup %8821  ;;  %v1432_v48 = vmul.f32 %v10746_v46, %v1386_v57 }
 0x487   : >> { %1411 = vrot.lane.b32.xlu1 %v8822_v29, %s10060_s18  ;;  %v8824_v58 = vpop.eup %8823 }
 0x489   : >> { %v1384_v49 = vpop.permute.xlu1 %1383 }
 0x48a   : >> { %v1431_v52 = vmul.f32 %v10748_v21, %v1384_v49  ;;  %v11050_v49 = vsel %vm1512_vm3, %v1432_v48, %v10045_v17 }
 0x48b   : >> { %1413 = vrot.lane.b32.xlu1 %v8824_v58, %s10060_s18 }
 0x48c   : >> { %v11041_v54 = vsel %vm1511_vm2, %v1431_v52, %v10049_v18 }
 0x48d   : >> { %1575 = vrot.lane.b32.xlu0 %v11041_v54, %s10059_s22  ;;  %v1390_v29 = vpop.permute.xlu1 %1389 }
 0x48e   : >> { %v1434_v40 = vmul.f32 %v10755_v43, %v1390_v29 }
 0x48f   : >> { %1577 = vrot.lane.b32.xlu1 %v11050_v49, %s10059_s22 }
 0x490   : >> { %v11059_v18 = vsel %vm1514_vm4, %v1434_v40, %v10037_v15  ;;  %v11073_v15 = vpop.permute.xlu0 %1476 }
 0x491   : >> { %v1388_v57 = vpop.permute.xlu1 %1387  ;;  %vm1515_vm7 = vcmp.eq.s32.totalorder %v11073_v15, 1 }
 0x492   : >> { %v1433_v58 = vmul.f32 %v10758_v45, %v1388_v57 }
 0x493   : >> { %1581 = vrot.lane.b32.xlu1 %v11059_v18, %s10059_s22 }
 0x494   : >> { %v11067_v48 = vsel %vm1513_vm5, %v1433_v58, %v10041_v16 }
 0x495   : >> { %1579 = vrot.lane.b32.xlu0 %v11067_v48, %s10059_s22  ;;  %v1394_v17 = vpop.permute.xlu1 %1393 }
 0x496   : >> { %v1436_v46 = vmul.f32 %v10764_v36, %v1394_v17 }
 0x498   : >> { %v11078_v21 = vsel %vm1516_vm6, %v1436_v46, %v10029_v13 }
 0x499   : >> { %v1392_v43 = vpop.permute.xlu1 %1391  ;;  %1585 = vrot.lane.b32.xlu1 %v11078_v21, %s10059_s22 }
 0x49a   : >> { %v1435_v16 = vmul.f32 %v10767_v39, %v1392_v43 }
 0x49c   : >> { %v11087_v45 = vsel %vm1515_vm7, %v1435_v16, %v10033_v14 }
 0x49d   : >> { %1583 = vrot.lane.b32.xlu0 %v11087_v45, %s10059_s22  ;;  %v1398_v36 = vpop.permute.xlu1 %1397 }
 0x49e   : >> { %v1438_v13 = vmul.f32 %v10772_v23, %v1398_v36  ;;  %v15808_v36 = vld [vmem:[#allocation23_spill] sm:$0xff] }
 0x4a0   : >> { %v11096_v30 = vsel %vm1518_vm8, %v1438_v13, %v10021_v11  ;;  %v15810_v13 = vld [vmem:[#allocation24_spill] sm:$0xff] }
 0x4a1   : >> { %v1396_v39 = vpop.permute.xlu1 %1395  ;;  %1589 = vrot.lane.b32.xlu1 %v11096_v30, %s10059_s22 }
 0x4a2   : >> { %v1437_v14 = vmul.f32 %v10775_v25, %v1396_v39  ;;  %v15811_v39 = vld [vmem:[#allocation25_spill] sm:$0xff] }
 0x4a4   : >> { %v11105_v52 = vsel %vm1517_vm9, %v1437_v14, %v10025_v12 }
 0x4a5   : >> { %1587 = vrot.lane.b32.xlu0 %v11105_v52, %s10059_s22  ;;  %v1402_v23 = vpop.permute.xlu1 %1401 }
 0x4a6   : >> { %v1440_v11 = vmul.f32 %v10781_v32, %v1402_v23 }
 0x4a8   : >> { %v11114_v29 = vsel %vm1520_vm10, %v1440_v11, %v10013_v9 }
 0x4a9   : >> { %v1400_v25 = vpop.permute.xlu1 %1399  ;;  %1593 = vrot.lane.b32.xlu1 %v11114_v29, %s10059_s22 }
 0x4aa   : >> { %v1439_v12 = vmul.f32 %v10785_v34, %v1400_v25 }
 0x4ac   : >> { %v11123_v40 = vsel %vm1519_vm11, %v1439_v12, %v10017_v10 }
 0x4ad   : >> { %1591 = vrot.lane.b32.xlu0 %v11123_v40, %s10059_s22  ;;  %v1406_v32 = vpop.permute.xlu1 %1405 }
 0x4ae   : >> { %v1442_v9 = vmul.f32 %v10788_v27, %v1406_v32 }
 0x4b0   : >> { %v11132_v57 = vsel %vm1522_vm12, %v1442_v9, %v10005_v7 }
 0x4b1   : >> { %v1404_v34 = vpop.permute.xlu1 %1403  ;;  %1597 = vrot.lane.b32.xlu1 %v11132_v57, %s10059_s22 }
 0x4b2   : >> { %v1441_v10 = vmul.f32 %v10794_v26, %v1404_v34 }
 0x4b4   : >> { %v11141_v58 = vsel %vm1521_vm13, %v1441_v10, %v10009_v8 }
 0x4b5   : >> { %1595 = vrot.lane.b32.xlu0 %v11141_v58, %s10059_s22  ;;  %v1410_v27 = vpop.permute.xlu1 %1409 }
 0x4b6   : >> { %v1444_v7 = vmul.f32 %v10797_v44, %v1410_v27 }
 0x4b8   : >> { %v11150_v17 = vsel %vm1524_vm14, %v1444_v7, %v9997_v5 }
 0x4b9   : >> { %15805 = vst [vmem:[#allocation53_spill] sm:$0xff] %v11150_v17  ;;  %v1408_v26 = vpop.permute.xlu1 %1407  ;;  %1601 = vrot.lane.b32.xlu1 %v11150_v17, %s10059_s22 }
 0x4ba   : >> { %v1443_v8 = vmul.f32 %v10801_v22, %v1408_v26 }
 0x4bc   : >> { %v11159_v46 = vsel %vm15478_vm15, %v1443_v8, %v10001_v6  ;;  %vm1526_vm15 = vcmp.eq.s32.totalorder %v11031_v56, 1 }
 0x4bd   : >> { %15806 = vst [vmem:[#allocation54_spill] sm:$0xff] %v11159_v46  ;;  %1599 = vrot.lane.b32.xlu0 %v11159_v46, %s10059_s22 }
 0x4f9   : >> { %v1412_v44 = vpop.permute.xlu1 %1411 }
 0x4fa   : >> { %v1445_v5 = vmul.f32 %v10891_v24, %v1412_v44  ;;  %v15812_v44 = vld [vmem:[#allocation26_spill] sm:$0xff] }
 0x4fc   : >> { %v11168_v43 = vsel %vm1525_vm1, %v1445_v5, %v9993_v4  ;;  %v1786_v5 = vsub.s32 1, %v15812_v44 }
 0x4fd   : >> { %15807 = vst [vmem:[#allocation55_spill] sm:$0xff] %v11168_v43  ;;  %1603 = vrot.lane.b32.xlu0 %v11168_v43, %s10059_s22  ;;  %v1414_v22 = vpop.permute.xlu1 %1413 }
 0x4fe   : >> { %v1446_v6 = vmul.f32 %v10885_v19, %v1414_v22  ;;  %v11203_v22 = vld [vmem:[%s10650_s17] sm:$0xff] }
 0x4ff   : >> { %v1576_v16 = vpop.permute.xlu0 %1575  ;;  %15813 = vst [vmem:[#allocation56_spill] sm:$0xff] %v11203_v22 }
 0x500   : >> { %7975 = vmatprep.mubr.msk.f32.mxu1 %vm15776_vm0, %v1576_v16  ;;  %v11178_v24 = vsel %vm1526_vm15, %v1446_v6, %v15808_v36  ;;  %v11206_v6 = vrot.slane %v11203_v22, %v1786_v5 }
 0x501   : >> { %15809 = vst [vmem:[#allocation23_spill] sm:$0xff] %v11178_v24  ;;  %1605 = vrot.lane.b32.xlu1 %v11178_v24, %s10059_s22  ;;  %v1578_v4 = vpop.permute.xlu1 %1577 }
 0x502   : >> { %7976 = vmatmul.mubr.msk.f32.vlgmr.msra.gmra.mrb[0].mxu1 %vm15776_vm0, %v1578_v4 }
 0x503   : >> { %8290 = vmatpush3.bf16.msra.mxu1 %v15810_v13 }
 0x504   : >> { %8292 = vmatprep.subr.bf16.mxu1 %v15811_v39 }
 0x505   : >> { %v1582_v14 = vpop.permute.xlu1 %1581 }
 0x507   : >> { %v1580_v19 = vpop.permute.xlu0 %1579  ;;  %8294 = vmatpush3.bf16.msra.mxu1 %v15811_v39 }
 0x508   : >> { %7978 = vmatprep.mubr.msk.f32.mxu1 %vm15776_vm0, %v1580_v19  ;;  %8304 = vmatprep.subr.bf16.mxu1 %v15810_v13 }
 0x509   : >> { %7979 = vmatmul.mubr.msk.f32.gmra.mrb[2].mxu1 %vm15776_vm0, %v1582_v14 }
 0x50b   : >> { %v1586_v11 = vpop.permute.xlu1 %1585 }
 0x50f   : >> { %v1584_v23 = vpop.permute.xlu0 %1583 }
 0x510   : >> { %7981 = vmatprep.mubr.msk.f32.mxu1 %vm15776_vm0, %v1584_v23 }
 0x511   : >> { %7982 = vmatmul.mubr.msk.f32.gmra.mrb[4].mxu1 %vm15776_vm0, %v1586_v11 }
 0x513   : >> { %v1590_v12 = vpop.permute.xlu1 %1589 }
 0x517   : >> { %v1588_v25 = vpop.permute.xlu0 %1587 }
 0x518   : >> { %7984 = vmatprep.mubr.msk.f32.mxu1 %vm15776_vm0, %v1588_v25 }
 0x519   : >> { %7985 = vmatmul.mubr.msk.f32.gmra.mrb[6].mxu1 %vm15776_vm0, %v1590_v12 }
 0x51b   : >> { %v1594_v9 = vpop.permute.xlu1 %1593 }
 0x51f   : >> { %v1592_v32 = vpop.permute.xlu0 %1591 }
 0x520   : >> { %7987 = vmatprep.mubr.msk.f32.mxu1 %vm15776_vm0, %v1592_v32 }
 0x521   : >> { %7988 = vmatmul.mubr.msk.f32.gmra.mrb[8].mxu1 %vm15776_vm0, %v1594_v9 }
 0x523   : >> { %v1598_v10 = vpop.permute.xlu1 %1597 }
 0x527   : >> { %v1596_v34 = vpop.permute.xlu0 %1595 }
 0x528   : >> { %7990 = vmatprep.mubr.msk.f32.mxu1 %vm15776_vm0, %v1596_v34 }
 0x529   : >> { %7991 = vmatmul.mubr.msk.f32.gmra.mrb[10].mxu1 %vm15776_vm0, %v1598_v10 }
 0x52b   : >> { %v1602_v7 = vpop.permute.xlu1 %1601 }
 0x52f   : >> { %v1600_v27 = vpop.permute.xlu0 %1599 }
 0x530   : >> { %7993 = vmatprep.mubr.msk.f32.mxu1 %vm15776_vm0, %v1600_v27 }
 0x531   : >> { %7994 = vmatmul.mubr.msk.f32.gmra.mrb[12].mxu1 %vm15776_vm0, %v1602_v7 }
 0x56f   : >> { %v1604_v26 = vpop.permute.xlu0 %1603 }
 0x570   : >> { %7996 = vmatprep.mubr.msk.f32.mxu1 %vm15776_vm0, %v1604_v26 }
 0x573   : >> { %v1606_v8 = vpop.permute.xlu1 %1605 }
 0x574   : >> { %7997 = vmatmul.mubr.msk.f32.gmra.mrb[14].mxu1 %vm15776_vm0, %v1606_v8 }
 0x5d5   : >> { %v7977_v16 = vpop.f32.mrb[0].mxu1 }
 0x5d6   : >> { %v11209_v36 = vadd.f32 %v7977_v16, %v11206_v6  ;;  %v1705_v4 = vpop.f32.mrb[1].mxu1 }
 0x5d7   : >> { %v11212_v19 = vadd.f32 %v11206_v6, %v1705_v4 }
 0x5d8   : >> { %8825 = vtanh.f32 %v11209_v36 }
 0x5d9   : >> { %8827 = vtanh.f32 %v11212_v19 }
 0x5dc   : >> { %v7980_v14 = vpop.f32.mrb[2].mxu1 }
 0x5dd   : >> { %v11217_v23 = vadd.f32 %v7980_v14, %v11206_v6  ;;  %v1715_v11 = vpop.f32.mrb[3].mxu1 }
 0x5de   : >> { %v11220_v25 = vadd.f32 %v11206_v6, %v1715_v11 }
 0x5df   : >> { %8829 = vtanh.f32 %v11217_v23  ;;  %v7402_v39 = vmul.f32 -1.442695, %v11217_v23 }
 0x5e0   : >> { %8831 = vtanh.f32 %v11220_v25  ;;  %v7401_v13 = vmul.f32 -1.442695, %v11220_v25 }
 0x5e2   : >> { %v8826_v12 = vpop.eup %8825 }
 0x5e3   : >> { %v8828_v32 = vpop.eup %8827  ;;  %1950 = vrot.lane.b32.xlu1 %v8826_v12, %s10060_s18 }
 0x5e4   : >> { %1948 = vrot.lane.b32.xlu0 %v8828_v32, %s10060_s18  ;;  %v7983_v9 = vpop.f32.mrb[4].mxu1 }
 0x5e5   : >> { %v1725_v34 = vpop.f32.mrb[5].mxu1  ;;  %v1793_v10 = vadd.f32 %v7983_v9, %v11206_v6 }
 0x5e6   : >> { %v11228_v27 = vadd.f32 %v11206_v6, %v1725_v34 }
 0x5e7   : >> { %8833 = vtanh.f32 %v1793_v10  ;;  %v7404_v24 = vmul.f32 -1.442695, %v1793_v10 }
 0x5e8   : >> { %8835 = vtanh.f32 %v11228_v27  ;;  %v7403_v25 = vmul.f32 -1.442695, %v11228_v27 }
 0x5e9   : >> { %v8830_v7 = vpop.eup %8829 }
 0x5ea   : >> { %v8832_v26 = vpop.eup %8831  ;;  %1954 = vrot.lane.b32.xlu1 %v8830_v7, %s10060_s18 }
 0x5eb   : >> { %1952 = vrot.lane.b32.xlu0 %v8832_v26, %s10060_s18 }
 0x5ec   : >> { %v7986_v8 = vpop.f32.mrb[6].mxu1 }
 0x5ed   : >> { %v11234_v5 = vadd.f32 %v7986_v8, %v11206_v6  ;;  %v1735_v16 = vpop.f32.mrb[7].mxu1 }
 0x5ee   : >> { %v11237_v4 = vadd.f32 %v11206_v6, %v1735_v16 }
 0x5ef   : >> { %8837 = vtanh.f32 %v11234_v5 }
 0x5f0   : >> { %8839 = vtanh.f32 %v11237_v4 }
 0x5f1   : >> { %v8834_v14 = vpop.eup %8833 }
 0x5f2   : >> { %1958 = vrot.lane.b32.xlu1 %v8834_v14, %s10060_s18  ;;  %v8836_v9 = vpop.eup %8835 }
 0x5f3   : >> { %1956 = vrot.lane.b32.xlu0 %v8836_v9, %s10060_s18 }
 0x5f4   : >> { %v7989_v11 = vpop.f32.mrb[8].mxu1 }
 0x5f5   : >> { %v11243_v12 = vadd.f32 %v7989_v11, %v11206_v6  ;;  %v1745_v32 = vpop.f32.mrb[9].mxu1 }
 0x5f6   : >> { %v11248_v34 = vadd.f32 %v11206_v6, %v1745_v32 }
 0x5f7   : >> { %8841 = vtanh.f32 %v11243_v12 }
 0x5f8   : >> { %8843 = vtanh.f32 %v11248_v34 }
 0x5f9   : >> { %v8838_v7 = vpop.eup %8837 }
 0x5fa   : >> { %1962 = vrot.lane.b32.xlu1 %v8838_v7, %s10060_s18  ;;  %v8840_v8 = vpop.eup %8839 }
 0x5fb   : >> { %1960 = vrot.lane.b32.xlu0 %v8840_v8, %s10060_s18 }
 0x5fc   : >> { %v7992_v26 = vpop.f32.mrb[10].mxu1 }
 0x5fd   : >> { %v11253_v16 = vadd.f32 %v7992_v26, %v11206_v6  ;;  %v1755_v14 = vpop.f32.mrb[11].mxu1 }
 0x5fe   : >> { %v11257_v11 = vadd.f32 %v11206_v6, %v1755_v14 }
 0x5ff   : >> { %8845 = vtanh.f32 %v11253_v16 }
 0x600   : >> { %8847 = vtanh.f32 %v11257_v11 }
 0x601   : >> { %v8842_v32 = vpop.eup %8841 }
 0x602   : >> { %1966 = vrot.lane.b32.xlu1 %v8842_v32, %s10060_s18  ;;  %v8844_v7 = vpop.eup %8843 }
 0x603   : >> { %1964 = vrot.lane.b32.xlu0 %v8844_v7, %s10060_s18  ;;  %v7400_v7 = vmul.f32 -1.442695, %v11209_v36 }
 0x604   : >> { %v7995_v9 = vpop.f32.mrb[12].mxu1 }
 0x605   : >> { %v11263_v22 = vadd.f32 %v7995_v9, %v11206_v6  ;;  %v1765_v26 = vpop.f32.mrb[13].mxu1 }
 0x606   : >> { %v11267_v8 = vadd.f32 %v11206_v6, %v1765_v26  ;;  %v7399_v26 = vmul.f32 -1.442695, %v11212_v19 }
 0x607   : >> { %8849 = vtanh.f32 %v11263_v22 }
 0x608   : >> { %8851 = vtanh.f32 %v11267_v8 }
 0x609   : >> { %v8846_v14 = vpop.eup %8845  ;;  %8853 = vpow2.f32 %v7400_v7  ;;  %v10062_v7 = vmov 1  }
 0x60a   : >> { %1970 = vrot.lane.b32.xlu1 %v8846_v14, %s10060_s18  ;;  %v8848_v32 = vpop.eup %8847  ;;  %8855 = vpow2.f32 %v7399_v26  ;;  %8683 = vset.pattern.permute.xlu0 %v10062_v7 }
 0x60b   : >> { %1968 = vrot.lane.b32.xlu0 %v8848_v32, %s10060_s18  ;;  %8857 = vpow2.f32 %v7402_v39  ;;  %8684 = vset.pattern.permute.xlu1 %v10062_v7 }
 0x60c   : >> { %8859 = vpow2.f32 %v7401_v13 }
 0x611   : >> { %v8850_v44 = vpop.eup %8849 }
 0x612   : >> { %1974 = vrot.lane.b32.xlu1 %v8850_v44, %s10060_s18  ;;  %v8852_v9 = vpop.eup %8851 }
 0x613   : >> { %1972 = vrot.lane.b32.xlu0 %v8852_v9, %s10060_s18  ;;  %v8854_v14 = vpop.eup %8853 }
 0x614   : >> { %v1853_v32 = vadd.f32 1.0, %v8854_v14  ;;  %v8856_v43 = vpop.eup %8855  ;;  %v7408_v14 = vmul.f32 -1.442695, %v11243_v12 }
 0x615   : >> { %v1852_v17 = vadd.f32 1.0, %v8856_v43  ;;  %v8858_v23 = vpop.eup %8857  ;;  %v7406_v43 = vmul.f32 -1.442695, %v11234_v5 }
 0x616   : >> { %8861 = vrcp.f32 %v1853_v32  ;;  %v8860_v13 = vpop.eup %8859  ;;  %v1855_v39 = vadd.f32 1.0, %v8858_v23 }
 0x617   : >> { %8863 = vpow2.f32 %v7404_v24  ;;  %v1854_v10 = vadd.f32 1.0, %v8860_v13  ;;  %v7405_v24 = vmul.f32 -1.442695, %v11237_v4  ;;  %v7407_v13 = vmul.f32 -1.442695, %v11248_v34 }
 0x647   : >> { %v7998_v44 = vpop.f32.mrb[14].mxu1 }
 0x648   : >> { %v11280_v9 = vadd.f32 %v7998_v44, %v11206_v6  ;;  %v1775_v36 = vpop.f32.mrb[15].mxu1 }
 0x649   : >> { %v11283_v19 = vadd.f32 %v11206_v6, %v1775_v36  ;;  %v11290_v6 = vpop.eup %8861 }
 0x64a   : >> { %8865 = vtanh.f32 %v11280_v9  ;;  %v8864_v27 = vpop.eup %8863 }
 0x64b   : >> { %8867 = vtanh.f32 %v11283_v19 }
 0x64c   : >> { %8869 = vrcp.f32 %v1852_v17 }
 0x64d   : >> { %8871 = vpow2.f32 %v7403_v25  ;;  %v1857_v25 = vadd.f32 1.0, %v8864_v27  ;;  %v7410_v27 = vmul.f32 -1.442695, %v11253_v16  ;;  %v7412_v16 = vmul.f32 -1.442695, %v11263_v22 }
 0x64e   : >> { %8873 = vrcp.f32 %v1855_v39 }
 0x64f   : >> { %8875 = vpow2.f32 %v7406_v43 }
 0x650   : >> { %8877 = vrcp.f32 %v1854_v10 }
 0x651   : >> { %8879 = vpow2.f32 %v7405_v24 }
 0x652   : >> { %8881 = vpow2.f32 %v7408_v14 }
 0x653   : >> { %8883 = vrcp.f32 %v1857_v25 }
 0x654   : >> { %v8866_v26 = vpop.eup %8865  ;;  %8885 = vpow2.f32 %v7407_v13 }
 0x655   : >> { %v8868_v17 = vpop.eup %8867  ;;  %1978 = vrot.lane.b32.xlu1 %v8866_v26, %s10060_s18  ;;  %v1951_v5 = vpop.permute.xlu1 %1950 }
 0x656   : >> { %v11294_v32 = vpop.eup %8869  ;;  %v1997_v44 = vmul.f32 %v11290_v6, %v1951_v5  ;;  %v1949_v36 = vpop.permute.xlu0 %1948  ;;  %1976 = vrot.lane.b32.xlu0 %v8868_v17, %s10060_s18  ;;  %v7409_v5 = vmul.f32 -1.442695, %v11257_v11  ;;  %v7411_v11 = vmul.f32 -1.442695, %v11267_v8 }
 0x657   : >> { %v1996_v4 = vmul.f32 %v11294_v32, %v1949_v36  ;;  %v8872_v23 = vpop.eup %8871 }
 0x658   : >> { %v11302_v12 = vpop.eup %8873  ;;  %v1856_v39 = vadd.f32 1.0, %v8872_v23 }
 0x659   : >> { %2030 = vrot.lane.b32.xlu1 %v1997_v44, %s10060_s18  ;;  %v8876_v43 = vpop.eup %8875 }
 0x65a   : >> { %2028 = vrot.lane.b32.xlu0 %v1996_v4, %s10060_s18  ;;  %v11304_v7 = vpop.eup %8877  ;;  %8887 = vrcp.f32 %v1856_v39  ;;  %v1859_v17 = vadd.f32 1.0, %v8876_v43 }
 0x65b   : >> { %v8880_v14 = vpop.eup %8879  ;;  %8889 = vpow2.f32 %v7410_v27 }
 0x65c   : >> { %v1955_v10 = vpop.permute.xlu1 %1954  ;;  %v8882_v44 = vpop.eup %8881  ;;  %v1858_v36 = vadd.f32 1.0, %v8880_v14  ;;  %8891 = vrcp.f32 %v1859_v17 }
 0x65d   : >> { %v1999_v24 = vmul.f32 %v11302_v12, %v1955_v10  ;;  %v1953_v26 = vpop.permute.xlu0 %1952  ;;  %v1861_v4 = vadd.f32 1.0, %v8882_v44  ;;  %8893 = vpow2.f32 %v7409_v5  ;;  %v11312_v23 = vpop.eup %8883 }
 0x65e   : >> { %v1998_v34 = vmul.f32 %v11304_v7, %v1953_v26  ;;  %8895 = vrcp.f32 %v1858_v36  ;;  %v8886_v25 = vpop.eup %8885 }
 0x65f   : >> { %2034 = vrot.lane.b32.xlu1 %v1999_v24, %s10060_s18  ;;  %8897 = vrcp.f32 %v1861_v4  ;;  %v1860_v24 = vadd.f32 1.0, %v8886_v25 }
 0x660   : >> { %2032 = vrot.lane.b32.xlu0 %v1998_v34, %s10060_s18  ;;  %8899 = vpow2.f32 %v7412_v16 }
 0x661   : >> { %8901 = vpow2.f32 %v7411_v11 }
 0x662   : >> { %8903 = vrcp.f32 %v1860_v24 }
 0x664   : >> { %v1959_v13 = vpop.permute.xlu1 %1958  ;;  %v11316_v43 = vpop.eup %8887 }
 0x665   : >> { %v2001_v39 = vmul.f32 %v11312_v23, %v1959_v13  ;;  %v1957_v10 = vpop.permute.xlu0 %1956  ;;  %v8890_v27 = vpop.eup %8889 }
 0x666   : >> { %v2000_v26 = vmul.f32 %v11316_v43, %v1957_v10  ;;  %v11322_v22 = vpop.eup %8891  ;;  %v1863_v5 = vadd.f32 1.0, %v8890_v27 }
 0x667   : >> { %2038 = vrot.lane.b32.xlu1 %v2001_v39, %s10060_s18  ;;  %v8894_v17 = vpop.eup %8893 }
 0x668   : >> { %2036 = vrot.lane.b32.xlu0 %v2000_v26, %s10060_s18  ;;  %v11325_v8 = vpop.eup %8895  ;;  %v1862_v4 = vadd.f32 1.0, %v8894_v17  ;;  %8905 = vrcp.f32 %v1863_v5 }
 0x669   : >> { %v11329_v16 = vpop.eup %8897 }
 0x66a   : >> { %v8900_v25 = vpop.eup %8899  ;;  %8907 = vrcp.f32 %v1862_v4 }
 0x66b   : >> { %v8902_v11 = vpop.eup %8901  ;;  %v1865_v10 = vadd.f32 1.0, %v8900_v25 }
 0x66c   : >> { %v1963_v34 = vpop.permute.xlu1 %1962  ;;  %v11334_v24 = vpop.eup %8903 }
 0x66d   : >> { %v2003_v14 = vmul.f32 %v11322_v22, %v1963_v34  ;;  %v1961_v44 = vpop.permute.xlu0 %1960  ;;  %v1864_v34 = vadd.f32 1.0, %v8902_v11  ;;  %8909 = vrcp.f32 %v1865_v10 }
 0x66e   : >> { %v2002_v36 = vmul.f32 %v11325_v8, %v1961_v44 }
 0x66f   : >> { %2042 = vrot.lane.b32.xlu1 %v2003_v14, %s10060_s18  ;;  %8911 = vrcp.f32 %v1864_v34  ;;  %v7413_v34 = vmul.f32 -1.442695, %v11283_v19  ;;  %v15814_v19 = vld [vmem:[#allocation28_spill] sm:$0xff] }
 0x670   : >> { %2040 = vrot.lane.b32.xlu0 %v2002_v36, %s10060_s18 }
 0x672   : >> { %v11338_v14 = vpop.eup %8905 }
 0x674   : >> { %v1967_v13 = vpop.permute.xlu1 %1966  ;;  %v11341_v44 = vpop.eup %8907 }
 0x675   : >> { %v2005_v39 = vmul.f32 %v11329_v16, %v1967_v13  ;;  %v1965_v26 = vpop.permute.xlu0 %1964 }
 0x676   : >> { %v2004_v27 = vmul.f32 %v11334_v24, %v1965_v26 }
 0x677   : >> { %2046 = vrot.lane.b32.xlu1 %v2005_v39, %s10060_s18  ;;  %v11346_v25 = vpop.eup %8909 }
 0x678   : >> { %2044 = vrot.lane.b32.xlu0 %v2004_v27, %s10060_s18  ;;  %v7414_v27 = vmul.f32 -1.442695, %v11280_v9 }
 0x679   : >> { %v11349_v11 = vpop.eup %8911 }
 0x67a   : >> { %8913 = vpow2.f32 %v7414_v27  ;;  %v15815_v27 = vld [vmem:[#allocation27_spill] sm:$0xff] }
 0x67b   : >> { %8915 = vpow2.f32 %v7413_v34  ;;  %v15816_v34 = vld [vmem:[#allocation29_spill] sm:$0xff] }
 0x67c   : >> { %v1971_v17 = vpop.permute.xlu1 %1970 }
 0x67d   : >> { %v2007_v5 = vmul.f32 %v11338_v14, %v1971_v17  ;;  %v1969_v36 = vpop.permute.xlu0 %1968 }
 0x67e   : >> { %v2006_v4 = vmul.f32 %v11341_v44, %v1969_v36 }
 0x67f   : >> { %2050 = vrot.lane.b32.xlu1 %v2007_v5, %s10060_s18 }
 0x680   : >> { %2048 = vrot.lane.b32.xlu0 %v2006_v4, %s10060_s18 }
 0x684   : >> { %v1975_v13 = vpop.permute.xlu1 %1974  ;;  %v8914_v17 = vpop.eup %8913 }
 0x685   : >> { %v2009_v39 = vmul.f32 %v11346_v25, %v1975_v13  ;;  %v1973_v10 = vpop.permute.xlu0 %1972  ;;  %v8916_v5 = vpop.eup %8915  ;;  %v1867_v36 = vadd.f32 1.0, %v8914_v17  ;;  %v15817_v17 = vld [vmem:[#allocation30_spill] sm:$0xff] }
 0x686   : >> { %v2008_v26 = vmul.f32 %v11349_v11, %v1973_v10  ;;  %v1866_v4 = vadd.f32 1.0, %v8916_v5  ;;  %v15818_v5 = vld [vmem:[#allocation31_spill] sm:$0xff] }
 0x687   : >> { %2054 = vrot.lane.b32.xlu1 %v2009_v39, %s10060_s18  ;;  %8917 = vrcp.f32 %v1867_v36  ;;  %v15819_v36 = vld [vmem:[#allocation32_spill] sm:$0xff] }
 0x688   : >> { %2052 = vrot.lane.b32.xlu0 %v2008_v26, %s10060_s18  ;;  %8919 = vrcp.f32 %v1866_v4  ;;  %v15821_v4 = vld [vmem:[#allocation34_spill] sm:$0xff] }
 0x691   : >> { %v11356_v13 = vpop.eup %8917 }
 0x692   : >> { %v11358_v39 = vpop.eup %8919 }
 0x6c7   : >> { %v1979_v46 = vpop.permute.xlu1 %1978 }
 0x6c8   : >> { %v2011_v10 = vmul.f32 %v11356_v13, %v1979_v46  ;;  %v1977_v26 = vpop.permute.xlu0 %1976  ;;  %v15820_v46 = vld [vmem:[#allocation33_spill] sm:$0xff] }
 0x6c9   : >> { %v2010_v9 = vmul.f32 %v11358_v39, %v1977_v26 }
 0x6ca   : >> { %2058 = vrot.lane.b32.xlu1 %v2011_v10, %s10060_s18  ;;  %v11376_v10 = vsel %vm1511_vm2, %v10902_v20, %v9985_v62  ;;  %v15826_v62 = vld [vmem:[#allocation36_spill] sm:$0xff]  ;;  %vm15871_vm2 = vcmp.eq.s32.totalorder %v11015_v37, 1 }
 0x6cb   : >> { %2056 = vrot.lane.b32.xlu0 %v2010_v9, %s10060_s18  ;;  %15822 = vst [vmem:[#allocation28_spill] sm:$0xff] %v11376_v10  ;;  %v15823_v9 = vld [vmem:[#allocation22_spill] sm:$0xff] }
 0x6cc   : >> { %v2029_v26 = vpop.permute.xlu0 %2028  ;;  %15827 = vst [vmem:[#allocation22_spill] sm:$0xff] %v11396_v51 }
 0x6ce   : >> { %2192 = vperm.xlu1 %8684, %v15814_v19  }
 0x6cf   : >> { %2189 = vperm.xlu0 %8683, %v15815_v27  }
 0x6d2   : >> { %2195 = vperm.xlu1 %8684, %v15816_v34   ;;  %v2031_v34 = vpop.permute.xlu1 %2030  ;;  %v2033_v20 = vpop.permute.xlu0 %2032 }
 0x6d3   : >> { %2198 = vperm.xlu0 %8683, %v15817_v17   ;;  %v11382_v17 = vsel %vm1512_vm3, %v10893_v38, %v15823_v9 }
 0x6d6   : >> { %2201 = vperm.xlu1 %8684, %v15818_v5   ;;  %v2035_v9 = vpop.permute.xlu1 %2034 }
 0x6d7   : >> { %2204 = vperm.xlu0 %8683, %v15819_v36   ;;  %v1916_v36 = vmul.f32 %v11294_v32, %v11376_v10  ;;  %v15829_v10 = vld [vmem:[#allocation37_spill] sm:$0xff] }
 0x6d9   : >> { %v11389_v5 = vadd.f32 %v2029_v26, %v1916_v36  ;;  %v1918_v36 = vmul.f32 %v11304_v7, %v11396_v51  ;;  %v1919_v26 = vmul.f32 %v11302_v12, %v11404_v1  ;;  %v15837_v51 = vld [vmem:[#allocation43_spill] sm:$0xff] }
 0x6da   : >> { %2207 = vperm.xlu1 %8684, %v15820_v46   ;;  %v15824_v46 = vld [vmem:[#allocation35_spill] sm:$0xff]  ;;  %v2037_v47 = vpop.permute.xlu0 %2036 }
 0x6db   : >> { %2210 = vperm.xlu0 %8683, %v15821_v4   ;;  %v1917_v4 = vmul.f32 %v11290_v6, %v11382_v17  ;;  %15825 = vst [vmem:[#allocation27_spill] sm:$0xff] %v11389_v5  ;;  %15828 = vst [vmem:[#allocation35_spill] sm:$0xff] %v11404_v1  ;;  %8921 = vtanh.f32 %v11389_v5  ;;  %v11412_v60 = vadd.f32 %v2033_v20, %v1918_v36  ;;  %v2039_v20 = vpop.permute.xlu1 %2038  ;;  %v15843_v5 = vld [vmem:[#allocation46_spill] sm:$0xff] }
 0x6dc   : >> { %v11422_v3 = vadd.f32 %v2035_v9, %v1919_v26  ;;  %v15841_v26 = vld [vmem:[#allocation40_spill] sm:$0xff] }
 0x6dd   : >> { %v11398_v38 = vadd.f32 %v2031_v34, %v1917_v4  ;;  %15830 = vst [vmem:[#allocation57_spill] sm:$0xff] %v11412_v60  ;;  %v15833_v34 = vld [vmem:[#allocation44_spill] sm:$0xff] }
 0x6de   : >> { %2213 = vperm.xlu1 %8684, %v15824_v46   ;;  %v11419_v59 = vsel %vm1515_vm7, %v15833_v34, %v15832_v0  ;;  %15835 = vst [vmem:[#allocation44_spill] sm:$0xff] %v11422_v3  ;;  %v15836_v4 = vld [vmem:[#allocation20_spill] sm:$0xff]  ;;  %v15839_v0 = vld [vmem:[#allocation39_spill] sm:$0xff] }
 0x6df   : >> { %2216 = vperm.xlu0 %8683, %v15826_v62   ;;  %15834 = vst [vmem:[#allocation21_spill] sm:$0xff] %v11419_v59  ;;  %8923 = vtanh.f32 %v11398_v38  ;;  %v11428_v1 = vsel %vm1516_vm6, %v15837_v51, %v15836_v4  ;;  %v1920_v36 = vmul.f32 %v11316_v43, %v11419_v59  ;;  %v15842_v34 = vld [vmem:[#allocation19_spill] sm:$0xff]  ;;  %v15845_v59 = vld [vmem:[#allocation18_spill] sm:$0xff] }
 0x6e0   : >> { %15838 = vst [vmem:[#allocation20_spill] sm:$0xff] %v11428_v1  ;;  %v1921_v15 = vmul.f32 %v11312_v23, %v11428_v1  ;;  %8925 = vtanh.f32 %v11412_v60  ;;  %v11443_v2 = vsel %vm1517_vm9, %v15843_v5, %v15842_v34  ;;  %v15846_v1 = vld [vmem:[#allocation45_spill] sm:$0xff] }
 0x6e1   : >> { %v11436_v9 = vadd.f32 %v2037_v47, %v1920_v36  ;;  %15844 = vst [vmem:[#allocation19_spill] sm:$0xff] %v11443_v2  ;;  %8927 = vtanh.f32 %v11422_v3  ;;  %v11452_v60 = vsel %vm1518_vm8, %v15846_v1, %v15845_v59  ;;  %v2043_v47 = vpop.permute.xlu1 %2042  ;;  %v1922_v36 = vmul.f32 %v11325_v8, %v11443_v2  ;;  %v15848_v5 = vld [vmem:[#allocation41_spill] sm:$0xff]  ;;  %v15851_v3 = vld [vmem:[#allocation48_spill] sm:$0xff] }
 0x6e2   : >> { %2219 = vperm.xlu1 %8684, %v15829_v10   ;;  %v11446_v51 = vadd.f32 %v2039_v20, %v1921_v15  ;;  %v2041_v4 = vpop.permute.xlu0 %2040  ;;  %15847 = vst [vmem:[#allocation46_spill] sm:$0xff] %v11452_v60  ;;  %v1923_v31 = vmul.f32 %v11322_v22, %v11452_v60  ;;  %v15849_v15 = vld [vmem:[#allocation42_spill] sm:$0xff]  ;;  %v15850_v34 = vld [vmem:[#allocation17_spill] sm:$0xff]  ;;  %v15853_v2 = vld [vmem:[#allocation16_spill] sm:$0xff] }
 0x6e3   : >> { %2222 = vperm.xlu0 %8683, %v15831_v28   ;;  %15840 = vst [vmem:[#allocation43_spill] sm:$0xff] %v11436_v9  ;;  %8929 = vtanh.f32 %v11436_v9  ;;  %v11460_v20 = vadd.f32 %v2041_v4, %v1922_v36  ;;  %v11467_v63 = vsel %vm1519_vm11, %v15851_v3, %v15850_v34  ;;  %v15854_v60 = vld [vmem:[#allocation47_spill] sm:$0xff] }
 0x6e4   : >> { %15852 = vst [vmem:[#allocation18_spill] sm:$0xff] %v11467_v63  ;;  %8931 = vtanh.f32 %v11446_v51  ;;  %v11470_v1 = vadd.f32 %v2043_v47, %v1923_v31  ;;  %v11476_v9 = vsel %vm1520_vm10, %v15854_v60, %v15853_v2  ;;  %v1924_v36 = vmul.f32 %v11334_v24, %v11467_v63  ;;  %v15858_v60 = vld [vmem:[#allocation49_spill] sm:$0xff] }
 0x6e5   : >> { %v8922_v59 = vpop.eup %8921  ;;  %15855 = vst [vmem:[#allocation45_spill] sm:$0xff] %v11476_v9  ;;  %v1925_v33 = vmul.f32 %v11329_v16, %v11476_v9  ;;  %8933 = vtanh.f32 %v11460_v20  ;;  %v11491_v2 = vsel %vm1522_vm12, %v15858_v60, %v15857_v35 }
 0x6e6   : >> { %2225 = vperm.xlu1 %8684, %v15839_v0   ;;  %15859 = vst [vmem:[#allocation48_spill] sm:$0xff] %v11491_v2  ;;  %8935 = vtanh.f32 %v11470_v1  ;;  %v1927_v34 = vmul.f32 %v11338_v14, %v11491_v2 }
 0x6e7   : >> { %2228 = vperm.xlu0 %8683, %v15841_v26  }
 0x6e9   : >> { %v2047_v4 = vpop.permute.xlu1 %2046  ;;  %v8924_v26 = vpop.eup %8923 }
 0x6ea   : >> { %2231 = vperm.xlu1 %8684, %v15848_v5   ;;  %v11494_v47 = vadd.f32 %v2047_v4, %v1925_v33  ;;  %v8926_v31 = vpop.eup %8925 }
 0x6eb   : >> { %2234 = vperm.xlu0 %8683, %v15849_v15   ;;  %v2045_v15 = vpop.permute.xlu0 %2044 }
 0x6ec   : >> { %v11484_v3 = vadd.f32 %v2045_v15, %v1924_v36  ;;  %15860 = vst [vmem:[#allocation16_spill] sm:$0xff] %v11494_v47  ;;  %v15861_v15 = vld [vmem:[#allocation15_spill] sm:$0xff] }
 0x6ee   : >> { %2124 = vrot.lane.b32.xlu1 %v8922_v59, %s10060_s18  ;;  %15856 = vst [vmem:[#allocation17_spill] sm:$0xff] %v11484_v3  ;;  %v8928_v59 = vpop.eup %8927  ;;  %8937 = vtanh.f32 %v11484_v3 }
 0x6ef   : >> { %2126 = vrot.lane.b32.xlu0 %v8924_v26, %s10060_s18  ;;  %v15862_v26 = vld [vmem:[#allocation50_spill] sm:$0xff]  ;;  %8939 = vtanh.f32 %v11494_v47  ;;  %v8930_v33 = vpop.eup %8929 }
 0x6f0   : >> { %v11503_v36 = vsel %vm1521_vm13, %v15862_v26, %v15861_v15  ;;  %v8932_v60 = vpop.eup %8931 }
 0x6f1   : >> { %v2051_v63 = vpop.permute.xlu1 %2050  ;;  %15863 = vst [vmem:[#allocation47_spill] sm:$0xff] %v11503_v36  ;;  %v1926_v4 = vmul.f32 %v11341_v44, %v11503_v36 }
 0x6f2   : >> { %2128 = vrot.lane.b32.xlu1 %v8926_v31, %s10060_s18  ;;  %v11506_v61 = vadd.f32 %v2051_v63, %v1927_v34  ;;  %v2049_v35 = vpop.permute.xlu0 %2048  ;;  %v15867_v63 = vld [vmem:[#allocation51_spill] sm:$0xff] }
 0x6f3   : >> { %2130 = vrot.lane.b32.xlu0 %v8928_v59, %s10060_s18  ;;  %v11512_v31 = vadd.f32 %v2049_v35, %v1926_v4  ;;  %v11521_v34 = vsel %vm1524_vm14, %v15867_v63, %v15866_v50  ;;  %v8934_v59 = vpop.eup %8933  ;;  %v15870_v35 = vld [vmem:[#allocation52_spill] sm:$0xff] }
 0x6f4   : >> { %15864 = vst [vmem:[#allocation14_spill] sm:$0xff] %v11506_v61  ;;  %8941 = vtanh.f32 %v11506_v61  ;;  %15868 = vst [vmem:[#allocation15_spill] sm:$0xff] %v11521_v34  ;;  %v1929_v15 = vmul.f32 %v11346_v25, %v11521_v34  ;;  %v8936_v26 = vpop.eup %8935 }
 0x6f5   : >> { %15865 = vst [vmem:[#allocation49_spill] sm:$0xff] %v11512_v31  ;;  %8943 = vtanh.f32 %v11512_v31 }
 0x6f6   : >> { %2132 = vrot.lane.b32.xlu1 %v8930_v33, %s10060_s18  ;;  %v15869_v33 = vld [vmem:[#allocation13_spill] sm:$0xff] }
 0x6f7   : >> { %2134 = vrot.lane.b32.xlu0 %v8932_v60, %s10060_s18  ;;  %v11531_v60 = vsel %vm15871_vm2, %v15870_v35, %v15869_v33 }
 0x6f8   : >> { %15872 = vst [vmem:[#allocation50_spill] sm:$0xff] %v11531_v60  ;;  %v1928_v53 = vmul.f32 %v11349_v11, %v11531_v60  ;;  %v8938_v50 = vpop.eup %8937 }
 0x6f9   : >> { %v2055_v4 = vpop.permute.xlu1 %2054  ;;  %v8940_v34 = vpop.eup %8939 }
 0x6fa   : >> { %2136 = vrot.lane.b32.xlu1 %v8934_v59, %s10060_s18  ;;  %v11533_v36 = vadd.f32 %v2055_v4, %v1929_v15  ;;  %v2053_v63 = vpop.permute.xlu0 %2052  ;;  %v15875_v4 = vld [vmem:[#allocation10_spill] sm:$0xff] }
 0x6fb   : >> { %2138 = vrot.lane.b32.xlu0 %v8936_v26, %s10060_s18  ;;  %v11539_v31 = vadd.f32 %v2053_v63, %v1928_v53  ;;  %v11552_v33 = vsel %vm1526_vm15, %v11025_v42, %v15875_v4 }
 0x6fc   : >> { %15873 = vst [vmem:[#allocation12_spill] sm:$0xff] %v11533_v36  ;;  %8945 = vtanh.f32 %v11533_v36  ;;  %15876 = vst [vmem:[#allocation13_spill] sm:$0xff] %v11552_v33  ;;  %v1931_v53 = vmul.f32 %v11356_v13, %v11552_v33 }
 0x6fd   : >> { %15874 = vst [vmem:[#allocation51_spill] sm:$0xff] %v11539_v31  ;;  %8947 = vtanh.f32 %v11539_v31 }
 0x6fe   : >> { %2140 = vrot.lane.b32.xlu1 %v8938_v50, %s10060_s18  ;;  %v8942_v37 = vpop.eup %8941 }
 0x6ff   : >> { %2142 = vrot.lane.b32.xlu0 %v8940_v34, %s10060_s18  ;;  %v8944_v59 = vpop.eup %8943  ;;  %v15877_v34 = vld [vmem:[#allocation11_spill] sm:$0xff] }
 0x700   : >> { %v11558_v35 = vsel %vm1525_vm1, %v11023_v55, %v15877_v34 }
 0x701   : >> { %15878 = vst [vmem:[#allocation52_spill] sm:$0xff] %v11558_v35  ;;  %v1930_v63 = vmul.f32 %v11358_v39, %v11558_v35 }
 0x702   : >> { %2144 = vrot.lane.b32.xlu1 %v8944_v59, %s10060_s18 }
 0x703   : >> { %2146 = vrot.lane.b32.xlu0 %v8942_v37, %s10060_s18 }
 0x706   : >> { %v8946_v15 = vpop.eup %8945 }
 0x707   : >> { %2150 = vrot.lane.b32.xlu0 %v8946_v15, %s10060_s18  ;;  %v8948_v26 = vpop.eup %8947 }
 0x708   : >> { %2148 = vrot.lane.b32.xlu1 %v8948_v26, %s10060_s18 }
 0x73c   : >> { %v2059_v50 = vpop.permute.xlu1 %2058 }
 0x73d   : >> { %v11564_v37 = vadd.f32 %v2059_v50, %v1931_v53  ;;  %v2057_v59 = vpop.permute.xlu0 %2056 }
 0x73e   : >> { %v11566_v15 = vadd.f32 %v2057_v59, %v1930_v63 }
 0x73f   : >> { %15879 = vst [vmem:[#allocation10_spill] sm:$0xff] %v11564_v37  ;;  %8949 = vtanh.f32 %v11564_v37 }
 0x740   : >> { %15880 = vst [vmem:[#allocation11_spill] sm:$0xff] %v11566_v15  ;;  %8951 = vtanh.f32 %v11566_v15 }
 0x749   : >> { %v8950_v42 = vpop.eup %8949 }
 0x74a   : >> { %v8952_v56 = vpop.eup %8951  ;;  %2154 = vrot.lane.b32.xlu0 %v8950_v42, %s10060_s18 }
 0x74b   : >> { %2152 = vrot.lane.b32.xlu1 %v8952_v56, %s10060_s18 }
 0x74d   : >> { %v11572_v55 = vpop.permute.xlu1 %2192 }
 0x74e   : >> { %v11574_v41 = vpop.permute.xlu0 %2189  ;;  %vm2237_vm4 = vcmp.eq.s32.totalorder %v11572_v55, 1 }
 0x74f   : >> { %vm2236_vm3 = vcmp.eq.s32.totalorder %v11574_v41, 1 }
 0x751   : >> { %v11576_v26 = vpop.permute.xlu1 %2195 }
 0x752   : >> { %v11578_v4 = vpop.permute.xlu0 %2198  ;;  %vm2238_vm5 = vcmp.eq.s32.totalorder %v11576_v26, 1 }
 0x753   : >> { %vm2239_vm6 = vcmp.eq.s32.totalorder %v11578_v4, 1 }
 0x755   : >> { %v11580_v34 = vpop.permute.xlu1 %2201 }
 0x756   : >> { %v11582_v53 = vpop.permute.xlu0 %2204  ;;  %vm2240_vm7 = vcmp.eq.s32.totalorder %v11580_v34, 1 }
 0x757   : >> { %vm2241_vm8 = vcmp.eq.s32.totalorder %v11582_v53, 1 }
 0x759   : >> { %v11584_v50 = vpop.permute.xlu1 %2207 }
 0x75a   : >> { %v11586_v63 = vpop.permute.xlu0 %2210  ;;  %vm2242_vm9 = vcmp.eq.s32.totalorder %v11584_v50, 1 }
 0x75b   : >> { %vm2243_vm10 = vcmp.eq.s32.totalorder %v11586_v63, 1 }
 0x75d   : >> { %v11588_v59 = vpop.permute.xlu1 %2213 }
 0x75e   : >> { %v11590_v42 = vpop.permute.xlu0 %2216  ;;  %vm2244_vm11 = vcmp.eq.s32.totalorder %v11588_v59, 1 }
 0x75f   : >> { %vm2245_vm12 = vcmp.eq.s32.totalorder %v11590_v42, 1 }
 0x761   : >> { %v11592_v56 = vpop.permute.xlu1 %2219 }
 0x762   : >> { %v11594_v15 = vpop.permute.xlu0 %2222  ;;  %vm2246_vm13 = vcmp.eq.s32.totalorder %v11592_v56, 1 }
 0x763   : >> { %vm2247_vm14 = vcmp.eq.s32.totalorder %v11594_v15, 1 }
 0x765   : >> { %v11596_v35 = vpop.permute.xlu1 %2225 }
 0x766   : >> { %v11598_v37 = vpop.permute.xlu0 %2228  ;;  %vm15513_vm15 = vcmp.eq.s32.totalorder %v11596_v35, 1 }
 0x767   : >> { %vm2249_vm1 = vcmp.eq.s32.totalorder %v11598_v37, 1 }
 0x769   : >> { %v11600_v33 = vpop.permute.xlu1 %2231 }
 0x76a   : >> { %v11602_v31 = vpop.permute.xlu0 %2234 }
 0x76b   : >> { %vm2251_vm2 = vcmp.eq.s32.totalorder %v11602_v31, 1 }
 0x76d   : >> { %v2125_v60 = vpop.permute.xlu1 %2124 }
 0x76e   : >> { %v2172_v36 = vmul.f32 %v11294_v32, %v2125_v60  ;;  %v2127_v61 = vpop.permute.xlu0 %2126 }
 0x76f   : >> { %v2173_v2 = vmul.f32 %v11290_v6, %v2127_v61 }
 0x770   : >> { %v11611_v3 = vsel %vm2236_vm3, %v2172_v36, %v11041_v54 }
 0x771   : >> { %2300 = vrot.lane.b32.xlu1 %v11611_v3, %s10059_s22  ;;  %v2129_v47 = vpop.permute.xlu1 %2128  ;;  %v11618_v32 = vsel %vm2237_vm4, %v2173_v2, %v11050_v49 }
 0x772   : >> { %v2174_v60 = vmul.f32 %v11304_v7, %v2129_v47  ;;  %v2131_v9 = vpop.permute.xlu0 %2130  ;;  %2302 = vrot.lane.b32.xlu0 %v11618_v32, %s10059_s22 }
 0x773   : >> { %v2175_v54 = vmul.f32 %v11302_v12, %v2131_v9 }
 0x774   : >> { %v11629_v6 = vsel %vm2238_vm5, %v2174_v60, %v11067_v48 }
 0x775   : >> { %2304 = vrot.lane.b32.xlu1 %v11629_v6, %s10059_s22  ;;  %v2133_v49 = vpop.permute.xlu1 %2132  ;;  %v11636_v7 = vsel %vm2239_vm6, %v2175_v54, %v11059_v18 }
 0x776   : >> { %v2176_v2 = vmul.f32 %v11316_v43, %v2133_v49  ;;  %v2135_v47 = vpop.permute.xlu0 %2134  ;;  %2306 = vrot.lane.b32.xlu0 %v11636_v7, %s10059_s22 }
 0x777   : >> { %v2177_v48 = vmul.f32 %v11312_v23, %v2135_v47 }
 0x778   : >> { %v11647_v12 = vsel %vm2240_vm7, %v2176_v2, %v11087_v45 }
 0x779   : >> { %2308 = vrot.lane.b32.xlu1 %v11647_v12, %s10059_s22  ;;  %v2137_v18 = vpop.permute.xlu1 %2136  ;;  %v11654_v43 = vsel %vm2241_vm8, %v2177_v48, %v11078_v21 }
 0x77a   : >> { %v2178_v9 = vmul.f32 %v11325_v8, %v2137_v18  ;;  %v2139_v36 = vpop.permute.xlu0 %2138  ;;  %2310 = vrot.lane.b32.xlu0 %v11654_v43, %s10059_s22 }
 0x77b   : >> { %v2179_v45 = vmul.f32 %v11322_v22, %v2139_v36 }
 0x77c   : >> { %v11665_v23 = vsel %vm2242_vm9, %v2178_v9, %v11105_v52 }
 0x77d   : >> { %2312 = vrot.lane.b32.xlu1 %v11665_v23, %s10059_s22  ;;  %v2141_v21 = vpop.permute.xlu1 %2140  ;;  %v11672_v8 = vsel %vm2243_vm10, %v2179_v45, %v11096_v30  ;;  %v15889_v45 = vld [vmem:[#allocation23_spill] sm:$0xff] }
 0x77e   : >> { %v2180_v61 = vmul.f32 %v11334_v24, %v2141_v21  ;;  %v2143_v60 = vpop.permute.xlu0 %2142  ;;  %2314 = vrot.lane.b32.xlu0 %v11672_v8, %s10059_s22 }
 0x77f   : >> { %v2181_v52 = vmul.f32 %v11329_v16, %v2143_v60 }
 0x780   : >> { %v11683_v22 = vsel %vm2244_vm11, %v2180_v61, %v11123_v40  ;;  %v15891_v61 = vld [vmem:[#allocation55_spill] sm:$0xff] }
 0x781   : >> { %15881 = vst [vmem:[#allocation58_spill] sm:$0xff] %v11683_v22  ;;  %2316 = vrot.lane.b32.xlu1 %v11683_v22, %s10059_s22  ;;  %v2145_v30 = vpop.permute.xlu1 %2144  ;;  %v11690_v24 = vsel %vm2245_vm12, %v2181_v52, %v11114_v29  ;;  %v15893_v52 = vld [vmem:[#allocation24_spill] sm:$0xff] }
 0x782   : >> { %15882 = vst [vmem:[#allocation59_spill] sm:$0xff] %v11690_v24  ;;  %v2182_v54 = vmul.f32 %v11341_v44, %v2145_v30  ;;  %v2147_v49 = vpop.permute.xlu0 %2146  ;;  %2318 = vrot.lane.b32.xlu0 %v11690_v24, %s10059_s22 }
 0x783   : >> { %v2183_v40 = vmul.f32 %v11338_v14, %v2147_v49  ;;  %v15885_v14 = vld [vmem:[#allocation54_spill] sm:$0xff] }
 0x784   : >> { %v11701_v16 = vsel %vm2246_vm13, %v2182_v54, %v11141_v58  ;;  %v15894_v54 = vld [vmem:[#allocation25_spill] sm:$0xff] }
 0x785   : >> { %15883 = vst [vmem:[#allocation60_spill] sm:$0xff] %v11701_v16  ;;  %2320 = vrot.lane.b32.xlu1 %v11701_v16, %s10059_s22  ;;  %v2149_v29 = vpop.permute.xlu1 %2148  ;;  %v11708_v44 = vsel %vm2247_vm14, %v2183_v40, %v11132_v57  ;;  %v15887_v57 = vld [vmem:[#allocation53_spill] sm:$0xff] }
 0x786   : >> { %15884 = vst [vmem:[#allocation61_spill] sm:$0xff] %v11708_v44  ;;  %v2184_v2 = vmul.f32 %v11349_v11, %v2149_v29  ;;  %v2151_v47 = vpop.permute.xlu0 %2150  ;;  %2322 = vrot.lane.b32.xlu0 %v11708_v44, %s10059_s22 }
 0x787   : >> { %v2185_v58 = vmul.f32 %v11346_v25, %v2151_v47 }
 0x788   : >> { %v11719_v48 = vsel %vm15513_vm15, %v2184_v2, %v15885_v14  ;;  %vm2250_vm15 = vcmp.eq.s32.totalorder %v11600_v33, 1 }
 0x789   : >> { %15886 = vst [vmem:[#allocation54_spill] sm:$0xff] %v11719_v48  ;;  %2324 = vrot.lane.b32.xlu1 %v11719_v48, %s10059_s22  ;;  %v11726_v11 = vsel %vm2249_vm1, %v2185_v58, %v15887_v57 }
 0x78a   : >> { %15888 = vst [vmem:[#allocation53_spill] sm:$0xff] %v11726_v11  ;;  %2326 = vrot.lane.b32.xlu0 %v11726_v11, %s10059_s22 }
 0x7bc   : >> { %v2155_v18 = vpop.permute.xlu0 %2154 }
 0x7bd   : >> { %v2187_v25 = vmul.f32 %v11356_v13, %v2155_v18  ;;  %v2153_v9 = vpop.permute.xlu1 %2152 }
 0x7be   : >> { %v2186_v36 = vmul.f32 %v11358_v39, %v2153_v9 }
 0x7bf   : >> { %v11737_v21 = vsel %vm2251_vm2, %v2187_v25, %v15889_v45 }
 0x7c0   : >> { %15890 = vst [vmem:[#allocation23_spill] sm:$0xff] %v11737_v21  ;;  %2330 = vrot.lane.b32.xlu0 %v11737_v21, %s10059_s22  ;;  %v11744_v60 = vsel %vm2250_vm15, %v2186_v36, %v15891_v61  ;;  %v15895_v61 = vld [vmem:[#allocation26_spill] sm:$0xff] }
 0x7c1   : >> { %15892 = vst [vmem:[#allocation55_spill] sm:$0xff] %v11744_v60  ;;  %2328 = vrot.lane.b32.xlu1 %v11744_v60, %s10059_s22 }
 0x7e3   : >> { %v2301_v13 = vpop.permute.xlu1 %2300 }
 0x7e4   : >> { %v2303_v39 = vpop.permute.xlu0 %2302  ;;  %8007 = vmatprep.mubr.msk.f32.mxu0 %vm15776_vm0, %v2301_v13  ;;  %v2511_v13 = vsub.s32 2, %v15895_v61 }
 0x7e5   : >> { %8008 = vmatmul.mubr.msk.f32.vlgmr.msra.gmra.mrb[16].mxu0 %vm15776_vm0, %v2303_v39  ;;  %v15896_v39 = vld [vmem:[#allocation56_spill] sm:$0xff] }
 0x7e6   : >> { %8298 = vmatpush3.bf16.msra.mxu0 %v15893_v52 }
 0x7e7   : >> { %v2305_v30 = vpop.permute.xlu1 %2304  ;;  %8300 = vmatprep.subr.bf16.mxu0 %v15894_v54 }
 0x7e8   : >> { %v2307_v49 = vpop.permute.xlu0 %2306  ;;  %8010 = vmatprep.mubr.msk.f32.mxu0 %vm15776_vm0, %v2305_v30  ;;  %v11770_v30 = vrot.slane %v15896_v39, %v2511_v13 }
 0x7e9   : >> { %8011 = vmatmul.mubr.msk.f32.gmra.mrb[18].mxu0 %vm15776_vm0, %v2307_v49 }
 0x7ea   : >> { %8302 = vmatpush3.bf16.msra.mxu0 %v15894_v54 }
 0x7eb   : >> { %v2309_v40 = vpop.permute.xlu1 %2308  ;;  %8312 = vmatprep.subr.bf16.mxu0 %v15893_v52 }
 0x7ec   : >> { %v2311_v29 = vpop.permute.xlu0 %2310  ;;  %8013 = vmatprep.mubr.msk.f32.mxu0 %vm15776_vm0, %v2309_v40 }
 0x7ed   : >> { %8014 = vmatmul.mubr.msk.f32.gmra.mrb[20].mxu0 %vm15776_vm0, %v2311_v29 }
 0x7ef   : >> { %v2313_v2 = vpop.permute.xlu1 %2312 }
 0x7f0   : >> { %v2315_v47 = vpop.permute.xlu0 %2314  ;;  %8016 = vmatprep.mubr.msk.f32.mxu0 %vm15776_vm0, %v2313_v2 }
 0x7f1   : >> { %8017 = vmatmul.mubr.msk.f32.gmra.mrb[22].mxu0 %vm15776_vm0, %v2315_v47 }
 0x7f3   : >> { %v2317_v58 = vpop.permute.xlu1 %2316 }
 0x7f4   : >> { %v2319_v14 = vpop.permute.xlu0 %2318  ;;  %8019 = vmatprep.mubr.msk.f32.mxu0 %vm15776_vm0, %v2317_v58 }
 0x7f5   : >> { %8020 = vmatmul.mubr.msk.f32.gmra.mrb[24].mxu0 %vm15776_vm0, %v2319_v14 }
 0x7f7   : >> { %v2321_v57 = vpop.permute.xlu1 %2320 }
 0x7f8   : >> { %v2323_v18 = vpop.permute.xlu0 %2322  ;;  %8022 = vmatprep.mubr.msk.f32.mxu0 %vm15776_vm0, %v2321_v57 }
 0x7f9   : >> { %8023 = vmatmul.mubr.msk.f32.gmra.mrb[26].mxu0 %vm15776_vm0, %v2323_v18 }
 0x7fb   : >> { %v2325_v25 = vpop.permute.xlu1 %2324 }
 0x7fc   : >> { %v2327_v9 = vpop.permute.xlu0 %2326  ;;  %8025 = vmatprep.mubr.msk.f32.mxu0 %vm15776_vm0, %v2325_v25 }
 0x7fd   : >> { %8026 = vmatmul.mubr.msk.f32.gmra.mrb[28].mxu0 %vm15776_vm0, %v2327_v9 }
 0x832   : >> { %v2331_v45 = vpop.permute.xlu0 %2330 }
 0x833   : >> { %v2329_v36 = vpop.permute.xlu1 %2328 }
 0x834   : >> { %8028 = vmatprep.mubr.msk.f32.mxu0 %vm15776_vm0, %v2329_v36 }
 0x835   : >> { %8029 = vmatmul.mubr.msk.f32.gmra.mrb[30].mxu0 %vm15776_vm0, %v2331_v45 }
 0x8b8   : >> { %v8009_v49 = vpop.f32.mrb[16].mxu0 }
 0x8b9   : >> { %v11773_v40 = vadd.f32 %v8009_v49, %v11770_v30  ;;  %v2430_v29 = vpop.f32.mrb[17].mxu0 }
 0x8ba   : >> { %v11776_v2 = vadd.f32 %v11770_v30, %v2430_v29 }
 0x8bb   : >> { %8953 = vtanh.f32 %v11773_v40 }
 0x8bc   : >> { %8955 = vtanh.f32 %v11776_v2  ;;  %v8012_v47 = vpop.f32.mrb[18].mxu0 }
 0x8bd   : >> { %v11781_v58 = vadd.f32 %v8012_v47, %v11770_v30  ;;  %v2440_v14 = vpop.f32.mrb[19].mxu0 }
 0x8be   : >> { %v11784_v57 = vadd.f32 %v11770_v30, %v2440_v14 }
 0x8bf   : >> { %8957 = vtanh.f32 %v11781_v58 }
 0x8c0   : >> { %8959 = vtanh.f32 %v11784_v57  ;;  %v8015_v18 = vpop.f32.mrb[20].mxu0 }
 0x8c1   : >> { %v11789_v25 = vadd.f32 %v8015_v18, %v11770_v30  ;;  %v2450_v9 = vpop.f32.mrb[21].mxu0 }
 0x8c2   : >> { %v11792_v36 = vadd.f32 %v11770_v30, %v2450_v9 }
 0x8c3   : >> { %8961 = vtanh.f32 %v11789_v25  ;;  %v7436_v16 = vmul.f32 -1.442695, %v11789_v25 }
 0x8c4   : >> { %8963 = vtanh.f32 %v11792_v36  ;;  %v8018_v45 = vpop.f32.mrb[22].mxu0 }
 0x8c5   : >> { %v8954_v13 = vpop.eup %8953  ;;  %v11797_v39 = vadd.f32 %v8018_v45, %v11770_v30  ;;  %v2460_v49 = vpop.f32.mrb[23].mxu0 }
 0x8c6   : >> { %v8956_v29 = vpop.eup %8955  ;;  %v11800_v47 = vadd.f32 %v11770_v30, %v2460_v49  ;;  %2675 = vrot.lane.b32.xlu0 %v8954_v13, %s10060_s18 }
 0x8c7   : >> { %8965 = vtanh.f32 %v11797_v39  ;;  %2673 = vrot.lane.b32.xlu1 %v8956_v29, %s10060_s18 }
 0x8c8   : >> { %8967 = vtanh.f32 %v11800_v47  ;;  %v8021_v14 = vpop.f32.mrb[24].mxu0 }
 0x8c9   : >> { %v8958_v18 = vpop.eup %8957  ;;  %v2470_v9 = vpop.f32.mrb[25].mxu0  ;;  %v11809_v45 = vadd.f32 %v8021_v14, %v11770_v30 }
 0x8ca   : >> { %v8960_v61 = vpop.eup %8959  ;;  %2679 = vrot.lane.b32.xlu0 %v8958_v18, %s10060_s18  ;;  %v11815_v29 = vadd.f32 %v11770_v30, %v2470_v9 }
 0x8cb   : >> { %2677 = vrot.lane.b32.xlu1 %v8960_v61, %s10060_s18  ;;  %8969 = vtanh.f32 %v11809_v45 }
 0x8cc   : >> { %v8024_v49 = vpop.f32.mrb[26].mxu0  ;;  %8971 = vtanh.f32 %v11815_v29 }
 0x8cd   : >> { %v8962_v54 = vpop.eup %8961  ;;  %v2480_v13 = vpop.f32.mrb[27].mxu0  ;;  %v11819_v14 = vadd.f32 %v8024_v49, %v11770_v30 }
 0x8ce   : >> { %v8964_v52 = vpop.eup %8963  ;;  %2683 = vrot.lane.b32.xlu0 %v8962_v54, %s10060_s18 }
 0x8cf   : >> { %2681 = vrot.lane.b32.xlu1 %v8964_v52, %s10060_s18  ;;  %8973 = vtanh.f32 %v11819_v14  ;;  %v11825_v52 = vadd.f32 %v11770_v30, %v2480_v13 }
 0x8d0   : >> { %v8027_v60 = vpop.f32.mrb[28].mxu0 }
 0x8d1   : >> { %v8966_v18 = vpop.eup %8965  ;;  %v2490_v21 = vpop.f32.mrb[29].mxu0  ;;  %v11828_v54 = vadd.f32 %v8027_v60, %v11770_v30  ;;  %8975 = vtanh.f32 %v11825_v52 }
 0x8d2   : >> { %v8968_v61 = vpop.eup %8967  ;;  %2687 = vrot.lane.b32.xlu0 %v8966_v18, %s10060_s18  ;;  %v11833_v49 = vadd.f32 %v11770_v30, %v2490_v21 }
 0x8d3   : >> { %2685 = vrot.lane.b32.xlu1 %v8968_v61, %s10060_s18  ;;  %8977 = vtanh.f32 %v11828_v54 }
 0x8d4   : >> { %8979 = vtanh.f32 %v11833_v49 }
 0x8d5   : >> { %v8970_v9 = vpop.eup %8969 }
 0x8d6   : >> { %2691 = vrot.lane.b32.xlu0 %v8970_v9, %s10060_s18  ;;  %v8972_v18 = vpop.eup %8971 }
 0x8d7   : >> { %2689 = vrot.lane.b32.xlu1 %v8972_v18, %s10060_s18 }
 0x8d9   : >> { %v8974_v13 = vpop.eup %8973 }
 0x8da   : >> { %2695 = vrot.lane.b32.xlu0 %v8974_v13, %s10060_s18  ;;  %v10063_v13 = vmov 2  }
 0x8db   : >> { %v8976_v60 = vpop.eup %8975  ;;  %8686 = vset.pattern.permute.xlu0 %v10063_v13  ;;  %8685 = vset.pattern.permute.xlu1 %v10063_v13  ;;  %v7435_v13 = vmul.f32 -1.442695, %v11792_v36 }
 0x8dc   : >> { %2693 = vrot.lane.b32.xlu1 %v8976_v60, %s10060_s18 }
 0x8dd   : >> { %v8978_v61 = vpop.eup %8977 }
 0x8de   : >> { %2699 = vrot.lane.b32.xlu0 %v8978_v61, %s10060_s18  ;;  %v8980_v9 = vpop.eup %8979 }
 0x8e0   : >> { %2697 = vrot.lane.b32.xlu1 %v8980_v9, %s10060_s18  ;;  %v7432_v9 = vmul.f32 -1.442695, %v11773_v40  ;;  %v7437_v40 = vmul.f32 -1.442695, %v11800_v47 }
 0x908   : >> { %v8030_v21 = vpop.f32.mrb[30].mxu0 }
 0x909   : >> { %v11843_v48 = vadd.f32 %v8030_v21, %v11770_v30  ;;  %v2500_v11 = vpop.f32.mrb[31].mxu0  ;;  %v7431_v21 = vmul.f32 -1.442695, %v11776_v2 }
 0x90a   : >> { %v11846_v18 = vadd.f32 %v11770_v30, %v2500_v11  ;;  %v7434_v11 = vmul.f32 -1.442695, %v11781_v58  ;;  %v7433_v30 = vmul.f32 -1.442695, %v11784_v57 }
 0x90b   : >> { %8981 = vtanh.f32 %v11843_v48 }
 0x90c   : >> { %8983 = vtanh.f32 %v11846_v18 }
 0x90d   : >> { %8985 = vpow2.f32 %v7432_v9 }
 0x90e   : >> { %8987 = vpow2.f32 %v7431_v21 }
 0x90f   : >> { %8989 = vpow2.f32 %v7434_v11  ;;  %v7440_v11 = vmul.f32 -1.442695, %v11809_v45 }
 0x910   : >> { %8991 = vpow2.f32 %v7433_v30 }
 0x911   : >> { %8993 = vpow2.f32 %v7436_v16 }
 0x912   : >> { %8995 = vpow2.f32 %v7435_v13 }
 0x915   : >> { %v8982_v60 = vpop.eup %8981 }
 0x916   : >> { %v8984_v61 = vpop.eup %8983  ;;  %2703 = vrot.lane.b32.xlu0 %v8982_v60, %s10060_s18  ;;  %v7438_v60 = vmul.f32 -1.442695, %v11797_v39  ;;  %v7439_v39 = vmul.f32 -1.442695, %v11815_v29  ;;  %v7441_v29 = vmul.f32 -1.442695, %v11825_v52 }
 0x917   : >> { %2701 = vrot.lane.b32.xlu1 %v8984_v61, %s10060_s18  ;;  %v8986_v61 = vpop.eup %8985 }
 0x918   : >> { %v8988_v2 = vpop.eup %8987  ;;  %8997 = vpow2.f32 %v7438_v60  ;;  %v2578_v9 = vadd.f32 1.0, %v8986_v61  ;;  %v7442_v61 = vmul.f32 -1.442695, %v11819_v14  ;;  %v7444_v14 = vmul.f32 -1.442695, %v11828_v54 }
 0x919   : >> { %8999 = vpow2.f32 %v7437_v40  ;;  %v8990_v58 = vpop.eup %8989  ;;  %v2577_v21 = vadd.f32 1.0, %v8988_v2 }
 0x91a   : >> { %v8992_v57 = vpop.eup %8991  ;;  %9001 = vrcp.f32 %v2578_v9  ;;  %v2580_v25 = vadd.f32 1.0, %v8990_v58 }
 0x91b   : >> { %v8994_v30 = vpop.eup %8993  ;;  %9003 = vrcp.f32 %v2577_v21  ;;  %v2579_v16 = vadd.f32 1.0, %v8992_v57 }
 0x91c   : >> { %v8996_v36 = vpop.eup %8995  ;;  %9005 = vpow2.f32 %v7440_v11  ;;  %v2582_v47 = vadd.f32 1.0, %v8994_v30 }
 0x91d   : >> { %9007 = vrcp.f32 %v2580_v25  ;;  %v2581_v60 = vadd.f32 1.0, %v8996_v36 }
 0x91e   : >> { %9009 = vrcp.f32 %v2579_v16 }
 0x91f   : >> { %9011 = vpow2.f32 %v7439_v39 }
 0x920   : >> { %9013 = vrcp.f32 %v2582_v47 }
 0x921   : >> { %9015 = vrcp.f32 %v2581_v60 }
 0x922   : >> { %v8998_v13 = vpop.eup %8997  ;;  %9017 = vpow2.f32 %v7442_v61 }
 0x923   : >> { %v9000_v40 = vpop.eup %8999  ;;  %v2584_v45 = vadd.f32 1.0, %v8998_v13  ;;  %v7443_v13 = vmul.f32 -1.442695, %v11833_v49 }
 0x924   : >> { %v2583_v2 = vadd.f32 1.0, %v9000_v40  ;;  %v11863_v9 = vpop.eup %9001 }
 0x925   : >> { %v11865_v21 = vpop.eup %9003  ;;  %9019 = vrcp.f32 %v2584_v45 }
 0x926   : >> { %v9006_v30 = vpop.eup %9005  ;;  %9021 = vrcp.f32 %v2583_v2 }
 0x927   : >> { %v11872_v16 = vpop.eup %9007  ;;  %9023 = vpow2.f32 %v7441_v29  ;;  %v2586_v61 = vadd.f32 1.0, %v9006_v30 }
 0x928   : >> { %v11875_v39 = vpop.eup %9009  ;;  %9025 = vpow2.f32 %v7444_v14 }
 0x929   : >> { %v9012_v40 = vpop.eup %9011  ;;  %9027 = vpow2.f32 %v7443_v13 }
 0x92a   : >> { %v11881_v54 = vpop.eup %9013  ;;  %9029 = vrcp.f32 %v2586_v61 }
 0x92b   : >> { %v11884_v2 = vpop.eup %9015 }
 0x938   : >> { %v2676_v58 = vpop.permute.xlu0 %2675 }
 0x939   : >> { %v2722_v57 = vmul.f32 %v11863_v9, %v2676_v58  ;;  %v2674_v11 = vpop.permute.xlu1 %2673 }
 0x93a   : >> { %v2721_v25 = vmul.f32 %v11865_v21, %v2674_v11  ;;  %v2585_v11 = vadd.f32 1.0, %v9012_v40 }
 0x93b   : >> { %2755 = vrot.lane.b32.xlu0 %v2722_v57, %s10060_s18  ;;  %v9018_v57 = vpop.eup %9017 }
 0x93c   : >> { %v2680_v36 = vpop.permute.xlu0 %2679  ;;  %2753 = vrot.lane.b32.xlu1 %v2721_v25, %s10060_s18  ;;  %v11889_v25 = vpop.eup %9019  ;;  %9031 = vrcp.f32 %v2585_v11 }
 0x93d   : >> { %v2724_v52 = vmul.f32 %v11872_v16, %v2680_v36  ;;  %v2678_v47 = vpop.permute.xlu1 %2677  ;;  %v11892_v14 = vpop.eup %9021 }
 0x93e   : >> { %v2723_v60 = vmul.f32 %v11875_v39, %v2678_v47  ;;  %v2588_v47 = vadd.f32 1.0, %v9018_v57 }
 0x93f   : >> { %2759 = vrot.lane.b32.xlu0 %v2724_v52, %s10060_s18 }
 0x940   : >> { %v2684_v45 = vpop.permute.xlu0 %2683  ;;  %2757 = vrot.lane.b32.xlu1 %v2723_v60, %s10060_s18  ;;  %v9024_v60 = vpop.eup %9023  ;;  %9033 = vrcp.f32 %v2588_v47 }
 0x941   : >> { %v2726_v58 = vmul.f32 %v11881_v54, %v2684_v45  ;;  %v2682_v29 = vpop.permute.xlu1 %2681  ;;  %v9026_v40 = vpop.eup %9025  ;;  %v2587_v61 = vadd.f32 1.0, %v9024_v60 }
 0x942   : >> { %v2725_v49 = vmul.f32 %v11884_v2, %v2682_v29  ;;  %v9028_v45 = vpop.eup %9027 }
 0x943   : >> { %2763 = vrot.lane.b32.xlu0 %v2726_v58, %s10060_s18  ;;  %v2590_v58 = vadd.f32 1.0, %v9026_v40  ;;  %v11898_v29 = vpop.eup %9029  ;;  %9035 = vrcp.f32 %v2587_v61  ;;  %v2589_v57 = vadd.f32 1.0, %v9028_v45 }
 0x944   : >> { %v2688_v30 = vpop.permute.xlu0 %2687  ;;  %2761 = vrot.lane.b32.xlu1 %v2725_v49, %s10060_s18 }
 0x945   : >> { %v2728_v36 = vmul.f32 %v11889_v25, %v2688_v30  ;;  %v2686_v52 = vpop.permute.xlu1 %2685  ;;  %9037 = vrcp.f32 %v2590_v58 }
 0x946   : >> { %v2727_v13 = vmul.f32 %v11892_v14, %v2686_v52  ;;  %v11902_v11 = vpop.eup %9031  ;;  %9039 = vrcp.f32 %v2589_v57 }
 0x947   : >> { %2767 = vrot.lane.b32.xlu0 %v2728_v36, %s10060_s18 }
 0x948   : >> { %2765 = vrot.lane.b32.xlu1 %v2727_v13, %s10060_s18  ;;  %v2692_v49 = vpop.permute.xlu0 %2691 }
 0x949   : >> { %v2730_v30 = vmul.f32 %v11898_v29, %v2692_v49  ;;  %v2690_v36 = vpop.permute.xlu1 %2689 }
 0x94a   : >> { %v2729_v52 = vmul.f32 %v11902_v11, %v2690_v36  ;;  %v11905_v47 = vpop.eup %9033 }
 0x94b   : >> { %2771 = vrot.lane.b32.xlu0 %v2730_v30, %s10060_s18 }
 0x94c   : >> { %v2696_v13 = vpop.permute.xlu0 %2695  ;;  %2769 = vrot.lane.b32.xlu1 %v2729_v52, %s10060_s18 }
 0x94d   : >> { %v2732_v60 = vmul.f32 %v11905_v47, %v2696_v13  ;;  %v11910_v40 = vpop.eup %9035  ;;  %v7446_v13 = vmul.f32 -1.442695, %v11843_v48 }
 0x94e   : >> { %v2694_v61 = vpop.permute.xlu1 %2693 }
 0x94f   : >> { %2775 = vrot.lane.b32.xlu0 %v2732_v60, %s10060_s18  ;;  %v2731_v45 = vmul.f32 %v11910_v40, %v2694_v61  ;;  %v11913_v58 = vpop.eup %9037  ;;  %v7445_v60 = vmul.f32 -1.442695, %v11846_v18  ;;  %9041 = vpow2.f32 %v7446_v13  ;;  %v15899_v18 = vld [vmem:[#allocation33_spill] sm:$0xff]  ;;  %v15900_v13 = vld [vmem:[#allocation30_spill] sm:$0xff] }
 0x950   : >> { %v2700_v49 = vpop.permute.xlu0 %2699  ;;  %v11917_v57 = vpop.eup %9039 }
 0x951   : >> { %v2734_v30 = vmul.f32 %v11913_v58, %v2700_v49  ;;  %2773 = vrot.lane.b32.xlu1 %v2731_v45, %s10060_s18  ;;  %9043 = vpow2.f32 %v7445_v60  ;;  %v15902_v60 = vld [vmem:[#allocation34_spill] sm:$0xff] }
 0x952   : >> { %v2698_v36 = vpop.permute.xlu1 %2697 }
 0x953   : >> { %2779 = vrot.lane.b32.xlu0 %v2734_v30, %s10060_s18  ;;  %v2733_v52 = vmul.f32 %v11917_v57, %v2698_v36 }
 0x955   : >> { %2777 = vrot.lane.b32.xlu1 %v2733_v52, %s10060_s18 }
 0x959   : >> { %v9042_v61 = vpop.eup %9041 }
 0x95a   : >> { %v2592_v49 = vadd.f32 1.0, %v9042_v61  ;;  %v11950_v61 = vsel %vm2237_vm4, %v11398_v38, %v11382_v17  ;;  %v15908_v17 = vld [vmem:[#allocation35_spill] sm:$0xff]  ;;  %v15909_v38 = vld [vmem:[#allocation44_spill] sm:$0xff] }
 0x95b   : >> { %v9044_v44 = vpop.eup %9043  ;;  %15903 = vst [vmem:[#allocation56_spill] sm:$0xff] %v11950_v61 }
 0x95c   : >> { %v2591_v22 = vadd.f32 1.0, %v9044_v44  ;;  %9045 = vrcp.f32 %v2592_v49  ;;  %v15897_v44 = vld [vmem:[#allocation31_spill] sm:$0xff]  ;;  %v15904_v49 = vld [vmem:[#allocation28_spill] sm:$0xff] }
 0x95e   : >> { %9047 = vrcp.f32 %v2591_v22  ;;  %v15898_v22 = vld [vmem:[#allocation29_spill] sm:$0xff] }
 0x966   : >> { %v11924_v45 = vpop.eup %9045 }
 0x968   : >> { %v11926_v30 = vpop.eup %9047 }
 0x988   : >> { %v2704_v24 = vpop.permute.xlu0 %2703 }
 0x989   : >> { %v2736_v36 = vmul.f32 %v11924_v45, %v2704_v24  ;;  %v2702_v52 = vpop.permute.xlu1 %2701  ;;  %v15901_v24 = vld [vmem:[#allocation32_spill] sm:$0xff] }
 0x98a   : >> { %v2735_v48 = vmul.f32 %v11926_v30, %v2702_v52 }
 0x98b   : >> { %2783 = vrot.lane.b32.xlu0 %v2736_v36, %s10060_s18  ;;  %v15905_v36 = vld [vmem:[#allocation27_spill] sm:$0xff] }
 0x98c   : >> { %2781 = vrot.lane.b32.xlu1 %v2735_v48, %s10060_s18  ;;  %v11956_v52 = vsel %vm2236_vm3, %v15905_v36, %v15904_v49  ;;  %v15907_v48 = vld [vmem:[#allocation40_spill] sm:$0xff]  ;;  %v15911_v49 = vld [vmem:[#allocation22_spill] sm:$0xff]  ;;  %v15912_v36 = vld [vmem:[#allocation57_spill] sm:$0xff]  ;;  %vm15946_vm3 = vcmp.eq.s32.totalorder %v11596_v35, 1 }
 0x98d   : >> { %15906 = vst [vmem:[#allocation31_spill] sm:$0xff] %v11956_v52 }
 0x98f   : >> { %2917 = vperm.xlu0 %8686, %v15814_v19  }
 0x990   : >> { %2914 = vperm.xlu1 %8685, %v15815_v27  }
 0x993   : >> { %2926 = vperm.xlu0 %8686, %v15897_v44  }
 0x994   : >> { %2920 = vperm.xlu1 %8685, %v15898_v22  }
 0x997   : >> { %2932 = vperm.xlu0 %8686, %v15899_v18  }
 0x998   : >> { %2923 = vperm.xlu1 %8685, %v15900_v13  }
 0x99b   : >> { %2938 = vperm.xlu0 %8686, %v15824_v46  }
 0x99c   : >> { %2929 = vperm.xlu1 %8685, %v15901_v24  }
 0x99f   : >> { %2944 = vperm.xlu0 %8686, %v15829_v10  }
 0x9a0   : >> { %2935 = vperm.xlu1 %8685, %v15902_v60  }
 0x9a3   : >> { %2950 = vperm.xlu0 %8686, %v15839_v0   ;;  %v2642_v0 = vmul.f32 %v11863_v9, %v11950_v61  ;;  %v11977_v61 = vsel %vm2238_vm5, %v15912_v36, %v15911_v49  ;;  %v15915_v49 = vld [vmem:[#allocation21_spill] sm:$0xff]  ;;  %v15916_v36 = vld [vmem:[#allocation43_spill] sm:$0xff] }
 0x9a4   : >> { %2941 = vperm.xlu1 %8685, %v15826_v62   ;;  %v11969_v62 = vsel %vm2239_vm6, %v15909_v38, %v15908_v17  ;;  %v15914_v17 = vld [vmem:[#allocation20_spill] sm:$0xff] }
 0x9a5   : >> { %15910 = vst [vmem:[#allocation29_spill] sm:$0xff] %v11969_v62  ;;  %v11992_v26 = vsel %vm2241_vm8, %v11446_v51, %v15914_v17 }
 0x9a7   : >> { %2956 = vperm.xlu0 %8686, %v15848_v5  }
 0x9a8   : >> { %2947 = vperm.xlu1 %8685, %v15831_v28   ;;  %v2641_v28 = vmul.f32 %v11865_v21, %v11956_v52  ;;  %v15913_v52 = vld [vmem:[#allocation42_spill] sm:$0xff] }
 0x9ac   : >> { %2953 = vperm.xlu1 %8685, %v15907_v48  }
 0x9ad   : >> { %v2756_v5 = vpop.permute.xlu0 %2755 }
 0x9ae   : >> { %v11963_v10 = vadd.f32 %v2756_v5, %v2642_v0  ;;  %v2754_v55 = vpop.permute.xlu1 %2753  ;;  %v2644_v0 = vmul.f32 %v11872_v16, %v11969_v62  ;;  %v12000_v62 = vsel %vm2240_vm7, %v15916_v36, %v15915_v49  ;;  %v15921_v49 = vld [vmem:[#allocation19_spill] sm:$0xff] }
 0x9af   : >> { %v11971_v41 = vadd.f32 %v2754_v55, %v2641_v28  ;;  %v2643_v28 = vmul.f32 %v11875_v39, %v11977_v61  ;;  %15917 = vst [vmem:[#allocation33_spill] sm:$0xff] %v12000_v62  ;;  %v2645_v51 = vmul.f32 %v11884_v2, %v12000_v62  ;;  %v12022_v36 = vsel %vm2242_vm9, %v11460_v20, %v15921_v49  ;;  %v15925_v49 = vld [vmem:[#allocation45_spill] sm:$0xff] }
 0x9b0   : >> { %9049 = vtanh.f32 %v11963_v10  ;;  %2959 = vperm.xlu1 %8685, %v15913_v52   ;;  %15922 = vst [vmem:[#allocation34_spill] sm:$0xff] %v12022_v36 }
 0x9b1   : >> { %9051 = vtanh.f32 %v11971_v41  ;;  %v2760_v5 = vpop.permute.xlu0 %2759 }
 0x9b2   : >> { %v11986_v4 = vadd.f32 %v2760_v5, %v2644_v0  ;;  %v2758_v55 = vpop.permute.xlu1 %2757  ;;  %v2646_v0 = vmul.f32 %v11881_v54, %v11992_v26 }
 0x9b3   : >> { %v11994_v38 = vadd.f32 %v2758_v55, %v2643_v28  ;;  %v15918_v55 = vld [vmem:[#allocation46_spill] sm:$0xff] }
 0x9b4   : >> { %9053 = vtanh.f32 %v11986_v4  ;;  %v12014_v34 = vsel %vm2243_vm10, %v11470_v1, %v15918_v55  ;;  %v2647_v1 = vmul.f32 %v11892_v14, %v12022_v36  ;;  %v15926_v36 = vld [vmem:[#allocation16_spill] sm:$0xff] }
 0x9b5   : >> { %9055 = vtanh.f32 %v11994_v38  ;;  %v2764_v5 = vpop.permute.xlu0 %2763  ;;  %15919 = vst [vmem:[#allocation30_spill] sm:$0xff] %v12014_v34 }
 0x9b6   : >> { %v12008_v53 = vadd.f32 %v2764_v5, %v2646_v0  ;;  %v2762_v28 = vpop.permute.xlu1 %2761  ;;  %v2648_v0 = vmul.f32 %v11889_v25, %v12014_v34 }
 0x9b7   : >> { %v12016_v17 = vadd.f32 %v2762_v28, %v2645_v51 }
 0x9b8   : >> { %9057 = vtanh.f32 %v12008_v53 }
 0x9b9   : >> { %15920 = vst [vmem:[#allocation32_spill] sm:$0xff] %v12016_v17  ;;  %9059 = vtanh.f32 %v12016_v17  ;;  %v2768_v5 = vpop.permute.xlu0 %2767 }
 0x9ba   : >> { %v9050_v63 = vpop.eup %9049  ;;  %v12030_v51 = vadd.f32 %v2768_v5, %v2648_v0  ;;  %v2766_v28 = vpop.permute.xlu1 %2765  ;;  %v12043_v0 = vsel %vm2245_vm12, %v15926_v36, %v15925_v49 }
 0x9bb   : >> { %v9052_v55 = vpop.eup %9051  ;;  %v12032_v62 = vadd.f32 %v2766_v28, %v2647_v1  ;;  %2851 = vrot.lane.b32.xlu1 %v9050_v63, %s10060_s18  ;;  %15927 = vst [vmem:[#allocation35_spill] sm:$0xff] %v12043_v0  ;;  %v2650_v5 = vmul.f32 %v11898_v29, %v12043_v0 }
 0x9bc   : >> { %15923 = vst [vmem:[#allocation28_spill] sm:$0xff] %v12030_v51  ;;  %9061 = vtanh.f32 %v12030_v51  ;;  %2849 = vrot.lane.b32.xlu0 %v9052_v55, %s10060_s18 }
 0x9bd   : >> { %15924 = vst [vmem:[#allocation27_spill] sm:$0xff] %v12032_v62  ;;  %9063 = vtanh.f32 %v12032_v62  ;;  %v2772_v63 = vpop.permute.xlu0 %2771  ;;  %v15929_v62 = vld [vmem:[#allocation18_spill] sm:$0xff] }
 0x9be   : >> { %v9054_v20 = vpop.eup %9053  ;;  %v12048_v55 = vadd.f32 %v2772_v63, %v2650_v5  ;;  %v15932_v5 = vld [vmem:[#allocation48_spill] sm:$0xff]  ;;  %v15933_v63 = vld [vmem:[#allocation14_spill] sm:$0xff] }
 0x9bf   : >> { %v9056_v50 = vpop.eup %9055  ;;  %2855 = vrot.lane.b32.xlu1 %v9054_v20, %s10060_s18  ;;  %v15930_v20 = vld [vmem:[#allocation17_spill] sm:$0xff] }
 0x9c0   : >> { %2853 = vrot.lane.b32.xlu0 %v9056_v50, %s10060_s18  ;;  %15928 = vst [vmem:[#allocation44_spill] sm:$0xff] %v12048_v55  ;;  %v12055_v51 = vsel %vm2244_vm11, %v15930_v20, %v15929_v62  ;;  %9065 = vtanh.f32 %v12048_v55  ;;  %v2770_v50 = vpop.permute.xlu1 %2769  ;;  %v15937_v20 = vld [vmem:[#allocation47_spill] sm:$0xff] }
 0x9c1   : >> { %15931 = vst [vmem:[#allocation22_spill] sm:$0xff] %v12055_v51  ;;  %v2649_v42 = vmul.f32 %v11902_v11, %v12055_v51  ;;  %v2776_v59 = vpop.permute.xlu0 %2775  ;;  %v15938_v51 = vld [vmem:[#allocation49_spill] sm:$0xff] }
 0x9c2   : >> { %v9058_v1 = vpop.eup %9057  ;;  %v12080_v15 = vsel %vm2246_vm13, %v15938_v51, %v15937_v20  ;;  %v15945_v20 = vld [vmem:[#allocation51_spill] sm:$0xff] }
 0x9c3   : >> { %v9060_v28 = vpop.eup %9059  ;;  %2859 = vrot.lane.b32.xlu1 %v9058_v1, %s10060_s18  ;;  %v12065_v1 = vsel %vm2247_vm14, %v15933_v63, %v15932_v5  ;;  %v12067_v0 = vadd.f32 %v2770_v50, %v2649_v42  ;;  %15939 = vst [vmem:[#allocation43_spill] sm:$0xff] %v12080_v15  ;;  %v2651_v42 = vmul.f32 %v11910_v40, %v12080_v15  ;;  %v15941_v50 = vld [vmem:[#allocation12_spill] sm:$0xff] }
 0x9c4   : >> { %2857 = vrot.lane.b32.xlu0 %v9060_v28, %s10060_s18  ;;  %15934 = vst [vmem:[#allocation57_spill] sm:$0xff] %v12065_v1  ;;  %v2652_v62 = vmul.f32 %v11905_v47, %v12065_v1  ;;  %v2774_v5 = vpop.permute.xlu1 %2773 }
 0x9c5   : >> { %15935 = vst [vmem:[#allocation20_spill] sm:$0xff] %v12067_v0  ;;  %9067 = vtanh.f32 %v12067_v0  ;;  %v12091_v63 = vadd.f32 %v2774_v5, %v2651_v42  ;;  %v2780_v51 = vpop.permute.xlu0 %2779 }
 0x9c6   : >> { %v9062_v36 = vpop.eup %9061  ;;  %v12074_v28 = vadd.f32 %v2776_v59, %v2652_v62  ;;  %v15944_v59 = vld [vmem:[#allocation50_spill] sm:$0xff] }
 0x9c7   : >> { %v9064_v49 = vpop.eup %9063  ;;  %2863 = vrot.lane.b32.xlu1 %v9062_v36, %s10060_s18  ;;  %v15940_v36 = vld [vmem:[#allocation15_spill] sm:$0xff]  ;;  %15943 = vst [vmem:[#allocation19_spill] sm:$0xff] %v12091_v63 }
 0x9c8   : >> { %2861 = vrot.lane.b32.xlu0 %v9064_v49, %s10060_s18  ;;  %15936 = vst [vmem:[#allocation21_spill] sm:$0xff] %v12074_v28  ;;  %9069 = vtanh.f32 %v12074_v28  ;;  %v12089_v49 = vsel %vm2249_vm1, %v15941_v50, %v15940_v36  ;;  %v12099_v28 = vsel %vm15946_vm3, %v15945_v20, %v15944_v59  ;;  %v2778_v42 = vpop.permute.xlu1 %2777  ;;  %v15951_v59 = vld [vmem:[#allocation10_spill] sm:$0xff] }
 0x9c9   : >> { %15942 = vst [vmem:[#allocation46_spill] sm:$0xff] %v12089_v49  ;;  %v2654_v62 = vmul.f32 %v11913_v58, %v12089_v49  ;;  %15947 = vst [vmem:[#allocation45_spill] sm:$0xff] %v12099_v28  ;;  %9071 = vtanh.f32 %v12091_v63  ;;  %v2653_v37 = vmul.f32 %v11917_v57, %v12099_v28 }
 0x9ca   : >> { %v9066_v56 = vpop.eup %9065 }
 0x9cb   : >> { %v12102_v15 = vadd.f32 %v2780_v51, %v2654_v62  ;;  %2867 = vrot.lane.b32.xlu1 %v9066_v56, %s10060_s18  ;;  %v12108_v50 = vadd.f32 %v2778_v42, %v2653_v37  ;;  %v15950_v51 = vld [vmem:[#allocation13_spill] sm:$0xff]  ;;  %v15953_v37 = vld [vmem:[#allocation52_spill] sm:$0xff]  ;;  %v15954_v42 = vld [vmem:[#allocation11_spill] sm:$0xff] }
 0x9cc   : >> { %v12120_v20 = vsel %vm2251_vm2, %v15951_v59, %v15950_v51 }
 0x9cd   : >> { %15948 = vst [vmem:[#allocation16_spill] sm:$0xff] %v12102_v15  ;;  %9073 = vtanh.f32 %v12102_v15  ;;  %15949 = vst [vmem:[#allocation18_spill] sm:$0xff] %v12108_v50 }
 0x9ce   : >> { %9075 = vtanh.f32 %v12108_v50  ;;  %15952 = vst [vmem:[#allocation17_spill] sm:$0xff] %v12120_v20 }
 0x9cf   : >> { %v9068_v36 = vpop.eup %9067 }
 0x9d0   : >> { %2865 = vrot.lane.b32.xlu0 %v9068_v36, %s10060_s18  ;;  %v12126_v36 = vsel %vm2250_vm15, %v15954_v42, %v15953_v37 }
 0x9d1   : >> { %15955 = vst [vmem:[#allocation48_spill] sm:$0xff] %v12126_v36 }
 0x9d2   : >> { %v9070_v35 = vpop.eup %9069 }
 0x9d3   : >> { %2871 = vrot.lane.b32.xlu1 %v9070_v35, %s10060_s18  ;;  %v9072_v5 = vpop.eup %9071  ;;  %v2656_v35 = vmul.f32 %v11924_v45, %v12120_v20 }
 0x9d4   : >> { %2869 = vrot.lane.b32.xlu0 %v9072_v5, %s10060_s18 }
 0x9d7   : >> { %v9074_v62 = vpop.eup %9073 }
 0x9d8   : >> { %2875 = vrot.lane.b32.xlu1 %v9074_v62, %s10060_s18  ;;  %v9076_v56 = vpop.eup %9075  ;;  %v2655_v62 = vmul.f32 %v11926_v30, %v12126_v36 }
 0x9d9   : >> { %2873 = vrot.lane.b32.xlu0 %v9076_v56, %s10060_s18 }
 0x9fd   : >> { %v2784_v5 = vpop.permute.xlu0 %2783 }
 0x9fe   : >> { %v12132_v56 = vadd.f32 %v2784_v5, %v2656_v35  ;;  %v2782_v50 = vpop.permute.xlu1 %2781 }
 0x9ff   : >> { %v12134_v28 = vadd.f32 %v2782_v50, %v2655_v62 }
 0xa00   : >> { %15956 = vst [vmem:[#allocation14_spill] sm:$0xff] %v12132_v56  ;;  %9077 = vtanh.f32 %v12132_v56 }
 0xa01   : >> { %15957 = vst [vmem:[#allocation47_spill] sm:$0xff] %v12134_v28  ;;  %9079 = vtanh.f32 %v12134_v28 }
 0xa0a   : >> { %v9078_v31 = vpop.eup %9077 }
 0xa0b   : >> { %v9080_v33 = vpop.eup %9079  ;;  %2879 = vrot.lane.b32.xlu1 %v9078_v31, %s10060_s18 }
 0xa0c   : >> { %2877 = vrot.lane.b32.xlu0 %v9080_v33, %s10060_s18 }
 0xa0e   : >> { %v12140_v51 = vpop.permute.xlu0 %2917 }
 0xa0f   : >> { %v12142_v59 = vpop.permute.xlu1 %2914  ;;  %vm2962_vm6 = vcmp.eq.s32.totalorder %v12140_v51, 1 }
 0xa10   : >> { %vm2961_vm4 = vcmp.eq.s32.totalorder %v12142_v59, 1 }
 0xa12   : >> { %v12144_v37 = vpop.permute.xlu0 %2926 }
 0xa13   : >> { %v12146_v42 = vpop.permute.xlu1 %2920  ;;  %vm2965_vm7 = vcmp.eq.s32.totalorder %v12144_v37, 1 }
 0xa14   : >> { %vm2963_vm5 = vcmp.eq.s32.totalorder %v12146_v42, 1  ;;  %v15991_v42 = vld [vmem:[#allocation33_spill] sm:$0xff] }
 0xa16   : >> { %v12148_v50 = vpop.permute.xlu0 %2932 }
 0xa17   : >> { %v12150_v35 = vpop.permute.xlu1 %2923  ;;  %vm2967_vm9 = vcmp.eq.s32.totalorder %v12148_v50, 1 }
 0xa18   : >> { %vm2964_vm8 = vcmp.eq.s32.totalorder %v12150_v35, 1 }
 0xa1a   : >> { %v12152_v5 = vpop.permute.xlu0 %2938 }
 0xa1b   : >> { %v12154_v62 = vpop.permute.xlu1 %2929  ;;  %vm2969_vm13 = vcmp.eq.s32.totalorder %v12152_v5, 1 }
 0xa1c   : >> { %vm2966_vm10 = vcmp.eq.s32.totalorder %v12154_v62, 1 }
 0xa1e   : >> { %v12156_v28 = vpop.permute.xlu0 %2944 }
 0xa1f   : >> { %v12158_v31 = vpop.permute.xlu1 %2935  ;;  %vm2971_vm15 = vcmp.eq.s32.totalorder %v12156_v28, 1 }
 0xa20   : >> { %vm2968_vm11 = vcmp.eq.s32.totalorder %v12158_v31, 1 }
 0xa22   : >> { %v12162_v36 = vpop.permute.xlu0 %2950 }
 0xa23   : >> { %v12160_v33 = vpop.permute.xlu1 %2941  ;;  %vm2973_vm2 = vcmp.eq.s32.totalorder %v12162_v36, 1 }
 0xa24   : >> { %vm2970_vm12 = vcmp.eq.s32.totalorder %v12160_v33, 1 }
 0xa26   : >> { %v12166_v20 = vpop.permute.xlu0 %2956 }
 0xa27   : >> { %v12164_v56 = vpop.permute.xlu1 %2947 }
 0xa28   : >> { %vm2972_vm14 = vcmp.eq.s32.totalorder %v12164_v56, 1 }
 0xa2b   : >> { %v12168_v15 = vpop.permute.xlu1 %2953 }
 0xa2c   : >> { %vm15554_vm1 = vcmp.eq.s32.totalorder %v12168_v15, 1 }
 0xa2e   : >> { %v2850_v49 = vpop.permute.xlu0 %2849 }
 0xa2f   : >> { %v2897_v63 = vmul.f32 %v11865_v21, %v2850_v49  ;;  %v12171_v1 = vpop.permute.xlu1 %2959 }
 0xa30   : >> { %vm2976_vm3 = vcmp.eq.s32.totalorder %v12171_v1, 1 }
 0xa31   : >> { %v12177_v0 = vsel %vm2961_vm4, %v2897_v63, %v11611_v3 }
 0xa32   : >> { %v2854_v55 = vpop.permute.xlu0 %2853  ;;  %3025 = vrot.lane.b32.xlu0 %v12177_v0, %s10059_s22 }
 0xa33   : >> { %v2899_v34 = vmul.f32 %v11875_v39, %v2854_v55  ;;  %v2852_v17 = vpop.permute.xlu1 %2851 }
 0xa34   : >> { %v2898_v21 = vmul.f32 %v11863_v9, %v2852_v17 }
 0xa35   : >> { %v12188_v49 = vsel %vm2963_vm5, %v2899_v34, %v11629_v6 }
 0xa36   : >> { %15958 = vst [vmem:[#allocation49_spill] sm:$0xff] %v12188_v49  ;;  %v2858_v3 = vpop.permute.xlu0 %2857  ;;  %3029 = vrot.lane.b32.xlu0 %v12188_v49, %s10059_s22  ;;  %v12195_v39 = vsel %vm2962_vm6, %v2898_v21, %v11618_v32 }
 0xa37   : >> { %v2901_v55 = vmul.f32 %v11884_v2, %v2858_v3  ;;  %3027 = vrot.lane.b32.xlu1 %v12195_v39, %s10059_s22  ;;  %v2856_v9 = vpop.permute.xlu1 %2855 }
 0xa38   : >> { %v2900_v6 = vmul.f32 %v11872_v16, %v2856_v9 }
 0xa39   : >> { %v12206_v34 = vsel %vm2965_vm7, %v2901_v55, %v11647_v12  ;;  %v15963_v55 = vld [vmem:[#allocation59_spill] sm:$0xff] }
 0xa3a   : >> { %15959 = vst [vmem:[#allocation15_spill] sm:$0xff] %v12206_v34  ;;  %v2862_v17 = vpop.permute.xlu0 %2861  ;;  %3033 = vrot.lane.b32.xlu0 %v12206_v34, %s10059_s22  ;;  %v12213_v32 = vsel %vm2964_vm8, %v2900_v6, %v11636_v7 }
 0xa3b   : >> { %v2903_v2 = vmul.f32 %v11892_v14, %v2862_v17  ;;  %3031 = vrot.lane.b32.xlu1 %v12213_v32, %s10059_s22  ;;  %v2860_v16 = vpop.permute.xlu1 %2859 }
 0xa3c   : >> { %v2902_v12 = vmul.f32 %v11881_v54, %v2860_v16 }
 0xa3d   : >> { %v12224_v63 = vsel %vm2967_vm9, %v2903_v2, %v11665_v23  ;;  %v15967_v2 = vld [vmem:[#allocation61_spill] sm:$0xff] }
 0xa3e   : >> { %15960 = vst [vmem:[#allocation12_spill] sm:$0xff] %v12224_v63  ;;  %3037 = vrot.lane.b32.xlu0 %v12224_v63, %s10059_s22  ;;  %v12231_v7 = vsel %vm2966_vm10, %v2902_v12, %v11654_v43 }
 0xa3f   : >> { %15961 = vst [vmem:[#allocation50_spill] sm:$0xff] %v12231_v7  ;;  %3035 = vrot.lane.b32.xlu1 %v12231_v7, %s10059_s22  ;;  %v2864_v14 = vpop.permute.xlu1 %2863 }
 0xa40   : >> { %v2904_v54 = vmul.f32 %v11889_v25, %v2864_v14 }
 0xa42   : >> { %v12240_v23 = vsel %vm2968_vm11, %v2904_v54, %v11672_v8  ;;  %v2866_v3 = vpop.permute.xlu0 %2865  ;;  %v15965_v8 = vld [vmem:[#allocation58_spill] sm:$0xff]  ;;  %v15969_v54 = vld [vmem:[#allocation60_spill] sm:$0xff] }
 0xa43   : >> { %15962 = vst [vmem:[#allocation51_spill] sm:$0xff] %v12240_v23  ;;  %3039 = vrot.lane.b32.xlu1 %v12240_v23, %s10059_s22  ;;  %v2868_v21 = vpop.permute.xlu1 %2867  ;;  %v2905_v9 = vmul.f32 %v11902_v11, %v2866_v3  ;;  %v15971_v3 = vld [vmem:[#allocation53_spill] sm:$0xff] }
 0xa44   : >> { %v2906_v43 = vmul.f32 %v11898_v29, %v2868_v21 }
 0xa45   : >> { %v12258_v6 = vsel %vm2969_vm13, %v2905_v9, %v15965_v8  ;;  %v15973_v9 = vld [vmem:[#allocation54_spill] sm:$0xff] }
 0xa46   : >> { %v12249_v25 = vsel %vm2970_vm12, %v2906_v43, %v15963_v55  ;;  %15966 = vst [vmem:[#allocation10_spill] sm:$0xff] %v12258_v6  ;;  %3041 = vrot.lane.b32.xlu0 %v12258_v6, %s10059_s22  ;;  %v2870_v16 = vpop.permute.xlu0 %2869 }
 0xa47   : >> { %15964 = vst [vmem:[#allocation13_spill] sm:$0xff] %v12249_v25  ;;  %3043 = vrot.lane.b32.xlu1 %v12249_v25, %s10059_s22  ;;  %v2872_v29 = vpop.permute.xlu1 %2871  ;;  %v2907_v12 = vmul.f32 %v11910_v40, %v2870_v16 }
 0xa48   : >> { %v2908_v17 = vmul.f32 %v11905_v47, %v2872_v29 }
 0xa49   : >> { %v12276_v47 = vsel %vm2971_vm15, %v2907_v12, %v15969_v54  ;;  %v15977_v12 = vld [vmem:[#allocation55_spill] sm:$0xff] }
 0xa4a   : >> { %v12267_v11 = vsel %vm2972_vm14, %v2908_v17, %v15967_v2  ;;  %15970 = vst [vmem:[#allocation11_spill] sm:$0xff] %v12276_v47  ;;  %3045 = vrot.lane.b32.xlu0 %v12276_v47, %s10059_s22  ;;  %v15975_v2 = vld [vmem:[#allocation23_spill] sm:$0xff] }
 0xa4b   : >> { %15968 = vst [vmem:[#allocation52_spill] sm:$0xff] %v12267_v11  ;;  %3047 = vrot.lane.b32.xlu1 %v12267_v11, %s10059_s22  ;;  %v2876_v14 = vpop.permute.xlu1 %2875  ;;  %v2874_v43 = vpop.permute.xlu0 %2873 }
 0xa4c   : >> { %v2910_v21 = vmul.f32 %v11913_v58, %v2876_v14  ;;  %v2909_v55 = vmul.f32 %v11917_v57, %v2874_v43 }
 0xa4e   : >> { %v12285_v40 = vsel %vm15554_vm1, %v2910_v21, %v15971_v3  ;;  %v12294_v58 = vsel %vm2973_vm2, %v2909_v55, %v15973_v9  ;;  %vm2975_vm1 = vcmp.eq.s32.totalorder %v12166_v20, 1  ;;  %v15979_v21 = vld [vmem:[#allocation24_spill] sm:$0xff]  ;;  %v15980_v3 = vld [vmem:[#allocation25_spill] sm:$0xff] }
 0xa4f   : >> { %15972 = vst [vmem:[#allocation59_spill] sm:$0xff] %v12285_v40  ;;  %3051 = vrot.lane.b32.xlu1 %v12285_v40, %s10059_s22  ;;  %15974 = vst [vmem:[#allocation58_spill] sm:$0xff] %v12294_v58  ;;  %3049 = vrot.lane.b32.xlu0 %v12294_v58, %s10059_s22 }
 0xa7d   : >> { %v2880_v8 = vpop.permute.xlu1 %2879 }
 0xa7e   : >> { %v2912_v29 = vmul.f32 %v11924_v45, %v2880_v8  ;;  %v2878_v17 = vpop.permute.xlu0 %2877 }
 0xa7f   : >> { %v2911_v57 = vmul.f32 %v11926_v30, %v2878_v17 }
 0xa80   : >> { %v12305_v16 = vsel %vm2976_vm3, %v2912_v29, %v15975_v2 }
 0xa81   : >> { %15976 = vst [vmem:[#allocation61_spill] sm:$0xff] %v12305_v16  ;;  %3055 = vrot.lane.b32.xlu1 %v12305_v16, %s10059_s22  ;;  %v12312_v14 = vsel %vm2975_vm1, %v2911_v57, %v15977_v12 }
 0xa82   : >> { %15978 = vst [vmem:[#allocation60_spill] sm:$0xff] %v12312_v14  ;;  %3053 = vrot.lane.b32.xlu0 %v12312_v14, %s10059_s22 }
 0xaa4   : >> { %v3026_v45 = vpop.permute.xlu0 %3025 }
 0xaa5   : >> { %8039 = vmatprep.mubr.msk.f32.mxu1 %vm15776_vm0, %v3026_v45 }
 0xaa8   : >> { %v3030_v30 = vpop.permute.xlu0 %3029 }
 0xaa9   : >> { %v3028_v54 = vpop.permute.xlu1 %3027 }
 0xaaa   : >> { %8040 = vmatmul.mubr.msk.f32.vlgmr.msra.gmra.mrb[16].mxu1 %vm15776_vm0, %v3028_v54 }
 0xaab   : >> { %8042 = vmatprep.mubr.msk.f32.mxu1 %vm15776_vm0, %v3030_v30  ;;  %8306 = vmatpush3.bf16.msra.mxu1 %v15979_v21 }
 0xaac   : >> { %v3034_v43 = vpop.permute.xlu0 %3033  ;;  %8308 = vmatprep.subr.bf16.mxu1 %v15980_v3 }
 0xaad   : >> { %v3032_v55 = vpop.permute.xlu1 %3031 }
 0xaae   : >> { %8043 = vmatmul.mubr.msk.f32.gmra.mrb[18].mxu1 %vm15776_vm0, %v3032_v55  ;;  %v15981_v55 = vld [vmem:[#allocation26_spill] sm:$0xff] }
 0xaaf   : >> { %8045 = vmatprep.mubr.msk.f32.mxu1 %vm15776_vm0, %v3034_v43  ;;  %8310 = vmatpush3.bf16.msra.mxu1 %v15980_v3 }
 0xab0   : >> { %8320 = vmatprep.subr.bf16.mxu1 %v15979_v21  ;;  %v3038_v8 = vpop.permute.xlu0 %3037 }
 0xab1   : >> { %v3036_v9 = vpop.permute.xlu1 %3035 }
 0xab2   : >> { %8046 = vmatmul.mubr.msk.f32.gmra.mrb[20].mxu1 %vm15776_vm0, %v3036_v9  ;;  %v3236_v9 = vsub.s32 3, %v15981_v55 }
 0xab3   : >> { %8048 = vmatprep.mubr.msk.f32.mxu1 %vm15776_vm0, %v3038_v8  ;;  %v12338_v8 = vld [vmem:[%s10650_s17] sm:$0xff] }
 0xab4   : >> { %15982 = vst [vmem:[#allocation53_spill] sm:$0xff] %v12338_v8 }
 0xab5   : >> { %v3040_v29 = vpop.permute.xlu1 %3039 }
 0xab6   : >> { %8049 = vmatmul.mubr.msk.f32.gmra.mrb[22].mxu1 %vm15776_vm0, %v3040_v29  ;;  %v12341_v29 = vrot.slane %v12338_v8, %v3236_v9 }
 0xab8   : >> { %v3042_v57 = vpop.permute.xlu0 %3041 }
 0xab9   : >> { %v3044_v17 = vpop.permute.xlu1 %3043  ;;  %8051 = vmatprep.mubr.msk.f32.mxu1 %vm15776_vm0, %v3042_v57 }
 0xaba   : >> { %8052 = vmatmul.mubr.msk.f32.gmra.mrb[24].mxu1 %vm15776_vm0, %v3044_v17 }
 0xabc   : >> { %v3046_v12 = vpop.permute.xlu0 %3045 }
 0xabd   : >> { %v3048_v2 = vpop.permute.xlu1 %3047  ;;  %8054 = vmatprep.mubr.msk.f32.mxu1 %vm15776_vm0, %v3046_v12 }
 0xabe   : >> { %8055 = vmatmul.mubr.msk.f32.gmra.mrb[26].mxu1 %vm15776_vm0, %v3048_v2 }
 0xac1   : >> { %v3052_v45 = vpop.permute.xlu1 %3051  ;;  %v3050_v30 = vpop.permute.xlu0 %3049 }
 0xac2   : >> { %8057 = vmatprep.mubr.msk.f32.mxu1 %vm15776_vm0, %v3050_v30 }
 0xac3   : >> { %8058 = vmatmul.mubr.msk.f32.gmra.mrb[28].mxu1 %vm15776_vm0, %v3052_v45 }
 0xaf3   : >> { %v3056_v43 = vpop.permute.xlu1 %3055 }
 0xaf4   : >> { %v3054_v54 = vpop.permute.xlu0 %3053 }
 0xaf5   : >> { %8060 = vmatprep.mubr.msk.f32.mxu1 %vm15776_vm0, %v3054_v54 }
 0xaf6   : >> { %8061 = vmatmul.mubr.msk.f32.gmra.mrb[30].mxu1 %vm15776_vm0, %v3056_v43 }
 0xb7d   : >> { %v8041_v17 = vpop.f32.mrb[16].mxu1 }
 0xb7e   : >> { %v12344_v57 = vadd.f32 %v8041_v17, %v12341_v29  ;;  %v3155_v2 = vpop.f32.mrb[17].mxu1 }
 0xb7f   : >> { %v12347_v12 = vadd.f32 %v12341_v29, %v3155_v2 }
 0xb80   : >> { %9081 = vtanh.f32 %v12344_v57 }
 0xb81   : >> { %9083 = vtanh.f32 %v12347_v12  ;;  %v8044_v45 = vpop.f32.mrb[18].mxu1 }
 0xb82   : >> { %v12352_v30 = vadd.f32 %v8044_v45, %v12341_v29  ;;  %v3165_v54 = vpop.f32.mrb[19].mxu1 }
 0xb83   : >> { %v12355_v43 = vadd.f32 %v12341_v29, %v3165_v54 }
 0xb84   : >> { %9085 = vtanh.f32 %v12352_v30 }
 0xb85   : >> { %9087 = vtanh.f32 %v12355_v43  ;;  %v8047_v9 = vpop.f32.mrb[20].mxu1 }
 0xb86   : >> { %v12360_v17 = vadd.f32 %v8047_v9, %v12341_v29  ;;  %v3175_v2 = vpop.f32.mrb[21].mxu1 }
 0xb87   : >> { %v12363_v8 = vadd.f32 %v12341_v29, %v3175_v2 }
 0xb88   : >> { %9089 = vtanh.f32 %v12360_v17 }
 0xb89   : >> { %9091 = vtanh.f32 %v12363_v8  ;;  %v8050_v45 = vpop.f32.mrb[22].mxu1 }
 0xb8a   : >> { %v9082_v55 = vpop.eup %9081  ;;  %v12368_v54 = vadd.f32 %v8050_v45, %v12341_v29  ;;  %v3185_v3 = vpop.f32.mrb[23].mxu1 }
 0xb8b   : >> { %v9084_v21 = vpop.eup %9083  ;;  %v12371_v14 = vadd.f32 %v12341_v29, %v3185_v3  ;;  %3400 = vrot.lane.b32.xlu1 %v9082_v55, %s10060_s18 }
 0xb8c   : >> { %9093 = vtanh.f32 %v12368_v54  ;;  %3398 = vrot.lane.b32.xlu0 %v9084_v21, %s10060_s18 }
 0xb8d   : >> { %9095 = vtanh.f32 %v12371_v14  ;;  %v8053_v45 = vpop.f32.mrb[24].mxu1 }
 0xb8e   : >> { %v9086_v9 = vpop.eup %9085  ;;  %v12380_v58 = vadd.f32 %v8053_v45, %v12341_v29  ;;  %v3195_v3 = vpop.f32.mrb[25].mxu1 }
 0xb8f   : >> { %v9088_v2 = vpop.eup %9087  ;;  %3404 = vrot.lane.b32.xlu1 %v9086_v9, %s10060_s18  ;;  %v12386_v55 = vadd.f32 %v12341_v29, %v3195_v3 }
 0xb90   : >> { %3402 = vrot.lane.b32.xlu0 %v9088_v2, %s10060_s18  ;;  %9097 = vtanh.f32 %v12380_v58 }
 0xb91   : >> { %v8056_v2 = vpop.f32.mrb[26].mxu1  ;;  %9099 = vtanh.f32 %v12386_v55 }
 0xb92   : >> { %v9090_v16 = vpop.eup %9089  ;;  %v12391_v45 = vadd.f32 %v8056_v2, %v12341_v29  ;;  %v3205_v47 = vpop.f32.mrb[27].mxu1 }
 0xb93   : >> { %v9092_v40 = vpop.eup %9091  ;;  %3408 = vrot.lane.b32.xlu1 %v9090_v16, %s10060_s18 }
 0xb94   : >> { %3406 = vrot.lane.b32.xlu0 %v9092_v40, %s10060_s18  ;;  %9101 = vtanh.f32 %v12391_v45  ;;  %v12396_v40 = vadd.f32 %v12341_v29, %v3205_v47 }
 0xb96   : >> { %v9094_v21 = vpop.eup %9093  ;;  %v8059_v16 = vpop.f32.mrb[28].mxu1  ;;  %9103 = vtanh.f32 %v12396_v40 }
 0xb97   : >> { %v9096_v9 = vpop.eup %9095  ;;  %3412 = vrot.lane.b32.xlu1 %v9094_v21, %s10060_s18  ;;  %v12399_v3 = vadd.f32 %v8059_v16, %v12341_v29  ;;  %v3215_v11 = vpop.f32.mrb[29].mxu1 }
 0xb98   : >> { %3410 = vrot.lane.b32.xlu0 %v9096_v9, %s10060_s18  ;;  %v12405_v9 = vadd.f32 %v12341_v29, %v3215_v11 }
 0xb99   : >> { %9105 = vtanh.f32 %v12399_v3 }
 0xb9a   : >> { %v9098_v21 = vpop.eup %9097  ;;  %9107 = vtanh.f32 %v12405_v9 }
 0xb9b   : >> { %3416 = vrot.lane.b32.xlu1 %v9098_v21, %s10060_s18  ;;  %v9100_v2 = vpop.eup %9099 }
 0xb9c   : >> { %3414 = vrot.lane.b32.xlu0 %v9100_v2, %s10060_s18  ;;  %v10064_v2 = vmov 3  }
 0xb9d   : >> { %8688 = vset.pattern.permute.xlu1 %v10064_v2  ;;  %8687 = vset.pattern.permute.xlu0 %v10064_v2  ;;  %v7467_v2 = vmul.f32 -1.442695, %v12363_v8  ;;  %v7472_v8 = vmul.f32 -1.442695, %v12380_v58 }
 0xb9e   : >> { %v9102_v47 = vpop.eup %9101 }
 0xb9f   : >> { %3420 = vrot.lane.b32.xlu1 %v9102_v47, %s10060_s18 }
 0xba0   : >> { %v9104_v16 = vpop.eup %9103 }
 0xba1   : >> { %3418 = vrot.lane.b32.xlu0 %v9104_v16, %s10060_s18  ;;  %v7463_v16 = vmul.f32 -1.442695, %v12347_v12 }
 0xba3   : >> { %v9106_v6 = vpop.eup %9105 }
 0xba4   : >> { %3424 = vrot.lane.b32.xlu1 %v9106_v6, %s10060_s18  ;;  %v9108_v21 = vpop.eup %9107 }
 0xba5   : >> { %3422 = vrot.lane.b32.xlu0 %v9108_v21, %s10060_s18  ;;  %v7468_v21 = vmul.f32 -1.442695, %v12360_v17 }
 0xbc9   : >> { %v8062_v25 = vpop.f32.mrb[30].mxu1 }
 0xbca   : >> { %v12414_v11 = vadd.f32 %v8062_v25, %v12341_v29  ;;  %v3225_v63 = vpop.f32.mrb[31].mxu1  ;;  %v7464_v25 = vmul.f32 -1.442695, %v12344_v57  ;;  %v7469_v57 = vmul.f32 -1.442695, %v12371_v14 }
 0xbcb   : >> { %v12417_v23 = vadd.f32 %v12341_v29, %v3225_v63  ;;  %v7466_v63 = vmul.f32 -1.442695, %v12352_v30  ;;  %v7465_v29 = vmul.f32 -1.442695, %v12355_v43 }
 0xbcc   : >> { %9109 = vtanh.f32 %v12414_v11 }
 0xbcd   : >> { %9111 = vtanh.f32 %v12417_v23 }
 0xbce   : >> { %9113 = vpow2.f32 %v7464_v25 }
 0xbcf   : >> { %9115 = vpow2.f32 %v7463_v16 }
 0xbd0   : >> { %9117 = vpow2.f32 %v7466_v63 }
 0xbd1   : >> { %9119 = vpow2.f32 %v7465_v29 }
 0xbd2   : >> { %9121 = vpow2.f32 %v7468_v21 }
 0xbd3   : >> { %9123 = vpow2.f32 %v7467_v2  ;;  %v7471_v2 = vmul.f32 -1.442695, %v12386_v55  ;;  %v7476_v55 = vmul.f32 -1.442695, %v12399_v3  ;;  %v7475_v3 = vmul.f32 -1.442695, %v12405_v9 }
 0xbd6   : >> { %v9110_v47 = vpop.eup %9109 }
 0xbd7   : >> { %v9112_v6 = vpop.eup %9111  ;;  %3428 = vrot.lane.b32.xlu1 %v9110_v47, %s10060_s18  ;;  %v7470_v47 = vmul.f32 -1.442695, %v12368_v54 }
 0xbd8   : >> { %3426 = vrot.lane.b32.xlu0 %v9112_v6, %s10060_s18  ;;  %v9114_v6 = vpop.eup %9113 }
 0xbd9   : >> { %v9116_v12 = vpop.eup %9115  ;;  %9125 = vpow2.f32 %v7470_v47  ;;  %v3303_v25 = vadd.f32 1.0, %v9114_v6 }
 0xbda   : >> { %v9118_v30 = vpop.eup %9117  ;;  %9127 = vpow2.f32 %v7469_v57  ;;  %v3302_v16 = vadd.f32 1.0, %v9116_v12  ;;  %v7474_v57 = vmul.f32 -1.442695, %v12391_v45 }
 0xbdb   : >> { %v9120_v43 = vpop.eup %9119  ;;  %v3305_v63 = vadd.f32 1.0, %v9118_v30  ;;  %9129 = vrcp.f32 %v3303_v25 }
 0xbdc   : >> { %v9122_v34 = vpop.eup %9121  ;;  %9131 = vrcp.f32 %v3302_v16  ;;  %v3304_v29 = vadd.f32 1.0, %v9120_v43 }
 0xbdd   : >> { %v9124_v17 = vpop.eup %9123  ;;  %9133 = vrcp.f32 %v3305_v63  ;;  %v3307_v54 = vadd.f32 1.0, %v9122_v34  ;;  %v7473_v34 = vmul.f32 -1.442695, %v12396_v40 }
 0xbde   : >> { %v3306_v21 = vadd.f32 1.0, %v9124_v17  ;;  %9135 = vpow2.f32 %v7472_v8 }
 0xbdf   : >> { %9137 = vrcp.f32 %v3304_v29 }
 0xbe0   : >> { %9139 = vrcp.f32 %v3307_v54 }
 0xbe1   : >> { %9141 = vrcp.f32 %v3306_v21 }
 0xbe2   : >> { %9143 = vpow2.f32 %v7471_v2 }
 0xbe3   : >> { %v9126_v14 = vpop.eup %9125  ;;  %9145 = vpow2.f32 %v7474_v57 }
 0xbe4   : >> { %v9128_v47 = vpop.eup %9127  ;;  %v3309_v6 = vadd.f32 1.0, %v9126_v14 }
 0xbe5   : >> { %v3308_v12 = vadd.f32 1.0, %v9128_v47  ;;  %v12434_v58 = vpop.eup %9129 }
 0xbe6   : >> { %v12436_v25 = vpop.eup %9131  ;;  %9147 = vrcp.f32 %v3309_v6 }
 0xbe7   : >> { %v12442_v63 = vpop.eup %9133  ;;  %9149 = vrcp.f32 %v3308_v12 }
 0xbe8   : >> { %v9136_v8 = vpop.eup %9135  ;;  %9151 = vpow2.f32 %v7473_v34 }
 0xbe9   : >> { %v12446_v29 = vpop.eup %9137  ;;  %9153 = vpow2.f32 %v7476_v55  ;;  %v3311_v2 = vadd.f32 1.0, %v9136_v8 }
 0xbea   : >> { %v12451_v14 = vpop.eup %9139  ;;  %9155 = vpow2.f32 %v7475_v3 }
 0xbeb   : >> { %v12454_v47 = vpop.eup %9141  ;;  %9157 = vrcp.f32 %v3311_v2 }
 0xbec   : >> { %v9144_v6 = vpop.eup %9143 }
 0xbed   : >> { %v9146_v9 = vpop.eup %9145 }
 0xbfd   : >> { %v3401_v30 = vpop.permute.xlu1 %3400 }
 0xbfe   : >> { %v3447_v16 = vmul.f32 %v12434_v58, %v3401_v30  ;;  %v3399_v43 = vpop.permute.xlu0 %3398 }
 0xbff   : >> { %v3446_v45 = vmul.f32 %v12436_v25, %v3399_v43  ;;  %v3310_v43 = vadd.f32 1.0, %v9144_v6 }
 0xc00   : >> { %3480 = vrot.lane.b32.xlu1 %v3447_v16, %s10060_s18  ;;  %v12460_v16 = vpop.eup %9147 }
 0xc01   : >> { %3478 = vrot.lane.b32.xlu0 %v3446_v45, %s10060_s18  ;;  %v3405_v17 = vpop.permute.xlu1 %3404  ;;  %v12463_v45 = vpop.eup %9149  ;;  %9159 = vrcp.f32 %v3310_v43 }
 0xc02   : >> { %v3449_v40 = vmul.f32 %v12442_v63, %v3405_v17  ;;  %v3403_v54 = vpop.permute.xlu0 %3402  ;;  %v9152_v3 = vpop.eup %9151 }
 0xc03   : >> { %v3448_v21 = vmul.f32 %v12446_v29, %v3403_v54  ;;  %v3312_v2 = vadd.f32 1.0, %v9152_v3 }
 0xc04   : >> { %3484 = vrot.lane.b32.xlu1 %v3449_v40, %s10060_s18  ;;  %v3313_v40 = vadd.f32 1.0, %v9146_v9 }
 0xc05   : >> { %3482 = vrot.lane.b32.xlu0 %v3448_v21, %s10060_s18  ;;  %v3409_v57 = vpop.permute.xlu1 %3408  ;;  %v9154_v21 = vpop.eup %9153 }
 0xc06   : >> { %v3451_v12 = vmul.f32 %v12451_v14, %v3409_v57  ;;  %v3407_v30 = vpop.permute.xlu0 %3406  ;;  %9161 = vrcp.f32 %v3313_v40  ;;  %v3315_v57 = vadd.f32 1.0, %v9154_v21  ;;  %v9156_v6 = vpop.eup %9155 }
 0xc07   : >> { %v3450_v34 = vmul.f32 %v12454_v47, %v3407_v30  ;;  %9163 = vrcp.f32 %v3312_v2  ;;  %v3314_v9 = vadd.f32 1.0, %v9156_v6 }
 0xc08   : >> { %3488 = vrot.lane.b32.xlu1 %v3451_v12, %s10060_s18  ;;  %v12469_v12 = vpop.eup %9157  ;;  %9165 = vrcp.f32 %v3315_v57 }
 0xc09   : >> { %3486 = vrot.lane.b32.xlu0 %v3450_v34, %s10060_s18  ;;  %v3413_v55 = vpop.permute.xlu1 %3412  ;;  %9167 = vrcp.f32 %v3314_v9 }
 0xc0a   : >> { %v3453_v8 = vmul.f32 %v12460_v16, %v3413_v55  ;;  %v3411_v17 = vpop.permute.xlu0 %3410 }
 0xc0b   : >> { %v3452_v54 = vmul.f32 %v12463_v45, %v3411_v17  ;;  %v12473_v55 = vpop.eup %9159 }
 0xc0c   : >> { %3492 = vrot.lane.b32.xlu1 %v3453_v8, %s10060_s18 }
 0xc0d   : >> { %3490 = vrot.lane.b32.xlu0 %v3452_v54, %s10060_s18  ;;  %v3417_v30 = vpop.permute.xlu1 %3416 }
 0xc0e   : >> { %v3455_v34 = vmul.f32 %v12469_v12, %v3417_v30  ;;  %v3415_v8 = vpop.permute.xlu0 %3414 }
 0xc0f   : >> { %v3454_v43 = vmul.f32 %v12473_v55, %v3415_v8 }
 0xc10   : >> { %3496 = vrot.lane.b32.xlu1 %v3455_v34, %s10060_s18  ;;  %v12476_v17 = vpop.eup %9161 }
 0xc11   : >> { %v3421_v40 = vpop.permute.xlu1 %3420  ;;  %3494 = vrot.lane.b32.xlu0 %v3454_v43, %s10060_s18  ;;  %v12481_v3 = vpop.eup %9163  ;;  %v7478_v43 = vmul.f32 -1.442695, %v12414_v11 }
 0xc12   : >> { %v3457_v54 = vmul.f32 %v12476_v17, %v3421_v40  ;;  %v12483_v2 = vpop.eup %9165  ;;  %v7477_v40 = vmul.f32 -1.442695, %v12417_v23  ;;  %v15984_v23 = vld [vmem:[#allocation37_spill] sm:$0xff] }
 0xc13   : >> { %v3419_v21 = vpop.permute.xlu0 %3418  ;;  %v12489_v34 = vpop.eup %9167  ;;  %9169 = vpow2.f32 %v7478_v43  ;;  %v15985_v43 = vld [vmem:[#allocation38_spill] sm:$0xff] }
 0xc14   : >> { %3500 = vrot.lane.b32.xlu1 %v3457_v54, %s10060_s18  ;;  %v3456_v57 = vmul.f32 %v12481_v3, %v3419_v21  ;;  %9171 = vpow2.f32 %v7477_v40  ;;  %v15986_v40 = vld [vmem:[#allocation39_spill] sm:$0xff] }
 0xc16   : >> { %v3425_v6 = vpop.permute.xlu1 %3424  ;;  %3498 = vrot.lane.b32.xlu0 %v3456_v57, %s10060_s18 }
 0xc17   : >> { %v3459_v30 = vmul.f32 %v12483_v2, %v3425_v6  ;;  %v3423_v9 = vpop.permute.xlu0 %3422 }
 0xc18   : >> { %v3458_v8 = vmul.f32 %v12489_v34, %v3423_v9 }
 0xc19   : >> { %3504 = vrot.lane.b32.xlu1 %v3459_v30, %s10060_s18 }
 0xc1a   : >> { %3502 = vrot.lane.b32.xlu0 %v3458_v8, %s10060_s18 }
 0xc1d   : >> { %v9170_v54 = vpop.eup %9169 }
 0xc1e   : >> { %v9172_v21 = vpop.eup %9171  ;;  %v3317_v6 = vadd.f32 1.0, %v9170_v54  ;;  %v15987_v54 = vld [vmem:[#allocation41_spill] sm:$0xff] }
 0xc1f   : >> { %v3316_v7 = vadd.f32 1.0, %v9172_v21  ;;  %v15988_v21 = vld [vmem:[#allocation56_spill] sm:$0xff] }
 0xc20   : >> { %9173 = vrcp.f32 %v3317_v6  ;;  %v12523_v6 = vsel %vm2962_vm6, %v11963_v10, %v15988_v21 }
 0xc21   : >> { %9175 = vrcp.f32 %v3316_v7  ;;  %v15983_v7 = vld [vmem:[#allocation36_spill] sm:$0xff] }
 0xc2a   : >> { %v12495_v57 = vpop.eup %9173 }
 0xc2b   : >> { %v12497_v49 = vpop.eup %9175 }
 0xc49   : >> { %v3429_v30 = vpop.permute.xlu1 %3428 }
 0xc4a   : >> { %v3461_v9 = vmul.f32 %v12495_v57, %v3429_v30  ;;  %v3427_v8 = vpop.permute.xlu0 %3426  ;;  %v15989_v30 = vld [vmem:[#allocation31_spill] sm:$0xff] }
 0xc4b   : >> { %v3460_v11 = vmul.f32 %v12497_v49, %v3427_v8  ;;  %v3367_v8 = vmul.f32 %v12434_v58, %v12523_v6 }
 0xc4c   : >> { %3508 = vrot.lane.b32.xlu1 %v3461_v9, %s10060_s18  ;;  %v12529_v9 = vsel %vm2961_vm4, %v11971_v41, %v15989_v30  ;;  %v12549_v41 = vsel %vm2963_vm5, %v11994_v38, %v11977_v61  ;;  %v12563_v61 = vsel %vm2966_vm10, %v12008_v53, %v11992_v26  ;;  %vm16019_vm4 = vcmp.eq.s32.totalorder %v12168_v15, 1 }
 0xc4d   : >> { %3506 = vrot.lane.b32.xlu0 %v3460_v11, %s10060_s18  ;;  %v3371_v30 = vmul.f32 %v12451_v14, %v12563_v61 }
 0xc50   : >> { %3642 = vperm.xlu1 %8688, %v15814_v19  }
 0xc51   : >> { %3639 = vperm.xlu0 %8687, %v15815_v27  }
 0xc54   : >> { %3645 = vperm.xlu1 %8688, %v15898_v22  }
 0xc55   : >> { %3648 = vperm.xlu0 %8687, %v15900_v13  }
 0xc58   : >> { %3651 = vperm.xlu1 %8688, %v15897_v44  }
 0xc59   : >> { %3654 = vperm.xlu0 %8687, %v15901_v24  }
 0xc5c   : >> { %3657 = vperm.xlu1 %8688, %v15899_v18  }
 0xc5d   : >> { %3660 = vperm.xlu0 %8687, %v15902_v60  }
 0xc60   : >> { %3663 = vperm.xlu1 %8688, %v15824_v46  }
 0xc61   : >> { %3666 = vperm.xlu0 %8687, %v15983_v7  }
 0xc64   : >> { %3669 = vperm.xlu1 %8688, %v15984_v23  }
 0xc65   : >> { %3672 = vperm.xlu0 %8687, %v15985_v43  }
 0xc68   : >> { %3675 = vperm.xlu1 %8688, %v15986_v40  }
 0xc69   : >> { %3678 = vperm.xlu0 %8687, %v15907_v48   ;;  %v3366_v48 = vmul.f32 %v12436_v25, %v12529_v9 }
 0xc6c   : >> { %3681 = vperm.xlu1 %8688, %v15987_v54   ;;  %v15990_v54 = vld [vmem:[#allocation29_spill] sm:$0xff] }
 0xc6d   : >> { %3684 = vperm.xlu0 %8687, %v15913_v52   ;;  %v12541_v10 = vsel %vm2964_vm8, %v11986_v4, %v15990_v54  ;;  %v3368_v4 = vmul.f32 %v12446_v29, %v12549_v41 }
 0xc6e   : >> { %v3369_v59 = vmul.f32 %v12442_v63, %v12541_v10 }
 0xc72   : >> { %v3481_v11 = vpop.permute.xlu1 %3480 }
 0xc73   : >> { %v12535_v52 = vadd.f32 %v3481_v11, %v3367_v8  ;;  %v3479_v43 = vpop.permute.xlu0 %3478  ;;  %v15993_v11 = vld [vmem:[#allocation30_spill] sm:$0xff] }
 0xc74   : >> { %v12543_v51 = vadd.f32 %v3479_v43, %v3366_v48  ;;  %v15992_v43 = vld [vmem:[#allocation32_spill] sm:$0xff] }
 0xc75   : >> { %9177 = vtanh.f32 %v12535_v52  ;;  %v12571_v54 = vsel %vm2965_vm7, %v15992_v43, %v15991_v42 }
 0xc76   : >> { %9179 = vtanh.f32 %v12543_v51  ;;  %v3485_v21 = vpop.permute.xlu1 %3484  ;;  %v3370_v26 = vmul.f32 %v12454_v47, %v12571_v54 }
 0xc77   : >> { %v12557_v35 = vadd.f32 %v3485_v21, %v3369_v59  ;;  %v3483_v48 = vpop.permute.xlu0 %3482  ;;  %v15994_v59 = vld [vmem:[#allocation28_spill] sm:$0xff] }
 0xc78   : >> { %v12565_v38 = vadd.f32 %v3483_v48, %v3368_v4  ;;  %v12585_v37 = vsel %vm2968_vm11, %v15994_v59, %v15993_v11  ;;  %v15997_v4 = vld [vmem:[#allocation34_spill] sm:$0xff]  ;;  %v15998_v48 = vld [vmem:[#allocation27_spill] sm:$0xff] }
 0xc79   : >> { %9181 = vtanh.f32 %v12557_v35  ;;  %15995 = vst [vmem:[#allocation54_spill] sm:$0xff] %v12585_v37  ;;  %v12593_v42 = vsel %vm2967_vm9, %v15998_v48, %v15997_v4  ;;  %v3373_v43 = vmul.f32 %v12460_v16, %v12585_v37  ;;  %v16002_v48 = vld [vmem:[#allocation35_spill] sm:$0xff] }
 0xc7a   : >> { %9183 = vtanh.f32 %v12565_v38  ;;  %v3489_v8 = vpop.permute.xlu1 %3488  ;;  %15999 = vst [vmem:[#allocation55_spill] sm:$0xff] %v12593_v42  ;;  %v3372_v31 = vmul.f32 %v12463_v45, %v12593_v42  ;;  %v16003_v42 = vld [vmem:[#allocation44_spill] sm:$0xff] }
 0xc7b   : >> { %v12579_v53 = vadd.f32 %v3489_v8, %v3371_v30  ;;  %v3487_v62 = vpop.permute.xlu0 %3486 }
 0xc7c   : >> { %v12587_v21 = vadd.f32 %v3487_v62, %v3370_v26 }
 0xc7d   : >> { %9185 = vtanh.f32 %v12579_v53 }
 0xc7e   : >> { %15996 = vst [vmem:[#allocation23_spill] sm:$0xff] %v12587_v21  ;;  %9187 = vtanh.f32 %v12587_v21  ;;  %v3493_v30 = vpop.permute.xlu1 %3492 }
 0xc7f   : >> { %v9178_v8 = vpop.eup %9177  ;;  %v12601_v26 = vadd.f32 %v3493_v30, %v3373_v43  ;;  %v3491_v62 = vpop.permute.xlu0 %3490  ;;  %v12614_v43 = vsel %vm2970_vm12, %v16003_v42, %v16002_v48 }
 0xc80   : >> { %v9180_v11 = vpop.eup %9179  ;;  %v12603_v59 = vadd.f32 %v3491_v62, %v3372_v31  ;;  %3576 = vrot.lane.b32.xlu0 %v9178_v8, %s10060_s18  ;;  %16004 = vst [vmem:[#allocation39_spill] sm:$0xff] %v12614_v43  ;;  %v3375_v30 = vmul.f32 %v12469_v12, %v12614_v43  ;;  %v16009_v43 = vld [vmem:[#allocation57_spill] sm:$0xff] }
 0xc81   : >> { %16000 = vst [vmem:[#allocation36_spill] sm:$0xff] %v12601_v26  ;;  %9189 = vtanh.f32 %v12601_v26  ;;  %3574 = vrot.lane.b32.xlu1 %v9180_v11, %s10060_s18 }
 0xc82   : >> { %16001 = vst [vmem:[#allocation37_spill] sm:$0xff] %v12603_v59  ;;  %9191 = vtanh.f32 %v12603_v59  ;;  %v3497_v8 = vpop.permute.xlu1 %3496  ;;  %v16007_v59 = vld [vmem:[#allocation20_spill] sm:$0xff] }
 0xc83   : >> { %v9182_v50 = vpop.eup %9181  ;;  %v12619_v11 = vadd.f32 %v3497_v8, %v3375_v30  ;;  %v16010_v30 = vld [vmem:[#allocation21_spill] sm:$0xff]  ;;  %v3495_v8 = vpop.permute.xlu0 %3494 }
 0xc84   : >> { %v9184_v4 = vpop.eup %9183  ;;  %3580 = vrot.lane.b32.xlu0 %v9182_v50, %s10060_s18  ;;  %v16006_v50 = vld [vmem:[#allocation22_spill] sm:$0xff] }
 0xc85   : >> { %3578 = vrot.lane.b32.xlu1 %v9184_v4, %s10060_s18  ;;  %16005 = vst [vmem:[#allocation56_spill] sm:$0xff] %v12619_v11  ;;  %v12627_v33 = vsel %vm2969_vm13, %v16007_v59, %v16006_v50  ;;  %9193 = vtanh.f32 %v12619_v11  ;;  %v16015_v11 = vld [vmem:[#allocation19_spill] sm:$0xff] }
 0xc86   : >> { %16008 = vst [vmem:[#allocation31_spill] sm:$0xff] %v12627_v33  ;;  %v3374_v4 = vmul.f32 %v12473_v55, %v12627_v33  ;;  %v3501_v59 = vpop.permute.xlu1 %3500  ;;  %v16014_v33 = vld [vmem:[#allocation43_spill] sm:$0xff] }
 0xc87   : >> { %v9186_v31 = vpop.eup %9185  ;;  %v12651_v56 = vsel %vm2971_vm15, %v16015_v11, %v16014_v33 }
 0xc88   : >> { %v9188_v62 = vpop.eup %9187  ;;  %3584 = vrot.lane.b32.xlu0 %v9186_v31, %s10060_s18  ;;  %v12636_v31 = vsel %vm2972_vm14, %v16010_v30, %v16009_v43  ;;  %16016 = vst [vmem:[#allocation30_spill] sm:$0xff] %v12651_v56  ;;  %v16017_v43 = vld [vmem:[#allocation46_spill] sm:$0xff]  ;;  %v3499_v30 = vpop.permute.xlu0 %3498 }
 0xc89   : >> { %3582 = vrot.lane.b32.xlu1 %v9188_v62, %s10060_s18  ;;  %16011 = vst [vmem:[#allocation29_spill] sm:$0xff] %v12636_v31  ;;  %v12639_v62 = vadd.f32 %v3495_v8, %v3374_v4  ;;  %v3377_v5 = vmul.f32 %v12476_v17, %v12636_v31  ;;  %v16024_v31 = vld [vmem:[#allocation18_spill] sm:$0xff] }
 0xc8b   : >> { %v9190_v42 = vpop.eup %9189  ;;  %16012 = vst [vmem:[#allocation33_spill] sm:$0xff] %v12639_v62  ;;  %9195 = vtanh.f32 %v12639_v62  ;;  %v12645_v50 = vadd.f32 %v3501_v59, %v3377_v5  ;;  %v3505_v28 = vpop.permute.xlu1 %3504  ;;  %v16023_v59 = vld [vmem:[#allocation45_spill] sm:$0xff] }
 0xc8c   : >> { %v9192_v48 = vpop.eup %9191  ;;  %3588 = vrot.lane.b32.xlu0 %v9190_v42, %s10060_s18  ;;  %v16018_v42 = vld [vmem:[#allocation16_spill] sm:$0xff]  ;;  %v12672_v15 = vsel %vm2973_vm2, %v16024_v31, %v16023_v59  ;;  %v16028_v59 = vld [vmem:[#allocation14_spill] sm:$0xff] }
 0xc8d   : >> { %3586 = vrot.lane.b32.xlu1 %v9192_v48, %s10060_s18  ;;  %16013 = vst [vmem:[#allocation32_spill] sm:$0xff] %v12645_v50  ;;  %v12657_v4 = vsel %vm16019_vm4, %v16018_v42, %v16017_v43  ;;  %9197 = vtanh.f32 %v12645_v50  ;;  %v3376_v48 = vmul.f32 %v12481_v3, %v12651_v56  ;;  %16025 = vst [vmem:[#allocation35_spill] sm:$0xff] %v12672_v15  ;;  %v3503_v42 = vpop.permute.xlu0 %3502 }
 0xc8e   : >> { %16020 = vst [vmem:[#allocation28_spill] sm:$0xff] %v12657_v4  ;;  %v3379_v8 = vmul.f32 %v12483_v2, %v12657_v4  ;;  %v3378_v43 = vmul.f32 %v12489_v34, %v12672_v15 }
 0xc8f   : >> { %v12664_v5 = vadd.f32 %v3499_v30, %v3376_v48  ;;  %v9194_v11 = vpop.eup %9193 }
 0xc90   : >> { %v12666_v33 = vadd.f32 %v3505_v28, %v3379_v8  ;;  %3592 = vrot.lane.b32.xlu0 %v9194_v11, %s10060_s18  ;;  %v12679_v48 = vadd.f32 %v3503_v42, %v3378_v43  ;;  %v16027_v11 = vld [vmem:[#allocation17_spill] sm:$0xff]  ;;  %v16030_v42 = vld [vmem:[#allocation48_spill] sm:$0xff] }
 0xc91   : >> { %16021 = vst [vmem:[#allocation34_spill] sm:$0xff] %v12664_v5  ;;  %9199 = vtanh.f32 %v12664_v5  ;;  %v12691_v43 = vsel %vm2976_vm3, %v16028_v59, %v16027_v11 }
 0xc92   : >> { %16022 = vst [vmem:[#allocation27_spill] sm:$0xff] %v12666_v33  ;;  %9201 = vtanh.f32 %v12666_v33  ;;  %16026 = vst [vmem:[#allocation44_spill] sm:$0xff] %v12679_v48 }
 0xc93   : >> { %9203 = vtanh.f32 %v12679_v48  ;;  %16029 = vst [vmem:[#allocation22_spill] sm:$0xff] %v12691_v43 }
 0xc95   : >> { %v9196_v30 = vpop.eup %9195 }
 0xc96   : >> { %3590 = vrot.lane.b32.xlu1 %v9196_v30, %s10060_s18  ;;  %v16031_v30 = vld [vmem:[#allocation47_spill] sm:$0xff] }
 0xc97   : >> { %v9198_v36 = vpop.eup %9197 }
 0xc98   : >> { %3596 = vrot.lane.b32.xlu0 %v9198_v36, %s10060_s18  ;;  %v12697_v36 = vsel %vm2975_vm1, %v16031_v30, %v16030_v42 }
 0xc99   : >> { %16032 = vst [vmem:[#allocation20_spill] sm:$0xff] %v12697_v36 }
 0xc9b   : >> { %v9200_v31 = vpop.eup %9199 }
 0xc9c   : >> { %v9202_v8 = vpop.eup %9201  ;;  %3594 = vrot.lane.b32.xlu1 %v9200_v31, %s10060_s18  ;;  %v3381_v31 = vmul.f32 %v12495_v57, %v12691_v43 }
 0xc9d   : >> { %3600 = vrot.lane.b32.xlu0 %v9202_v8, %s10060_s18  ;;  %v9204_v28 = vpop.eup %9203  ;;  %v3380_v8 = vmul.f32 %v12497_v49, %v12697_v36 }
 0xca0   : >> { %3598 = vrot.lane.b32.xlu1 %v9204_v28, %s10060_s18 }
 0xcbe   : >> { %v3509_v48 = vpop.permute.xlu1 %3508 }
 0xcbf   : >> { %v12703_v28 = vadd.f32 %v3509_v48, %v3381_v31  ;;  %v3507_v15 = vpop.permute.xlu0 %3506 }
 0xcc0   : >> { %v12705_v33 = vadd.f32 %v3507_v15, %v3380_v8 }
 0xcc1   : >> { %16033 = vst [vmem:[#allocation57_spill] sm:$0xff] %v12703_v28  ;;  %9205 = vtanh.f32 %v12703_v28 }
 0xcc2   : >> { %16034 = vst [vmem:[#allocation21_spill] sm:$0xff] %v12705_v33  ;;  %9207 = vtanh.f32 %v12705_v33 }
 0xccb   : >> { %v9206_v1 = vpop.eup %9205 }
 0xccc   : >> { %v9208_v20 = vpop.eup %9207  ;;  %3604 = vrot.lane.b32.xlu0 %v9206_v1, %s10060_s18 }
 0xccd   : >> { %3602 = vrot.lane.b32.xlu1 %v9208_v20, %s10060_s18 }
 0xccf   : >> { %v12711_v11 = vpop.permute.xlu1 %3642 }
 0xcd0   : >> { %v12713_v59 = vpop.permute.xlu0 %3639  ;;  %vm3687_vm5 = vcmp.eq.s32.totalorder %v12711_v11, 1 }
 0xcd1   : >> { %vm3686_vm6 = vcmp.eq.s32.totalorder %v12713_v59, 1 }
 0xcd3   : >> { %v12715_v42 = vpop.permute.xlu1 %3645 }
 0xcd4   : >> { %v12717_v48 = vpop.permute.xlu0 %3648  ;;  %vm3688_vm8 = vcmp.eq.s32.totalorder %v12715_v42, 1  ;;  %v16075_v42 = vld [vmem:[#allocation23_spill] sm:$0xff] }
 0xcd5   : >> { %vm3689_vm7 = vcmp.eq.s32.totalorder %v12717_v48, 1 }
 0xcd7   : >> { %v12719_v15 = vpop.permute.xlu1 %3651 }
 0xcd8   : >> { %v12721_v30 = vpop.permute.xlu0 %3654  ;;  %vm3690_vm10 = vcmp.eq.s32.totalorder %v12719_v15, 1 }
 0xcd9   : >> { %vm3691_vm9 = vcmp.eq.s32.totalorder %v12721_v30, 1 }
 0xcdb   : >> { %v12723_v31 = vpop.permute.xlu1 %3657 }
 0xcdc   : >> { %v12725_v8 = vpop.permute.xlu0 %3660  ;;  %vm3692_vm12 = vcmp.eq.s32.totalorder %v12723_v31, 1 }
 0xcdd   : >> { %vm3693_vm11 = vcmp.eq.s32.totalorder %v12725_v8, 1 }
 0xcdf   : >> { %v12727_v33 = vpop.permute.xlu1 %3663 }
 0xce0   : >> { %v12729_v1 = vpop.permute.xlu0 %3666  ;;  %vm3694_vm14 = vcmp.eq.s32.totalorder %v12727_v33, 1  ;;  %v16095_v33 = vld [vmem:[#allocation29_spill] sm:$0xff] }
 0xce1   : >> { %vm3695_vm13 = vcmp.eq.s32.totalorder %v12729_v1, 1 }
 0xce3   : >> { %v12731_v20 = vpop.permute.xlu1 %3669 }
 0xce4   : >> { %v12733_v36 = vpop.permute.xlu0 %3672  ;;  %vm3696_vm1 = vcmp.eq.s32.totalorder %v12731_v20, 1  ;;  %v16107_v20 = vld [vmem:[#allocation35_spill] sm:$0xff] }
 0xce5   : >> { %vm3697_vm15 = vcmp.eq.s32.totalorder %v12733_v36, 1 }
 0xce7   : >> { %v12737_v43 = vpop.permute.xlu1 %3675 }
 0xce8   : >> { %v12735_v28 = vpop.permute.xlu0 %3678  ;;  %vm3698_vm3 = vcmp.eq.s32.totalorder %v12737_v43, 1 }
 0xce9   : >> { %vm15594_vm2 = vcmp.eq.s32.totalorder %v12735_v28, 1 }
 0xceb   : >> { %v12741_v5 = vpop.permute.xlu1 %3681 }
 0xcec   : >> { %v12739_v4 = vpop.permute.xlu0 %3684  ;;  %16036 = vst [vmem:[#allocation19_spill] sm:$0xff] %v12741_v5 }
 0xced   : >> { %16035 = vst [vmem:[#allocation43_spill] sm:$0xff] %v12739_v4  ;;  %vm3701_vm4 = vcmp.eq.s32.totalorder %v12739_v4, 1 }
 0xcf2   : >> { %v3577_v56 = vpop.permute.xlu0 %3576 }
 0xcf3   : >> { %v3623_v50 = vmul.f32 %v12434_v58, %v3577_v56  ;;  %v3575_v62 = vpop.permute.xlu1 %3574 }
 0xcf4   : >> { %v3622_v26 = vmul.f32 %v12436_v25, %v3575_v62 }
 0xcf5   : >> { %v12750_v37 = vsel %vm3687_vm5, %v3623_v50, %v12195_v39 }
 0xcf6   : >> { %16037 = vst [vmem:[#allocation46_spill] sm:$0xff] %v12750_v37  ;;  %v3581_v21 = vpop.permute.xlu0 %3580  ;;  %3752 = vrot.lane.b32.xlu0 %v12750_v37, %s10059_s22  ;;  %v12757_v58 = vsel %vm3686_vm6, %v3622_v26, %v12177_v0  ;;  %v16040_v0 = vld [vmem:[#allocation49_spill] sm:$0xff]  ;;  %v16042_v26 = vld [vmem:[#allocation50_spill] sm:$0xff] }
 0xcf7   : >> { %16038 = vst [vmem:[#allocation16_spill] sm:$0xff] %v12757_v58  ;;  %v3625_v56 = vmul.f32 %v12442_v63, %v3581_v21  ;;  %3750 = vrot.lane.b32.xlu1 %v12757_v58, %s10059_s22  ;;  %v3579_v25 = vpop.permute.xlu1 %3578 }
 0xcf8   : >> { %v3624_v39 = vmul.f32 %v12446_v29, %v3579_v25 }
 0xcf9   : >> { %v12768_v62 = vsel %vm3689_vm7, %v3625_v56, %v12213_v32 }
 0xcfa   : >> { %16039 = vst [vmem:[#allocation45_spill] sm:$0xff] %v12768_v62  ;;  %v3585_v50 = vpop.permute.xlu0 %3584  ;;  %3756 = vrot.lane.b32.xlu0 %v12768_v62, %s10059_s22  ;;  %v12775_v63 = vsel %vm3688_vm8, %v3624_v39, %v16040_v0 }
 0xcfb   : >> { %16041 = vst [vmem:[#allocation18_spill] sm:$0xff] %v12775_v63  ;;  %v3627_v21 = vmul.f32 %v12451_v14, %v3585_v50  ;;  %3754 = vrot.lane.b32.xlu1 %v12775_v63, %s10059_s22  ;;  %v3583_v29 = vpop.permute.xlu1 %3582  ;;  %v16044_v14 = vld [vmem:[#allocation15_spill] sm:$0xff] }
 0xcfc   : >> { %v3626_v32 = vmul.f32 %v12454_v47, %v3583_v29 }
 0xcfd   : >> { %v12786_v56 = vsel %vm3691_vm9, %v3627_v21, %v16042_v26  ;;  %v16046_v21 = vld [vmem:[#allocation51_spill] sm:$0xff] }
 0xcfe   : >> { %16043 = vst [vmem:[#allocation17_spill] sm:$0xff] %v12786_v56  ;;  %v3589_v25 = vpop.permute.xlu0 %3588  ;;  %3760 = vrot.lane.b32.xlu0 %v12786_v56, %s10059_s22  ;;  %v12793_v39 = vsel %vm3690_vm10, %v3626_v32, %v16044_v14  ;;  %v16048_v32 = vld [vmem:[#allocation12_spill] sm:$0xff] }
 0xcff   : >> { %16045 = vst [vmem:[#allocation14_spill] sm:$0xff] %v12793_v39  ;;  %v3629_v50 = vmul.f32 %v12460_v16, %v3589_v25  ;;  %3758 = vrot.lane.b32.xlu1 %v12793_v39, %s10059_s22  ;;  %v3587_v47 = vpop.permute.xlu1 %3586  ;;  %v16050_v25 = vld [vmem:[#allocation13_spill] sm:$0xff] }
 0xd00   : >> { %v3628_v0 = vmul.f32 %v12463_v45, %v3587_v47 }
 0xd01   : >> { %v12804_v29 = vsel %vm3693_vm11, %v3629_v50, %v16046_v21 }
 0xd02   : >> { %16047 = vst [vmem:[#allocation48_spill] sm:$0xff] %v12804_v29  ;;  %3764 = vrot.lane.b32.xlu0 %v12804_v29, %s10059_s22  ;;  %v12811_v16 = vsel %vm3692_vm12, %v3628_v0, %v16048_v32  ;;  %v3593_v26 = vpop.permute.xlu0 %3592  ;;  %v16052_v32 = vld [vmem:[#allocation10_spill] sm:$0xff] }
 0xd03   : >> { %16049 = vst [vmem:[#allocation47_spill] sm:$0xff] %v12811_v16  ;;  %3762 = vrot.lane.b32.xlu1 %v12811_v16, %s10059_s22  ;;  %v3631_v45 = vmul.f32 %v12469_v12, %v3593_v26  ;;  %v16054_v26 = vld [vmem:[#allocation52_spill] sm:$0xff] }
 0xd05   : >> { %v12820_v14 = vsel %vm3695_vm13, %v3631_v45, %v16050_v25 }
 0xd06   : >> { %16051 = vst [vmem:[#allocation49_spill] sm:$0xff] %v12820_v14  ;;  %3768 = vrot.lane.b32.xlu0 %v12820_v14, %s10059_s22 }
 0xd08   : >> { %v3591_v50 = vpop.permute.xlu1 %3590 }
 0xd09   : >> { %v3630_v47 = vmul.f32 %v12473_v55, %v3591_v50 }
 0xd0a   : >> { %v3597_v0 = vpop.permute.xlu0 %3596 }
 0xd0b   : >> { %v3633_v21 = vmul.f32 %v12476_v17, %v3597_v0  ;;  %v12830_v12 = vsel %vm3694_vm14, %v3630_v47, %v16052_v32  ;;  %v16056_v47 = vld [vmem:[#allocation11_spill] sm:$0xff] }
 0xd0c   : >> { %16053 = vst [vmem:[#allocation50_spill] sm:$0xff] %v12830_v12  ;;  %3766 = vrot.lane.b32.xlu1 %v12830_v12, %s10059_s22 }
 0xd0d   : >> { %v12838_v45 = vsel %vm3697_vm15, %v3633_v21, %v16054_v26  ;;  %v16058_v21 = vld [vmem:[#allocation59_spill] sm:$0xff]  ;;  %v16060_v26 = vld [vmem:[#allocation58_spill] sm:$0xff] }
 0xd0e   : >> { %16055 = vst [vmem:[#allocation15_spill] sm:$0xff] %v12838_v45  ;;  %v3595_v55 = vpop.permute.xlu1 %3594  ;;  %3772 = vrot.lane.b32.xlu0 %v12838_v45, %s10059_s22 }
 0xd0f   : >> { %v3632_v17 = vmul.f32 %v12481_v3, %v3595_v55  ;;  %v3601_v25 = vpop.permute.xlu0 %3600 }
 0xd10   : >> { %v3635_v50 = vmul.f32 %v12483_v2, %v3601_v25 }
 0xd11   : >> { %v12849_v0 = vsel %vm3696_vm1, %v3632_v17, %v16056_v47 }
 0xd12   : >> { %16057 = vst [vmem:[#allocation51_spill] sm:$0xff] %v12849_v0  ;;  %3770 = vrot.lane.b32.xlu1 %v12849_v0, %s10059_s22  ;;  %v12856_v32 = vsel %vm15594_vm2, %v3635_v50, %v16058_v21  ;;  %v3599_v3 = vpop.permute.xlu1 %3598  ;;  %vm3700_vm2 = vcmp.eq.s32.totalorder %v12741_v5, 1 }
 0xd13   : >> { %16059 = vst [vmem:[#allocation12_spill] sm:$0xff] %v12856_v32  ;;  %3776 = vrot.lane.b32.xlu0 %v12856_v32, %s10059_s22  ;;  %v3634_v2 = vmul.f32 %v12489_v34, %v3599_v3  ;;  %v16062_v34 = vld [vmem:[#allocation61_spill] sm:$0xff]  ;;  %v16064_v3 = vld [vmem:[#allocation60_spill] sm:$0xff] }
 0xd15   : >> { %v12865_v55 = vsel %vm3698_vm3, %v3634_v2, %v16060_v26 }
 0xd16   : >> { %16061 = vst [vmem:[#allocation13_spill] sm:$0xff] %v12865_v55  ;;  %3774 = vrot.lane.b32.xlu1 %v12865_v55, %s10059_s22 }
 0xd3e   : >> { %v3605_v17 = vpop.permute.xlu0 %3604 }
 0xd3f   : >> { %v3637_v25 = vmul.f32 %v12495_v57, %v3605_v17  ;;  %v3603_v50 = vpop.permute.xlu1 %3602  ;;  %v16066_v17 = vld [vmem:[#allocation24_spill] sm:$0xff] }
 0xd40   : >> { %v3636_v47 = vmul.f32 %v12497_v49, %v3603_v50  ;;  %v16067_v50 = vld [vmem:[#allocation25_spill] sm:$0xff] }
 0xd41   : >> { %v12876_v21 = vsel %vm3701_vm4, %v3637_v25, %v16062_v34 }
 0xd42   : >> { %16063 = vst [vmem:[#allocation10_spill] sm:$0xff] %v12876_v21  ;;  %3780 = vrot.lane.b32.xlu0 %v12876_v21, %s10059_s22  ;;  %v12883_v2 = vsel %vm3700_vm2, %v3636_v47, %v16064_v3 }
 0xd43   : >> { %16065 = vst [vmem:[#allocation52_spill] sm:$0xff] %v12883_v2  ;;  %3778 = vrot.lane.b32.xlu1 %v12883_v2, %s10059_s22 }
 0xd68   : >> { %v3753_v57 = vpop.permute.xlu0 %3752 }
 0xd69   : >> { %v3751_v49 = vpop.permute.xlu1 %3750 }
 0xd6a   : >> { %8071 = vmatprep.mubr.msk.f32.mxu0 %vm15776_vm0, %v3751_v49 }
 0xd6b   : >> { %8072 = vmatmul.mubr.msk.f32.vlgmr.msra.gmra.mrb[32].mxu0 %vm15776_vm0, %v3753_v57 }
 0xd6c   : >> { %v3757_v26 = vpop.permute.xlu0 %3756  ;;  %8314 = vmatpush3.bf16.msra.mxu0 %v16066_v17 }
 0xd6d   : >> { %v3755_v25 = vpop.permute.xlu1 %3754  ;;  %8316 = vmatprep.subr.bf16.mxu0 %v16067_v50 }
 0xd6e   : >> { %8074 = vmatprep.mubr.msk.f32.mxu0 %vm15776_vm0, %v3755_v25 }
 0xd6f   : >> { %8075 = vmatmul.mubr.msk.f32.gmra.mrb[34].mxu0 %vm15776_vm0, %v3757_v26 }
 0xd70   : >> { %v3761_v47 = vpop.permute.xlu0 %3760  ;;  %8318 = vmatpush3.bf16.msra.mxu0 %v16067_v50  ;;  %v16069_v50 = vld [vmem:[#allocation53_spill] sm:$0xff] }
 0xd71   : >> { %v3759_v34 = vpop.permute.xlu1 %3758 }
 0xd72   : >> { %8077 = vmatprep.mubr.msk.f32.mxu0 %vm15776_vm0, %v3759_v34 }
 0xd73   : >> { %8078 = vmatmul.mubr.msk.f32.gmra.mrb[36].mxu0 %vm15776_vm0, %v3761_v47 }
 0xd74   : >> { %v3765_v57 = vpop.permute.xlu0 %3764 }
 0xd75   : >> { %v3763_v3 = vpop.permute.xlu1 %3762 }
 0xd76   : >> { %8080 = vmatprep.mubr.msk.f32.mxu0 %vm15776_vm0, %v3763_v3 }
 0xd77   : >> { %8081 = vmatmul.mubr.msk.f32.gmra.mrb[38].mxu0 %vm15776_vm0, %v3765_v57 }
 0xd78   : >> { %v3769_v49 = vpop.permute.xlu0 %3768 }
 0xd7e   : >> { %v3767_v17 = vpop.permute.xlu1 %3766 }
 0xd7f   : >> { %8083 = vmatprep.mubr.msk.f32.mxu0 %vm15776_vm0, %v3767_v17  ;;  %v16068_v17 = vld [vmem:[#allocation26_spill] sm:$0xff] }
 0xd80   : >> { %8084 = vmatmul.mubr.msk.f32.gmra.mrb[40].mxu0 %vm15776_vm0, %v3769_v49  ;;  %v3773_v26 = vpop.permute.xlu0 %3772  ;;  %v3961_v49 = vsub.s32 4, %v16068_v17 }
 0xd82   : >> { %v12908_v2 = vrot.slane %v16069_v50, %v3961_v49 }
 0xd84   : >> { %v3771_v25 = vpop.permute.xlu1 %3770 }
 0xd85   : >> { %8086 = vmatprep.mubr.msk.f32.mxu0 %vm15776_vm0, %v3771_v25  ;;  %v3777_v47 = vpop.permute.xlu0 %3776 }
 0xd86   : >> { %8087 = vmatmul.mubr.msk.f32.gmra.mrb[42].mxu0 %vm15776_vm0, %v3773_v26 }
 0xd88   : >> { %v3775_v34 = vpop.permute.xlu1 %3774 }
 0xd89   : >> { %8089 = vmatprep.mubr.msk.f32.mxu0 %vm15776_vm0, %v3775_v34 }
 0xd8a   : >> { %8090 = vmatmul.mubr.msk.f32.gmra.mrb[44].mxu0 %vm15776_vm0, %v3777_v47 }
 0xdb4   : >> { %v3781_v57 = vpop.permute.xlu0 %3780 }
 0xdb5   : >> { %v3779_v3 = vpop.permute.xlu1 %3778 }
 0xdb6   : >> { %8092 = vmatprep.mubr.msk.f32.mxu0 %vm15776_vm0, %v3779_v3 }
 0xdb7   : >> { %8093 = vmatmul.mubr.msk.f32.gmra.mrb[46].mxu0 %vm15776_vm0, %v3781_v57 }
 0xe3e   : >> { %v8073_v25 = vpop.f32.mrb[32].mxu0 }
 0xe3f   : >> { %v12911_v26 = vadd.f32 %v8073_v25, %v12908_v2  ;;  %v3880_v21 = vpop.f32.mrb[33].mxu0 }
 0xe40   : >> { %v12914_v34 = vadd.f32 %v12908_v2, %v3880_v21 }
 0xe41   : >> { %9209 = vtanh.f32 %v12911_v26 }
 0xe42   : >> { %9211 = vtanh.f32 %v12914_v34  ;;  %v8076_v47 = vpop.f32.mrb[34].mxu0 }
 0xe43   : >> { %v12919_v3 = vadd.f32 %v8076_v47, %v12908_v2  ;;  %v3890_v57 = vpop.f32.mrb[35].mxu0 }
 0xe44   : >> { %v12922_v50 = vadd.f32 %v12908_v2, %v3890_v57 }
 0xe45   : >> { %9213 = vtanh.f32 %v12919_v3 }
 0xe46   : >> { %9215 = vtanh.f32 %v12922_v50  ;;  %v8079_v49 = vpop.f32.mrb[36].mxu0 }
 0xe47   : >> { %v12927_v21 = vadd.f32 %v8079_v49, %v12908_v2  ;;  %v3900_v25 = vpop.f32.mrb[37].mxu0 }
 0xe48   : >> { %v12930_v17 = vadd.f32 %v12908_v2, %v3900_v25 }
 0xe49   : >> { %9217 = vtanh.f32 %v12927_v21 }
 0xe4a   : >> { %9219 = vtanh.f32 %v12930_v17  ;;  %v8082_v47 = vpop.f32.mrb[38].mxu0 }
 0xe4b   : >> { %v9210_v55 = vpop.eup %9209  ;;  %v12935_v57 = vadd.f32 %v8082_v47, %v12908_v2  ;;  %v3910_v32 = vpop.f32.mrb[39].mxu0 }
 0xe4c   : >> { %v9212_v0 = vpop.eup %9211  ;;  %v12938_v45 = vadd.f32 %v12908_v2, %v3910_v32  ;;  %4125 = vrot.lane.b32.xlu0 %v9210_v55, %s10060_s18 }
 0xe4d   : >> { %9221 = vtanh.f32 %v12935_v57  ;;  %4123 = vrot.lane.b32.xlu1 %v9212_v0, %s10060_s18 }
 0xe4e   : >> { %9223 = vtanh.f32 %v12938_v45 }
 0xe4f   : >> { %v9214_v49 = vpop.eup %9213 }
 0xe50   : >> { %v9216_v25 = vpop.eup %9215  ;;  %4129 = vrot.lane.b32.xlu0 %v9214_v49, %s10060_s18 }
 0xe51   : >> { %4127 = vrot.lane.b32.xlu1 %v9216_v25, %s10060_s18 }
 0xe53   : >> { %v9218_v47 = vpop.eup %9217  ;;  %v8085_v55 = vpop.f32.mrb[40].mxu0 }
 0xe54   : >> { %v9220_v12 = vpop.eup %9219  ;;  %4133 = vrot.lane.b32.xlu0 %v9218_v47, %s10060_s18  ;;  %v12949_v29 = vadd.f32 %v8085_v55, %v12908_v2  ;;  %v3920_v0 = vpop.f32.mrb[41].mxu0 }
 0xe55   : >> { %4131 = vrot.lane.b32.xlu1 %v9220_v12, %s10060_s18  ;;  %v12953_v16 = vadd.f32 %v12908_v2, %v3920_v0 }
 0xe56   : >> { %9225 = vtanh.f32 %v12949_v29 }
 0xe57   : >> { %v9222_v32 = vpop.eup %9221  ;;  %9227 = vtanh.f32 %v12953_v16 }
 0xe58   : >> { %v9224_v14 = vpop.eup %9223  ;;  %4137 = vrot.lane.b32.xlu0 %v9222_v32, %s10060_s18 }
 0xe59   : >> { %4135 = vrot.lane.b32.xlu1 %v9224_v14, %s10060_s18  ;;  %v8088_v49 = vpop.f32.mrb[42].mxu0 }
 0xe5a   : >> { %v12959_v12 = vadd.f32 %v8088_v49, %v12908_v2  ;;  %v3930_v25 = vpop.f32.mrb[43].mxu0 }
 0xe5b   : >> { %v12962_v47 = vadd.f32 %v12908_v2, %v3930_v25 }
 0xe5c   : >> { %9229 = vtanh.f32 %v12959_v12 }
 0xe5d   : >> { %9231 = vtanh.f32 %v12962_v47  ;;  %v8091_v32 = vpop.f32.mrb[44].mxu0 }
 0xe5e   : >> { %v12967_v55 = vadd.f32 %v8091_v32, %v12908_v2  ;;  %v3940_v14 = vpop.f32.mrb[45].mxu0 }
 0xe5f   : >> { %v12970_v56 = vadd.f32 %v12908_v2, %v3940_v14 }
 0xe60   : >> { %v9226_v0 = vpop.eup %9225  ;;  %9233 = vtanh.f32 %v12967_v55 }
 0xe61   : >> { %v9228_v39 = vpop.eup %9227  ;;  %4141 = vrot.lane.b32.xlu0 %v9226_v0, %s10060_s18  ;;  %9235 = vtanh.f32 %v12970_v56 }
 0xe62   : >> { %4139 = vrot.lane.b32.xlu1 %v9228_v39, %s10060_s18  ;;  %v10065_v39 = vmov 4  }
 0xe63   : >> { %8690 = vset.pattern.permute.xlu0 %v10065_v39  ;;  %8689 = vset.pattern.permute.xlu1 %v10065_v39  ;;  %v7499_v39 = vmul.f32 -1.442695, %v12930_v17 }
 0xe66   : >> { %v9230_v49 = vpop.eup %9229 }
 0xe67   : >> { %v9232_v25 = vpop.eup %9231  ;;  %4145 = vrot.lane.b32.xlu0 %v9230_v49, %s10060_s18 }
 0xe68   : >> { %4143 = vrot.lane.b32.xlu1 %v9232_v25, %s10060_s18 }
 0xe6a   : >> { %v9234_v32 = vpop.eup %9233 }
 0xe6b   : >> { %v9236_v62 = vpop.eup %9235  ;;  %4149 = vrot.lane.b32.xlu0 %v9234_v32, %s10060_s18  ;;  %v7495_v32 = vmul.f32 -1.442695, %v12914_v34 }
 0xe6c   : >> { %4147 = vrot.lane.b32.xlu1 %v9236_v62, %s10060_s18  ;;  %v7496_v62 = vmul.f32 -1.442695, %v12911_v26  ;;  %v7501_v26 = vmul.f32 -1.442695, %v12938_v45 }
 0xe8a   : >> { %v8094_v14 = vpop.f32.mrb[46].mxu0 }
 0xe8b   : >> { %v12981_v63 = vadd.f32 %v8094_v14, %v12908_v2  ;;  %v3950_v0 = vpop.f32.mrb[47].mxu0  ;;  %v7497_v14 = vmul.f32 -1.442695, %v12922_v50 }
 0xe8c   : >> { %v12984_v37 = vadd.f32 %v12908_v2, %v3950_v0  ;;  %v7498_v2 = vmul.f32 -1.442695, %v12919_v3  ;;  %v7500_v0 = vmul.f32 -1.442695, %v12927_v21 }
 0xe8d   : >> { %9237 = vtanh.f32 %v12981_v63 }
 0xe8e   : >> { %9239 = vtanh.f32 %v12984_v37 }
 0xe8f   : >> { %9241 = vpow2.f32 %v7496_v62 }
 0xe90   : >> { %9243 = vpow2.f32 %v7495_v32 }
 0xe91   : >> { %9245 = vpow2.f32 %v7498_v2 }
 0xe92   : >> { %9247 = vpow2.f32 %v7497_v14 }
 0xe93   : >> { %9249 = vpow2.f32 %v7500_v0 }
 0xe94   : >> { %9251 = vpow2.f32 %v7499_v39  ;;  %v7503_v39 = vmul.f32 -1.442695, %v12953_v16 }
 0xe97   : >> { %v9238_v49 = vpop.eup %9237 }
 0xe98   : >> { %v9240_v25 = vpop.eup %9239  ;;  %4153 = vrot.lane.b32.xlu0 %v9238_v49, %s10060_s18  ;;  %v7502_v49 = vmul.f32 -1.442695, %v12935_v57  ;;  %v7504_v57 = vmul.f32 -1.442695, %v12949_v29  ;;  %v7505_v29 = vmul.f32 -1.442695, %v12962_v47 }
 0xe99   : >> { %4151 = vrot.lane.b32.xlu1 %v9240_v25, %s10060_s18  ;;  %v9242_v25 = vpop.eup %9241  ;;  %v7508_v47 = vmul.f32 -1.442695, %v12967_v55 }
 0xe9a   : >> { %v9244_v34 = vpop.eup %9243  ;;  %9253 = vpow2.f32 %v7502_v49  ;;  %v4028_v62 = vadd.f32 1.0, %v9242_v25 }
 0xe9b   : >> { %9255 = vpow2.f32 %v7501_v26  ;;  %v9246_v3 = vpop.eup %9245  ;;  %v4027_v32 = vadd.f32 1.0, %v9244_v34 }
 0xe9c   : >> { %v9248_v50 = vpop.eup %9247  ;;  %9257 = vrcp.f32 %v4028_v62  ;;  %v4030_v17 = vadd.f32 1.0, %v9246_v3  ;;  %v7506_v62 = vmul.f32 -1.442695, %v12959_v12 }
 0xe9d   : >> { %v9250_v58 = vpop.eup %9249  ;;  %9259 = vrcp.f32 %v4027_v32  ;;  %v4029_v2 = vadd.f32 1.0, %v9248_v50 }
 0xe9e   : >> { %v9252_v21 = vpop.eup %9251  ;;  %v4032_v14 = vadd.f32 1.0, %v9250_v58  ;;  %9261 = vrcp.f32 %v4030_v17 }
 0xe9f   : >> { %v4031_v0 = vadd.f32 1.0, %v9252_v21  ;;  %9263 = vrcp.f32 %v4029_v2 }
 0xea0   : >> { %9265 = vrcp.f32 %v4032_v14 }
 0xea1   : >> { %9267 = vrcp.f32 %v4031_v0 }
 0xea2   : >> { %9269 = vpow2.f32 %v7504_v57  ;;  %v7507_v57 = vmul.f32 -1.442695, %v12970_v56 }
 0xea3   : >> { %9271 = vpow2.f32 %v7503_v39 }
 0xea4   : >> { %v9254_v45 = vpop.eup %9253 }
 0xea5   : >> { %v9256_v49 = vpop.eup %9255  ;;  %v4034_v26 = vadd.f32 1.0, %v9254_v45 }
 0xea6   : >> { %v4033_v25 = vadd.f32 1.0, %v9256_v49  ;;  %v13000_v34 = vpop.eup %9257 }
 0xea7   : >> { %v13003_v3 = vpop.eup %9259  ;;  %9273 = vrcp.f32 %v4034_v26 }
 0xea8   : >> { %9275 = vrcp.f32 %v4033_v25  ;;  %v13009_v21 = vpop.eup %9261 }
 0xea9   : >> { %9277 = vpow2.f32 %v7506_v62  ;;  %v13012_v12 = vpop.eup %9263 }
 0xeaa   : >> { %9279 = vpow2.f32 %v7505_v29  ;;  %v13016_v0 = vpop.eup %9265 }
 0xeab   : >> { %v13020_v39 = vpop.eup %9267  ;;  %9281 = vpow2.f32 %v7508_v47 }
 0xeac   : >> { %v9270_v49 = vpop.eup %9269  ;;  %9283 = vpow2.f32 %v7507_v57 }
 0xead   : >> { %v9272_v25 = vpop.eup %9271  ;;  %v4036_v29 = vadd.f32 1.0, %v9270_v49 }
 0xeaf   : >> { %9285 = vrcp.f32 %v4036_v29 }
 0xeb1   : >> { %v13027_v56 = vpop.eup %9273 }
 0xebe   : >> { %v4126_v58 = vpop.permute.xlu0 %4125 }
 0xebf   : >> { %v4172_v32 = vmul.f32 %v13000_v34, %v4126_v58  ;;  %v4124_v50 = vpop.permute.xlu1 %4123 }
 0xec0   : >> { %v4171_v16 = vmul.f32 %v13003_v3, %v4124_v50 }
 0xec1   : >> { %4205 = vrot.lane.b32.xlu0 %v4172_v32, %s10060_s18  ;;  %v4035_v32 = vadd.f32 1.0, %v9272_v25 }
 0xec2   : >> { %v4130_v17 = vpop.permute.xlu0 %4129  ;;  %4203 = vrot.lane.b32.xlu1 %v4171_v16, %s10060_s18  ;;  %v13030_v16 = vpop.eup %9275 }
 0xec3   : >> { %v4174_v2 = vmul.f32 %v13009_v21, %v4130_v17  ;;  %v4128_v14 = vpop.permute.xlu1 %4127  ;;  %9287 = vrcp.f32 %v4035_v32 }
 0xec4   : >> { %v4173_v45 = vmul.f32 %v13012_v12, %v4128_v14 }
 0xec5   : >> { %4209 = vrot.lane.b32.xlu0 %v4174_v2, %s10060_s18  ;;  %v9278_v2 = vpop.eup %9277 }
 0xec6   : >> { %v4134_v26 = vpop.permute.xlu0 %4133  ;;  %4207 = vrot.lane.b32.xlu1 %v4173_v45, %s10060_s18  ;;  %v9280_v57 = vpop.eup %9279  ;;  %v4038_v45 = vadd.f32 1.0, %v9278_v2 }
 0xec7   : >> { %v4176_v55 = vmul.f32 %v13016_v0, %v4134_v26  ;;  %v4132_v62 = vpop.permute.xlu1 %4131  ;;  %v4037_v49 = vadd.f32 1.0, %v9280_v57  ;;  %v9282_v26 = vpop.eup %9281 }
 0xec8   : >> { %v4175_v58 = vmul.f32 %v13020_v39, %v4132_v62  ;;  %v9284_v25 = vpop.eup %9283  ;;  %9289 = vrcp.f32 %v4038_v45 }
 0xec9   : >> { %4213 = vrot.lane.b32.xlu0 %v4176_v55, %s10060_s18  ;;  %9291 = vrcp.f32 %v4037_v49  ;;  %v4040_v55 = vadd.f32 1.0, %v9282_v26  ;;  %v4039_v62 = vadd.f32 1.0, %v9284_v25 }
 0xeca   : >> { %v4138_v50 = vpop.permute.xlu0 %4137  ;;  %4211 = vrot.lane.b32.xlu1 %v4175_v58, %s10060_s18  ;;  %v13036_v58 = vpop.eup %9285 }
 0xecb   : >> { %v4178_v17 = vmul.f32 %v13027_v56, %v4138_v50  ;;  %v4136_v47 = vpop.permute.xlu1 %4135  ;;  %9293 = vrcp.f32 %v4040_v55 }
 0xecc   : >> { %v4177_v14 = vmul.f32 %v13030_v16, %v4136_v47  ;;  %9295 = vrcp.f32 %v4039_v62 }
 0xecd   : >> { %4217 = vrot.lane.b32.xlu0 %v4178_v17, %s10060_s18  ;;  %v13038_v5 = vpop.eup %9287 }
 0xece   : >> { %4215 = vrot.lane.b32.xlu1 %v4177_v14, %s10060_s18 }
 0xed2   : >> { %v13044_v47 = vpop.eup %9289 }
 0xed3   : >> { %v4142_v50 = vpop.permute.xlu0 %4141  ;;  %v13046_v14 = vpop.eup %9291 }
 0xed4   : >> { %v4180_v29 = vmul.f32 %v13036_v58, %v4142_v50  ;;  %v4140_v17 = vpop.permute.xlu1 %4139 }
 0xed5   : >> { %v4179_v32 = vmul.f32 %v13038_v5, %v4140_v17  ;;  %v13052_v26 = vpop.eup %9293  ;;  %v7510_v17 = vmul.f32 -1.442695, %v12981_v63 }
 0xed6   : >> { %4221 = vrot.lane.b32.xlu0 %v4180_v29, %s10060_s18  ;;  %v13054_v55 = vpop.eup %9295 }
 0xed7   : >> { %4219 = vrot.lane.b32.xlu1 %v4179_v32, %s10060_s18  ;;  %v7509_v32 = vmul.f32 -1.442695, %v12984_v37  ;;  %9297 = vpow2.f32 %v7510_v17  ;;  %v16070_v37 = vld [vmem:[#allocation41_spill] sm:$0xff]  ;;  %v16072_v17 = vld [vmem:[#allocation40_spill] sm:$0xff] }
 0xed9   : >> { %v4146_v2 = vpop.permute.xlu0 %4145  ;;  %9299 = vpow2.f32 %v7509_v32  ;;  %v13089_v32 = vsel %vm3687_vm5, %v12535_v52, %v12523_v6  ;;  %v13108_v52 = vsel %vm3689_vm7, %v12557_v35, %v12541_v10  ;;  %vm16105_vm5 = vcmp.eq.s32.totalorder %v12735_v28, 1 }
 0xeda   : >> { %v4182_v57 = vmul.f32 %v13044_v47, %v4146_v2  ;;  %v4144_v45 = vpop.permute.xlu1 %4143 }
 0xedb   : >> { %v4181_v49 = vmul.f32 %v13046_v14, %v4144_v45 }
 0xedc   : >> { %4225 = vrot.lane.b32.xlu0 %v4182_v57, %s10060_s18 }
 0xedd   : >> { %4223 = vrot.lane.b32.xlu1 %v4181_v49, %s10060_s18  ;;  %v4150_v25 = vpop.permute.xlu0 %4149 }
 0xede   : >> { %v4184_v62 = vmul.f32 %v13052_v26, %v4150_v25  ;;  %v4148_v50 = vpop.permute.xlu1 %4147 }
 0xedf   : >> { %v4183_v29 = vmul.f32 %v13054_v55, %v4148_v50 }
 0xee0   : >> { %4229 = vrot.lane.b32.xlu0 %v4184_v62, %s10060_s18 }
 0xee1   : >> { %4227 = vrot.lane.b32.xlu1 %v4183_v29, %s10060_s18  ;;  %v9298_v2 = vpop.eup %9297 }
 0xee2   : >> { %v4042_v45 = vadd.f32 1.0, %v9298_v2  ;;  %v13095_v2 = vsel %vm3686_vm6, %v12543_v51, %v12529_v9  ;;  %v13116_v9 = vsel %vm3688_vm8, %v12565_v38, %v12549_v41  ;;  %v4094_v51 = vmul.f32 %v13009_v21, %v13108_v52 }
 0xee3   : >> { %v9300_v57 = vpop.eup %9299  ;;  %v4093_v10 = vmul.f32 %v13012_v12, %v13116_v9  ;;  %v13130_v41 = vsel %vm3691_vm9, %v12579_v53, %v12563_v61 }
 0xee4   : >> { %v4041_v49 = vadd.f32 1.0, %v9300_v57  ;;  %9301 = vrcp.f32 %v4042_v45  ;;  %v16073_v57 = vld [vmem:[#allocation42_spill] sm:$0xff]  ;;  %v4092_v45 = vmul.f32 %v13000_v34, %v13089_v32  ;;  %16074 = vst [vmem:[#allocation11_spill] sm:$0xff] %v13130_v41 }
 0xee6   : >> { %9303 = vrcp.f32 %v4041_v49 }
 0xeee   : >> { %v13062_v25 = vpop.eup %9301 }
 0xef0   : >> { %v13064_v50 = vpop.eup %9303 }
 0xf0a   : >> { %v4154_v4 = vpop.permute.xlu0 %4153 }
 0xf0b   : >> { %v4186_v62 = vmul.f32 %v13062_v25, %v4154_v4  ;;  %v4152_v29 = vpop.permute.xlu1 %4151  ;;  %v16071_v4 = vld [vmem:[#allocation38_spill] sm:$0xff] }
 0xf0c   : >> { %v4185_v63 = vmul.f32 %v13064_v50, %v4152_v29 }
 0xf0d   : >> { %4233 = vrot.lane.b32.xlu0 %v4186_v62, %s10060_s18  ;;  %v4091_v62 = vmul.f32 %v13003_v3, %v13095_v2 }
 0xf0e   : >> { %4231 = vrot.lane.b32.xlu1 %v4185_v63, %s10060_s18  ;;  %v13138_v63 = vsel %vm3690_vm10, %v16075_v42, %v12571_v54 }
 0xf0f   : >> { %16076 = vst [vmem:[#allocation59_spill] sm:$0xff] %v13138_v63  ;;  %v4095_v61 = vmul.f32 %v13020_v39, %v13138_v63 }
 0xf11   : >> { %4367 = vperm.xlu0 %8690, %v15814_v19  }
 0xf12   : >> { %4364 = vperm.xlu1 %8689, %v15815_v27  }
 0xf15   : >> { %4376 = vperm.xlu0 %8690, %v15897_v44  }
 0xf16   : >> { %4370 = vperm.xlu1 %8689, %v15898_v22  }
 0xf19   : >> { %4382 = vperm.xlu0 %8690, %v15899_v18  }
 0xf1a   : >> { %4373 = vperm.xlu1 %8689, %v15900_v13  }
 0xf1d   : >> { %4388 = vperm.xlu0 %8690, %v15824_v46  }
 0xf1e   : >> { %4379 = vperm.xlu1 %8689, %v15901_v24  }
 0xf21   : >> { %4394 = vperm.xlu0 %8690, %v15984_v23  }
 0xf22   : >> { %4385 = vperm.xlu1 %8689, %v15902_v60  }
 0xf25   : >> { %4400 = vperm.xlu0 %8690, %v15986_v40  }
 0xf26   : >> { %4391 = vperm.xlu1 %8689, %v15983_v7  }
 0xf29   : >> { %4406 = vperm.xlu0 %8690, %v16070_v37  }
 0xf2a   : >> { %4397 = vperm.xlu1 %8689, %v16071_v4  }
 0xf2e   : >> { %4403 = vperm.xlu1 %8689, %v16072_v17  }
 0xf32   : >> { %4409 = vperm.xlu1 %8689, %v16073_v57  }
 0xf33   : >> { %v4206_v49 = vpop.permute.xlu0 %4205 }
 0xf34   : >> { %v13102_v29 = vadd.f32 %v4206_v49, %v4092_v45  ;;  %v4204_v11 = vpop.permute.xlu1 %4203  ;;  %v4096_v45 = vmul.f32 %v13016_v0, %v13130_v41  ;;  %v16126_v41 = vld [vmem:[#allocation46_spill] sm:$0xff] }
 0xf35   : >> { %v13110_v6 = vadd.f32 %v4204_v11, %v4091_v62  ;;  %v16078_v62 = vld [vmem:[#allocation54_spill] sm:$0xff]  ;;  %v16079_v11 = vld [vmem:[#allocation36_spill] sm:$0xff] }
 0xf36   : >> { %9305 = vtanh.f32 %v13102_v29  ;;  %v13152_v54 = vsel %vm3693_vm11, %v16079_v11, %v16078_v62 }
 0xf37   : >> { %9307 = vtanh.f32 %v13110_v6  ;;  %v4210_v59 = vpop.permute.xlu0 %4209  ;;  %16080 = vst [vmem:[#allocation61_spill] sm:$0xff] %v13152_v54 }
 0xf38   : >> { %v13124_v35 = vadd.f32 %v4210_v59, %v4094_v51  ;;  %v4208_v48 = vpop.permute.xlu1 %4207  ;;  %v16082_v51 = vld [vmem:[#allocation55_spill] sm:$0xff]  ;;  %v16083_v59 = vld [vmem:[#allocation37_spill] sm:$0xff] }
 0xf39   : >> { %v13132_v38 = vadd.f32 %v4208_v48, %v4093_v10  ;;  %v13160_v10 = vsel %vm3692_vm12, %v16083_v59, %v16082_v51  ;;  %v4098_v48 = vmul.f32 %v13027_v56, %v13152_v54 }
 0xf3a   : >> { %9309 = vtanh.f32 %v13124_v35  ;;  %16084 = vst [vmem:[#allocation53_spill] sm:$0xff] %v13160_v10  ;;  %v4097_v8 = vmul.f32 %v13030_v16, %v13160_v10 }
 0xf3b   : >> { %9311 = vtanh.f32 %v13132_v38  ;;  %v4214_v49 = vpop.permute.xlu0 %4213 }
 0xf3c   : >> { %v13146_v53 = vadd.f32 %v4214_v49, %v4096_v45  ;;  %v4212_v30 = vpop.permute.xlu1 %4211 }
 0xf3d   : >> { %v13154_v15 = vadd.f32 %v4212_v30, %v4095_v61 }
 0xf3e   : >> { %16077 = vst [vmem:[#allocation58_spill] sm:$0xff] %v13146_v53  ;;  %9313 = vtanh.f32 %v13146_v53 }
 0xf3f   : >> { %16081 = vst [vmem:[#allocation60_spill] sm:$0xff] %v13154_v15  ;;  %9315 = vtanh.f32 %v13154_v15  ;;  %v4218_v42 = vpop.permute.xlu0 %4217  ;;  %v16124_v15 = vld [vmem:[#allocation16_spill] sm:$0xff] }
 0xf40   : >> { %v9306_v45 = vpop.eup %9305  ;;  %v13168_v49 = vadd.f32 %v4218_v42, %v4098_v48  ;;  %v4216_v61 = vpop.permute.xlu1 %4215  ;;  %v16087_v48 = vld [vmem:[#allocation39_spill] sm:$0xff]  ;;  %v16088_v42 = vld [vmem:[#allocation56_spill] sm:$0xff] }
 0xf41   : >> { %v9308_v30 = vpop.eup %9307  ;;  %v13170_v62 = vadd.f32 %v4216_v61, %v4097_v8  ;;  %4301 = vrot.lane.b32.xlu1 %v9306_v45, %s10060_s18  ;;  %v13183_v8 = vsel %vm3695_vm13, %v16088_v42, %v16087_v48  ;;  %v16090_v45 = vld [vmem:[#allocation31_spill] sm:$0xff]  ;;  %v16091_v61 = vld [vmem:[#allocation33_spill] sm:$0xff]  ;;  %v16096_v42 = vld [vmem:[#allocation32_spill] sm:$0xff] }
 0xf42   : >> { %16085 = vst [vmem:[#allocation41_spill] sm:$0xff] %v13168_v49  ;;  %9317 = vtanh.f32 %v13168_v49  ;;  %4299 = vrot.lane.b32.xlu0 %v9308_v30, %s10060_s18  ;;  %16089 = vst [vmem:[#allocation40_spill] sm:$0xff] %v13183_v8  ;;  %v13190_v30 = vsel %vm3694_vm14, %v16091_v61, %v16090_v45  ;;  %v13207_v45 = vsel %vm3697_vm15, %v16096_v42, %v16095_v33  ;;  %v16098_v61 = vld [vmem:[#allocation30_spill] sm:$0xff]  ;;  %v16103_v42 = vld [vmem:[#allocation28_spill] sm:$0xff] }
 0xf43   : >> { %16086 = vst [vmem:[#allocation38_spill] sm:$0xff] %v13170_v62  ;;  %9319 = vtanh.f32 %v13170_v62  ;;  %16092 = vst [vmem:[#allocation42_spill] sm:$0xff] %v13190_v30 }
 0xf44   : >> { %v9310_v31 = vpop.eup %9309  ;;  %16097 = vst [vmem:[#allocation36_spill] sm:$0xff] %v13207_v45 }
 0xf45   : >> { %v9312_v11 = vpop.eup %9311  ;;  %4305 = vrot.lane.b32.xlu1 %v9310_v31, %s10060_s18  ;;  %v4100_v31 = vmul.f32 %v13036_v58, %v13183_v8 }
 0xf46   : >> { %4303 = vrot.lane.b32.xlu0 %v9312_v11, %s10060_s18 }
 0xf48   : >> { %v9314_v51 = vpop.eup %9313  ;;  %v4222_v62 = vpop.permute.xlu0 %4221 }
 0xf49   : >> { %v9316_v59 = vpop.eup %9315  ;;  %4309 = vrot.lane.b32.xlu1 %v9314_v51, %s10060_s18  ;;  %v4099_v51 = vmul.f32 %v13038_v5, %v13190_v30  ;;  %v13196_v1 = vadd.f32 %v4222_v62, %v4100_v31  ;;  %v4220_v48 = vpop.permute.xlu1 %4219  ;;  %v16099_v62 = vld [vmem:[#allocation34_spill] sm:$0xff] }
 0xf4a   : >> { %4307 = vrot.lane.b32.xlu0 %v9316_v59, %s10060_s18  ;;  %v13214_v31 = vsel %vm3696_vm1, %v16099_v62, %v16098_v61  ;;  %v16108_v61 = vld [vmem:[#allocation44_spill] sm:$0xff] }
 0xf4b   : >> { %16093 = vst [vmem:[#allocation23_spill] sm:$0xff] %v13196_v1  ;;  %v13199_v59 = vadd.f32 %v4220_v48, %v4099_v51  ;;  %9321 = vtanh.f32 %v13196_v1  ;;  %16100 = vst [vmem:[#allocation55_spill] sm:$0xff] %v13214_v31  ;;  %v4101_v51 = vmul.f32 %v13046_v14, %v13214_v31  ;;  %v13235_v62 = vsel %vm3698_vm3, %v16108_v61, %v16107_v20 }
 0xf4c   : >> { %v9318_v11 = vpop.eup %9317  ;;  %16109 = vst [vmem:[#allocation31_spill] sm:$0xff] %v13235_v62 }
 0xf4d   : >> { %v9320_v10 = vpop.eup %9319  ;;  %4313 = vrot.lane.b32.xlu1 %v9318_v11, %s10060_s18  ;;  %16094 = vst [vmem:[#allocation54_spill] sm:$0xff] %v13199_v59  ;;  %9323 = vtanh.f32 %v13199_v59  ;;  %v4102_v11 = vmul.f32 %v13044_v47, %v13207_v45  ;;  %v16104_v59 = vld [vmem:[#allocation27_spill] sm:$0xff] }
 0xf4e   : >> { %4311 = vrot.lane.b32.xlu0 %v9320_v10, %s10060_s18  ;;  %v4226_v10 = vpop.permute.xlu0 %4225  ;;  %v13228_v30 = vsel %vm16105_vm5, %v16104_v59, %v16103_v42 }
 0xf4f   : >> { %v13220_v48 = vadd.f32 %v4226_v10, %v4102_v11  ;;  %v4224_v36 = vpop.permute.xlu1 %4223  ;;  %16106 = vst [vmem:[#allocation56_spill] sm:$0xff] %v13228_v30  ;;  %v4104_v11 = vmul.f32 %v13052_v26, %v13228_v30 }
 0xf50   : >> { %v13222_v33 = vadd.f32 %v4224_v36, %v4101_v51  ;;  %v4103_v51 = vmul.f32 %v13054_v55, %v13235_v62 }
 0xf51   : >> { %16101 = vst [vmem:[#allocation37_spill] sm:$0xff] %v13220_v48  ;;  %9325 = vtanh.f32 %v13220_v48 }
 0xf52   : >> { %16102 = vst [vmem:[#allocation39_spill] sm:$0xff] %v13222_v33  ;;  %9327 = vtanh.f32 %v13222_v33  ;;  %v4230_v10 = vpop.permute.xlu0 %4229 }
 0xf53   : >> { %v13242_v28 = vadd.f32 %v4230_v10, %v4104_v11  ;;  %v4228_v59 = vpop.permute.xlu1 %4227  ;;  %v16112_v10 = vld [vmem:[#allocation22_spill] sm:$0xff] }
 0xf54   : >> { %v13244_v42 = vadd.f32 %v4228_v59, %v4103_v51  ;;  %v16113_v51 = vld [vmem:[#allocation57_spill] sm:$0xff] }
 0xf55   : >> { %16110 = vst [vmem:[#allocation33_spill] sm:$0xff] %v13242_v28  ;;  %v9322_v36 = vpop.eup %9321  ;;  %9329 = vtanh.f32 %v13242_v28 }
 0xf56   : >> { %16111 = vst [vmem:[#allocation29_spill] sm:$0xff] %v13244_v42  ;;  %4317 = vrot.lane.b32.xlu1 %v9322_v36, %s10060_s18  ;;  %9331 = vtanh.f32 %v13244_v42  ;;  %v13258_v36 = vsel %vm3701_vm4, %v16113_v51, %v16112_v10  ;;  %v16116_v42 = vld [vmem:[#allocation20_spill] sm:$0xff] }
 0xf57   : >> { %v9324_v31 = vpop.eup %9323  ;;  %16115 = vst [vmem:[#allocation32_spill] sm:$0xff] %v13258_v36 }
 0xf58   : >> { %4315 = vrot.lane.b32.xlu0 %v9324_v31, %s10060_s18  ;;  %v16117_v31 = vld [vmem:[#allocation21_spill] sm:$0xff] }
 0xf59   : >> { %v13264_v28 = vsel %vm3700_vm2, %v16117_v31, %v16116_v42 }
 0xf5a   : >> { %16119 = vst [vmem:[#allocation30_spill] sm:$0xff] %v13264_v28 }
 0xf5b   : >> { %v9326_v43 = vpop.eup %9325 }
 0xf5c   : >> { %v9328_v20 = vpop.eup %9327  ;;  %4321 = vrot.lane.b32.xlu1 %v9326_v43, %s10060_s18  ;;  %v4106_v43 = vmul.f32 %v13062_v25, %v13258_v36 }
 0xf5d   : >> { %4319 = vrot.lane.b32.xlu0 %v9328_v20, %s10060_s18 }
 0xf5f   : >> { %v9330_v61 = vpop.eup %9329 }
 0xf60   : >> { %v9332_v11 = vpop.eup %9331  ;;  %4325 = vrot.lane.b32.xlu1 %v9330_v61, %s10060_s18  ;;  %v4105_v61 = vmul.f32 %v13064_v50, %v13264_v28 }
 0xf61   : >> { %4323 = vrot.lane.b32.xlu0 %v9332_v11, %s10060_s18 }
 0xf7f   : >> { %v4234_v20 = vpop.permute.xlu0 %4233 }
 0xf80   : >> { %v13270_v11 = vadd.f32 %v4234_v20, %v4106_v43  ;;  %v4232_v30 = vpop.permute.xlu1 %4231 }
 0xf81   : >> { %v13272_v33 = vadd.f32 %v4232_v30, %v4105_v61 }
 0xf82   : >> { %16120 = vst [vmem:[#allocation34_spill] sm:$0xff] %v13270_v11  ;;  %9333 = vtanh.f32 %v13270_v11 }
 0xf83   : >> { %16121 = vst [vmem:[#allocation28_spill] sm:$0xff] %v13272_v33  ;;  %9335 = vtanh.f32 %v13272_v33 }
 0xf8c   : >> { %v9334_v10 = vpop.eup %9333 }
 0xf8d   : >> { %v9336_v62 = vpop.eup %9335  ;;  %4329 = vrot.lane.b32.xlu1 %v9334_v10, %s10060_s18 }
 0xf8e   : >> { %4327 = vrot.lane.b32.xlu0 %v9336_v62, %s10060_s18 }
 0xf90   : >> { %v13278_v42 = vpop.permute.xlu0 %4367 }
 0xf91   : >> { %v13280_v51 = vpop.permute.xlu1 %4364  ;;  %vm4412_vm7 = vcmp.eq.s32.totalorder %v13278_v42, 1 }
 0xf92   : >> { %vm4411_vm6 = vcmp.eq.s32.totalorder %v13280_v51, 1 }
 0xf94   : >> { %v13282_v59 = vpop.permute.xlu0 %4376 }
 0xf95   : >> { %v13284_v31 = vpop.permute.xlu1 %4370  ;;  %vm4415_vm10 = vcmp.eq.s32.totalorder %v13282_v59, 1 }
 0xf96   : >> { %vm4413_vm8 = vcmp.eq.s32.totalorder %v13284_v31, 1  ;;  %v16164_v31 = vld [vmem:[#allocation59_spill] sm:$0xff] }
 0xf98   : >> { %v13286_v30 = vpop.permute.xlu0 %4382 }
 0xf99   : >> { %v13288_v43 = vpop.permute.xlu1 %4373  ;;  %vm4417_vm12 = vcmp.eq.s32.totalorder %v13286_v30, 1 }
 0xf9a   : >> { %vm4414_vm9 = vcmp.eq.s32.totalorder %v13288_v43, 1  ;;  %v16161_v43 = vld [vmem:[#allocation11_spill] sm:$0xff] }
 0xf9c   : >> { %v13292_v61 = vpop.permute.xlu0 %4388 }
 0xf9d   : >> { %v13290_v20 = vpop.permute.xlu1 %4379  ;;  %vm4419_vm15 = vcmp.eq.s32.totalorder %v13292_v61, 1  ;;  %v16185_v61 = vld [vmem:[#allocation36_spill] sm:$0xff] }
 0xf9e   : >> { %vm4416_vm11 = vcmp.eq.s32.totalorder %v13290_v20, 1 }
 0xfa0   : >> { %v13296_v10 = vpop.permute.xlu0 %4394 }
 0xfa1   : >> { %v13294_v33 = vpop.permute.xlu1 %4385  ;;  %vm4421_vm2 = vcmp.eq.s32.totalorder %v13296_v10, 1  ;;  %v16197_v10 = vld [vmem:[#allocation31_spill] sm:$0xff] }
 0xfa2   : >> { %vm4418_vm13 = vcmp.eq.s32.totalorder %v13294_v33, 1 }
 0xfa4   : >> { %v13302_v11 = vpop.permute.xlu0 %4400 }
 0xfa5   : >> { %v13298_v62 = vpop.permute.xlu1 %4391  ;;  %vm4423_vm4 = vcmp.eq.s32.totalorder %v13302_v11, 1 }
 0xfa6   : >> { %vm4420_vm14 = vcmp.eq.s32.totalorder %v13298_v62, 1 }
 0xfa8   : >> { %v13306_v48 = vpop.permute.xlu0 %4406 }
 0xfa9   : >> { %v13300_v28 = vpop.permute.xlu1 %4397  ;;  %16122 = vst [vmem:[#allocation27_spill] sm:$0xff] %v13306_v48 }
 0xfaa   : >> { %vm4422_vm1 = vcmp.eq.s32.totalorder %v13300_v28, 1 }
 0xfad   : >> { %v13304_v36 = vpop.permute.xlu1 %4403 }
 0xfae   : >> { %vm15639_vm3 = vcmp.eq.s32.totalorder %v13304_v36, 1 }
 0xfb1   : >> { %v13308_v45 = vpop.permute.xlu1 %4409 }
 0xfb2   : >> { %16123 = vst [vmem:[#allocation35_spill] sm:$0xff] %v13308_v45  ;;  %vm4426_vm5 = vcmp.eq.s32.totalorder %v13308_v45, 1 }
 0xfb4   : >> { %v4300_v1 = vpop.permute.xlu0 %4299 }
 0xfb5   : >> { %v4347_v8 = vmul.f32 %v13003_v3, %v4300_v1  ;;  %v4302_v49 = vpop.permute.xlu1 %4301 }
 0xfb6   : >> { %v4348_v54 = vmul.f32 %v13000_v34, %v4302_v49  ;;  %v16128_v49 = vld [vmem:[#allocation18_spill] sm:$0xff] }
 0xfb7   : >> { %v13317_v63 = vsel %vm4411_vm6, %v4347_v8, %v16124_v15 }
 0xfb8   : >> { %16125 = vst [vmem:[#allocation44_spill] sm:$0xff] %v13317_v63  ;;  %v4304_v53 = vpop.permute.xlu0 %4303  ;;  %4475 = vrot.lane.b32.xlu0 %v13317_v63, %s10059_s22  ;;  %v13324_v3 = vsel %vm4412_vm7, %v4348_v54, %v16126_v41 }
 0xfb9   : >> { %16127 = vst [vmem:[#allocation22_spill] sm:$0xff] %v13324_v3  ;;  %v4349_v1 = vmul.f32 %v13012_v12, %v4304_v53  ;;  %4477 = vrot.lane.b32.xlu1 %v13324_v3, %s10059_s22  ;;  %v4306_v34 = vpop.permute.xlu1 %4305  ;;  %v16130_v12 = vld [vmem:[#allocation45_spill] sm:$0xff] }
 0xfba   : >> { %v4350_v15 = vmul.f32 %v13009_v21, %v4306_v34 }
 0xfbb   : >> { %v13335_v8 = vsel %vm4413_vm8, %v4349_v1, %v16128_v49  ;;  %v16132_v1 = vld [vmem:[#allocation14_spill] sm:$0xff] }
 0xfbc   : >> { %16129 = vst [vmem:[#allocation57_spill] sm:$0xff] %v13335_v8  ;;  %v4308_v63 = vpop.permute.xlu0 %4307  ;;  %4479 = vrot.lane.b32.xlu0 %v13335_v8, %s10059_s22  ;;  %v13342_v41 = vsel %vm4414_vm9, %v4350_v15, %v16130_v12 }
 0xfbd   : >> { %16131 = vst [vmem:[#allocation43_spill] sm:$0xff] %v13342_v41  ;;  %v4351_v53 = vmul.f32 %v13020_v39, %v4308_v63  ;;  %4481 = vrot.lane.b32.xlu1 %v13342_v41, %s10059_s22  ;;  %v4310_v21 = vpop.permute.xlu1 %4309  ;;  %v16134_v39 = vld [vmem:[#allocation17_spill] sm:$0xff] }
 0xfbe   : >> { %v4352_v54 = vmul.f32 %v13016_v0, %v4310_v21 }
 0xfbf   : >> { %v13353_v34 = vsel %vm4415_vm10, %v4351_v53, %v16132_v1  ;;  %v16136_v53 = vld [vmem:[#allocation47_spill] sm:$0xff] }
 0xfc0   : >> { %16133 = vst [vmem:[#allocation20_spill] sm:$0xff] %v13353_v34  ;;  %v4312_v49 = vpop.permute.xlu0 %4311  ;;  %4483 = vrot.lane.b32.xlu0 %v13353_v34, %s10059_s22  ;;  %v13360_v63 = vsel %vm4416_vm11, %v4352_v54, %v16134_v39  ;;  %v16138_v54 = vld [vmem:[#allocation48_spill] sm:$0xff] }
 0xfc1   : >> { %16135 = vst [vmem:[#allocation21_spill] sm:$0xff] %v13360_v63  ;;  %v4353_v15 = vmul.f32 %v13030_v16, %v4312_v49  ;;  %4485 = vrot.lane.b32.xlu1 %v13360_v63, %s10059_s22  ;;  %v4314_v0 = vpop.permute.xlu1 %4313 }
 0xfc2   : >> { %v4354_v12 = vmul.f32 %v13027_v56, %v4314_v0 }
 0xfc3   : >> { %v13371_v21 = vsel %vm4417_vm12, %v4353_v15, %v16136_v53  ;;  %v16140_v15 = vld [vmem:[#allocation49_spill] sm:$0xff] }
 0xfc4   : >> { %16137 = vst [vmem:[#allocation19_spill] sm:$0xff] %v13371_v21  ;;  %4487 = vrot.lane.b32.xlu0 %v13371_v21, %s10059_s22  ;;  %v13378_v16 = vsel %vm4418_vm13, %v4354_v12, %v16138_v54  ;;  %v16142_v12 = vld [vmem:[#allocation50_spill] sm:$0xff] }
 0xfc5   : >> { %16139 = vst [vmem:[#allocation16_spill] sm:$0xff] %v13378_v16  ;;  %4489 = vrot.lane.b32.xlu1 %v13378_v16, %s10059_s22 }
 0xfc8   : >> { %v4318_v1 = vpop.permute.xlu1 %4317 }
 0xfc9   : >> { %v4356_v49 = vmul.f32 %v13036_v58, %v4318_v1 }
 0xfca   : >> { %v4316_v56 = vpop.permute.xlu0 %4315 }
 0xfcb   : >> { %v4355_v39 = vmul.f32 %v13038_v5, %v4316_v56  ;;  %v13389_v0 = vsel %vm4420_vm14, %v4356_v49, %v16140_v15  ;;  %v16144_v56 = vld [vmem:[#allocation15_spill] sm:$0xff] }
 0xfcc   : >> { %16141 = vst [vmem:[#allocation46_spill] sm:$0xff] %v13389_v0  ;;  %4493 = vrot.lane.b32.xlu1 %v13389_v0, %s10059_s22 }
 0xfcd   : >> { %v13394_v53 = vsel %vm4419_vm15, %v4355_v39, %v16142_v12  ;;  %v16146_v39 = vld [vmem:[#allocation51_spill] sm:$0xff] }
 0xfce   : >> { %16143 = vst [vmem:[#allocation18_spill] sm:$0xff] %v13394_v53  ;;  %4491 = vrot.lane.b32.xlu0 %v13394_v53, %s10059_s22  ;;  %v4322_v58 = vpop.permute.xlu1 %4321 }
 0xfcf   : >> { %v4320_v5 = vpop.permute.xlu0 %4319  ;;  %v4358_v54 = vmul.f32 %v13044_v47, %v4322_v58 }
 0xfd0   : >> { %v4357_v1 = vmul.f32 %v13046_v14, %v4320_v5  ;;  %v16148_v5 = vld [vmem:[#allocation12_spill] sm:$0xff] }
 0xfd1   : >> { %v13407_v49 = vsel %vm4422_vm1, %v4358_v54, %v16144_v56 }
 0xfd2   : >> { %16145 = vst [vmem:[#allocation45_spill] sm:$0xff] %v13407_v49  ;;  %v13412_v15 = vsel %vm4421_vm2, %v4357_v1, %v16146_v39  ;;  %4497 = vrot.lane.b32.xlu1 %v13407_v49, %s10059_s22  ;;  %v4326_v47 = vpop.permute.xlu1 %4325  ;;  %v16150_v1 = vld [vmem:[#allocation13_spill] sm:$0xff] }
 0xfd3   : >> { %16147 = vst [vmem:[#allocation14_spill] sm:$0xff] %v13412_v15  ;;  %4495 = vrot.lane.b32.xlu0 %v13412_v15, %s10059_s22  ;;  %v4324_v14 = vpop.permute.xlu0 %4323  ;;  %v4360_v12 = vmul.f32 %v13052_v26, %v4326_v47 }
 0xfd4   : >> { %v4359_v58 = vmul.f32 %v13054_v55, %v4324_v14  ;;  %v16152_v14 = vld [vmem:[#allocation10_spill] sm:$0xff] }
 0xfd5   : >> { %v13425_v54 = vsel %vm15639_vm3, %v4360_v12, %v16148_v5  ;;  %vm4425_vm3 = vcmp.eq.s32.totalorder %v13306_v48, 1 }
 0xfd6   : >> { %16149 = vst [vmem:[#allocation17_spill] sm:$0xff] %v13425_v54  ;;  %v13430_v56 = vsel %vm4423_vm4, %v4359_v58, %v16150_v1  ;;  %4501 = vrot.lane.b32.xlu1 %v13425_v54, %s10059_s22  ;;  %v16154_v58 = vld [vmem:[#allocation52_spill] sm:$0xff] }
 0xfd7   : >> { %16151 = vst [vmem:[#allocation47_spill] sm:$0xff] %v13430_v56  ;;  %4499 = vrot.lane.b32.xlu0 %v13430_v56, %s10059_s22  ;;  %v16156_v1 = vld [vmem:[#allocation24_spill] sm:$0xff] }
 0xfff   : >> { %v4330_v26 = vpop.permute.xlu1 %4329 }
0x1000   : >> { %v4362_v55 = vmul.f32 %v13062_v25, %v4330_v26  ;;  %v4328_v39 = vpop.permute.xlu0 %4327 }
0x1001   : >> { %v4361_v47 = vmul.f32 %v13064_v50, %v4328_v39 }
0x1002   : >> { %v13443_v12 = vsel %vm4426_vm5, %v4362_v55, %v16152_v14  ;;  %v16157_v55 = vld [vmem:[#allocation25_spill] sm:$0xff] }
0x1003   : >> { %16153 = vst [vmem:[#allocation48_spill] sm:$0xff] %v13443_v12  ;;  %4505 = vrot.lane.b32.xlu1 %v13443_v12, %s10059_s22  ;;  %v13450_v5 = vsel %vm4425_vm3, %v4361_v47, %v16154_v58 }
0x1004   : >> { %16155 = vst [vmem:[#allocation49_spill] sm:$0xff] %v13450_v5  ;;  %4503 = vrot.lane.b32.xlu0 %v13450_v5, %s10059_s22 }
0x102a   : >> { %v4476_v25 = vpop.permute.xlu0 %4475 }
0x102b   : >> { %8103 = vmatprep.mubr.msk.f32.mxu1 %vm15776_vm0, %v4476_v25  ;;  %v4478_v50 = vpop.permute.xlu1 %4477 }
0x102c   : >> { %8104 = vmatmul.mubr.msk.f32.vlgmr.msra.gmra.mrb[32].mxu1 %vm15776_vm0, %v4478_v50 }
0x102d   : >> { %8322 = vmatpush3.bf16.msra.mxu1 %v16156_v1 }
0x102e   : >> { %v4480_v26 = vpop.permute.xlu0 %4479  ;;  %8324 = vmatprep.subr.bf16.mxu1 %v16157_v55 }
0x102f   : >> { %8106 = vmatprep.mubr.msk.f32.mxu1 %vm15776_vm0, %v4480_v26  ;;  %v4482_v39 = vpop.permute.xlu1 %4481 }
0x1030   : >> { %8107 = vmatmul.mubr.msk.f32.gmra.mrb[34].mxu1 %vm15776_vm0, %v4482_v39 }
0x1031   : >> { %8326 = vmatpush3.bf16.msra.mxu1 %v16157_v55 }
0x1032   : >> { %v4484_v47 = vpop.permute.xlu0 %4483 }
0x1033   : >> { %8109 = vmatprep.mubr.msk.f32.mxu1 %vm15776_vm0, %v4484_v47  ;;  %v4486_v14 = vpop.permute.xlu1 %4485 }
0x1034   : >> { %8110 = vmatmul.mubr.msk.f32.gmra.mrb[36].mxu1 %vm15776_vm0, %v4486_v14 }
0x1036   : >> { %v4488_v58 = vpop.permute.xlu0 %4487 }
0x1037   : >> { %8112 = vmatprep.mubr.msk.f32.mxu1 %vm15776_vm0, %v4488_v58  ;;  %v4490_v25 = vpop.permute.xlu1 %4489 }
0x1038   : >> { %8113 = vmatmul.mubr.msk.f32.gmra.mrb[38].mxu1 %vm15776_vm0, %v4490_v25  ;;  %v16158_v25 = vld [vmem:[#allocation26_spill] sm:$0xff] }
0x103e   : >> { %v4494_v50 = vpop.permute.xlu1 %4493 }
0x1040   : >> { %v4492_v1 = vpop.permute.xlu0 %4491 }
0x1041   : >> { %8115 = vmatprep.mubr.msk.f32.mxu1 %vm15776_vm0, %v4492_v1  ;;  %v13475_v1 = vld [vmem:[%s10650_s17] sm:$0xff] }
0x1042   : >> { %8116 = vmatmul.mubr.msk.f32.gmra.mrb[40].mxu1 %vm15776_vm0, %v4494_v50  ;;  %v4686_v50 = vsub.s32 5, %v16158_v25  ;;  %16159 = vst [vmem:[#allocation50_spill] sm:$0xff] %v13475_v1 }
0x1044   : >> { %v4498_v26 = vpop.permute.xlu1 %4497 }
0x1045   : >> { %v4496_v55 = vpop.permute.xlu0 %4495 }
0x1046   : >> { %8118 = vmatprep.mubr.msk.f32.mxu1 %vm15776_vm0, %v4496_v55  ;;  %v13478_v55 = vrot.slane %v13475_v1, %v4686_v50 }
0x1047   : >> { %8119 = vmatmul.mubr.msk.f32.gmra.mrb[42].mxu1 %vm15776_vm0, %v4498_v26 }
0x1048   : >> { %v4502_v39 = vpop.permute.xlu1 %4501 }
0x1049   : >> { %v4500_v47 = vpop.permute.xlu0 %4499 }
0x104a   : >> { %8121 = vmatprep.mubr.msk.f32.mxu1 %vm15776_vm0, %v4500_v47 }
0x104b   : >> { %8122 = vmatmul.mubr.msk.f32.gmra.mrb[44].mxu1 %vm15776_vm0, %v4502_v39 }
0x1075   : >> { %v4506_v58 = vpop.permute.xlu1 %4505 }
0x1076   : >> { %v4504_v14 = vpop.permute.xlu0 %4503 }
0x1077   : >> { %8124 = vmatprep.mubr.msk.f32.mxu1 %vm15776_vm0, %v4504_v14 }
0x1078   : >> { %8125 = vmatmul.mubr.msk.f32.gmra.mrb[46].mxu1 %vm15776_vm0, %v4506_v58 }
0x10ff   : >> { %v8105_v26 = vpop.f32.mrb[32].mxu1 }
0x1100   : >> { %v13481_v5 = vadd.f32 %v8105_v26, %v13478_v55  ;;  %v4605_v47 = vpop.f32.mrb[33].mxu1 }
0x1101   : >> { %v13484_v39 = vadd.f32 %v13478_v55, %v4605_v47 }
0x1102   : >> { %9337 = vtanh.f32 %v13481_v5 }
0x1103   : >> { %9339 = vtanh.f32 %v13484_v39  ;;  %v8108_v14 = vpop.f32.mrb[34].mxu1 }
0x1104   : >> { %v13489_v58 = vadd.f32 %v8108_v14, %v13478_v55  ;;  %v4615_v25 = vpop.f32.mrb[35].mxu1 }
0x1105   : >> { %v13492_v50 = vadd.f32 %v13478_v55, %v4615_v25 }
0x1106   : >> { %9341 = vtanh.f32 %v13489_v58 }
0x1107   : >> { %9343 = vtanh.f32 %v13492_v50  ;;  %v8111_v26 = vpop.f32.mrb[36].mxu1 }
0x1108   : >> { %v13497_v47 = vadd.f32 %v8111_v26, %v13478_v55  ;;  %v4625_v1 = vpop.f32.mrb[37].mxu1 }
0x1109   : >> { %v13500_v12 = vadd.f32 %v13478_v55, %v4625_v1 }
0x110a   : >> { %9345 = vtanh.f32 %v13497_v47 }
0x110b   : >> { %9347 = vtanh.f32 %v13500_v12  ;;  %v8114_v14 = vpop.f32.mrb[38].mxu1 }
0x110c   : >> { %v9338_v56 = vpop.eup %9337  ;;  %v13505_v25 = vadd.f32 %v8114_v14, %v13478_v55  ;;  %v4635_v54 = vpop.f32.mrb[39].mxu1 }
0x110d   : >> { %v9340_v15 = vpop.eup %9339  ;;  %v13508_v49 = vadd.f32 %v13478_v55, %v4635_v54  ;;  %4850 = vrot.lane.b32.xlu1 %v9338_v56, %s10060_s18 }
0x110e   : >> { %9349 = vtanh.f32 %v13505_v25  ;;  %4848 = vrot.lane.b32.xlu0 %v9340_v15, %s10060_s18 }
0x110f   : >> { %9351 = vtanh.f32 %v13508_v49 }
0x1110   : >> { %v9342_v1 = vpop.eup %9341 }
0x1111   : >> { %v9344_v26 = vpop.eup %9343  ;;  %4854 = vrot.lane.b32.xlu1 %v9342_v1, %s10060_s18 }
0x1112   : >> { %4852 = vrot.lane.b32.xlu0 %v9344_v26, %s10060_s18 }
0x1114   : >> { %v9346_v14 = vpop.eup %9345 }
0x1115   : >> { %v9348_v53 = vpop.eup %9347  ;;  %4858 = vrot.lane.b32.xlu1 %v9346_v14, %s10060_s18  ;;  %v8117_v56 = vpop.f32.mrb[40].mxu1 }
0x1116   : >> { %4856 = vrot.lane.b32.xlu0 %v9348_v53, %s10060_s18  ;;  %v13519_v21 = vadd.f32 %v8117_v56, %v13478_v55  ;;  %v4645_v15 = vpop.f32.mrb[41].mxu1 }
0x1117   : >> { %v13523_v16 = vadd.f32 %v13478_v55, %v4645_v15 }
0x1118   : >> { %v9350_v54 = vpop.eup %9349  ;;  %9353 = vtanh.f32 %v13519_v21 }
0x1119   : >> { %v9352_v0 = vpop.eup %9351  ;;  %4862 = vrot.lane.b32.xlu1 %v9350_v54, %s10060_s18  ;;  %9355 = vtanh.f32 %v13523_v16 }
0x111a   : >> { %4860 = vrot.lane.b32.xlu0 %v9352_v0, %s10060_s18  ;;  %v8120_v1 = vpop.f32.mrb[42].mxu1 }
0x111b   : >> { %v13529_v53 = vadd.f32 %v8120_v1, %v13478_v55  ;;  %v4655_v26 = vpop.f32.mrb[43].mxu1 }
0x111c   : >> { %v13532_v14 = vadd.f32 %v13478_v55, %v4655_v26 }
0x111d   : >> { %9357 = vtanh.f32 %v13529_v53 }
0x111e   : >> { %9359 = vtanh.f32 %v13532_v14  ;;  %v8123_v54 = vpop.f32.mrb[44].mxu1 }
0x111f   : >> { %v13537_v56 = vadd.f32 %v8123_v54, %v13478_v55  ;;  %v4665_v0 = vpop.f32.mrb[45].mxu1 }
0x1120   : >> { %v13540_v34 = vadd.f32 %v13478_v55, %v4665_v0 }
0x1121   : >> { %9361 = vtanh.f32 %v13537_v56 }
0x1122   : >> { %v9354_v15 = vpop.eup %9353  ;;  %9363 = vtanh.f32 %v13540_v34 }
0x1123   : >> { %v9356_v63 = vpop.eup %9355  ;;  %4866 = vrot.lane.b32.xlu1 %v9354_v15, %s10060_s18 }
0x1124   : >> { %4864 = vrot.lane.b32.xlu0 %v9356_v63, %s10060_s18  ;;  %v10066_v63 = vmov 5  }
0x1125   : >> { %8692 = vset.pattern.permute.xlu1 %v10066_v63  ;;  %8691 = vset.pattern.permute.xlu0 %v10066_v63  ;;  %v7531_v63 = vmul.f32 -1.442695, %v13500_v12 }
0x1127   : >> { %v9358_v1 = vpop.eup %9357 }
0x1128   : >> { %v9360_v26 = vpop.eup %9359  ;;  %4870 = vrot.lane.b32.xlu1 %v9358_v1, %s10060_s18 }
0x1129   : >> { %4868 = vrot.lane.b32.xlu0 %v9360_v26, %s10060_s18 }
0x112b   : >> { %v9362_v54 = vpop.eup %9361 }
0x112c   : >> { %v9364_v8 = vpop.eup %9363  ;;  %4874 = vrot.lane.b32.xlu1 %v9362_v54, %s10060_s18  ;;  %v7527_v54 = vmul.f32 -1.442695, %v13484_v39 }
0x112d   : >> { %4872 = vrot.lane.b32.xlu0 %v9364_v8, %s10060_s18  ;;  %v7528_v8 = vmul.f32 -1.442695, %v13481_v5  ;;  %v7533_v5 = vmul.f32 -1.442695, %v13508_v49 }
0x114b   : >> { %v8126_v0 = vpop.f32.mrb[46].mxu1 }
0x114c   : >> { %v13551_v41 = vadd.f32 %v8126_v0, %v13478_v55  ;;  %v4675_v15 = vpop.f32.mrb[47].mxu1  ;;  %v7529_v0 = vmul.f32 -1.442695, %v13492_v50 }
0x114d   : >> { %v13554_v3 = vadd.f32 %v13478_v55, %v4675_v15  ;;  %v7530_v55 = vmul.f32 -1.442695, %v13489_v58  ;;  %v7532_v15 = vmul.f32 -1.442695, %v13497_v47 }
0x114e   : >> { %9365 = vtanh.f32 %v13551_v41 }
0x114f   : >> { %9367 = vtanh.f32 %v13554_v3 }
0x1150   : >> { %9369 = vpow2.f32 %v7528_v8 }
0x1151   : >> { %9371 = vpow2.f32 %v7527_v54 }
0x1152   : >> { %9373 = vpow2.f32 %v7530_v55 }
0x1153   : >> { %9375 = vpow2.f32 %v7529_v0 }
0x1154   : >> { %9377 = vpow2.f32 %v7532_v15 }
0x1155   : >> { %9379 = vpow2.f32 %v7531_v63  ;;  %v7535_v63 = vmul.f32 -1.442695, %v13523_v16 }
0x1158   : >> { %v9366_v1 = vpop.eup %9365 }
0x1159   : >> { %v9368_v26 = vpop.eup %9367  ;;  %4878 = vrot.lane.b32.xlu1 %v9366_v1, %s10060_s18  ;;  %v7534_v1 = vmul.f32 -1.442695, %v13505_v25  ;;  %v7536_v25 = vmul.f32 -1.442695, %v13519_v21  ;;  %v7537_v21 = vmul.f32 -1.442695, %v13532_v14 }
0x115a   : >> { %4876 = vrot.lane.b32.xlu0 %v9368_v26, %s10060_s18  ;;  %v9370_v26 = vpop.eup %9369  ;;  %v7540_v14 = vmul.f32 -1.442695, %v13537_v56 }
0x115b   : >> { %v9372_v39 = vpop.eup %9371  ;;  %9381 = vpow2.f32 %v7534_v1  ;;  %v4753_v8 = vadd.f32 1.0, %v9370_v26 }
0x115c   : >> { %9383 = vpow2.f32 %v7533_v5  ;;  %v9374_v58 = vpop.eup %9373  ;;  %v4752_v54 = vadd.f32 1.0, %v9372_v39 }
0x115d   : >> { %v9376_v50 = vpop.eup %9375  ;;  %9385 = vrcp.f32 %v4753_v8  ;;  %v4755_v12 = vadd.f32 1.0, %v9374_v58  ;;  %v7538_v8 = vmul.f32 -1.442695, %v13529_v53 }
0x115e   : >> { %v9378_v48 = vpop.eup %9377  ;;  %9387 = vrcp.f32 %v4752_v54  ;;  %v4754_v55 = vadd.f32 1.0, %v9376_v50 }
0x115f   : >> { %v9380_v47 = vpop.eup %9379  ;;  %v4757_v0 = vadd.f32 1.0, %v9378_v48  ;;  %9389 = vrcp.f32 %v4755_v12 }
0x1160   : >> { %v4756_v15 = vadd.f32 1.0, %v9380_v47  ;;  %9391 = vrcp.f32 %v4754_v55 }
0x1161   : >> { %9393 = vrcp.f32 %v4757_v0 }
0x1162   : >> { %9395 = vrcp.f32 %v4756_v15 }
0x1163   : >> { %9397 = vpow2.f32 %v7536_v25  ;;  %v7539_v25 = vmul.f32 -1.442695, %v13540_v34 }
0x1164   : >> { %9399 = vpow2.f32 %v7535_v63 }
0x1165   : >> { %v9382_v49 = vpop.eup %9381 }
0x1166   : >> { %v9384_v1 = vpop.eup %9383  ;;  %v4759_v5 = vadd.f32 1.0, %v9382_v49 }
0x1167   : >> { %v4758_v26 = vadd.f32 1.0, %v9384_v1  ;;  %v13570_v39 = vpop.eup %9385 }
0x1168   : >> { %v13573_v58 = vpop.eup %9387  ;;  %9401 = vrcp.f32 %v4759_v5 }
0x1169   : >> { %9403 = vrcp.f32 %v4758_v26  ;;  %v13579_v47 = vpop.eup %9389 }
0x116a   : >> { %9405 = vpow2.f32 %v7538_v8  ;;  %v13582_v12 = vpop.eup %9391 }
0x116b   : >> { %9407 = vpow2.f32 %v7537_v21  ;;  %v13586_v15 = vpop.eup %9393 }
0x116c   : >> { %v13590_v63 = vpop.eup %9395  ;;  %9409 = vpow2.f32 %v7540_v14 }
0x116d   : >> { %v9398_v1 = vpop.eup %9397  ;;  %9411 = vpow2.f32 %v7539_v25 }
0x116e   : >> { %v9400_v26 = vpop.eup %9399  ;;  %v4761_v21 = vadd.f32 1.0, %v9398_v1 }
0x1170   : >> { %9413 = vrcp.f32 %v4761_v21 }
0x1172   : >> { %v13597_v34 = vpop.eup %9401 }
0x117f   : >> { %v4851_v48 = vpop.permute.xlu1 %4850 }
0x1180   : >> { %v4897_v54 = vmul.f32 %v13570_v39, %v4851_v48  ;;  %v4849_v50 = vpop.permute.xlu0 %4848 }
0x1181   : >> { %v4896_v16 = vmul.f32 %v13573_v58, %v4849_v50 }
0x1182   : >> { %4930 = vrot.lane.b32.xlu1 %v4897_v54, %s10060_s18  ;;  %v4760_v54 = vadd.f32 1.0, %v9400_v26 }
0x1183   : >> { %4928 = vrot.lane.b32.xlu0 %v4896_v16, %s10060_s18  ;;  %v4855_v53 = vpop.permute.xlu1 %4854  ;;  %v13600_v16 = vpop.eup %9403 }
0x1184   : >> { %v4899_v55 = vmul.f32 %v13579_v47, %v4855_v53  ;;  %v4853_v0 = vpop.permute.xlu0 %4852  ;;  %9415 = vrcp.f32 %v4760_v54 }
0x1185   : >> { %v4898_v49 = vmul.f32 %v13582_v12, %v4853_v0 }
0x1186   : >> { %4934 = vrot.lane.b32.xlu1 %v4899_v55, %s10060_s18  ;;  %v9406_v55 = vpop.eup %9405 }
0x1187   : >> { %4932 = vrot.lane.b32.xlu0 %v4898_v49, %s10060_s18  ;;  %v4859_v5 = vpop.permute.xlu1 %4858  ;;  %v9408_v25 = vpop.eup %9407  ;;  %v4763_v49 = vadd.f32 1.0, %v9406_v55 }
0x1188   : >> { %v4901_v56 = vmul.f32 %v13586_v15, %v4859_v5  ;;  %v4857_v8 = vpop.permute.xlu0 %4856  ;;  %v4762_v1 = vadd.f32 1.0, %v9408_v25  ;;  %v9410_v5 = vpop.eup %9409 }
0x1189   : >> { %v4900_v48 = vmul.f32 %v13590_v63, %v4857_v8  ;;  %v9412_v26 = vpop.eup %9411  ;;  %9417 = vrcp.f32 %v4763_v49 }
0x118a   : >> { %4938 = vrot.lane.b32.xlu1 %v4901_v56, %s10060_s18  ;;  %9419 = vrcp.f32 %v4762_v1  ;;  %v4765_v56 = vadd.f32 1.0, %v9410_v5  ;;  %v4764_v8 = vadd.f32 1.0, %v9412_v26 }
0x118b   : >> { %4936 = vrot.lane.b32.xlu0 %v4900_v48, %s10060_s18  ;;  %v4863_v50 = vpop.permute.xlu1 %4862  ;;  %v13606_v48 = vpop.eup %9413 }
0x118c   : >> { %v4903_v53 = vmul.f32 %v13597_v34, %v4863_v50  ;;  %v4861_v14 = vpop.permute.xlu0 %4860  ;;  %9421 = vrcp.f32 %v4765_v56 }
0x118d   : >> { %v4902_v0 = vmul.f32 %v13600_v16, %v4861_v14  ;;  %9423 = vrcp.f32 %v4764_v8 }
0x118e   : >> { %4942 = vrot.lane.b32.xlu1 %v4903_v53, %s10060_s18  ;;  %v13608_v45 = vpop.eup %9415 }
0x118f   : >> { %4940 = vrot.lane.b32.xlu0 %v4902_v0, %s10060_s18 }
0x1193   : >> { %v13614_v14 = vpop.eup %9417 }
0x1194   : >> { %v13616_v0 = vpop.eup %9419 }
0x1195   : >> { %v4867_v50 = vpop.permute.xlu1 %4866 }
0x1196   : >> { %v4905_v21 = vmul.f32 %v13606_v48, %v4867_v50  ;;  %v4865_v53 = vpop.permute.xlu0 %4864  ;;  %v13622_v5 = vpop.eup %9421 }
0x1197   : >> { %v4904_v54 = vmul.f32 %v13608_v45, %v4865_v53  ;;  %16160 = vst [vmem:[#allocation15_spill] sm:$0xff] %v13622_v5  ;;  %v13624_v56 = vpop.eup %9423  ;;  %v7542_v53 = vmul.f32 -1.442695, %v13551_v41 }
0x1198   : >> { %4946 = vrot.lane.b32.xlu1 %v4905_v21, %s10060_s18 }
0x1199   : >> { %4944 = vrot.lane.b32.xlu0 %v4904_v54, %s10060_s18  ;;  %v7541_v54 = vmul.f32 -1.442695, %v13554_v3  ;;  %9425 = vpow2.f32 %v7542_v53  ;;  %v13660_v3 = vsel %vm4412_vm7, %v13102_v29, %v13089_v32  ;;  %v13678_v32 = vsel %vm4414_vm9, %v13124_v35, %v13108_v52 }
0x119a   : >> { %v4871_v55 = vpop.permute.xlu1 %4870  ;;  %v4817_v53 = vmul.f32 %v13570_v39, %v13660_v3 }
0x119b   : >> { %v4907_v25 = vmul.f32 %v13614_v14, %v4871_v55  ;;  %v4869_v49 = vpop.permute.xlu0 %4868  ;;  %9427 = vpow2.f32 %v7541_v54 }
0x119c   : >> { %v4906_v1 = vmul.f32 %v13616_v0, %v4869_v49 }
0x119d   : >> { %4950 = vrot.lane.b32.xlu1 %v4907_v25, %s10060_s18 }
0x119e   : >> { %4948 = vrot.lane.b32.xlu0 %v4906_v1, %s10060_s18  ;;  %v4875_v26 = vpop.permute.xlu1 %4874 }
0x119f   : >> { %v4909_v8 = vmul.f32 %v13622_v5, %v4875_v26  ;;  %v4873_v50 = vpop.permute.xlu0 %4872 }
0x11a0   : >> { %v4908_v21 = vmul.f32 %v13624_v56, %v4873_v50 }
0x11a1   : >> { %4954 = vrot.lane.b32.xlu1 %v4909_v8, %s10060_s18 }
0x11a2   : >> { %4952 = vrot.lane.b32.xlu0 %v4908_v21, %s10060_s18 }
0x11a3   : >> { %v9426_v55 = vpop.eup %9425 }
0x11a4   : >> { %v4767_v49 = vadd.f32 1.0, %v9426_v55 }
0x11a5   : >> { %v9428_v25 = vpop.eup %9427 }
0x11a6   : >> { %v4766_v1 = vadd.f32 1.0, %v9428_v25  ;;  %9429 = vrcp.f32 %v4767_v49 }
0x11a8   : >> { %9431 = vrcp.f32 %v4766_v1  ;;  %v16162_v1 = vld [vmem:[#allocation58_spill] sm:$0xff] }
0x11b0   : >> { %v13632_v26 = vpop.eup %9429 }
0x11b2   : >> { %v13634_v50 = vpop.eup %9431 }
0x11cb   : >> { %v4879_v5 = vpop.permute.xlu1 %4878 }
0x11cc   : >> { %v4911_v8 = vmul.f32 %v13632_v26, %v4879_v5  ;;  %v4877_v21 = vpop.permute.xlu0 %4876  ;;  %v13666_v5 = vsel %vm4411_vm6, %v13110_v6, %v13095_v2  ;;  %v13686_v2 = vsel %vm4413_vm8, %v13132_v38, %v13116_v9  ;;  %v4819_v6 = vmul.f32 %v13579_v47, %v13678_v32 }
0x11cd   : >> { %v4910_v41 = vmul.f32 %v13634_v50, %v4877_v21  ;;  %v4816_v55 = vmul.f32 %v13573_v58, %v13666_v5  ;;  %v4818_v52 = vmul.f32 %v13582_v12, %v13686_v2  ;;  %v13700_v9 = vsel %vm4416_vm11, %v16162_v1, %v16161_v43 }
0x11ce   : >> { %4958 = vrot.lane.b32.xlu1 %v4911_v8, %s10060_s18  ;;  %16163 = vst [vmem:[#allocation51_spill] sm:$0xff] %v13700_v9  ;;  %v16165_v8 = vld [vmem:[#allocation60_spill] sm:$0xff]  ;;  %vm16195_vm6 = vcmp.eq.s32.totalorder %v13304_v36, 1 }
0x11cf   : >> { %4956 = vrot.lane.b32.xlu0 %v4910_v41, %s10060_s18  ;;  %v13708_v21 = vsel %vm4415_vm10, %v16165_v8, %v16164_v31  ;;  %v4821_v41 = vmul.f32 %v13586_v15, %v13700_v9  ;;  %v16217_v9 = vld [vmem:[#allocation44_spill] sm:$0xff] }
0x11d0   : >> { %16166 = vst [vmem:[#allocation12_spill] sm:$0xff] %v13708_v21  ;;  %v4820_v20 = vmul.f32 %v13590_v63, %v13708_v21 }
0x11d2   : >> { %5092 = vperm.xlu1 %8692, %v15814_v19  }
0x11d3   : >> { %5089 = vperm.xlu0 %8691, %v15815_v27  }
0x11d6   : >> { %5095 = vperm.xlu1 %8692, %v15898_v22  }
0x11d7   : >> { %5098 = vperm.xlu0 %8691, %v15900_v13  }
0x11da   : >> { %5101 = vperm.xlu1 %8692, %v15897_v44  }
0x11db   : >> { %5104 = vperm.xlu0 %8691, %v15901_v24  }
0x11de   : >> { %5107 = vperm.xlu1 %8692, %v15899_v18  }
0x11df   : >> { %5110 = vperm.xlu0 %8691, %v15902_v60  }
0x11e2   : >> { %5113 = vperm.xlu1 %8692, %v15824_v46  }
0x11e3   : >> { %5116 = vperm.xlu0 %8691, %v15983_v7  }
0x11e6   : >> { %5119 = vperm.xlu1 %8692, %v15984_v23  }
0x11e7   : >> { %5122 = vperm.xlu0 %8691, %v16071_v4  }
0x11ea   : >> { %5125 = vperm.xlu1 %8692, %v15986_v40  }
0x11eb   : >> { %5128 = vperm.xlu0 %8691, %v16072_v17  }
0x11ee   : >> { %5131 = vperm.xlu1 %8692, %v16070_v37  }
0x11ef   : >> { %5134 = vperm.xlu0 %8691, %v16073_v57  }
0x11f4   : >> { %v4931_v54 = vpop.permute.xlu1 %4930 }
0x11f5   : >> { %v13672_v25 = vadd.f32 %v4931_v54, %v4817_v53  ;;  %v4929_v49 = vpop.permute.xlu0 %4928 }
0x11f6   : >> { %v13680_v29 = vadd.f32 %v4929_v49, %v4816_v55  ;;  %v16168_v49 = vld [vmem:[#allocation61_spill] sm:$0xff] }
0x11f7   : >> { %9433 = vtanh.f32 %v13672_v25 }
0x11f8   : >> { %9435 = vtanh.f32 %v13680_v29  ;;  %v4935_v42 = vpop.permute.xlu1 %4934 }
0x11f9   : >> { %v13694_v35 = vadd.f32 %v4935_v42, %v4819_v6  ;;  %v4933_v51 = vpop.permute.xlu0 %4932  ;;  %v16169_v6 = vld [vmem:[#allocation41_spill] sm:$0xff] }
0x11fa   : >> { %v13702_v38 = vadd.f32 %v4933_v51, %v4818_v52  ;;  %v13722_v59 = vsel %vm4418_vm13, %v16169_v6, %v16168_v49  ;;  %v16172_v52 = vld [vmem:[#allocation53_spill] sm:$0xff]  ;;  %v16173_v51 = vld [vmem:[#allocation38_spill] sm:$0xff] }
0x11fb   : >> { %9437 = vtanh.f32 %v13694_v35  ;;  %16170 = vst [vmem:[#allocation10_spill] sm:$0xff] %v13722_v59  ;;  %v13730_v43 = vsel %vm4417_vm12, %v16173_v51, %v16172_v52  ;;  %v4823_v1 = vmul.f32 %v13597_v34, %v13722_v59  ;;  %v16177_v51 = vld [vmem:[#allocation40_spill] sm:$0xff] }
0x11fc   : >> { %9439 = vtanh.f32 %v13702_v38  ;;  %v4939_v53 = vpop.permute.xlu1 %4938  ;;  %16174 = vst [vmem:[#allocation24_spill] sm:$0xff] %v13730_v43  ;;  %v4822_v33 = vmul.f32 %v13600_v16, %v13730_v43 }
0x11fd   : >> { %v13716_v54 = vadd.f32 %v4939_v53, %v4821_v41  ;;  %v4937_v55 = vpop.permute.xlu0 %4936 }
0x11fe   : >> { %v13724_v42 = vadd.f32 %v4937_v55, %v4820_v20 }
0x11ff   : >> { %16167 = vst [vmem:[#allocation13_spill] sm:$0xff] %v13716_v54  ;;  %9441 = vtanh.f32 %v13716_v54 }
0x1200   : >> { %16171 = vst [vmem:[#allocation52_spill] sm:$0xff] %v13724_v42  ;;  %9443 = vtanh.f32 %v13724_v42  ;;  %v4943_v31 = vpop.permute.xlu1 %4942  ;;  %v16215_v42 = vld [vmem:[#allocation22_spill] sm:$0xff] }
0x1201   : >> { %v9434_v8 = vpop.eup %9433  ;;  %v13738_v41 = vadd.f32 %v4943_v31, %v4823_v1  ;;  %v4941_v53 = vpop.permute.xlu0 %4940  ;;  %v16178_v1 = vld [vmem:[#allocation23_spill] sm:$0xff] }
0x1202   : >> { %v9436_v20 = vpop.eup %9435  ;;  %v13740_v55 = vadd.f32 %v4941_v53, %v4822_v33  ;;  %5026 = vrot.lane.b32.xlu0 %v9434_v8, %s10060_s18  ;;  %v13753_v31 = vsel %vm4420_vm14, %v16178_v1, %v16177_v51  ;;  %v16180_v33 = vld [vmem:[#allocation42_spill] sm:$0xff]  ;;  %v16186_v1 = vld [vmem:[#allocation37_spill] sm:$0xff] }
0x1203   : >> { %16175 = vst [vmem:[#allocation25_spill] sm:$0xff] %v13738_v41  ;;  %9445 = vtanh.f32 %v13738_v41  ;;  %5024 = vrot.lane.b32.xlu1 %v9436_v20, %s10060_s18  ;;  %16179 = vst [vmem:[#allocation58_spill] sm:$0xff] %v13753_v31  ;;  %v16181_v8 = vld [vmem:[#allocation54_spill] sm:$0xff]  ;;  %v4825_v20 = vmul.f32 %v13606_v48, %v13753_v31 }
0x1204   : >> { %16176 = vst [vmem:[#allocation11_spill] sm:$0xff] %v13740_v55  ;;  %9447 = vtanh.f32 %v13740_v55  ;;  %v13760_v53 = vsel %vm4419_vm15, %v16181_v8, %v16180_v33  ;;  %v13777_v33 = vsel %vm4422_vm1, %v16186_v1, %v16185_v61  ;;  %v16188_v8 = vld [vmem:[#allocation55_spill] sm:$0xff]  ;;  %v16193_v1 = vld [vmem:[#allocation56_spill] sm:$0xff] }
0x1205   : >> { %v9438_v30 = vpop.eup %9437  ;;  %16182 = vst [vmem:[#allocation59_spill] sm:$0xff] %v13760_v53  ;;  %16187 = vst [vmem:[#allocation41_spill] sm:$0xff] %v13777_v33 }
0x1206   : >> { %v9440_v49 = vpop.eup %9439  ;;  %5030 = vrot.lane.b32.xlu0 %v9438_v30, %s10060_s18 }
0x1207   : >> { %5028 = vrot.lane.b32.xlu1 %v9440_v49, %s10060_s18 }
0x1209   : >> { %v9442_v6 = vpop.eup %9441 }
0x120a   : >> { %v9444_v52 = vpop.eup %9443  ;;  %5034 = vrot.lane.b32.xlu0 %v9442_v6, %s10060_s18  ;;  %v4947_v49 = vpop.permute.xlu1 %4946  ;;  %v4824_v6 = vmul.f32 %v13608_v45, %v13760_v53 }
0x120b   : >> { %5032 = vrot.lane.b32.xlu1 %v9444_v52, %s10060_s18  ;;  %v13766_v62 = vadd.f32 %v4947_v49, %v4825_v20  ;;  %v4945_v51 = vpop.permute.xlu0 %4944  ;;  %v16189_v20 = vld [vmem:[#allocation39_spill] sm:$0xff] }
0x120c   : >> { %v13769_v52 = vadd.f32 %v4945_v51, %v4824_v6  ;;  %v13784_v49 = vsel %vm4421_vm2, %v16189_v20, %v16188_v8  ;;  %v16198_v8 = vld [vmem:[#allocation29_spill] sm:$0xff] }
0x120d   : >> { %v9446_v30 = vpop.eup %9445  ;;  %16183 = vst [vmem:[#allocation60_spill] sm:$0xff] %v13766_v62  ;;  %9449 = vtanh.f32 %v13766_v62  ;;  %16190 = vst [vmem:[#allocation53_spill] sm:$0xff] %v13784_v49  ;;  %v4826_v6 = vmul.f32 %v13616_v0, %v13784_v49  ;;  %v13805_v20 = vsel %vm4423_vm4, %v16198_v8, %v16197_v10 }
0x120e   : >> { %v9448_v55 = vpop.eup %9447  ;;  %5038 = vrot.lane.b32.xlu0 %v9446_v30, %s10060_s18  ;;  %16184 = vst [vmem:[#allocation61_spill] sm:$0xff] %v13769_v52  ;;  %9451 = vtanh.f32 %v13769_v52  ;;  %v4827_v30 = vmul.f32 %v13614_v14, %v13777_v33  ;;  %v16194_v52 = vld [vmem:[#allocation33_spill] sm:$0xff]  ;;  %16199 = vst [vmem:[#allocation42_spill] sm:$0xff] %v13805_v20 }
0x120f   : >> { %5036 = vrot.lane.b32.xlu1 %v9448_v55, %s10060_s18  ;;  %v4951_v55 = vpop.permute.xlu1 %4950  ;;  %v13798_v53 = vsel %vm16195_vm6, %v16194_v52, %v16193_v1 }
0x1210   : >> { %v13790_v51 = vadd.f32 %v4951_v55, %v4827_v30  ;;  %v4949_v28 = vpop.permute.xlu0 %4948  ;;  %16196 = vst [vmem:[#allocation23_spill] sm:$0xff] %v13798_v53  ;;  %v16200_v30 = vld [vmem:[#allocation15_spill] sm:$0xff] }
0x1211   : >> { %v13792_v61 = vadd.f32 %v4949_v28, %v4826_v6  ;;  %v4829_v55 = vmul.f32 %v16200_v30, %v13798_v53  ;;  %v4828_v28 = vmul.f32 %v13624_v56, %v13805_v20 }
0x1212   : >> { %16191 = vst [vmem:[#allocation38_spill] sm:$0xff] %v13790_v51  ;;  %9453 = vtanh.f32 %v13790_v51 }
0x1213   : >> { %16192 = vst [vmem:[#allocation40_spill] sm:$0xff] %v13792_v61  ;;  %9455 = vtanh.f32 %v13792_v61  ;;  %v4955_v6 = vpop.permute.xlu1 %4954 }
0x1214   : >> { %v13812_v36 = vadd.f32 %v4955_v6, %v4829_v55  ;;  %v4953_v52 = vpop.permute.xlu0 %4952  ;;  %v16203_v6 = vld [vmem:[#allocation32_spill] sm:$0xff] }
0x1215   : >> { %v13814_v49 = vadd.f32 %v4953_v52, %v4828_v28  ;;  %v16204_v28 = vld [vmem:[#allocation34_spill] sm:$0xff] }
0x1216   : >> { %16201 = vst [vmem:[#allocation54_spill] sm:$0xff] %v13812_v36  ;;  %9457 = vtanh.f32 %v13812_v36 }
0x1217   : >> { %v9450_v1 = vpop.eup %9449  ;;  %16202 = vst [vmem:[#allocation36_spill] sm:$0xff] %v13814_v49  ;;  %9459 = vtanh.f32 %v13814_v49  ;;  %v16207_v49 = vld [vmem:[#allocation30_spill] sm:$0xff] }
0x1218   : >> { %v9452_v51 = vpop.eup %9451  ;;  %5042 = vrot.lane.b32.xlu0 %v9450_v1, %s10060_s18  ;;  %v13828_v1 = vsel %vm4426_vm5, %v16204_v28, %v16203_v6 }
0x1219   : >> { %5040 = vrot.lane.b32.xlu1 %v9452_v51, %s10060_s18  ;;  %16206 = vst [vmem:[#allocation37_spill] sm:$0xff] %v13828_v1  ;;  %v16208_v51 = vld [vmem:[#allocation28_spill] sm:$0xff] }
0x121a   : >> { %v13834_v36 = vsel %vm4425_vm3, %v16208_v51, %v16207_v49 }
0x121b   : >> { %16210 = vst [vmem:[#allocation55_spill] sm:$0xff] %v13834_v36 }
0x121c   : >> { %v9454_v11 = vpop.eup %9453 }
0x121d   : >> { %v9456_v10 = vpop.eup %9455  ;;  %5046 = vrot.lane.b32.xlu0 %v9454_v11, %s10060_s18  ;;  %v4831_v11 = vmul.f32 %v13632_v26, %v13828_v1 }
0x121e   : >> { %5044 = vrot.lane.b32.xlu1 %v9456_v10, %s10060_s18 }
0x1220   : >> { %v9458_v8 = vpop.eup %9457 }
0x1221   : >> { %v9460_v55 = vpop.eup %9459  ;;  %5050 = vrot.lane.b32.xlu0 %v9458_v8, %s10060_s18  ;;  %v4830_v8 = vmul.f32 %v13634_v50, %v13834_v36 }
0x1222   : >> { %5048 = vrot.lane.b32.xlu1 %v9460_v55, %s10060_s18 }
0x1240   : >> { %v4959_v10 = vpop.permute.xlu1 %4958 }
0x1241   : >> { %v13840_v55 = vadd.f32 %v4959_v10, %v4831_v11  ;;  %v4957_v53 = vpop.permute.xlu0 %4956 }
0x1242   : >> { %v13842_v61 = vadd.f32 %v4957_v53, %v4830_v8 }
0x1243   : >> { %16211 = vst [vmem:[#allocation39_spill] sm:$0xff] %v13840_v55  ;;  %9461 = vtanh.f32 %v13840_v55 }
0x1244   : >> { %16212 = vst [vmem:[#allocation56_spill] sm:$0xff] %v13842_v61  ;;  %9463 = vtanh.f32 %v13842_v61 }
0x124d   : >> { %v9462_v6 = vpop.eup %9461 }
0x124e   : >> { %v9464_v20 = vpop.eup %9463  ;;  %5054 = vrot.lane.b32.xlu0 %v9462_v6, %s10060_s18 }
0x124f   : >> { %5052 = vrot.lane.b32.xlu1 %v9464_v20, %s10060_s18 }
0x1251   : >> { %v13848_v49 = vpop.permute.xlu1 %5092 }
0x1252   : >> { %v13850_v28 = vpop.permute.xlu0 %5089  ;;  %vm5137_vm7 = vcmp.eq.s32.totalorder %v13848_v49, 1 }
0x1253   : >> { %vm5136_vm8 = vcmp.eq.s32.totalorder %v13850_v28, 1 }
0x1255   : >> { %v13852_v52 = vpop.permute.xlu1 %5095 }
0x1256   : >> { %v13854_v51 = vpop.permute.xlu0 %5098  ;;  %vm5138_vm10 = vcmp.eq.s32.totalorder %v13852_v52, 1  ;;  %v16253_v52 = vld [vmem:[#allocation12_spill] sm:$0xff] }
0x1257   : >> { %vm5139_vm9 = vcmp.eq.s32.totalorder %v13854_v51, 1 }
0x1259   : >> { %v13856_v53 = vpop.permute.xlu1 %5101 }
0x125a   : >> { %v13858_v11 = vpop.permute.xlu0 %5104  ;;  %vm5140_vm12 = vcmp.eq.s32.totalorder %v13856_v53, 1 }
0x125b   : >> { %vm5141_vm11 = vcmp.eq.s32.totalorder %v13858_v11, 1 }
0x125d   : >> { %v13860_v10 = vpop.permute.xlu1 %5107 }
0x125e   : >> { %v13862_v8 = vpop.permute.xlu0 %5110  ;;  %vm5142_vm14 = vcmp.eq.s32.totalorder %v13860_v10, 1 }
0x125f   : >> { %vm5143_vm13 = vcmp.eq.s32.totalorder %v13862_v8, 1 }
0x1261   : >> { %v13864_v61 = vpop.permute.xlu1 %5113 }
0x1262   : >> { %v13866_v6 = vpop.permute.xlu0 %5116  ;;  %vm5144_vm1 = vcmp.eq.s32.totalorder %v13864_v61, 1  ;;  %v16274_v61 = vld [vmem:[#allocation41_spill] sm:$0xff] }
0x1263   : >> { %vm5145_vm15 = vcmp.eq.s32.totalorder %v13866_v6, 1 }
0x1265   : >> { %v13868_v20 = vpop.permute.xlu1 %5119 }
0x1266   : >> { %v13870_v36 = vpop.permute.xlu0 %5122  ;;  %vm5146_vm3 = vcmp.eq.s32.totalorder %v13868_v20, 1  ;;  %v16286_v20 = vld [vmem:[#allocation42_spill] sm:$0xff] }
0x1267   : >> { %vm5147_vm2 = vcmp.eq.s32.totalorder %v13870_v36, 1 }
0x1269   : >> { %v13874_v1 = vpop.permute.xlu1 %5125 }
0x126a   : >> { %v13872_v55 = vpop.permute.xlu0 %5128  ;;  %vm5148_vm5 = vcmp.eq.s32.totalorder %v13874_v1, 1 }
0x126b   : >> { %vm15685_vm4 = vcmp.eq.s32.totalorder %v13872_v55, 1 }
0x126d   : >> { %v13878_v62 = vpop.permute.xlu1 %5131 }
0x126e   : >> { %v13876_v33 = vpop.permute.xlu0 %5134  ;;  %16214 = vst [vmem:[#allocation31_spill] sm:$0xff] %v13878_v62 }
0x126f   : >> { %16213 = vst [vmem:[#allocation33_spill] sm:$0xff] %v13876_v33  ;;  %vm5151_vm6 = vcmp.eq.s32.totalorder %v13876_v33, 1 }
0x1274   : >> { %v5027_v31 = vpop.permute.xlu0 %5026 }
0x1275   : >> { %v5073_v43 = vmul.f32 %v13570_v39, %v5027_v31  ;;  %v5025_v41 = vpop.permute.xlu1 %5024 }
0x1276   : >> { %v5072_v59 = vmul.f32 %v13573_v58, %v5025_v41 }
0x1277   : >> { %v13887_v21 = vsel %vm5137_vm7, %v5073_v43, %v16215_v42  ;;  %v16219_v43 = vld [vmem:[#allocation43_spill] sm:$0xff] }
0x1278   : >> { %16216 = vst [vmem:[#allocation29_spill] sm:$0xff] %v13887_v21  ;;  %v5031_v54 = vpop.permute.xlu0 %5030  ;;  %5202 = vrot.lane.b32.xlu0 %v13887_v21, %s10059_s22  ;;  %v13894_v39 = vsel %vm5136_vm8, %v5072_v59, %v16217_v9 }
0x1279   : >> { %16218 = vst [vmem:[#allocation15_spill] sm:$0xff] %v13894_v39  ;;  %v5075_v31 = vmul.f32 %v13579_v47, %v5031_v54  ;;  %5200 = vrot.lane.b32.xlu1 %v13894_v39, %s10059_s22  ;;  %v5029_v58 = vpop.permute.xlu1 %5028  ;;  %v16221_v47 = vld [vmem:[#allocation57_spill] sm:$0xff] }
0x127a   : >> { %v5074_v42 = vmul.f32 %v13582_v12, %v5029_v58 }
0x127b   : >> { %v13905_v41 = vsel %vm5139_vm9, %v5075_v31, %v16219_v43  ;;  %v16223_v31 = vld [vmem:[#allocation21_spill] sm:$0xff] }
0x127c   : >> { %16220 = vst [vmem:[#allocation32_spill] sm:$0xff] %v13905_v41  ;;  %v5035_v21 = vpop.permute.xlu0 %5034  ;;  %5206 = vrot.lane.b32.xlu0 %v13905_v41, %s10059_s22  ;;  %v13912_v9 = vsel %vm5138_vm10, %v5074_v42, %v16221_v47 }
0x127d   : >> { %16222 = vst [vmem:[#allocation34_spill] sm:$0xff] %v13912_v9  ;;  %v5077_v54 = vmul.f32 %v13586_v15, %v5035_v21  ;;  %5204 = vrot.lane.b32.xlu1 %v13912_v9, %s10059_s22  ;;  %v5033_v12 = vpop.permute.xlu1 %5032  ;;  %v16225_v15 = vld [vmem:[#allocation20_spill] sm:$0xff] }
0x127e   : >> { %v5076_v59 = vmul.f32 %v13590_v63, %v5033_v12 }
0x127f   : >> { %v13923_v58 = vsel %vm5141_vm11, %v5077_v54, %v16223_v31  ;;  %v16227_v54 = vld [vmem:[#allocation16_spill] sm:$0xff] }
0x1280   : >> { %16224 = vst [vmem:[#allocation35_spill] sm:$0xff] %v13923_v58  ;;  %v5039_v43 = vpop.permute.xlu0 %5038  ;;  %5210 = vrot.lane.b32.xlu0 %v13923_v58, %s10059_s22  ;;  %v13930_v21 = vsel %vm5140_vm12, %v5076_v59, %v16225_v15  ;;  %v16229_v59 = vld [vmem:[#allocation19_spill] sm:$0xff] }
0x1281   : >> { %16226 = vst [vmem:[#allocation30_spill] sm:$0xff] %v13930_v21  ;;  %v5079_v42 = vmul.f32 %v13597_v34, %v5039_v43  ;;  %5208 = vrot.lane.b32.xlu1 %v13930_v21, %s10059_s22  ;;  %v5037_v63 = vpop.permute.xlu1 %5036 }
0x1282   : >> { %v5078_v47 = vmul.f32 %v13600_v16, %v5037_v63 }
0x1283   : >> { %v13941_v12 = vsel %vm5143_vm13, %v5079_v42, %v16227_v54  ;;  %v16231_v42 = vld [vmem:[#allocation46_spill] sm:$0xff] }
0x1284   : >> { %16228 = vst [vmem:[#allocation28_spill] sm:$0xff] %v13941_v12  ;;  %5214 = vrot.lane.b32.xlu0 %v13941_v12, %s10059_s22  ;;  %v13948_v34 = vsel %vm5142_vm14, %v5078_v47, %v16229_v59  ;;  %v16233_v47 = vld [vmem:[#allocation18_spill] sm:$0xff] }
0x1285   : >> { %16230 = vst [vmem:[#allocation27_spill] sm:$0xff] %v13948_v34  ;;  %5212 = vrot.lane.b32.xlu1 %v13948_v34, %s10059_s22 }
0x128a   : >> { %v5043_v31 = vpop.permute.xlu0 %5042 }
0x128b   : >> { %v5081_v16 = vmul.f32 %v13606_v48, %v5043_v31  ;;  %v5041_v43 = vpop.permute.xlu1 %5040 }
0x128c   : >> { %v5080_v15 = vmul.f32 %v13608_v45, %v5041_v43 }
0x128d   : >> { %v13959_v63 = vsel %vm5145_vm15, %v5081_v16, %v16231_v42  ;;  %v16235_v16 = vld [vmem:[#allocation45_spill] sm:$0xff] }
0x128e   : >> { %16232 = vst [vmem:[#allocation22_spill] sm:$0xff] %v13959_v63  ;;  %5218 = vrot.lane.b32.xlu0 %v13959_v63, %s10059_s22  ;;  %v13966_v54 = vsel %vm5144_vm1, %v5080_v15, %v16233_v47  ;;  %v16237_v15 = vld [vmem:[#allocation14_spill] sm:$0xff] }
0x128f   : >> { %16234 = vst [vmem:[#allocation44_spill] sm:$0xff] %v13966_v54  ;;  %5216 = vrot.lane.b32.xlu1 %v13966_v54, %s10059_s22  ;;  %v5047_v48 = vpop.permute.xlu0 %5046 }
0x1290   : >> { %v5083_v45 = vmul.f32 %v13614_v14, %v5047_v48  ;;  %v5045_v59 = vpop.permute.xlu1 %5044 }
0x1291   : >> { %v5082_v31 = vmul.f32 %v13616_v0, %v5045_v59 }
0x1292   : >> { %v13977_v43 = vsel %vm5147_vm2, %v5083_v45, %v16235_v16  ;;  %v16239_v45 = vld [vmem:[#allocation17_spill] sm:$0xff] }
0x1293   : >> { %16236 = vst [vmem:[#allocation43_spill] sm:$0xff] %v13977_v43  ;;  %5222 = vrot.lane.b32.xlu0 %v13977_v43, %s10059_s22  ;;  %v13984_v42 = vsel %vm5146_vm3, %v5082_v31, %v16237_v15  ;;  %v5051_v14 = vpop.permute.xlu0 %5050  ;;  %v16241_v31 = vld [vmem:[#allocation47_spill] sm:$0xff] }
0x1294   : >> { %16238 = vst [vmem:[#allocation57_spill] sm:$0xff] %v13984_v42  ;;  %5220 = vrot.lane.b32.xlu1 %v13984_v42, %s10059_s22  ;;  %v5085_v0 = vmul.f32 %v16200_v30, %v5051_v14  ;;  %v5049_v47 = vpop.permute.xlu1 %5048 }
0x1295   : >> { %v5084_v48 = vmul.f32 %v13624_v56, %v5049_v47 }
0x1296   : >> { %v13995_v59 = vsel %vm15685_vm4, %v5085_v0, %v16239_v45  ;;  %vm5150_vm4 = vcmp.eq.s32.totalorder %v13878_v62, 1  ;;  %v16243_v0 = vld [vmem:[#allocation48_spill] sm:$0xff] }
0x1297   : >> { %16240 = vst [vmem:[#allocation21_spill] sm:$0xff] %v13995_v59  ;;  %5226 = vrot.lane.b32.xlu0 %v13995_v59, %s10059_s22  ;;  %v14002_v16 = vsel %vm5148_vm5, %v5084_v48, %v16241_v31  ;;  %v16245_v48 = vld [vmem:[#allocation49_spill] sm:$0xff] }
0x1298   : >> { %16242 = vst [vmem:[#allocation20_spill] sm:$0xff] %v14002_v16  ;;  %5224 = vrot.lane.b32.xlu1 %v14002_v16, %s10059_s22 }
0x12c0   : >> { %v5055_v30 = vpop.permute.xlu0 %5054 }
0x12c1   : >> { %v5087_v56 = vmul.f32 %v13632_v26, %v5055_v30  ;;  %v5053_v15 = vpop.permute.xlu1 %5052 }
0x12c2   : >> { %v5086_v14 = vmul.f32 %v13634_v50, %v5053_v15 }
0x12c3   : >> { %v14013_v47 = vsel %vm5151_vm6, %v5087_v56, %v16243_v0 }
0x12c4   : >> { %16244 = vst [vmem:[#allocation16_spill] sm:$0xff] %v14013_v47  ;;  %5230 = vrot.lane.b32.xlu0 %v14013_v47, %s10059_s22  ;;  %v14020_v45 = vsel %vm5150_vm4, %v5086_v14, %v16245_v48 }
0x12c5   : >> { %16246 = vst [vmem:[#allocation19_spill] sm:$0xff] %v14020_v45  ;;  %5228 = vrot.lane.b32.xlu1 %v14020_v45, %s10059_s22 }
0x12ea   : >> { %v5203_v26 = vpop.permute.xlu0 %5202 }
0x12eb   : >> { %v5201_v50 = vpop.permute.xlu1 %5200 }
0x12ec   : >> { %8135 = vmatprep.mubr.msk.f32.mxu0 %vm15776_vm0, %v5201_v50 }
0x12ed   : >> { %8136 = vmatmul.mubr.msk.f32.vlgmr.msra.gmra.mrb[48].mxu0 %vm15776_vm0, %v5203_v26 }
0x12ee   : >> { %v5207_v31 = vpop.permute.xlu0 %5206 }
0x12ef   : >> { %v5205_v30 = vpop.permute.xlu1 %5204 }
0x12f0   : >> { %8138 = vmatprep.mubr.msk.f32.mxu0 %vm15776_vm0, %v5205_v30 }
0x12f1   : >> { %8139 = vmatmul.mubr.msk.f32.gmra.mrb[50].mxu0 %vm15776_vm0, %v5207_v31 }
0x12f2   : >> { %v5211_v56 = vpop.permute.xlu0 %5210 }
0x12f3   : >> { %v5209_v15 = vpop.permute.xlu1 %5208 }
0x12f4   : >> { %8141 = vmatprep.mubr.msk.f32.mxu0 %vm15776_vm0, %v5209_v15 }
0x12f5   : >> { %8142 = vmatmul.mubr.msk.f32.gmra.mrb[52].mxu0 %vm15776_vm0, %v5211_v56 }
0x12f6   : >> { %v5215_v0 = vpop.permute.xlu0 %5214 }
0x12f7   : >> { %v5213_v14 = vpop.permute.xlu1 %5212 }
0x12f8   : >> { %8144 = vmatprep.mubr.msk.f32.mxu0 %vm15776_vm0, %v5213_v14 }
0x12f9   : >> { %8145 = vmatmul.mubr.msk.f32.gmra.mrb[54].mxu0 %vm15776_vm0, %v5215_v0  ;;  %v16247_v0 = vld [vmem:[#allocation26_spill] sm:$0xff] }
0x1300   : >> { %v5219_v48 = vpop.permute.xlu0 %5218 }
0x1301   : >> { %v5217_v26 = vpop.permute.xlu1 %5216 }
0x1302   : >> { %8147 = vmatprep.mubr.msk.f32.mxu0 %vm15776_vm0, %v5217_v26  ;;  %v16248_v26 = vld [vmem:[#allocation50_spill] sm:$0xff] }
0x1303   : >> { %8148 = vmatmul.mubr.msk.f32.gmra.mrb[56].mxu0 %vm15776_vm0, %v5219_v48  ;;  %v5411_v48 = vsub.s32 6, %v16247_v0 }
0x1305   : >> { %v5223_v50 = vpop.permute.xlu0 %5222  ;;  %v14042_v45 = vrot.slane %v16248_v26, %v5411_v48 }
0x1306   : >> { %v5221_v31 = vpop.permute.xlu1 %5220 }
0x1307   : >> { %8150 = vmatprep.mubr.msk.f32.mxu0 %vm15776_vm0, %v5221_v31 }
0x1308   : >> { %8151 = vmatmul.mubr.msk.f32.gmra.mrb[58].mxu0 %vm15776_vm0, %v5223_v50 }
0x1309   : >> { %v5227_v56 = vpop.permute.xlu0 %5226 }
0x130a   : >> { %v5225_v30 = vpop.permute.xlu1 %5224 }
0x130b   : >> { %8153 = vmatprep.mubr.msk.f32.mxu0 %vm15776_vm0, %v5225_v30 }
0x130c   : >> { %8154 = vmatmul.mubr.msk.f32.gmra.mrb[60].mxu0 %vm15776_vm0, %v5227_v56 }
0x1336   : >> { %v5231_v14 = vpop.permute.xlu0 %5230 }
0x1337   : >> { %v5229_v15 = vpop.permute.xlu1 %5228 }
0x1338   : >> { %8156 = vmatprep.mubr.msk.f32.mxu0 %vm15776_vm0, %v5229_v15 }
0x1339   : >> { %8157 = vmatmul.mubr.msk.f32.gmra.mrb[62].mxu0 %vm15776_vm0, %v5231_v14 }
0x13c0   : >> { %v8137_v31 = vpop.f32.mrb[48].mxu0 }
0x13c1   : >> { %v14045_v50 = vadd.f32 %v8137_v31, %v14042_v45  ;;  %v5330_v47 = vpop.f32.mrb[49].mxu0 }
0x13c2   : >> { %v14048_v30 = vadd.f32 %v14042_v45, %v5330_v47 }
0x13c3   : >> { %9465 = vtanh.f32 %v14045_v50 }
0x13c4   : >> { %9467 = vtanh.f32 %v14048_v30  ;;  %v8140_v56 = vpop.f32.mrb[50].mxu0 }
0x13c5   : >> { %v14053_v15 = vadd.f32 %v8140_v56, %v14042_v45  ;;  %v5340_v14 = vpop.f32.mrb[51].mxu0 }
0x13c6   : >> { %v14056_v48 = vadd.f32 %v14042_v45, %v5340_v14 }
0x13c7   : >> { %9469 = vtanh.f32 %v14053_v15 }
0x13c8   : >> { %9471 = vtanh.f32 %v14056_v48  ;;  %v8143_v26 = vpop.f32.mrb[52].mxu0 }
0x13c9   : >> { %v14061_v47 = vadd.f32 %v8143_v26, %v14042_v45  ;;  %v5350_v31 = vpop.f32.mrb[53].mxu0 }
0x13ca   : >> { %v14064_v0 = vadd.f32 %v14042_v45, %v5350_v31 }
0x13cb   : >> { %9473 = vtanh.f32 %v14061_v47 }
0x13cc   : >> { %9475 = vtanh.f32 %v14064_v0  ;;  %v8146_v56 = vpop.f32.mrb[54].mxu0 }
0x13cd   : >> { %v9466_v16 = vpop.eup %9465  ;;  %v14069_v14 = vadd.f32 %v8146_v56, %v14042_v45  ;;  %v5360_v59 = vpop.f32.mrb[55].mxu0 }
0x13ce   : >> { %v9468_v42 = vpop.eup %9467  ;;  %v14072_v43 = vadd.f32 %v14042_v45, %v5360_v59  ;;  %5575 = vrot.lane.b32.xlu0 %v9466_v16, %s10060_s18 }
0x13cf   : >> { %9477 = vtanh.f32 %v14069_v14  ;;  %5573 = vrot.lane.b32.xlu1 %v9468_v42, %s10060_s18 }
0x13d0   : >> { %9479 = vtanh.f32 %v14072_v43 }
0x13d1   : >> { %v9470_v26 = vpop.eup %9469 }
0x13d2   : >> { %v9472_v31 = vpop.eup %9471  ;;  %5579 = vrot.lane.b32.xlu0 %v9470_v26, %s10060_s18 }
0x13d3   : >> { %5577 = vrot.lane.b32.xlu1 %v9472_v31, %s10060_s18 }
0x13d5   : >> { %v9474_v56 = vpop.eup %9473 }
0x13d6   : >> { %v9476_v54 = vpop.eup %9475  ;;  %5583 = vrot.lane.b32.xlu0 %v9474_v56, %s10060_s18  ;;  %v8149_v16 = vpop.f32.mrb[56].mxu0 }
0x13d7   : >> { %5581 = vrot.lane.b32.xlu1 %v9476_v54, %s10060_s18  ;;  %v14083_v12 = vadd.f32 %v8149_v16, %v14042_v45  ;;  %v5370_v42 = vpop.f32.mrb[57].mxu0 }
0x13d8   : >> { %v14087_v34 = vadd.f32 %v14042_v45, %v5370_v42 }
0x13d9   : >> { %v9478_v59 = vpop.eup %9477  ;;  %9481 = vtanh.f32 %v14083_v12 }
0x13da   : >> { %v9480_v63 = vpop.eup %9479  ;;  %5587 = vrot.lane.b32.xlu0 %v9478_v59, %s10060_s18  ;;  %9483 = vtanh.f32 %v14087_v34 }
0x13db   : >> { %5585 = vrot.lane.b32.xlu1 %v9480_v63, %s10060_s18  ;;  %v8152_v26 = vpop.f32.mrb[58].mxu0 }
0x13dc   : >> { %v14093_v54 = vadd.f32 %v8152_v26, %v14042_v45  ;;  %v5380_v31 = vpop.f32.mrb[59].mxu0 }
0x13dd   : >> { %v14096_v56 = vadd.f32 %v14042_v45, %v5380_v31 }
0x13de   : >> { %9485 = vtanh.f32 %v14093_v54 }
0x13df   : >> { %9487 = vtanh.f32 %v14096_v56  ;;  %v8155_v59 = vpop.f32.mrb[60].mxu0 }
0x13e0   : >> { %v14101_v16 = vadd.f32 %v8155_v59, %v14042_v45  ;;  %v5390_v63 = vpop.f32.mrb[61].mxu0 }
0x13e1   : >> { %v14104_v58 = vadd.f32 %v14042_v45, %v5390_v63 }
0x13e2   : >> { %9489 = vtanh.f32 %v14101_v16 }
0x13e3   : >> { %v9482_v42 = vpop.eup %9481  ;;  %9491 = vtanh.f32 %v14104_v58 }
0x13e4   : >> { %v9484_v21 = vpop.eup %9483  ;;  %5591 = vrot.lane.b32.xlu0 %v9482_v42, %s10060_s18 }
0x13e5   : >> { %5589 = vrot.lane.b32.xlu1 %v9484_v21, %s10060_s18  ;;  %v10067_v21 = vmov 6  }
0x13e6   : >> { %8694 = vset.pattern.permute.xlu0 %v10067_v21  ;;  %8693 = vset.pattern.permute.xlu1 %v10067_v21  ;;  %v7563_v21 = vmul.f32 -1.442695, %v14064_v0 }
0x13e8   : >> { %v9486_v26 = vpop.eup %9485 }
0x13e9   : >> { %v9488_v31 = vpop.eup %9487  ;;  %5595 = vrot.lane.b32.xlu0 %v9486_v26, %s10060_s18 }
0x13ea   : >> { %5593 = vrot.lane.b32.xlu1 %v9488_v31, %s10060_s18 }
0x13ec   : >> { %v9490_v59 = vpop.eup %9489 }
0x13ed   : >> { %v9492_v41 = vpop.eup %9491  ;;  %5599 = vrot.lane.b32.xlu0 %v9490_v59, %s10060_s18  ;;  %v7559_v59 = vmul.f32 -1.442695, %v14048_v30 }
0x13ee   : >> { %5597 = vrot.lane.b32.xlu1 %v9492_v41, %s10060_s18  ;;  %v7560_v41 = vmul.f32 -1.442695, %v14045_v50  ;;  %v7565_v50 = vmul.f32 -1.442695, %v14072_v43 }
0x140c   : >> { %v8158_v63 = vpop.f32.mrb[62].mxu0 }
0x140d   : >> { %v14115_v9 = vadd.f32 %v8158_v63, %v14042_v45  ;;  %v5400_v42 = vpop.f32.mrb[63].mxu0  ;;  %v7561_v63 = vmul.f32 -1.442695, %v14056_v48 }
0x140e   : >> { %v14118_v39 = vadd.f32 %v14042_v45, %v5400_v42  ;;  %v7562_v45 = vmul.f32 -1.442695, %v14053_v15  ;;  %v7564_v42 = vmul.f32 -1.442695, %v14061_v47 }
0x140f   : >> { %9493 = vtanh.f32 %v14115_v9 }
0x1410   : >> { %9495 = vtanh.f32 %v14118_v39 }
0x1411   : >> { %9497 = vpow2.f32 %v7560_v41 }
0x1412   : >> { %9499 = vpow2.f32 %v7559_v59 }
0x1413   : >> { %9501 = vpow2.f32 %v7562_v45 }
0x1414   : >> { %9503 = vpow2.f32 %v7561_v63 }
0x1415   : >> { %9505 = vpow2.f32 %v7564_v42 }
0x1416   : >> { %9507 = vpow2.f32 %v7563_v21  ;;  %v7567_v21 = vmul.f32 -1.442695, %v14087_v34 }
0x1419   : >> { %v9494_v26 = vpop.eup %9493 }
0x141a   : >> { %v9496_v31 = vpop.eup %9495  ;;  %5603 = vrot.lane.b32.xlu0 %v9494_v26, %s10060_s18  ;;  %v7566_v26 = vmul.f32 -1.442695, %v14069_v14  ;;  %v7568_v14 = vmul.f32 -1.442695, %v14083_v12  ;;  %v7569_v12 = vmul.f32 -1.442695, %v14096_v56 }
0x141b   : >> { %5601 = vrot.lane.b32.xlu1 %v9496_v31, %s10060_s18  ;;  %v9498_v31 = vpop.eup %9497  ;;  %v7572_v56 = vmul.f32 -1.442695, %v14101_v16 }
0x141c   : >> { %v9500_v30 = vpop.eup %9499  ;;  %9509 = vpow2.f32 %v7566_v26  ;;  %v5478_v41 = vadd.f32 1.0, %v9498_v31 }
0x141d   : >> { %9511 = vpow2.f32 %v7565_v50  ;;  %v9502_v15 = vpop.eup %9501  ;;  %v5477_v59 = vadd.f32 1.0, %v9500_v30 }
0x141e   : >> { %v9504_v48 = vpop.eup %9503  ;;  %9513 = vrcp.f32 %v5478_v41  ;;  %v5480_v0 = vadd.f32 1.0, %v9502_v15  ;;  %v7570_v41 = vmul.f32 -1.442695, %v14093_v54 }
0x141f   : >> { %v9506_v62 = vpop.eup %9505  ;;  %9515 = vrcp.f32 %v5477_v59  ;;  %v5479_v45 = vadd.f32 1.0, %v9504_v48 }
0x1420   : >> { %v9508_v47 = vpop.eup %9507  ;;  %v5482_v63 = vadd.f32 1.0, %v9506_v62  ;;  %9517 = vrcp.f32 %v5480_v0 }
0x1421   : >> { %v5481_v42 = vadd.f32 1.0, %v9508_v47  ;;  %9519 = vrcp.f32 %v5479_v45 }
0x1422   : >> { %9521 = vrcp.f32 %v5482_v63 }
0x1423   : >> { %9523 = vrcp.f32 %v5481_v42 }
0x1424   : >> { %9525 = vpow2.f32 %v7568_v14  ;;  %v7571_v14 = vmul.f32 -1.442695, %v14104_v58 }
0x1425   : >> { %9527 = vpow2.f32 %v7567_v21 }
0x1426   : >> { %v9510_v43 = vpop.eup %9509 }
0x1427   : >> { %v9512_v26 = vpop.eup %9511  ;;  %v5484_v50 = vadd.f32 1.0, %v9510_v43 }
0x1428   : >> { %v5483_v31 = vadd.f32 1.0, %v9512_v26  ;;  %v14134_v30 = vpop.eup %9513 }
0x1429   : >> { %v14137_v15 = vpop.eup %9515  ;;  %9529 = vrcp.f32 %v5484_v50 }
0x142a   : >> { %9531 = vrcp.f32 %v5483_v31  ;;  %v14143_v47 = vpop.eup %9517 }
0x142b   : >> { %9533 = vpow2.f32 %v7570_v41  ;;  %v14146_v54 = vpop.eup %9519 }
0x142c   : >> { %9535 = vpow2.f32 %v7569_v12  ;;  %v14150_v42 = vpop.eup %9521 }
0x142d   : >> { %v14154_v21 = vpop.eup %9523  ;;  %9537 = vpow2.f32 %v7572_v56 }
0x142e   : >> { %v9526_v26 = vpop.eup %9525  ;;  %9539 = vpow2.f32 %v7571_v14 }
0x142f   : >> { %v9528_v31 = vpop.eup %9527  ;;  %v5486_v12 = vadd.f32 1.0, %v9526_v26 }
0x1431   : >> { %9541 = vrcp.f32 %v5486_v12 }
0x1433   : >> { %v14161_v58 = vpop.eup %9529 }
0x1440   : >> { %v5576_v62 = vpop.permute.xlu0 %5575 }
0x1441   : >> { %v5622_v59 = vmul.f32 %v14134_v30, %v5576_v62  ;;  %v5574_v48 = vpop.permute.xlu1 %5573 }
0x1442   : >> { %v5621_v34 = vmul.f32 %v14137_v15, %v5574_v48 }
0x1443   : >> { %5655 = vrot.lane.b32.xlu0 %v5622_v59, %s10060_s18  ;;  %v5485_v59 = vadd.f32 1.0, %v9528_v31 }
0x1444   : >> { %v5580_v0 = vpop.permute.xlu0 %5579  ;;  %5653 = vrot.lane.b32.xlu1 %v5621_v34, %s10060_s18  ;;  %v14164_v34 = vpop.eup %9531 }
0x1445   : >> { %v5624_v45 = vmul.f32 %v14143_v47, %v5580_v0  ;;  %v5578_v63 = vpop.permute.xlu1 %5577  ;;  %9543 = vrcp.f32 %v5485_v59 }
0x1446   : >> { %v5623_v43 = vmul.f32 %v14146_v54, %v5578_v63 }
0x1447   : >> { %5659 = vrot.lane.b32.xlu0 %v5624_v45, %s10060_s18  ;;  %v9534_v45 = vpop.eup %9533 }
0x1448   : >> { %v5584_v50 = vpop.permute.xlu0 %5583  ;;  %5657 = vrot.lane.b32.xlu1 %v5623_v43, %s10060_s18  ;;  %v9536_v14 = vpop.eup %9535  ;;  %v5488_v43 = vadd.f32 1.0, %v9534_v45 }
0x1449   : >> { %v5626_v16 = vmul.f32 %v14150_v42, %v5584_v50  ;;  %v5582_v41 = vpop.permute.xlu1 %5581  ;;  %v5487_v26 = vadd.f32 1.0, %v9536_v14  ;;  %v9538_v50 = vpop.eup %9537 }
0x144a   : >> { %v5625_v62 = vmul.f32 %v14154_v21, %v5582_v41  ;;  %v9540_v31 = vpop.eup %9539  ;;  %9545 = vrcp.f32 %v5488_v43 }
0x144b   : >> { %5663 = vrot.lane.b32.xlu0 %v5626_v16, %s10060_s18  ;;  %9547 = vrcp.f32 %v5487_v26  ;;  %v5490_v16 = vadd.f32 1.0, %v9538_v50  ;;  %v5489_v41 = vadd.f32 1.0, %v9540_v31 }
0x144c   : >> { %v5588_v48 = vpop.permute.xlu0 %5587  ;;  %5661 = vrot.lane.b32.xlu1 %v5625_v62, %s10060_s18  ;;  %v14170_v62 = vpop.eup %9541 }
0x144d   : >> { %v5628_v0 = vmul.f32 %v14161_v58, %v5588_v48  ;;  %v5586_v56 = vpop.permute.xlu1 %5585  ;;  %9549 = vrcp.f32 %v5490_v16 }
0x144e   : >> { %v5627_v63 = vmul.f32 %v14164_v34, %v5586_v56  ;;  %9551 = vrcp.f32 %v5489_v41 }
0x144f   : >> { %5667 = vrot.lane.b32.xlu0 %v5628_v0, %s10060_s18  ;;  %v14172_v33 = vpop.eup %9543 }
0x1450   : >> { %5665 = vrot.lane.b32.xlu1 %v5627_v63, %s10060_s18 }
0x1454   : >> { %v14178_v56 = vpop.eup %9545 }
0x1455   : >> { %v14180_v63 = vpop.eup %9547 }
0x1456   : >> { %v5592_v48 = vpop.permute.xlu0 %5591 }
0x1457   : >> { %v5630_v12 = vmul.f32 %v14170_v62, %v5592_v48  ;;  %v5590_v0 = vpop.permute.xlu1 %5589  ;;  %v14186_v50 = vpop.eup %9549 }
0x1458   : >> { %v5629_v59 = vmul.f32 %v14172_v33, %v5590_v0  ;;  %16249 = vst [vmem:[#allocation46_spill] sm:$0xff] %v14186_v50  ;;  %v14188_v16 = vpop.eup %9551  ;;  %v7574_v0 = vmul.f32 -1.442695, %v14115_v9 }
0x1459   : >> { %5671 = vrot.lane.b32.xlu0 %v5630_v12, %s10060_s18 }
0x145a   : >> { %5669 = vrot.lane.b32.xlu1 %v5629_v59, %s10060_s18  ;;  %v7573_v59 = vmul.f32 -1.442695, %v14118_v39  ;;  %9553 = vpow2.f32 %v7574_v0  ;;  %v14223_v39 = vsel %vm5137_vm7, %v13672_v25, %v13660_v3  ;;  %v14242_v3 = vsel %vm5139_vm9, %v13694_v35, %v13678_v32 }
0x145b   : >> { %v5596_v45 = vpop.permute.xlu0 %5595  ;;  %v5542_v0 = vmul.f32 %v14134_v30, %v14223_v39  ;;  %v14250_v25 = vsel %vm5138_vm10, %v13702_v38, %v13686_v2  ;;  %vm16284_vm7 = vcmp.eq.s32.totalorder %v13872_v55, 1 }
0x145c   : >> { %v5632_v14 = vmul.f32 %v14178_v56, %v5596_v45  ;;  %v5594_v43 = vpop.permute.xlu1 %5593  ;;  %9555 = vpow2.f32 %v7573_v59  ;;  %v5543_v32 = vmul.f32 %v14146_v54, %v14250_v25 }
0x145d   : >> { %v5631_v26 = vmul.f32 %v14180_v63, %v5594_v43 }
0x145e   : >> { %5675 = vrot.lane.b32.xlu0 %v5632_v14, %s10060_s18 }
0x145f   : >> { %5673 = vrot.lane.b32.xlu1 %v5631_v26, %s10060_s18  ;;  %v5600_v31 = vpop.permute.xlu0 %5599 }
0x1460   : >> { %v5634_v41 = vmul.f32 %v14186_v50, %v5600_v31  ;;  %v5598_v48 = vpop.permute.xlu1 %5597 }
0x1461   : >> { %v5633_v12 = vmul.f32 %v14188_v16, %v5598_v48 }
0x1462   : >> { %5679 = vrot.lane.b32.xlu0 %v5634_v41, %s10060_s18 }
0x1463   : >> { %5677 = vrot.lane.b32.xlu1 %v5633_v12, %s10060_s18 }
0x1464   : >> { %v9554_v45 = vpop.eup %9553 }
0x1465   : >> { %v5492_v43 = vadd.f32 1.0, %v9554_v45 }
0x1466   : >> { %v9556_v14 = vpop.eup %9555 }
0x1467   : >> { %v5491_v26 = vadd.f32 1.0, %v9556_v14  ;;  %9557 = vrcp.f32 %v5492_v43  ;;  %v16250_v43 = vld [vmem:[#allocation51_spill] sm:$0xff] }
0x1469   : >> { %9559 = vrcp.f32 %v5491_v26  ;;  %v16251_v26 = vld [vmem:[#allocation13_spill] sm:$0xff] }
0x146a   : >> { %v14264_v2 = vsel %vm5141_vm11, %v16251_v26, %v16250_v43 }
0x146b   : >> { %16252 = vst [vmem:[#allocation18_spill] sm:$0xff] %v14264_v2 }
0x1471   : >> { %v14196_v31 = vpop.eup %9557 }
0x1473   : >> { %v14198_v48 = vpop.eup %9559 }
0x148c   : >> { %v5604_v50 = vpop.permute.xlu0 %5603 }
0x148d   : >> { %v5636_v41 = vmul.f32 %v14196_v31, %v5604_v50  ;;  %v5602_v12 = vpop.permute.xlu1 %5601  ;;  %v14229_v50 = vsel %vm5136_vm8, %v13680_v29, %v13666_v5  ;;  %v5544_v29 = vmul.f32 %v14143_v47, %v14242_v3 }
0x148e   : >> { %v5635_v9 = vmul.f32 %v14198_v48, %v5602_v12  ;;  %v5541_v45 = vmul.f32 %v14137_v15, %v14229_v50 }
0x148f   : >> { %5683 = vrot.lane.b32.xlu0 %v5636_v41, %s10060_s18  ;;  %v16254_v41 = vld [vmem:[#allocation52_spill] sm:$0xff] }
0x1490   : >> { %5681 = vrot.lane.b32.xlu1 %v5635_v9, %s10060_s18  ;;  %v14272_v12 = vsel %vm5140_vm12, %v16254_v41, %v16253_v52  ;;  %v5546_v9 = vmul.f32 %v14150_v42, %v14264_v2  ;;  %v16307_v2 = vld [vmem:[#allocation29_spill] sm:$0xff] }
0x1491   : >> { %16255 = vst [vmem:[#allocation45_spill] sm:$0xff] %v14272_v12  ;;  %v5545_v11 = vmul.f32 %v14154_v21, %v14272_v12 }
0x1493   : >> { %5817 = vperm.xlu0 %8694, %v15814_v19  }
0x1494   : >> { %5814 = vperm.xlu1 %8693, %v15815_v27  }
0x1497   : >> { %5826 = vperm.xlu0 %8694, %v15897_v44  }
0x1498   : >> { %5820 = vperm.xlu1 %8693, %v15898_v22  }
0x149b   : >> { %5832 = vperm.xlu0 %8694, %v15899_v18  }
0x149c   : >> { %5823 = vperm.xlu1 %8693, %v15900_v13  }
0x149f   : >> { %5838 = vperm.xlu0 %8694, %v15824_v46  }
0x14a0   : >> { %5829 = vperm.xlu1 %8693, %v15901_v24  }
0x14a3   : >> { %5844 = vperm.xlu0 %8694, %v15984_v23  }
0x14a4   : >> { %5835 = vperm.xlu1 %8693, %v15902_v60  }
0x14a7   : >> { %5850 = vperm.xlu0 %8694, %v15986_v40  }
0x14a8   : >> { %5841 = vperm.xlu1 %8693, %v15983_v7  }
0x14ab   : >> { %5856 = vperm.xlu0 %8694, %v16070_v37  }
0x14ac   : >> { %5847 = vperm.xlu1 %8693, %v16071_v4  }
0x14b0   : >> { %5853 = vperm.xlu1 %8693, %v16072_v17  }
0x14b4   : >> { %5859 = vperm.xlu1 %8693, %v16073_v57  }
0x14b5   : >> { %v5656_v59 = vpop.permute.xlu0 %5655 }
0x14b6   : >> { %v14236_v14 = vadd.f32 %v5656_v59, %v5542_v0  ;;  %v5654_v49 = vpop.permute.xlu1 %5653 }
0x14b7   : >> { %v14244_v5 = vadd.f32 %v5654_v49, %v5541_v45  ;;  %v16257_v49 = vld [vmem:[#allocation10_spill] sm:$0xff] }
0x14b8   : >> { %9561 = vtanh.f32 %v14236_v14 }
0x14b9   : >> { %9563 = vtanh.f32 %v14244_v5  ;;  %v5660_v28 = vpop.permute.xlu0 %5659 }
0x14ba   : >> { %v14258_v35 = vadd.f32 %v5660_v28, %v5544_v29  ;;  %v5658_v51 = vpop.permute.xlu1 %5657  ;;  %v16258_v29 = vld [vmem:[#allocation25_spill] sm:$0xff] }
0x14bb   : >> { %v14266_v38 = vadd.f32 %v5658_v51, %v5543_v32  ;;  %v14286_v53 = vsel %vm5143_vm13, %v16258_v29, %v16257_v49  ;;  %v16261_v32 = vld [vmem:[#allocation24_spill] sm:$0xff]  ;;  %v16262_v51 = vld [vmem:[#allocation11_spill] sm:$0xff] }
0x14bc   : >> { %9565 = vtanh.f32 %v14258_v35  ;;  %16259 = vst [vmem:[#allocation17_spill] sm:$0xff] %v14286_v53  ;;  %v14294_v43 = vsel %vm5142_vm14, %v16262_v51, %v16261_v32  ;;  %v5548_v26 = vmul.f32 %v14161_v58, %v14286_v53  ;;  %v16266_v51 = vld [vmem:[#allocation58_spill] sm:$0xff] }
0x14bd   : >> { %9567 = vtanh.f32 %v14266_v38  ;;  %v5664_v0 = vpop.permute.xlu0 %5663  ;;  %16263 = vst [vmem:[#allocation48_spill] sm:$0xff] %v14294_v43  ;;  %v5547_v8 = vmul.f32 %v14164_v34, %v14294_v43 }
0x14be   : >> { %v14280_v59 = vadd.f32 %v5664_v0, %v5546_v9  ;;  %v5662_v45 = vpop.permute.xlu1 %5661 }
0x14bf   : >> { %v14288_v28 = vadd.f32 %v5662_v45, %v5545_v11 }
0x14c0   : >> { %16256 = vst [vmem:[#allocation14_spill] sm:$0xff] %v14280_v59  ;;  %9569 = vtanh.f32 %v14280_v59 }
0x14c1   : >> { %16260 = vst [vmem:[#allocation47_spill] sm:$0xff] %v14288_v28  ;;  %9571 = vtanh.f32 %v14288_v28  ;;  %v5668_v52 = vpop.permute.xlu0 %5667  ;;  %v16305_v28 = vld [vmem:[#allocation15_spill] sm:$0xff] }
0x14c2   : >> { %v9562_v41 = vpop.eup %9561  ;;  %v14302_v9 = vadd.f32 %v5668_v52, %v5548_v26  ;;  %v5666_v0 = vpop.permute.xlu1 %5665  ;;  %v16267_v26 = vld [vmem:[#allocation60_spill] sm:$0xff] }
0x14c3   : >> { %v9564_v11 = vpop.eup %9563  ;;  %v14304_v45 = vadd.f32 %v5666_v0, %v5547_v8  ;;  %5751 = vrot.lane.b32.xlu1 %v9562_v41, %s10060_s18  ;;  %v14317_v52 = vsel %vm5145_vm15, %v16267_v26, %v16266_v51  ;;  %v16269_v8 = vld [vmem:[#allocation59_spill] sm:$0xff]  ;;  %v16270_v41 = vld [vmem:[#allocation61_spill] sm:$0xff]  ;;  %v16275_v26 = vld [vmem:[#allocation38_spill] sm:$0xff] }
0x14c4   : >> { %16264 = vst [vmem:[#allocation49_spill] sm:$0xff] %v14302_v9  ;;  %9573 = vtanh.f32 %v14302_v9  ;;  %5749 = vrot.lane.b32.xlu0 %v9564_v11, %s10060_s18  ;;  %16268 = vst [vmem:[#allocation51_spill] sm:$0xff] %v14317_v52  ;;  %v14324_v0 = vsel %vm5144_vm1, %v16270_v41, %v16269_v8  ;;  %v5550_v11 = vmul.f32 %v14170_v62, %v14317_v52  ;;  %v16277_v41 = vld [vmem:[#allocation53_spill] sm:$0xff] }
0x14c5   : >> { %16265 = vst [vmem:[#allocation50_spill] sm:$0xff] %v14304_v45  ;;  %9575 = vtanh.f32 %v14304_v45  ;;  %16271 = vst [vmem:[#allocation13_spill] sm:$0xff] %v14324_v0  ;;  %v14341_v8 = vsel %vm5147_vm2, %v16275_v26, %v16274_v61  ;;  %v16282_v26 = vld [vmem:[#allocation23_spill] sm:$0xff] }
0x14c6   : >> { %v9566_v10 = vpop.eup %9565  ;;  %16276 = vst [vmem:[#allocation10_spill] sm:$0xff] %v14341_v8 }
0x14c7   : >> { %v9568_v49 = vpop.eup %9567  ;;  %5755 = vrot.lane.b32.xlu1 %v9566_v10, %s10060_s18 }
0x14c8   : >> { %5753 = vrot.lane.b32.xlu0 %v9568_v49, %s10060_s18 }
0x14ca   : >> { %v9570_v29 = vpop.eup %9569 }
0x14cb   : >> { %v9572_v32 = vpop.eup %9571  ;;  %5759 = vrot.lane.b32.xlu1 %v9570_v29, %s10060_s18  ;;  %v5672_v49 = vpop.permute.xlu0 %5671  ;;  %v5549_v29 = vmul.f32 %v14172_v33, %v14324_v0 }
0x14cc   : >> { %5757 = vrot.lane.b32.xlu0 %v9572_v32, %s10060_s18  ;;  %v14330_v6 = vadd.f32 %v5672_v49, %v5550_v11  ;;  %v5670_v51 = vpop.permute.xlu1 %5669  ;;  %v16278_v11 = vld [vmem:[#allocation40_spill] sm:$0xff] }
0x14cd   : >> { %v14333_v32 = vadd.f32 %v5670_v51, %v5549_v29  ;;  %v14348_v49 = vsel %vm5146_vm3, %v16278_v11, %v16277_v41  ;;  %v16287_v41 = vld [vmem:[#allocation36_spill] sm:$0xff] }
0x14ce   : >> { %v9574_v10 = vpop.eup %9573  ;;  %16272 = vst [vmem:[#allocation12_spill] sm:$0xff] %v14330_v6  ;;  %9577 = vtanh.f32 %v14330_v6  ;;  %16279 = vst [vmem:[#allocation25_spill] sm:$0xff] %v14348_v49  ;;  %v5551_v29 = vmul.f32 %v14180_v63, %v14348_v49  ;;  %v14369_v11 = vsel %vm5148_vm5, %v16287_v41, %v16286_v20 }
0x14cf   : >> { %v9576_v45 = vpop.eup %9575  ;;  %5763 = vrot.lane.b32.xlu1 %v9574_v10, %s10060_s18  ;;  %16273 = vst [vmem:[#allocation52_spill] sm:$0xff] %v14333_v32  ;;  %9579 = vtanh.f32 %v14333_v32  ;;  %v5552_v10 = vmul.f32 %v14178_v56, %v14341_v8  ;;  %v16283_v32 = vld [vmem:[#allocation54_spill] sm:$0xff]  ;;  %16288 = vst [vmem:[#allocation60_spill] sm:$0xff] %v14369_v11 }
0x14d0   : >> { %5761 = vrot.lane.b32.xlu0 %v9576_v45, %s10060_s18  ;;  %v5676_v45 = vpop.permute.xlu0 %5675  ;;  %v14362_v0 = vsel %vm16284_vm7, %v16283_v32, %v16282_v26 }
0x14d1   : >> { %v14354_v51 = vadd.f32 %v5676_v45, %v5552_v10  ;;  %v5674_v36 = vpop.permute.xlu1 %5673  ;;  %16285 = vst [vmem:[#allocation58_spill] sm:$0xff] %v14362_v0  ;;  %v16289_v10 = vld [vmem:[#allocation46_spill] sm:$0xff] }
0x14d2   : >> { %v14356_v61 = vadd.f32 %v5674_v36, %v5551_v29  ;;  %v5554_v45 = vmul.f32 %v16289_v10, %v14362_v0  ;;  %v5553_v36 = vmul.f32 %v14188_v16, %v14369_v11 }
0x14d3   : >> { %16280 = vst [vmem:[#allocation24_spill] sm:$0xff] %v14354_v51  ;;  %9581 = vtanh.f32 %v14354_v51 }
0x14d4   : >> { %16281 = vst [vmem:[#allocation11_spill] sm:$0xff] %v14356_v61  ;;  %9583 = vtanh.f32 %v14356_v61  ;;  %v5680_v29 = vpop.permute.xlu0 %5679 }
0x14d5   : >> { %v14376_v55 = vadd.f32 %v5680_v29, %v5554_v45  ;;  %v5678_v32 = vpop.permute.xlu1 %5677  ;;  %v16292_v29 = vld [vmem:[#allocation37_spill] sm:$0xff] }
0x14d6   : >> { %v14378_v49 = vadd.f32 %v5678_v32, %v5553_v36  ;;  %v16293_v36 = vld [vmem:[#allocation39_spill] sm:$0xff] }
0x14d7   : >> { %16290 = vst [vmem:[#allocation59_spill] sm:$0xff] %v14376_v55  ;;  %9585 = vtanh.f32 %v14376_v55 }
0x14d8   : >> { %v9578_v26 = vpop.eup %9577  ;;  %16291 = vst [vmem:[#allocation61_spill] sm:$0xff] %v14378_v49  ;;  %9587 = vtanh.f32 %v14378_v49  ;;  %v16296_v49 = vld [vmem:[#allocation55_spill] sm:$0xff] }
0x14d9   : >> { %v9580_v51 = vpop.eup %9579  ;;  %5767 = vrot.lane.b32.xlu1 %v9578_v26, %s10060_s18  ;;  %v14392_v26 = vsel %vm5151_vm6, %v16293_v36, %v16292_v29 }
0x14da   : >> { %5765 = vrot.lane.b32.xlu0 %v9580_v51, %s10060_s18  ;;  %16295 = vst [vmem:[#allocation41_spill] sm:$0xff] %v14392_v26  ;;  %v16297_v51 = vld [vmem:[#allocation56_spill] sm:$0xff] }
0x14db   : >> { %v14398_v55 = vsel %vm5150_vm4, %v16297_v51, %v16296_v49 }
0x14dc   : >> { %16299 = vst [vmem:[#allocation38_spill] sm:$0xff] %v14398_v55 }
0x14dd   : >> { %v9582_v1 = vpop.eup %9581 }
0x14de   : >> { %v9584_v20 = vpop.eup %9583  ;;  %5771 = vrot.lane.b32.xlu1 %v9582_v1, %s10060_s18  ;;  %v5556_v1 = vmul.f32 %v14196_v31, %v14392_v26 }
0x14df   : >> { %5769 = vrot.lane.b32.xlu0 %v9584_v20, %s10060_s18 }
0x14e1   : >> { %v9586_v41 = vpop.eup %9585 }
0x14e2   : >> { %v9588_v45 = vpop.eup %9587  ;;  %5775 = vrot.lane.b32.xlu1 %v9586_v41, %s10060_s18  ;;  %v5555_v41 = vmul.f32 %v14198_v48, %v14398_v55 }
0x14e3   : >> { %5773 = vrot.lane.b32.xlu0 %v9588_v45, %s10060_s18 }
0x1501   : >> { %v5684_v20 = vpop.permute.xlu0 %5683 }
0x1502   : >> { %v14404_v45 = vadd.f32 %v5684_v20, %v5556_v1  ;;  %v5682_v0 = vpop.permute.xlu1 %5681 }
0x1503   : >> { %v14406_v61 = vadd.f32 %v5682_v0, %v5555_v41 }
0x1504   : >> { %16300 = vst [vmem:[#allocation53_spill] sm:$0xff] %v14404_v45  ;;  %9589 = vtanh.f32 %v14404_v45 }
0x1505   : >> { %16301 = vst [vmem:[#allocation40_spill] sm:$0xff] %v14406_v61  ;;  %9591 = vtanh.f32 %v14406_v61 }
0x150e   : >> { %v9590_v29 = vpop.eup %9589 }
0x150f   : >> { %v9592_v11 = vpop.eup %9591  ;;  %5779 = vrot.lane.b32.xlu1 %v9590_v29, %s10060_s18 }
0x1510   : >> { %5777 = vrot.lane.b32.xlu0 %v9592_v11, %s10060_s18 }
0x1512   : >> { %v14412_v49 = vpop.permute.xlu0 %5817 }
0x1513   : >> { %v14414_v36 = vpop.permute.xlu1 %5814  ;;  %vm5862_vm9 = vcmp.eq.s32.totalorder %v14412_v49, 1 }
0x1514   : >> { %vm5861_vm8 = vcmp.eq.s32.totalorder %v14414_v36, 1 }
0x1516   : >> { %v14416_v32 = vpop.permute.xlu0 %5826 }
0x1517   : >> { %v14418_v51 = vpop.permute.xlu1 %5820  ;;  %vm5865_vm12 = vcmp.eq.s32.totalorder %v14416_v32, 1 }
0x1518   : >> { %vm5863_vm10 = vcmp.eq.s32.totalorder %v14418_v51, 1 }
0x151a   : >> { %v14420_v0 = vpop.permute.xlu0 %5832 }
0x151b   : >> { %v14422_v1 = vpop.permute.xlu1 %5823  ;;  %vm5867_vm14 = vcmp.eq.s32.totalorder %v14420_v0, 1 }
0x151c   : >> { %vm5864_vm11 = vcmp.eq.s32.totalorder %v14422_v1, 1  ;;  %v16342_v1 = vld [vmem:[#allocation17_spill] sm:$0xff] }
0x151e   : >> { %v14426_v41 = vpop.permute.xlu0 %5838 }
0x151f   : >> { %v14424_v20 = vpop.permute.xlu1 %5829  ;;  %vm5869_vm2 = vcmp.eq.s32.totalorder %v14426_v41, 1 }
0x1520   : >> { %vm5866_vm13 = vcmp.eq.s32.totalorder %v14424_v20, 1  ;;  %v16343_v20 = vld [vmem:[#allocation49_spill] sm:$0xff] }
0x1522   : >> { %v14430_v29 = vpop.permute.xlu0 %5844 }
0x1523   : >> { %v14428_v61 = vpop.permute.xlu1 %5835  ;;  %vm5871_vm4 = vcmp.eq.s32.totalorder %v14430_v29, 1 }
0x1524   : >> { %vm5868_vm15 = vcmp.eq.s32.totalorder %v14428_v61, 1 }
0x1526   : >> { %v14436_v45 = vpop.permute.xlu0 %5850 }
0x1527   : >> { %v14432_v11 = vpop.permute.xlu1 %5841  ;;  %16302 = vst [vmem:[#allocation23_spill] sm:$0xff] %v14436_v45  ;;  %vm5873_vm6 = vcmp.eq.s32.totalorder %v14436_v45, 1 }
0x1528   : >> { %vm5870_vm1 = vcmp.eq.s32.totalorder %v14432_v11, 1 }
0x152a   : >> { %v14440_v8 = vpop.permute.xlu0 %5856 }
0x152b   : >> { %v14434_v55 = vpop.permute.xlu1 %5847  ;;  %16303 = vst [vmem:[#allocation54_spill] sm:$0xff] %v14440_v8 }
0x152c   : >> { %vm5872_vm3 = vcmp.eq.s32.totalorder %v14434_v55, 1 }
0x152f   : >> { %v14438_v26 = vpop.permute.xlu1 %5853 }
0x1530   : >> { %vm15730_vm5 = vcmp.eq.s32.totalorder %v14438_v26, 1 }
0x1533   : >> { %v14442_v6 = vpop.permute.xlu1 %5859 }
0x1534   : >> { %16304 = vst [vmem:[#allocation42_spill] sm:$0xff] %v14442_v6  ;;  %vm5876_vm7 = vcmp.eq.s32.totalorder %v14442_v6, 1 }
0x1536   : >> { %v5750_v52 = vpop.permute.xlu0 %5749 }
0x1537   : >> { %v5797_v43 = vmul.f32 %v14137_v15, %v5750_v52  ;;  %v5752_v9 = vpop.permute.xlu1 %5751 }
0x1538   : >> { %v5798_v53 = vmul.f32 %v14134_v30, %v5752_v9 }
0x1539   : >> { %v14451_v12 = vsel %vm5861_vm8, %v5797_v43, %v16305_v28  ;;  %v16309_v43 = vld [vmem:[#allocation34_spill] sm:$0xff] }
0x153a   : >> { %16306 = vst [vmem:[#allocation36_spill] sm:$0xff] %v14451_v12  ;;  %v5754_v59 = vpop.permute.xlu0 %5753  ;;  %5925 = vrot.lane.b32.xlu0 %v14451_v12, %s10059_s22  ;;  %v14458_v15 = vsel %vm5862_vm9, %v5798_v53, %v16307_v2 }
0x153b   : >> { %16308 = vst [vmem:[#allocation46_spill] sm:$0xff] %v14458_v15  ;;  %v5799_v52 = vmul.f32 %v14146_v54, %v5754_v59  ;;  %5927 = vrot.lane.b32.xlu1 %v14458_v15, %s10059_s22  ;;  %v5756_v30 = vpop.permute.xlu1 %5755  ;;  %v16311_v54 = vld [vmem:[#allocation32_spill] sm:$0xff] }
0x153c   : >> { %v5800_v28 = vmul.f32 %v14143_v47, %v5756_v30 }
0x153d   : >> { %v14469_v9 = vsel %vm5863_vm10, %v5799_v52, %v16309_v43  ;;  %v16313_v52 = vld [vmem:[#allocation30_spill] sm:$0xff] }
0x153e   : >> { %16310 = vst [vmem:[#allocation37_spill] sm:$0xff] %v14469_v9  ;;  %v5758_v12 = vpop.permute.xlu0 %5757  ;;  %5929 = vrot.lane.b32.xlu0 %v14469_v9, %s10059_s22  ;;  %v14476_v2 = vsel %vm5864_vm11, %v5800_v28, %v16311_v54 }
0x153f   : >> { %16312 = vst [vmem:[#allocation39_spill] sm:$0xff] %v14476_v2  ;;  %v5801_v59 = vmul.f32 %v14154_v21, %v5758_v12  ;;  %5931 = vrot.lane.b32.xlu1 %v14476_v2, %s10059_s22  ;;  %v5760_v47 = vpop.permute.xlu1 %5759  ;;  %v16315_v21 = vld [vmem:[#allocation35_spill] sm:$0xff] }
0x1540   : >> { %v5802_v53 = vmul.f32 %v14150_v42, %v5760_v47 }
0x1541   : >> { %v14487_v30 = vsel %vm5865_vm12, %v5801_v59, %v16313_v52  ;;  %v16317_v59 = vld [vmem:[#allocation27_spill] sm:$0xff] }
0x1542   : >> { %16314 = vst [vmem:[#allocation33_spill] sm:$0xff] %v14487_v30  ;;  %v5762_v43 = vpop.permute.xlu0 %5761  ;;  %5933 = vrot.lane.b32.xlu0 %v14487_v30, %s10059_s22  ;;  %v14494_v12 = vsel %vm5866_vm13, %v5802_v53, %v16315_v21  ;;  %v16319_v53 = vld [vmem:[#allocation28_spill] sm:$0xff] }
0x1543   : >> { %16316 = vst [vmem:[#allocation55_spill] sm:$0xff] %v14494_v12  ;;  %v5803_v28 = vmul.f32 %v14164_v34, %v5762_v43  ;;  %5935 = vrot.lane.b32.xlu1 %v14494_v12, %s10059_s22  ;;  %v5764_v42 = vpop.permute.xlu1 %5763 }
0x1544   : >> { %v5804_v54 = vmul.f32 %v14161_v58, %v5764_v42 }
0x1545   : >> { %v14505_v47 = vsel %vm5867_vm14, %v5803_v28, %v16317_v59  ;;  %v16321_v28 = vld [vmem:[#allocation22_spill] sm:$0xff] }
0x1546   : >> { %16318 = vst [vmem:[#allocation56_spill] sm:$0xff] %v14505_v47  ;;  %5937 = vrot.lane.b32.xlu0 %v14505_v47, %s10059_s22  ;;  %v14512_v34 = vsel %vm5868_vm15, %v5804_v54, %v16319_v53  ;;  %v16323_v54 = vld [vmem:[#allocation44_spill] sm:$0xff] }
0x1547   : >> { %16320 = vst [vmem:[#allocation31_spill] sm:$0xff] %v14512_v34  ;;  %5939 = vrot.lane.b32.xlu1 %v14512_v34, %s10059_s22 }
0x154b   : >> { %v5768_v52 = vpop.permute.xlu1 %5767 }
0x154c   : >> { %v5766_v58 = vpop.permute.xlu0 %5765  ;;  %v5806_v43 = vmul.f32 %v14170_v62, %v5768_v52 }
0x154d   : >> { %v5805_v21 = vmul.f32 %v14172_v33, %v5766_v58  ;;  %v16325_v58 = vld [vmem:[#allocation43_spill] sm:$0xff] }
0x154e   : >> { %v14523_v42 = vsel %vm5870_vm1, %v5806_v43, %v16321_v28 }
0x154f   : >> { %16322 = vst [vmem:[#allocation15_spill] sm:$0xff] %v14523_v42  ;;  %v14528_v59 = vsel %vm5869_vm2, %v5805_v21, %v16323_v54  ;;  %5943 = vrot.lane.b32.xlu1 %v14523_v42, %s10059_s22  ;;  %v16327_v21 = vld [vmem:[#allocation57_spill] sm:$0xff] }
0x1550   : >> { %16324 = vst [vmem:[#allocation29_spill] sm:$0xff] %v14528_v59  ;;  %5941 = vrot.lane.b32.xlu0 %v14528_v59, %s10059_s22  ;;  %v5772_v62 = vpop.permute.xlu1 %5771 }
0x1551   : >> { %v5770_v33 = vpop.permute.xlu0 %5769  ;;  %v5808_v53 = vmul.f32 %v14178_v56, %v5772_v62 }
0x1552   : >> { %v5807_v52 = vmul.f32 %v14180_v63, %v5770_v33  ;;  %v16329_v33 = vld [vmem:[#allocation21_spill] sm:$0xff] }
0x1553   : >> { %v14541_v43 = vsel %vm5872_vm3, %v5808_v53, %v16325_v58 }
0x1554   : >> { %16326 = vst [vmem:[#allocation34_spill] sm:$0xff] %v14541_v43  ;;  %v14546_v28 = vsel %vm5871_vm4, %v5807_v52, %v16327_v21  ;;  %5947 = vrot.lane.b32.xlu1 %v14541_v43, %s10059_s22  ;;  %v5776_v56 = vpop.permute.xlu1 %5775  ;;  %v16331_v52 = vld [vmem:[#allocation20_spill] sm:$0xff] }
0x1555   : >> { %16328 = vst [vmem:[#allocation32_spill] sm:$0xff] %v14546_v28  ;;  %5945 = vrot.lane.b32.xlu0 %v14546_v28, %s10059_s22  ;;  %v5774_v63 = vpop.permute.xlu0 %5773  ;;  %v5810_v54 = vmul.f32 %v16289_v10, %v5776_v56 }
0x1556   : >> { %v5809_v62 = vmul.f32 %v14188_v16, %v5774_v63  ;;  %v16333_v63 = vld [vmem:[#allocation16_spill] sm:$0xff] }
0x1557   : >> { %v14559_v53 = vsel %vm15730_vm5, %v5810_v54, %v16329_v33  ;;  %vm5875_vm5 = vcmp.eq.s32.totalorder %v14440_v8, 1 }
0x1558   : >> { %16330 = vst [vmem:[#allocation30_spill] sm:$0xff] %v14559_v53  ;;  %v14564_v58 = vsel %vm5873_vm6, %v5809_v62, %v16331_v52  ;;  %5951 = vrot.lane.b32.xlu1 %v14559_v53, %s10059_s22  ;;  %v16335_v62 = vld [vmem:[#allocation19_spill] sm:$0xff] }
0x1559   : >> { %16332 = vst [vmem:[#allocation35_spill] sm:$0xff] %v14564_v58  ;;  %5949 = vrot.lane.b32.xlu0 %v14564_v58, %s10059_s22 }
0x1581   : >> { %v5780_v10 = vpop.permute.xlu1 %5779 }
0x1582   : >> { %v5812_v16 = vmul.f32 %v14196_v31, %v5780_v10  ;;  %v5778_v21 = vpop.permute.xlu0 %5777 }
0x1583   : >> { %v5811_v56 = vmul.f32 %v14198_v48, %v5778_v21 }
0x1584   : >> { %v14577_v54 = vsel %vm5876_vm7, %v5812_v16, %v16333_v63 }
0x1585   : >> { %16334 = vst [vmem:[#allocation27_spill] sm:$0xff] %v14577_v54  ;;  %5955 = vrot.lane.b32.xlu1 %v14577_v54, %s10059_s22  ;;  %v14584_v33 = vsel %vm5875_vm5, %v5811_v56, %v16335_v62 }
0x1586   : >> { %16336 = vst [vmem:[#allocation28_spill] sm:$0xff] %v14584_v33  ;;  %5953 = vrot.lane.b32.xlu0 %v14584_v33, %s10059_s22  ;;  %s7607_s22 = sshll.u32 (%p15115_p7), %s10134_s9, 7 }
0x1587   : > { %s15240_s9 = scalar_lea.vmem (%p15115_p7), %s15405_s0, %s7607_s22 }
0x15ac   : >> { %v5926_v31 = vpop.permute.xlu0 %5925 }
0x15ad   : >> { %8167 = vmatprep.mubr.msk.f32.mxu1 %vm15776_vm0, %v5926_v31  ;;  %v5928_v48 = vpop.permute.xlu1 %5927 }
0x15ae   : >> { %8168 = vmatmul.mubr.msk.f32.vlgmr.msra.gmra.mrb[48].mxu1 %vm15776_vm0, %v5928_v48 }
0x15b0   : >> { %v5930_v52 = vpop.permute.xlu0 %5929 }
0x15b1   : >> { %8170 = vmatprep.mubr.msk.f32.mxu1 %vm15776_vm0, %v5930_v52  ;;  %v5932_v10 = vpop.permute.xlu1 %5931 }
0x15b2   : >> { %8171 = vmatmul.mubr.msk.f32.gmra.mrb[50].mxu1 %vm15776_vm0, %v5932_v10 }
0x15b4   : >> { %v5934_v16 = vpop.permute.xlu0 %5933 }
0x15b5   : >> { %8173 = vmatprep.mubr.msk.f32.mxu1 %vm15776_vm0, %v5934_v16  ;;  %v5936_v21 = vpop.permute.xlu1 %5935 }
0x15b6   : >> { %8174 = vmatmul.mubr.msk.f32.gmra.mrb[52].mxu1 %vm15776_vm0, %v5936_v21 }
0x15b8   : >> { %v5938_v56 = vpop.permute.xlu0 %5937 }
0x15b9   : >> { %8176 = vmatprep.mubr.msk.f32.mxu1 %vm15776_vm0, %v5938_v56  ;;  %v5940_v63 = vpop.permute.xlu1 %5939 }
0x15ba   : >> { %8177 = vmatmul.mubr.msk.f32.gmra.mrb[54].mxu1 %vm15776_vm0, %v5940_v63  ;;  %v16337_v63 = vld [vmem:[#allocation26_spill] sm:$0xff] }
0x15c1   : >> { %v5944_v62 = vpop.permute.xlu1 %5943 }
0x15c2   : >> { %v5942_v31 = vpop.permute.xlu0 %5941 }
0x15c3   : >> { %8179 = vmatprep.mubr.msk.f32.mxu1 %vm15776_vm0, %v5942_v31  ;;  %v9724_v31 = vld [vmem:[%s10650_s17] sm:$0xff] }
0x15c4   : >> { %8180 = vmatmul.mubr.msk.f32.gmra.mrb[56].mxu1 %vm15776_vm0, %v5944_v62  ;;  %v6136_v62 = vsub.s32 7, %v16337_v63 }
0x15c6   : >> { %v5948_v48 = vpop.permute.xlu1 %5947  ;;  %v14606_v33 = vrot.slane %v9724_v31, %v6136_v62 }
0x15c7   : >> { %v5946_v52 = vpop.permute.xlu0 %5945 }
0x15c8   : >> { %8182 = vmatprep.mubr.msk.f32.mxu1 %vm15776_vm0, %v5946_v52 }
0x15c9   : >> { %8183 = vmatmul.mubr.msk.f32.gmra.mrb[58].mxu1 %vm15776_vm0, %v5948_v48 }
0x15ca   : >> { %v5952_v10 = vpop.permute.xlu1 %5951 }
0x15cb   : >> { %v5950_v16 = vpop.permute.xlu0 %5949 }
0x15cc   : >> { %8185 = vmatprep.mubr.msk.f32.mxu1 %vm15776_vm0, %v5950_v16 }
0x15cd   : >> { %8186 = vmatmul.mubr.msk.f32.gmra.mrb[60].mxu1 %vm15776_vm0, %v5952_v10 }
0x15f7   : >> { %v5956_v56 = vpop.permute.xlu1 %5955 }
0x15f8   : >> { %v5954_v21 = vpop.permute.xlu0 %5953 }
0x15f9   : >> { %8188 = vmatprep.mubr.msk.f32.mxu1 %vm15776_vm0, %v5954_v21 }
0x15fa   : >> { %8189 = vmatmul.mubr.msk.f32.gmra.mrb[62].mxu1 %vm15776_vm0, %v5956_v56 }
0x1681   : >> { %v8169_v52 = vpop.f32.mrb[48].mxu1 }
0x1682   : >> { %v14609_v48 = vadd.f32 %v8169_v52, %v14606_v33  ;;  %v6055_v54 = vpop.f32.mrb[49].mxu1 }
0x1683   : >> { %v14612_v16 = vadd.f32 %v14606_v33, %v6055_v54 }
0x1684   : >> { %9593 = vtanh.f32 %v14609_v48 }
0x1685   : >> { %9595 = vtanh.f32 %v14612_v16  ;;  %v8172_v10 = vpop.f32.mrb[50].mxu1 }
0x1686   : >> { %v14617_v21 = vadd.f32 %v8172_v10, %v14606_v33  ;;  %v6065_v56 = vpop.f32.mrb[51].mxu1 }
0x1687   : >> { %v14620_v63 = vadd.f32 %v14606_v33, %v6065_v56 }
0x1688   : >> { %9597 = vtanh.f32 %v14617_v21 }
0x1689   : >> { %9599 = vtanh.f32 %v14620_v63  ;;  %v8175_v62 = vpop.f32.mrb[52].mxu1 }
0x168a   : >> { %v14625_v54 = vadd.f32 %v8175_v62, %v14606_v33  ;;  %v6075_v31 = vpop.f32.mrb[53].mxu1 }
0x168b   : >> { %v14628_v52 = vadd.f32 %v14606_v33, %v6075_v31 }
0x168c   : >> { %9601 = vtanh.f32 %v14625_v54 }
0x168d   : >> { %9603 = vtanh.f32 %v14628_v52  ;;  %v8178_v10 = vpop.f32.mrb[54].mxu1 }
0x168e   : >> { %v9594_v53 = vpop.eup %9593  ;;  %v14633_v56 = vadd.f32 %v8178_v10, %v14606_v33  ;;  %v6085_v58 = vpop.f32.mrb[55].mxu1 }
0x168f   : >> { %v9596_v43 = vpop.eup %9595  ;;  %v14636_v28 = vadd.f32 %v14606_v33, %v6085_v58  ;;  %6300 = vrot.lane.b32.xlu1 %v9594_v53, %s10060_s18 }
0x1690   : >> { %9605 = vtanh.f32 %v14633_v56  ;;  %6298 = vrot.lane.b32.xlu0 %v9596_v43, %s10060_s18 }
0x1691   : >> { %9607 = vtanh.f32 %v14636_v28 }
0x1692   : >> { %v9598_v62 = vpop.eup %9597 }
0x1693   : >> { %v9600_v31 = vpop.eup %9599  ;;  %6304 = vrot.lane.b32.xlu1 %v9598_v62, %s10060_s18 }
0x1694   : >> { %6302 = vrot.lane.b32.xlu0 %v9600_v31, %s10060_s18 }
0x1696   : >> { %v9602_v10 = vpop.eup %9601 }
0x1697   : >> { %v9604_v59 = vpop.eup %9603  ;;  %6308 = vrot.lane.b32.xlu1 %v9602_v10, %s10060_s18  ;;  %v8181_v53 = vpop.f32.mrb[56].mxu1 }
0x1698   : >> { %6306 = vrot.lane.b32.xlu0 %v9604_v59, %s10060_s18  ;;  %v14647_v34 = vadd.f32 %v8181_v53, %v14606_v33  ;;  %v6095_v43 = vpop.f32.mrb[57].mxu1 }
0x1699   : >> { %v14651_v47 = vadd.f32 %v14606_v33, %v6095_v43 }
0x169a   : >> { %v9606_v58 = vpop.eup %9605  ;;  %9609 = vtanh.f32 %v14647_v34 }
0x169b   : >> { %v9608_v42 = vpop.eup %9607  ;;  %6312 = vrot.lane.b32.xlu1 %v9606_v58, %s10060_s18  ;;  %9611 = vtanh.f32 %v14651_v47 }
0x169c   : >> { %6310 = vrot.lane.b32.xlu0 %v9608_v42, %s10060_s18  ;;  %v8184_v62 = vpop.f32.mrb[58].mxu1 }
0x169d   : >> { %v14657_v59 = vadd.f32 %v8184_v62, %v14606_v33  ;;  %v6105_v31 = vpop.f32.mrb[59].mxu1 }
0x169e   : >> { %v14660_v10 = vadd.f32 %v14606_v33, %v6105_v31 }
0x169f   : >> { %9613 = vtanh.f32 %v14657_v59 }
0x16a0   : >> { %9615 = vtanh.f32 %v14660_v10  ;;  %v8187_v58 = vpop.f32.mrb[60].mxu1 }
0x16a1   : >> { %v14665_v53 = vadd.f32 %v8187_v58, %v14606_v33  ;;  %v6115_v42 = vpop.f32.mrb[61].mxu1 }
0x16a2   : >> { %v14668_v12 = vadd.f32 %v14606_v33, %v6115_v42 }
0x16a3   : >> { %9617 = vtanh.f32 %v14665_v53 }
0x16a4   : >> { %v9610_v43 = vpop.eup %9609  ;;  %9619 = vtanh.f32 %v14668_v12 }
0x16a5   : >> { %v9612_v30 = vpop.eup %9611  ;;  %6316 = vrot.lane.b32.xlu1 %v9610_v43, %s10060_s18 }
0x16a6   : >> { %6314 = vrot.lane.b32.xlu0 %v9612_v30, %s10060_s18  ;;  %v10068_v30 = vmov 7  }
0x16a7   : >> { %8695 = vset.pattern.permute.xlu1 %v10068_v30  ;;  %8696 = vset.pattern.permute.xlu0 %v10068_v30  ;;  %v7595_v30 = vmul.f32 -1.442695, %v14628_v52 }
0x16a9   : >> { %v9614_v62 = vpop.eup %9613 }
0x16aa   : >> { %v9616_v31 = vpop.eup %9615  ;;  %6320 = vrot.lane.b32.xlu1 %v9614_v62, %s10060_s18 }
0x16ab   : >> { %6318 = vrot.lane.b32.xlu0 %v9616_v31, %s10060_s18 }
0x16ad   : >> { %v9618_v58 = vpop.eup %9617 }
0x16ae   : >> { %v9620_v2 = vpop.eup %9619  ;;  %6324 = vrot.lane.b32.xlu1 %v9618_v58, %s10060_s18  ;;  %v7591_v58 = vmul.f32 -1.442695, %v14612_v16 }
0x16af   : >> { %6322 = vrot.lane.b32.xlu0 %v9620_v2, %s10060_s18  ;;  %v7592_v2 = vmul.f32 -1.442695, %v14609_v48  ;;  %v7597_v48 = vmul.f32 -1.442695, %v14636_v28 }
0x16cd   : >> { %v8190_v42 = vpop.f32.mrb[62].mxu1 }
0x16ce   : >> { %v14679_v9 = vadd.f32 %v8190_v42, %v14606_v33  ;;  %v6125_v43 = vpop.f32.mrb[63].mxu1  ;;  %v7593_v42 = vmul.f32 -1.442695, %v14620_v63 }
0x16cf   : >> { %v14682_v15 = vadd.f32 %v14606_v33, %v6125_v43  ;;  %v7594_v33 = vmul.f32 -1.442695, %v14617_v21  ;;  %v7596_v43 = vmul.f32 -1.442695, %v14625_v54 }
0x16d0   : >> { %9621 = vtanh.f32 %v14679_v9 }
0x16d1   : >> { %9623 = vtanh.f32 %v14682_v15 }
0x16d2   : >> { %9625 = vpow2.f32 %v7592_v2 }
0x16d3   : >> { %9627 = vpow2.f32 %v7591_v58 }
0x16d4   : >> { %9629 = vpow2.f32 %v7594_v33 }
0x16d5   : >> { %9631 = vpow2.f32 %v7593_v42 }
0x16d6   : >> { %9633 = vpow2.f32 %v7596_v43 }
0x16d7   : >> { %9635 = vpow2.f32 %v7595_v30  ;;  %v7599_v30 = vmul.f32 -1.442695, %v14651_v47 }
0x16da   : >> { %v9622_v62 = vpop.eup %9621 }
0x16db   : >> { %v9624_v31 = vpop.eup %9623  ;;  %6328 = vrot.lane.b32.xlu1 %v9622_v62, %s10060_s18  ;;  %v7598_v62 = vmul.f32 -1.442695, %v14633_v56  ;;  %v7600_v56 = vmul.f32 -1.442695, %v14647_v34  ;;  %v7601_v34 = vmul.f32 -1.442695, %v14660_v10 }
0x16dc   : >> { %6326 = vrot.lane.b32.xlu0 %v9624_v31, %s10060_s18  ;;  %v9626_v31 = vpop.eup %9625  ;;  %v7604_v10 = vmul.f32 -1.442695, %v14665_v53 }
0x16dd   : >> { %v9628_v16 = vpop.eup %9627  ;;  %9637 = vpow2.f32 %v7598_v62  ;;  %v6203_v2 = vadd.f32 1.0, %v9626_v31 }
0x16de   : >> { %9639 = vpow2.f32 %v7597_v48  ;;  %v9630_v21 = vpop.eup %9629  ;;  %v6202_v58 = vadd.f32 1.0, %v9628_v16 }
0x16df   : >> { %v9632_v63 = vpop.eup %9631  ;;  %9641 = vrcp.f32 %v6203_v2  ;;  %v6205_v52 = vadd.f32 1.0, %v9630_v21  ;;  %v7602_v2 = vmul.f32 -1.442695, %v14657_v59 }
0x16e0   : >> { %v9634_v8 = vpop.eup %9633  ;;  %9643 = vrcp.f32 %v6202_v58  ;;  %v6204_v33 = vadd.f32 1.0, %v9632_v63 }
0x16e1   : >> { %v9636_v54 = vpop.eup %9635  ;;  %v6207_v42 = vadd.f32 1.0, %v9634_v8  ;;  %9645 = vrcp.f32 %v6205_v52 }
0x16e2   : >> { %v6206_v43 = vadd.f32 1.0, %v9636_v54  ;;  %9647 = vrcp.f32 %v6204_v33 }
0x16e3   : >> { %9649 = vrcp.f32 %v6207_v42 }
0x16e4   : >> { %9651 = vrcp.f32 %v6206_v43 }
0x16e5   : >> { %9653 = vpow2.f32 %v7600_v56  ;;  %v7603_v56 = vmul.f32 -1.442695, %v14668_v12 }
0x16e6   : >> { %9655 = vpow2.f32 %v7599_v30 }
0x16e7   : >> { %v9638_v28 = vpop.eup %9637 }
0x16e8   : >> { %v9640_v62 = vpop.eup %9639  ;;  %v6209_v48 = vadd.f32 1.0, %v9638_v28 }
0x16e9   : >> { %v6208_v31 = vadd.f32 1.0, %v9640_v62  ;;  %v14698_v16 = vpop.eup %9641 }
0x16ea   : >> { %v14701_v21 = vpop.eup %9643  ;;  %9657 = vrcp.f32 %v6209_v48 }
0x16eb   : >> { %9659 = vrcp.f32 %v6208_v31  ;;  %v14707_v54 = vpop.eup %9645 }
0x16ec   : >> { %9661 = vpow2.f32 %v7602_v2  ;;  %v14710_v52 = vpop.eup %9647 }
0x16ed   : >> { %9663 = vpow2.f32 %v7601_v34  ;;  %v14714_v43 = vpop.eup %9649 }
0x16ee   : >> { %v14718_v30 = vpop.eup %9651  ;;  %9665 = vpow2.f32 %v7604_v10 }
0x16ef   : >> { %v9654_v62 = vpop.eup %9653  ;;  %9667 = vpow2.f32 %v7603_v56 }
0x16f0   : >> { %v9656_v31 = vpop.eup %9655  ;;  %v6211_v34 = vadd.f32 1.0, %v9654_v62 }
0x16f2   : >> { %9669 = vrcp.f32 %v6211_v34 }
0x16f4   : >> { %v14725_v12 = vpop.eup %9657 }
0x1701   : >> { %v6301_v8 = vpop.permute.xlu1 %6300 }
0x1702   : >> { %v6347_v58 = vmul.f32 %v14698_v16, %v6301_v8  ;;  %v6299_v63 = vpop.permute.xlu0 %6298 }
0x1703   : >> { %v6346_v47 = vmul.f32 %v14701_v21, %v6299_v63 }
0x1704   : >> { %6380 = vrot.lane.b32.xlu1 %v6347_v58, %s10060_s18  ;;  %v6210_v58 = vadd.f32 1.0, %v9656_v31 }
0x1705   : >> { %6378 = vrot.lane.b32.xlu0 %v6346_v47, %s10060_s18  ;;  %v6305_v59 = vpop.permute.xlu1 %6304  ;;  %v14728_v47 = vpop.eup %9659 }
0x1706   : >> { %v6349_v33 = vmul.f32 %v14707_v54, %v6305_v59  ;;  %v6303_v42 = vpop.permute.xlu0 %6302  ;;  %9671 = vrcp.f32 %v6210_v58 }
0x1707   : >> { %v6348_v28 = vmul.f32 %v14710_v52, %v6303_v42 }
0x1708   : >> { %6384 = vrot.lane.b32.xlu1 %v6349_v33, %s10060_s18  ;;  %v9662_v33 = vpop.eup %9661 }
0x1709   : >> { %6382 = vrot.lane.b32.xlu0 %v6348_v28, %s10060_s18  ;;  %v6309_v48 = vpop.permute.xlu1 %6308  ;;  %v9664_v56 = vpop.eup %9663  ;;  %v6213_v28 = vadd.f32 1.0, %v9662_v33 }
0x170a   : >> { %v6351_v53 = vmul.f32 %v14714_v43, %v6309_v48  ;;  %v6307_v2 = vpop.permute.xlu0 %6306  ;;  %v6212_v62 = vadd.f32 1.0, %v9664_v56  ;;  %v9666_v48 = vpop.eup %9665 }
0x170b   : >> { %v6350_v8 = vmul.f32 %v14718_v30, %v6307_v2  ;;  %v9668_v31 = vpop.eup %9667  ;;  %9673 = vrcp.f32 %v6213_v28 }
0x170c   : >> { %6388 = vrot.lane.b32.xlu1 %v6351_v53, %s10060_s18  ;;  %9675 = vrcp.f32 %v6212_v62  ;;  %v6215_v53 = vadd.f32 1.0, %v9666_v48  ;;  %v6214_v2 = vadd.f32 1.0, %v9668_v31 }
0x170d   : >> { %6386 = vrot.lane.b32.xlu0 %v6350_v8, %s10060_s18  ;;  %v6313_v63 = vpop.permute.xlu1 %6312  ;;  %v14734_v8 = vpop.eup %9669 }
0x170e   : >> { %v6353_v59 = vmul.f32 %v14725_v12, %v6313_v63  ;;  %v6311_v10 = vpop.permute.xlu0 %6310  ;;  %9677 = vrcp.f32 %v6215_v53 }
0x170f   : >> { %v6352_v42 = vmul.f32 %v14728_v47, %v6311_v10  ;;  %9679 = vrcp.f32 %v6214_v2 }
0x1710   : >> { %6392 = vrot.lane.b32.xlu1 %v6353_v59, %s10060_s18  ;;  %v14736_v6 = vpop.eup %9671 }
0x1711   : >> { %6390 = vrot.lane.b32.xlu0 %v6352_v42, %s10060_s18 }
0x1715   : >> { %v14742_v10 = vpop.eup %9673 }
0x1716   : >> { %v14744_v42 = vpop.eup %9675 }
0x1717   : >> { %v6317_v63 = vpop.permute.xlu1 %6316 }
0x1718   : >> { %v6355_v34 = vmul.f32 %v14734_v8, %v6317_v63  ;;  %v6315_v59 = vpop.permute.xlu0 %6314  ;;  %v14750_v48 = vpop.eup %9677 }
0x1719   : >> { %v6354_v58 = vmul.f32 %v14736_v6, %v6315_v59  ;;  %v14752_v53 = vpop.eup %9679  ;;  %v7606_v59 = vmul.f32 -1.442695, %v14679_v9 }
0x171a   : >> { %6396 = vrot.lane.b32.xlu1 %v6355_v34, %s10060_s18 }
0x171b   : >> { %6394 = vrot.lane.b32.xlu0 %v6354_v58, %s10060_s18  ;;  %v7605_v58 = vmul.f32 -1.442695, %v14682_v15  ;;  %9681 = vpow2.f32 %v7606_v59  ;;  %v14852_v15 = vsel %vm5868_vm15, %v16343_v20, %v16342_v1  ;;  %v16344_v59 = vld [vmem:[#allocation48_spill] sm:$0xff]  ;;  %v16350_v1 = vld [vmem:[#allocation10_spill] sm:$0xff] }
0x171c   : >> { %v6321_v33 = vpop.permute.xlu1 %6320  ;;  %v6273_v32 = vmul.f32 %v14725_v12, %v14852_v15  ;;  %v16351_v20 = vld [vmem:[#allocation24_spill] sm:$0xff] }
0x171d   : >> { %v6357_v56 = vmul.f32 %v14742_v10, %v6321_v33  ;;  %v6319_v28 = vpop.permute.xlu0 %6318  ;;  %9683 = vpow2.f32 %v7605_v58  ;;  %v16345_v58 = vld [vmem:[#allocation50_spill] sm:$0xff]  ;;  %v14905_v41 = vsel %vm5872_vm3, %v16351_v20, %v16350_v1 }
0x171e   : >> { %v6356_v62 = vmul.f32 %v14744_v42, %v6319_v28 }
0x171f   : >> { %6400 = vrot.lane.b32.xlu1 %v6357_v56, %s10060_s18 }
0x1720   : >> { %6398 = vrot.lane.b32.xlu0 %v6356_v62, %s10060_s18  ;;  %v6325_v31 = vpop.permute.xlu1 %6324 }
0x1721   : >> { %v6359_v2 = vmul.f32 %v14750_v48, %v6325_v31  ;;  %v6323_v63 = vpop.permute.xlu0 %6322 }
0x1722   : >> { %v6358_v34 = vmul.f32 %v14752_v53, %v6323_v63 }
0x1723   : >> { %6404 = vrot.lane.b32.xlu1 %v6359_v2, %s10060_s18 }
0x1724   : >> { %6402 = vrot.lane.b32.xlu0 %v6358_v34, %s10060_s18 }
0x1725   : >> { %v9682_v33 = vpop.eup %9681 }
0x1726   : >> { %v6217_v28 = vadd.f32 1.0, %v9682_v33  ;;  %v14861_v33 = vsel %vm5867_vm14, %v16345_v58, %v16344_v59  ;;  %v16352_v59 = vld [vmem:[#allocation25_spill] sm:$0xff]  ;;  %v16353_v58 = vld [vmem:[#allocation11_spill] sm:$0xff] }
0x1727   : >> { %v9684_v56 = vpop.eup %9683 }
0x1728   : >> { %v6216_v62 = vadd.f32 1.0, %v9684_v56  ;;  %9685 = vrcp.f32 %v6217_v28  ;;  %v6272_v28 = vmul.f32 %v14728_v47, %v14861_v33 }
0x172a   : >> { %9687 = vrcp.f32 %v6216_v62 }
0x1732   : >> { %v14760_v31 = vpop.eup %9685 }
0x1734   : >> { %v14762_v63 = vpop.eup %9687 }
0x174d   : >> { %v6329_v45 = vpop.permute.xlu1 %6328 }
0x174e   : >> { %v6361_v2 = vmul.f32 %v14760_v31, %v6329_v45  ;;  %v6327_v34 = vpop.permute.xlu0 %6326 }
0x174f   : >> { %v6360_v9 = vmul.f32 %v14762_v63, %v6327_v34 }
0x1750   : >> { %6408 = vrot.lane.b32.xlu1 %v6361_v2, %s10060_s18 }
0x1751   : >> { %6406 = vrot.lane.b32.xlu0 %v6360_v9, %s10060_s18 }
0x1754   : >> { %6539 = vperm.xlu1 %8695, %v15815_v27  }
0x1755   : >> { %6542 = vperm.xlu0 %8696, %v15814_v19   ;;  %v14788_v19 = vsel %vm5862_vm9, %v14236_v14, %v14223_v39  ;;  %v16338_v39 = vld [vmem:[#allocation18_spill] sm:$0xff] }
0x1756   : >> { %v6267_v27 = vmul.f32 %v14698_v16, %v14788_v19 }
0x1758   : >> { %6545 = vperm.xlu1 %8695, %v15898_v22  }
0x1759   : >> { %6551 = vperm.xlu0 %8696, %v15897_v44  }
0x175c   : >> { %6548 = vperm.xlu1 %8695, %v15900_v13  }
0x175d   : >> { %6557 = vperm.xlu0 %8696, %v15899_v18  }
0x1760   : >> { %6554 = vperm.xlu1 %8695, %v15901_v24  }
0x1761   : >> { %6563 = vperm.xlu0 %8696, %v15824_v46   ;;  %v14796_v46 = vsel %vm5861_vm8, %v14244_v5, %v14229_v50  ;;  %v16339_v50 = vld [vmem:[#allocation14_spill] sm:$0xff]  ;;  %v16340_v5 = vld [vmem:[#allocation45_spill] sm:$0xff]  ;;  %vm16356_vm8 = vcmp.eq.s32.totalorder %v14438_v26, 1 }
0x1762   : >> { %v6266_v22 = vmul.f32 %v14701_v21, %v14796_v46  ;;  %v14830_v14 = vsel %vm5866_vm13, %v16339_v50, %v16338_v39  ;;  %v16348_v50 = vld [vmem:[#allocation13_spill] sm:$0xff] }
0x1764   : >> { %6560 = vperm.xlu1 %8695, %v15902_v60   ;;  %v14808_v60 = vsel %vm5864_vm11, %v14258_v35, %v14242_v3  ;;  %v6271_v3 = vmul.f32 %v14714_v43, %v14830_v14 }
0x1765   : >> { %6569 = vperm.xlu0 %8696, %v15984_v23   ;;  %v14817_v23 = vsel %vm5863_vm10, %v14266_v38, %v14250_v25  ;;  %v16341_v25 = vld [vmem:[#allocation47_spill] sm:$0xff] }
0x1766   : >> { %v14839_v35 = vsel %vm5865_vm12, %v16341_v25, %v16340_v5 }
0x1767   : >> { %v6270_v45 = vmul.f32 %v14718_v30, %v14839_v35 }
0x1768   : >> { %6566 = vperm.xlu1 %8695, %v15983_v7   ;;  %v6269_v7 = vmul.f32 %v14707_v54, %v14808_v60 }
0x1769   : >> { %6575 = vperm.xlu0 %8696, %v15986_v40  }
0x176c   : >> { %6572 = vperm.xlu1 %8695, %v16071_v4  }
0x176d   : >> { %6581 = vperm.xlu0 %8696, %v16070_v37   ;;  %v6268_v37 = vmul.f32 %v14710_v52, %v14817_v23 }
0x1770   : >> { %6578 = vperm.xlu1 %8695, %v16072_v17  }
0x1774   : >> { %6584 = vperm.xlu1 %8695, %v16073_v57  }
0x1776   : >> { %v6381_v44 = vpop.permute.xlu1 %6380 }
0x1777   : >> { %v14800_v18 = vadd.f32 %v6381_v44, %v6267_v27  ;;  %v6379_v13 = vpop.permute.xlu0 %6378 }
0x1778   : >> { %v14802_v24 = vadd.f32 %v6379_v13, %v6266_v22  ;;  %v16346_v13 = vld [vmem:[#allocation51_spill] sm:$0xff] }
0x1779   : >> { %9689 = vtanh.f32 %v14800_v18 }
0x177a   : >> { %9691 = vtanh.f32 %v14802_v24  ;;  %v6385_v40 = vpop.permute.xlu1 %6384 }
0x177b   : >> { %v14822_v4 = vadd.f32 %v6385_v40, %v6269_v7  ;;  %v6383_v17 = vpop.permute.xlu0 %6382  ;;  %v16347_v7 = vld [vmem:[#allocation12_spill] sm:$0xff] }
0x177c   : >> { %v14824_v57 = vadd.f32 %v6383_v17, %v6268_v37  ;;  %v14881_v40 = vsel %vm5870_vm1, %v16347_v7, %v16346_v13  ;;  %v16358_v13 = vld [vmem:[#allocation61_spill] sm:$0xff] }
0x177d   : >> { %9693 = vtanh.f32 %v14822_v4  ;;  %v6275_v37 = vmul.f32 %v14734_v8, %v14881_v40 }
0x177e   : >> { %9695 = vtanh.f32 %v14824_v57  ;;  %v6389_v38 = vpop.permute.xlu1 %6388 }
0x177f   : >> { %v14844_v49 = vadd.f32 %v6389_v38, %v6271_v3  ;;  %v6387_v36 = vpop.permute.xlu0 %6386  ;;  %v16349_v3 = vld [vmem:[#allocation52_spill] sm:$0xff] }
0x1780   : >> { %v14846_v51 = vadd.f32 %v6387_v36, %v6270_v45  ;;  %v14890_v5 = vsel %vm5869_vm2, %v16349_v3, %v16348_v50 }
0x1781   : >> { %9697 = vtanh.f32 %v14844_v49  ;;  %v6274_v11 = vmul.f32 %v14736_v6, %v14890_v5 }
0x1782   : >> { %9699 = vtanh.f32 %v14846_v51  ;;  %v6393_v56 = vpop.permute.xlu1 %6392 }
0x1783   : >> { %v9690_v61 = vpop.eup %9689  ;;  %v14866_v62 = vadd.f32 %v6393_v56, %v6273_v32  ;;  %v6391_v2 = vpop.permute.xlu0 %6390  ;;  %v6277_v32 = vmul.f32 %v14742_v10, %v14905_v41  ;;  %v14913_v56 = vsel %vm5871_vm4, %v16353_v58, %v16352_v59  ;;  %v16360_v59 = vld [vmem:[#allocation41_spill] sm:$0xff] }
0x1784   : >> { %v9692_v34 = vpop.eup %9691  ;;  %v14868_v9 = vadd.f32 %v6391_v2, %v6272_v28  ;;  %6476 = vrot.lane.b32.xlu1 %v9690_v61, %s10060_s18  ;;  %v6276_v61 = vmul.f32 %v14744_v42, %v14913_v56  ;;  %v16361_v58 = vld [vmem:[#allocation53_spill] sm:$0xff] }
0x1785   : >> { %9701 = vtanh.f32 %v14866_v62  ;;  %6474 = vrot.lane.b32.xlu0 %v9692_v34, %s10060_s18 }
0x1786   : >> { %9703 = vtanh.f32 %v14868_v9 }
0x1787   : >> { %v9694_v0 = vpop.eup %9693 }
0x1788   : >> { %v9696_v27 = vpop.eup %9695  ;;  %6480 = vrot.lane.b32.xlu1 %v9694_v0, %s10060_s18  ;;  %v16354_v0 = vld [vmem:[#allocation58_spill] sm:$0xff] }
0x1789   : >> { %6478 = vrot.lane.b32.xlu0 %v9696_v27, %s10060_s18  ;;  %v16355_v27 = vld [vmem:[#allocation59_spill] sm:$0xff] }
0x178b   : >> { %v9698_v44 = vpop.eup %9697 }
0x178c   : >> { %v9700_v22 = vpop.eup %9699  ;;  %6484 = vrot.lane.b32.xlu1 %v9698_v44, %s10060_s18  ;;  %v6397_v39 = vpop.permute.xlu1 %6396  ;;  %v14926_v44 = vsel %vm16356_vm8, %v16355_v27, %v16354_v0  ;;  %v16364_v0 = vld [vmem:[#allocation40_spill] sm:$0xff] }
0x178d   : >> { %6482 = vrot.lane.b32.xlu0 %v9700_v22, %s10060_s18  ;;  %v14892_v38 = vadd.f32 %v6397_v39, %v6275_v37  ;;  %v6395_v45 = vpop.permute.xlu0 %6394  ;;  %v6279_v29 = vmul.f32 %v14750_v48, %v14926_v44  ;;  %v16357_v22 = vld [vmem:[#allocation60_spill] sm:$0xff] }
0x178e   : >> { %v14899_v36 = vadd.f32 %v6395_v45, %v6274_v11  ;;  %v14935_v37 = vsel %vm5873_vm6, %v16358_v13, %v16357_v22 }
0x178f   : >> { %v9702_v17 = vpop.eup %9701  ;;  %9705 = vtanh.f32 %v14892_v38  ;;  %v6278_v39 = vmul.f32 %v14752_v53, %v14935_v37 }
0x1790   : >> { %v9704_v25 = vpop.eup %9703  ;;  %6488 = vrot.lane.b32.xlu1 %v9702_v17, %s10060_s18  ;;  %9707 = vtanh.f32 %v14899_v36 }
0x1791   : >> { %6486 = vrot.lane.b32.xlu0 %v9704_v25, %s10060_s18  ;;  %v6401_v28 = vpop.permute.xlu1 %6400 }
0x1792   : >> { %v14918_v2 = vadd.f32 %v6401_v28, %v6277_v32  ;;  %v6399_v55 = vpop.permute.xlu0 %6398 }
0x1793   : >> { %v14920_v34 = vadd.f32 %v6399_v55, %v6276_v61  ;;  %v5908_v61 = vsel %vm5876_vm7, %v16361_v58, %v16360_v59  ;;  %v16363_v55 = vld [vmem:[#allocation38_spill] sm:$0xff] }
0x1794   : >> { %v6281_v22 = vmul.f32 %v14760_v31, %v5908_v61 }
0x1795   : >> { %9709 = vtanh.f32 %v14920_v34  ;;  %v6405_v17 = vpop.permute.xlu1 %6404 }
0x1796   : >> { %9711 = vtanh.f32 %v14918_v2  ;;  %v14940_v26 = vadd.f32 %v6405_v17, %v6279_v29  ;;  %v6403_v50 = vpop.permute.xlu0 %6402  ;;  %v5907_v29 = vsel %vm5875_vm5, %v16364_v0, %v16363_v55 }
0x1797   : >> { %v14942_v25 = vadd.f32 %v6403_v50, %v6278_v39  ;;  %v6280_v7 = vmul.f32 %v14762_v63, %v5907_v29 }
0x1798   : >> { %9713 = vtanh.f32 %v14940_v26 }
0x1799   : >> { %v9706_v3 = vpop.eup %9705  ;;  %9715 = vtanh.f32 %v14942_v25 }
0x179a   : >> { %6492 = vrot.lane.b32.xlu0 %v9706_v3, %s10060_s18  ;;  %v9708_v11 = vpop.eup %9707 }
0x179e   : >> { %6490 = vrot.lane.b32.xlu0 %v9708_v11, %s10060_s18 }
0x179f   : >> { %v9710_v45 = vpop.eup %9709 }
0x17a0   : >> { %v9712_v1 = vpop.eup %9711  ;;  %6494 = vrot.lane.b32.xlu1 %v9710_v45, %s10060_s18 }
0x17a2   : >> { %6496 = vrot.lane.b32.xlu0 %v9712_v1, %s10060_s18  ;;  %v9714_v20 = vpop.eup %9713 }
0x17a3   : >> { %v9716_v32 = vpop.eup %9715 }
0x17a4   : >> { %6498 = vrot.lane.b32.xlu1 %v9716_v32, %s10060_s18 }
0x17a6   : >> { %6500 = vrot.lane.b32.xlu0 %v9714_v20, %s10060_s18 }
0x17c2   : >> { %v6409_v13 = vpop.permute.xlu1 %6408 }
0x17c3   : >> { %v6441_v17 = vadd.f32 %v6409_v13, %v6281_v22  ;;  %v6407_v39 = vpop.permute.xlu0 %6406 }
0x17c4   : >> { %v6440_v50 = vadd.f32 %v6407_v39, %v6280_v7  ;;  %v16369_v7 = vld [vmem:[#allocation37_spill] sm:$0xff] }
0x17c5   : >> { %9717 = vtanh.f32 %v6441_v17 }
0x17c6   : >> { %9719 = vtanh.f32 %v6440_v50 }
0x17cf   : >> { %v9718_v3 = vpop.eup %9717 }
0x17d0   : >> { %v9720_v11 = vpop.eup %9719  ;;  %6504 = vrot.lane.b32.xlu0 %v9718_v3, %s10060_s18  ;;  %v16371_v3 = vld [vmem:[#allocation39_spill] sm:$0xff] }
0x17d1   : >> { %6502 = vrot.lane.b32.xlu1 %v9720_v11, %s10060_s18 }
0x17d3   : >> { %v6540_v45 = vpop.permute.xlu1 %6539 }
0x17d4   : >> { %vm6586_vm9 = vcmp.eq.s32.totalorder %v6540_v45, 1  ;;  %v6543_v1 = vpop.permute.xlu0 %6542 }
0x17d5   : >> { %v14967_v20 = vsel %vm6586_vm9, %v14802_v24, %v14796_v46   ;;  %vm6587_vm10 = vcmp.eq.s32.totalorder %v6543_v1, 1 }
0x17d6   : >> { %v14972_v32 = vsel %vm6587_vm10, %v14800_v18, %v14788_v19  }
0x17d7   : >> { %v6546_v59 = vpop.permute.xlu1 %6545 }
0x17d8   : >> { %vm6588_vm11 = vcmp.eq.s32.totalorder %v6546_v59, 1  ;;  %v6552_v58 = vpop.permute.xlu0 %6551 }
0x17d9   : >> { %v14977_v28 = vsel %vm6588_vm11, %v14824_v57, %v14817_v23   ;;  %vm6590_vm12 = vcmp.eq.s32.totalorder %v6552_v58, 1 }
0x17da   : >> { %v14982_v46 = vsel %vm6590_vm12, %v14846_v51, %v14839_v35  }
0x17db   : >> { %v6549_v24 = vpop.permute.xlu1 %6548 }
0x17dc   : >> { %vm6589_vm13 = vcmp.eq.s32.totalorder %v6549_v24, 1  ;;  %v6558_v55 = vpop.permute.xlu0 %6557 }
0x17dd   : >> { %v14987_v19 = vsel %vm6589_vm13, %v14822_v4, %v14808_v60   ;;  %vm6592_vm14 = vcmp.eq.s32.totalorder %v6558_v55, 1 }
0x17de   : >> { %v14992_v18 = vsel %vm6592_vm14, %v14868_v9, %v14861_v33  }
0x17df   : >> { %v6555_v23 = vpop.permute.xlu1 %6554 }
0x17e0   : >> { %vm6591_vm15 = vcmp.eq.s32.totalorder %v6555_v23, 1  ;;  %v6564_v57 = vpop.permute.xlu0 %6563  ;;  %v16380_v23 = vld [vmem:[#allocation15_spill] sm:$0xff] }
0x17e1   : >> { %v14997_v35 = vsel %vm6591_vm15, %v14844_v49, %v14830_v14   ;;  %vm6594_vm1 = vcmp.eq.s32.totalorder %v6564_v57, 1 }
0x17e2   : >> { %v15002_v60 = vsel %vm6594_vm1, %v14899_v36, %v14890_v5  }
0x17e3   : >> { %v6561_v4 = vpop.permute.xlu1 %6560 }
0x17e4   : >> { %vm6593_vm2 = vcmp.eq.s32.totalorder %v6561_v4, 1  ;;  %v6570_v51 = vpop.permute.xlu0 %6569 }
0x17e5   : >> { %v15007_v33 = vsel %vm6593_vm2, %v14866_v62, %v14852_v15   ;;  %vm6596_vm3 = vcmp.eq.s32.totalorder %v6570_v51, 1 }
0x17e6   : >> { %v15012_v14 = vsel %vm6596_vm3, %v14920_v34, %v14913_v56  }
0x17e7   : >> { %v6567_v49 = vpop.permute.xlu1 %6566 }
0x17e8   : >> { %vm6595_vm4 = vcmp.eq.s32.totalorder %v6567_v49, 1  ;;  %v6576_v9 = vpop.permute.xlu0 %6575  ;;  %v16385_v49 = vld [vmem:[#allocation34_spill] sm:$0xff] }
0x17e9   : >> { %v15017_v5 = vsel %vm6595_vm4, %v14892_v38, %v14881_v40   ;;  %vm6598_vm5 = vcmp.eq.s32.totalorder %v6576_v9, 1 }
0x17ea   : >> { %v15022_v15 = vsel %vm6598_vm5, %v14942_v25, %v14935_v37  }
0x17eb   : >> { %v6573_v62 = vpop.permute.xlu1 %6572 }
0x17ec   : >> { %vm6597_vm6 = vcmp.eq.s32.totalorder %v6573_v62, 1  ;;  %v6582_v36 = vpop.permute.xlu0 %6581 }
0x17ed   : >> { %v6629_v56 = vsel %vm6597_vm6, %v14918_v2, %v14905_v41   ;;  %vm6600_vm7 = vcmp.eq.s32.totalorder %v6582_v36, 1  ;;  %v16366_v41 = vld [vmem:[#allocation36_spill] sm:$0xff]  ;;  %v6641_v36 = vld [vmem:[%s15240_s9 + $0x28] sm:$0xff] (%p15115_p7) }
0x17ee   : >> { %v6632_v34 = vsel %vm6600_vm7, %v6440_v50, %v5907_v29   ;;  %v16367_v29 = vld [vmem:[#allocation46_spill] sm:$0xff] }
0x17ef   : >> { %v6579_v0 = vpop.permute.xlu1 %6578 }
0x17f0   : >> { %vm6599_vm8 = vcmp.eq.s32.totalorder %v6579_v0, 1  ;;  %v6644_v0 = vld [vmem:[%s15240_s9 + $0x40] sm:$0xff] (%p15115_p7) }
0x17f1   : >> { %v6631_v50 = vsel %vm6599_vm8, %v14940_v26, %v14926_v44  }
0x17f2   : > { %v6654_v50 = vld [vmem:[%s15410_s5 + $0x10] sm:$0xff] (%p15115_p7) }
0x17f3   : >> { %v6585_v40 = vpop.permute.xlu1 %6584 }
0x17f4   : >> { %vm6601_vm0 = vcmp.eq.s32.totalorder %v6585_v40, 1  ;;  %v6645_v40 = vld [vmem:[%s15240_s9 + $0x48] sm:$0xff] (%p15115_p7) }
0x17f5   : >> { %v6633_v38 = vsel %vm6601_vm0, %v6441_v17, %v5908_v61  }
0x17f7   : >> { %v6475_v37 = vpop.permute.xlu0 %6474  ;;  %v6477_v25 = vpop.permute.xlu1 %6476 }
0x17f8   : >> { %v6522_v27 = vmul.f32 %v14701_v21, %v6475_v37  ;;  %v6523_v22 = vmul.f32 %v14698_v16, %v6477_v25 }
0x17fa   : >> { %v15036_v2 = vsel %vm6586_vm9, %v6522_v27, %v16366_v41   ;;  %v15040_v17 = vsel %vm6587_vm10, %v6523_v22, %v16367_v29   ;;  %v16373_v27 = vld [vmem:[#allocation33_spill] sm:$0xff]  ;;  %v16376_v29 = vld [vmem:[#allocation56_spill] sm:$0xff] }
0x17fb   : >> { %v16368_v39 = vmov %v15040_v17  ;;  %v6479_v13 = vpop.permute.xlu0 %6478  ;;  %v6481_v44 = vpop.permute.xlu1 %6480  ;;  %6676 = vrot.lane.b32.xlu0 (%p15115_p7), %v15036_v2, %s10069_s15 }
0x17fc   : >> { %v6524_v26 = vmul.f32 %v14710_v52, %v6479_v13  ;;  %v6525_v61 = vmul.f32 %v14707_v54, %v6481_v44  ;;  %v16374_v52 = vld [vmem:[#allocation55_spill] sm:$0xff] }
0x17fd   : >> { %v16378_v44 = vld [vmem:[#allocation31_spill] sm:$0xff] }
0x17fe   : >> { %v15046_v16 = vsel %vm6588_vm11, %v6524_v26, %v16369_v7   ;;  %v15050_v11 = vsel %vm6589_vm13, %v6525_v61, %v16371_v3   ;;  %v16382_v7 = vld [vmem:[#allocation29_spill] sm:$0xff] }
0x17ff   : >> { %v16370_v21 = vmov %v15046_v16  ;;  %v16372_v45 = vmov %v15050_v11  ;;  %v6483_v37 = vpop.permute.xlu0 %6482  ;;  %v6485_v25 = vpop.permute.xlu1 %6484  ;;  %6678 = vrot.lane.b32.xlu0 (%p15115_p7), %v16368_v39, %s10069_s15 }
0x1800   : >> { %v6526_v1 = vmul.f32 %v14718_v30, %v6483_v37  ;;  %v6527_v17 = vmul.f32 %v14714_v43, %v6485_v25  ;;  %v16383_v25 = vld [vmem:[#allocation32_spill] sm:$0xff]  ;;  %6680 = vrot.lane.b32.xlu1 (%p15115_p7), %v16370_v21, %s10069_s15 }
0x1802   : >> { %v15056_v22 = vsel %vm6590_vm12, %v6526_v1, %v16373_v27   ;;  %v15060_v13 = vsel %vm6591_vm15, %v6527_v17, %v16374_v52  }
0x1803   : >> { %v16375_v41 = vmov %v15060_v13  ;;  %v6487_v54 = vpop.permute.xlu0 %6486  ;;  %v6489_v16 = vpop.permute.xlu1 %6488  ;;  %6684 = vrot.lane.b32.xlu0 (%p15115_p7), %v15056_v22, %s10069_s15 }
0x1804   : >> { %v6528_v59 = vmul.f32 %v14728_v47, %v6487_v54  ;;  %v6529_v24 = vmul.f32 %v14725_v12, %v6489_v16  ;;  %v16387_v54 = vld [vmem:[#allocation35_spill] sm:$0xff]  ;;  %6682 = vrot.lane.b32.xlu1 (%p15115_p7), %v16372_v45, %s10069_s15 }
0x1806   : >> { %v15066_v12 = vsel %vm6592_vm14, %v6528_v59, %v16376_v29   ;;  %v15070_v11 = vsel %vm6593_vm2, %v6529_v24, %v16378_v44   ;;  %v16391_v59 = vld [vmem:[#allocation27_spill] sm:$0xff] }
0x1807   : >> { %v16377_v30 = vmov %v15066_v12  ;;  %v16379_v43 = vmov %v15070_v11 }
0x1808   : > { %6686 = vrot.lane.b32.xlu1 (%p15115_p7), %v16375_v41, %s10069_s15  ;;  %6688 = vrot.lane.b32.xlu0 (%p15115_p7), %v16377_v30, %s10069_s15 }
0x180c   : >> { %v6493_v58 = vpop.permute.xlu0 %6492  ;;  %6690 = vrot.lane.b32.xlu1 (%p15115_p7), %v16379_v43, %s10069_s15 }
0x180d   : >> { %v6531_v26 = vmul.f32 %v14734_v8, %v6493_v58  ;;  %v16406_v58 = vmov %v14982_v46  ;;  %v6655_v46 = vld [vmem:[%s15410_s5 + $0x18] sm:$0xff] (%p15115_p7) }
0x180f   : >> { %v15075_v13 = vsel %vm6595_vm4, %v6531_v26, %v16380_v23  }
0x1810   : >> { %v16381_v3 = vmov %v15075_v13  ;;  %v6491_v61 = vpop.permute.xlu0 %6490  ;;  %v16421_v13 = vmov %v16375_v41 }
0x1811   : >> { %v6530_v47 = vmul.f32 %v14736_v6, %v6491_v61  ;;  %v16409_v61 = vmov %v14972_v32  ;;  %v16417_v9 = vmov %v16381_v3  ;;  %v6656_v32 = vld [vmem:[%s15411_s6] sm:$0xff] (%p15115_p7)  ;;  %6694 = vrot.lane.b32.xlu1 (%p15115_p7), %v16381_v3, %s10069_s15 }
0x1812   : >> { %v6495_v55 = vpop.permute.xlu1 %6494  ;;  %v6638_v9 = vld [vmem:[%s15240_s9 + $0x10] sm:$0xff] (%p15115_p7) }
0x1813   : >> { %v15080_v37 = vsel %vm6594_vm1, %v6530_v47, %v16382_v7   ;;  %v6532_v12 = vmul.f32 %v14744_v42, %v6495_v55  ;;  %v16389_v42 = vld [vmem:[#allocation30_spill] sm:$0xff]  ;;  %v16402_v55 = vmov %v15002_v60  ;;  %v16408_v60 = vmov %v14977_v28 }
0x1814   : >> { %v6497_v4 = vpop.permute.xlu0 %6496  ;;  %6692 = vrot.lane.b32.xlu0 (%p15115_p7), %v15080_v37, %s10069_s15 }
0x1815   : >> { %v6533_v11 = vmul.f32 %v14742_v10, %v6497_v4  ;;  %v15086_v8 = vsel %vm6596_vm3, %v6532_v12, %v16383_v25   ;;  %v16420_v12 = vmov %v16377_v30 }
0x1816   : >> { %v16384_v1 = vmov %v15086_v8  ;;  %v6499_v17 = vpop.permute.xlu1 %6498 }
0x1817   : >> { %v15090_v7 = vsel %vm6597_vm6, %v6533_v11, %v16385_v49   ;;  %v6534_v57 = vmul.f32 %v14752_v53, %v6499_v17  ;;  %v16393_v53 = vld [vmem:[#allocation28_spill] sm:$0xff]  ;;  %v16397_v49 = vmov %v6632_v34  ;;  %v16419_v11 = vmov %v16379_v43  ;;  %v6643_v34 = vld [vmem:[%s15240_s9 + $0x38] sm:$0xff] (%p15115_p7) }
0x1818   : >> { %v16386_v27 = vmov %v15090_v7  ;;  %v6501_v6 = vpop.permute.xlu0 %6500  ;;  %v16425_v17 = vmov %v16368_v39  ;;  %6696 = vrot.lane.b32.xlu0 (%p15115_p7), %v16384_v1, %s10069_s15  ;;  %v6648_v39 = vld [vmem:[%s15240_s9 + $0x60] sm:$0xff] (%p15115_p7) }
0x1819   : >> { %v6535_v52 = vmul.f32 %v14750_v48, %v6501_v6  ;;  %v15096_v6 = vsel %vm6598_vm5, %v6534_v57, %v16387_v54   ;;  %v16396_v48 = vmov %v6633_v38  ;;  %v16401_v54 = vmov %v15017_v5  ;;  %6698 = vrot.lane.b32.xlu1 (%p15115_p7), %v16386_v27, %s10069_s15  ;;  %v6646_v38 = vld [vmem:[%s15240_s9 + $0x50] sm:$0xff] (%p15115_p7) }
0x181a   : >> { %v16388_v24 = vmov %v15096_v6  ;;  %v16405_v57 = vmov %v14997_v35  ;;  %v16415_v7 = vmov %v16386_v27  ;;  %v8339_v35 = vpack.c.bf16 (%p15115_p7), %v6655_v46, %v6654_v50 }
0x181b   : >> { %v15100_v10 = vsel %vm6599_vm8, %v6535_v52, %v16389_v42   ;;  %v16399_v52 = vmov %v6629_v56  ;;  %v16403_v42 = vmov %v15007_v33  ;;  %v16404_v56 = vmov %v14992_v18  ;;  %v6636_v33 = vld [vmem:[%s15240_s9] sm:$0xff] (%p15115_p7) }
0x181c   : >> { %v16390_v29 = vmov %v15100_v10  ;;  %v16414_v6 = vmov %v16388_v24  ;;  %v16418_v10 = vmov %v15080_v37  ;;  %v16426_v18 = vmov %v15036_v2  ;;  %v6642_v56 = vld [vmem:[%s15240_s9 + $0x30] sm:$0xff] (%p15115_p7)  ;;  %6700 = vrot.lane.b32.xlu0 (%p15115_p7), %v16388_v24, %s10069_s15  ;;  %v6647_v2 = vld [vmem:[%s15240_s9 + $0x58] sm:$0xff] (%p15115_p7) }
0x181d   : >> { %v16413_v5 = vmov %v16390_v29  ;;  %v6659_v18 = vld [vmem:[%s15411_s6 + $0x18] sm:$0xff] (%p15115_p7)  ;;  %6702 = vrot.lane.b32.xlu1 (%p15115_p7), %v16390_v29, %s10069_s15 }
0x181e   : > { %v6639_v5 = vld [vmem:[%s15240_s9 + $0x18] sm:$0xff] (%p15115_p7) }
0x1842   : >> { %v6505_v51 = vpop.permute.xlu0 %6504  ;;  %731 = sbr.rel (!%p15115_p7) target bundleno = 310 (0x136), region = 102 }
0x1843   : >> { %v6537_v8 = vmul.f32 %v14760_v31, %v6505_v51  ;;  %v6503_v62 = vpop.permute.xlu1 %6502  ;;  %v16398_v51 = vmov %v15022_v15  ;;  %v16423_v15 = vmov %v16372_v45  ;;  %v6652_v31 = vld [vmem:[%s15410_s5] sm:$0xff] (%p15115_p7)  ;;  %v6650_v45 = vld [vmem:[%s15240_s9 + $0x70] sm:$0xff] (%p15115_p7) }
0x1844   : >> { %v6536_v16 = vmul.f32 %v14762_v63, %v6503_v62  ;;  %v16410_v62 = vmov %v14967_v20  ;;  %v6653_v20 = vld [vmem:[%s15410_s5 + $0x8] sm:$0xff] (%p15115_p7)  ;;  %v6640_v15 = vld [vmem:[%s15240_s9 + $0x20] sm:$0xff] (%p15115_p7) }
0x1845   : >> { %v15106_v63 = vsel %vm6601_vm0, %v6537_v8, %v16391_v59   ;;  %v16407_v59 = vmov %v14987_v19  ;;  %v16416_v8 = vmov %v16384_v1  ;;  %v8335_v48 = vpack.c.bf16 (%p15115_p7), %v6653_v20, %v6652_v31  ;;  %v6658_v19 = vld [vmem:[%s15411_s6 + $0x10] sm:$0xff] (%p15115_p7) }
0x1846   : >> { %v16392_v44 = vmov %v15106_v63  ;;  %v15110_v4 = vsel %vm6600_vm7, %v6536_v16, %v16393_v53   ;;  %v16400_v53 = vmov %v15012_v14  ;;  %v16422_v14 = vmov %v15056_v22  ;;  %v6651_v22 = vld [vmem:[%s15240_s9 + $0x78] sm:$0xff] (%p15115_p7) }
0x1847   : >> { %v16394_v26 = vmov %v15110_v4  ;;  %v16411_v63 = vmov %v16392_v44  ;;  %v16424_v16 = vmov %v16370_v21  ;;  %8336 = vmatprep.subr.bf16.mxu0 (%p15115_p7), %v8335_v48  ;;  %v8331_v60 = vpack.c.bf16 (%p15115_p7), %v6659_v18, %v6658_v19  ;;  %v6637_v14 = vld [vmem:[%s15240_s9 + $0x8] sm:$0xff] (%p15115_p7)  ;;  %6706 = vrot.lane.b32.xlu1 (%p15115_p7), %v16392_v44, %s10069_s15  ;;  %v15338_v44 = vld [vmem:[%s15412_s7] ss:$0 sm:$0xff] (%p15115_p7) }
0x1848   : >> { %v16412_v4 = vmov %v16394_v26  ;;  %v6657_v63 = vld [vmem:[%s15411_s6 + $0x8] sm:$0xff] (%p15115_p7)  ;;  %8338 = vmatpush3.bf16.msra.mxu0 (%p15115_p7), %v8335_v48  ;;  %vm16428_vm0 = vcmask (%p15115_p7), 261120   ;;  %6704 = vrot.lane.b32.xlu0 (%p15115_p7), %v16394_v26, %s10069_s15 }
0x1849   : > { %v8327_v28 = vpack.c.bf16 %v6657_v63, %v6656_v32  ;;  %8340 = vmatprep.subr.bf16.mxu0 %v8339_v35  ;;  %8231 = vmatprep.mubr.msk.f32.mxu0 %vm16428_vm0, %v6636_v33  ;;  %vm16429_vm9 = vmmov %vm16428_vm0  ;;  %v6649_v21 = vld [vmem:[%s15240_s9 + $0x68] sm:$0xff] }
0x184a   : > { %vm16430_vm10 = vmmov %vm16428_vm0 }
0x184b   : > { %8328 = vmatprep.subr.bf16.mxu1 %v8327_v28  ;;  %vm16431_vm11 = vmmov %vm16428_vm0 }
0x184c   : > { %8330 = vmatpush3.bf16.msra.mxu1 %v8327_v28  ;;  %8342 = vmatpush3.bf16.msra.mxu0 %v8339_v35  ;;  %vm16432_vm12 = vmmov %vm16428_vm0 }
0x184d   : > { %8332 = vmatprep.subr.bf16.mxu1 %v8331_v60  ;;  %vm16433_vm13 = vmmov %vm16428_vm0 }
0x184e   : > { %vm16434_vm14 = vmmov %vm16428_vm0 }
0x184f   : > { %8232 = vmatmul.mubr.msk.f32.vlgmr.msra.gmra.mrb[0].mxu0 %vm16429_vm9, %v6637_v14  ;;  %vm16435_vm15 = vmmov %vm16428_vm0 }
0x1850   : > { %8334 = vmatpush3.bf16.msra.mxu1 %v8331_v60  ;;  %8234 = vmatprep.mubr.msk.f32.mxu0 %vm16430_vm10, %v6638_v9  ;;  %vm16436_vm1 = vmmov %vm16428_vm0 }
0x1851   : > { %vm16437_vm2 = vmmov %vm16428_vm0 }
0x1852   : > { %vm16438_vm3 = vmmov %vm16428_vm0 }
0x1853   : > { %8235 = vmatmul.mubr.msk.f32.gmra.mrb[2].mxu0 %vm16431_vm11, %v6639_v5  ;;  %vm16439_vm4 = vmmov %vm16428_vm0 }
0x1854   : > { %8237 = vmatprep.mubr.msk.f32.mxu0 %vm16432_vm12, %v6640_v15  ;;  %vm16440_vm5 = vmmov %vm16428_vm0 }
0x1855   : > { %vm16441_vm6 = vmmov %vm16428_vm0 }
0x1856   : > { %vm16442_vm7 = vmmov %vm16428_vm0 }
0x1857   : > { %8238 = vmatmul.mubr.msk.f32.gmra.mrb[4].mxu0 %vm16433_vm13, %v6641_v36  ;;  %vm16443_vm8 = vmmov %vm16428_vm0 }
0x1858   : > { %8240 = vmatprep.mubr.msk.f32.mxu0 %vm16434_vm14, %v6642_v56  ;;  %vm16444_vm9 = vmmov %vm16428_vm0 }
0x1859   : > { %vm16445_vm10 = vmmov %vm16428_vm0 }
0x185a   : > { %vm16446_vm11 = vmmov %vm16428_vm0 }
0x185b   : > { %8241 = vmatmul.mubr.msk.f32.gmra.mrb[6].mxu0 %vm16435_vm15, %v6643_v34  ;;  %vm16447_vm12 = vmmov %vm16428_vm0 }
0x185c   : > { %8243 = vmatprep.mubr.msk.f32.mxu0 %vm16436_vm1, %v6644_v0  ;;  %vm16448_vm13 = vmmov %vm16428_vm0 }
0x185d   : > { %vm16449_vm14 = vmmov %vm16428_vm0 }
0x185e   : > { %vm16450_vm15 = vmmov %vm16428_vm0 }
0x185f   : > { %8244 = vmatmul.mubr.msk.f32.gmra.mrb[8].mxu0 %vm16437_vm2, %v6645_v40  ;;  %vm16451_vm1 = vmmov %vm16428_vm0 }
0x1860   : > { %8246 = vmatprep.mubr.msk.f32.mxu0 %vm16438_vm3, %v6646_v38  ;;  %vm16452_vm2 = vmmov %vm16428_vm0 }
0x1861   : > { %vm16453_vm3 = vmmov %vm16428_vm0 }
0x1863   : > { %8247 = vmatmul.mubr.msk.f32.gmra.mrb[10].mxu0 %vm16439_vm4, %v6647_v2  ;;  %vm16454_vm4 = vmmov %vm16428_vm0 }
0x1864   : > { %8249 = vmatprep.mubr.msk.f32.mxu0 %vm16440_vm5, %v6648_v39  ;;  %vm16455_vm5 = vmmov %vm16428_vm0 }
0x1867   : > { %8250 = vmatmul.mubr.msk.f32.gmra.mrb[12].mxu0 %vm16441_vm6, %v6649_v21  ;;  %vm16456_vm6 = vmmov %vm16428_vm0 }
0x1868   : > { %8252 = vmatprep.mubr.msk.f32.mxu0 %vm16442_vm7, %v6650_v45  ;;  %vm16457_vm7 = vmmov %vm16428_vm0 }
0x186b   : > { %8253 = vmatmul.mubr.msk.f32.gmra.mrb[14].mxu0 %vm16443_vm8, %v6651_v22  ;;  %vm16458_vm8 = vmmov %vm16428_vm0 }
0x186d   : > { %v6677_v41 = vpop.permute.xlu0 %6676 }
0x186e   : > { %8199 = vmatprep.mubr.msk.f32.mxu1 %vm16428_vm0, %v6677_v41 }
0x1871   : > { %v6679_v43 = vpop.permute.xlu0 %6678 }
0x1872   : > { %v6681_v30 = vpop.permute.xlu1 %6680  ;;  %8200 = vmatmul.mubr.msk.f32.vlgmr.msra.gmra.mrb[0].mxu1 %vm16444_vm9, %v6679_v43  ;;  %vm16459_vm9 = vmmov %vm16428_vm0 }
0x1873   : > { %8202 = vmatprep.mubr.msk.f32.mxu1 %vm16445_vm10, %v6681_v30  ;;  %vm16460_vm10 = vmmov %vm16428_vm0 }
0x1875   : > { %v6685_v23 = vpop.permute.xlu0 %6684 }
0x1876   : > { %v6683_v58 = vpop.permute.xlu1 %6682 }
0x1877   : > { %8203 = vmatmul.mubr.msk.f32.gmra.mrb[2].mxu1 %vm16446_vm11, %v6683_v58  ;;  %vm16461_vm11 = vmmov %vm16428_vm0 }
0x1878   : > { %8205 = vmatprep.mubr.msk.f32.mxu1 %vm16447_vm12, %v6685_v23  ;;  %vm16462_vm12 = vmmov %vm16428_vm0 }
0x187a   : > { %v6687_v13 = vpop.permute.xlu1 %6686  ;;  %v6689_v3 = vpop.permute.xlu0 %6688 }
0x187b   : > { %8206 = vmatmul.mubr.msk.f32.gmra.mrb[4].mxu1 %vm16448_vm13, %v6687_v13  ;;  %vm16463_vm13 = vmmov %vm16428_vm0 }
0x187c   : > { %8208 = vmatprep.mubr.msk.f32.mxu1 %vm16449_vm14, %v6689_v3  ;;  %vm16464_vm14 = vmmov %vm16428_vm0 }
0x187e   : > { %v6691_v61 = vpop.permute.xlu1 %6690 }
0x187f   : > { %8209 = vmatmul.mubr.msk.f32.gmra.mrb[6].mxu1 %vm16450_vm15, %v6691_v61  ;;  %vm16465_vm15 = vmmov %vm16428_vm0 }
0x1883   : > { %v6695_v7 = vpop.permute.xlu1 %6694 }
0x1886   : > { %v6693_v47 = vpop.permute.xlu0 %6692 }
0x1887   : > { %8211 = vmatprep.mubr.msk.f32.mxu1 %vm16451_vm1, %v6693_v47  ;;  %vm16466_vm1 = vmmov %vm16428_vm0 }
0x1888   : > { %8212 = vmatmul.mubr.msk.f32.gmra.mrb[8].mxu1 %vm16452_vm2, %v6695_v7  ;;  %vm16467_vm2 = vmmov %vm16428_vm0 }
0x188a   : > { %v6697_v37 = vpop.permute.xlu0 %6696 }
0x188b   : > { %v6699_v55 = vpop.permute.xlu1 %6698  ;;  %8214 = vmatprep.mubr.msk.f32.mxu1 %vm16453_vm3, %v6697_v37  ;;  %vm16468_vm3 = vmmov %vm16428_vm0 }
0x188c   : > { %8215 = vmatmul.mubr.msk.f32.gmra.mrb[10].mxu1 %vm16454_vm4, %v6699_v55  ;;  %vm16469_vm4 = vmmov %vm16428_vm0 }
0x188e   : > { %v6701_v12 = vpop.permute.xlu0 %6700 }
0x188f   : > { %v6703_v4 = vpop.permute.xlu1 %6702  ;;  %8217 = vmatprep.mubr.msk.f32.mxu1 %vm16455_vm5, %v6701_v12  ;;  %vm16470_vm5 = vmmov %vm16428_vm0 }
0x1890   : > { %8218 = vmatmul.mubr.msk.f32.gmra.mrb[12].mxu1 %vm16456_vm6, %v6703_v4  ;;  %vm16471_vm6 = vmmov %vm16428_vm0 }
0x18b9   : > { %v6707_v25 = vpop.permute.xlu1 %6706 }
0x18ba   : > { %v6705_v11 = vpop.permute.xlu0 %6704 }
0x18bb   : > { %8220 = vmatprep.mubr.msk.f32.mxu1 %vm16457_vm7, %v6705_v11  ;;  %vm16472_vm7 = vmmov %vm16428_vm0 }
0x18bc   : > { %8221 = vmatmul.mubr.msk.f32.gmra.mrb[14].mxu1 %vm16458_vm8, %v6707_v25  ;;  %vm16473_vm8 = vmmov %vm16428_vm0 }
0x1922   : > { %v8233_v1 = vpop.f32.mrb[0].mxu0 }
0x1923   : > { %v6999_v49 = vpop.f32.mrb[1].mxu0 }
0x1926   : > { %v8236_v27 = vpop.f32.mrb[2].mxu0 }
0x1927   : > { %v7009_v17 = vpop.f32.mrb[3].mxu0 }
0x192a   : > { %v8239_v6 = vpop.f32.mrb[4].mxu0 }
0x192b   : > { %v7019_v57 = vpop.f32.mrb[5].mxu0 }
0x192e   : > { %v8242_v52 = vpop.f32.mrb[6].mxu0 }
0x192f   : > { %v7029_v54 = vpop.f32.mrb[7].mxu0 }
0x1932   : > { %v8245_v24 = vpop.f32.mrb[8].mxu0 }
0x1933   : > { %v7039_v42 = vpop.f32.mrb[9].mxu0 }
0x1936   : > { %v8248_v10 = vpop.f32.mrb[10].mxu0 }
0x1937   : > { %v7049_v29 = vpop.f32.mrb[11].mxu0 }
0x193a   : > { %v15327_v51 = vpop.f32.mrb[12].mxu0 }
0x193b   : > { %v15329_v8 = vpop.f32.mrb[13].mxu0 }
0x193e   : > { %v15331_v62 = vpop.f32.mrb[14].mxu0 }
0x193f   : > { %v15333_v16 = vpop.f32.mrb[15].mxu0 }
0x1945   : > { %v8201_v59 = vpop.f32.mrb[0].mxu1 }
0x1946   : > { %v7005_v53 = vadd.f32 %v8233_v1, %v8201_v59  ;;  %v6806_v26 = vpop.f32.mrb[1].mxu1 }
0x1947   : > { %v7000_v31 = vadd.f32 %v6999_v49, %v6806_v26 }
0x1948   : > { %v7086_v20 = vadd.f32 %v15338_v44, %v7005_v53 }
0x1949   : > { %v7085_v32 = vadd.f32 %v15338_v44, %v7000_v31 }
0x194a   : > { %v8204_v48 = vpop.f32.mrb[2].mxu1  ;;  %v7102_v63 = vmax.f32 %v7086_v20, 0.0 }
0x194b   : > { %v7015_v50 = vadd.f32 %v8236_v27, %v8204_v48  ;;  %v6816_v28 = vpop.f32.mrb[3].mxu1  ;;  %v7101_v46 = vmax.f32 %v7085_v32, 0.0 }
0x194c   : > { %v7010_v19 = vadd.f32 %v7009_v17, %v6816_v28  ;;  %7118 = vst.msk [vmem:[%s10210_s24 + $0x8] sm:$0xff] %vm16428_vm0, %v7102_v63 }
0x194d   : > { %v7088_v18 = vadd.f32 %v15338_v44, %v7015_v50  ;;  %7117 = vst.msk [vmem:[%s10210_s24] sm:$0xff] %vm16459_vm9, %v7101_v46 }
0x194e   : > { %v7087_v35 = vadd.f32 %v15338_v44, %v7010_v19  ;;  %v8207_v60 = vpop.f32.mrb[4].mxu1 }
0x194f   : > { %v7104_v33 = vmax.f32 %v7088_v18, 0.0  ;;  %v7025_v14 = vadd.f32 %v8239_v6, %v8207_v60  ;;  %v6826_v9 = vpop.f32.mrb[5].mxu1 }
0x1950   : > { %v7103_v5 = vmax.f32 %v7087_v35, 0.0  ;;  %v7020_v15 = vadd.f32 %v7019_v57, %v6826_v9 }
0x1951   : > { %7120 = vst.msk [vmem:[%s10210_s24 + $0x18] sm:$0xff] %vm16460_vm10, %v7104_v33  ;;  %v7090_v36 = vadd.f32 %v15338_v44, %v7025_v14 }
0x1952   : > { %7119 = vst.msk [vmem:[%s10210_s24 + $0x10] sm:$0xff] %vm16461_vm11, %v7103_v5  ;;  %v7089_v56 = vadd.f32 %v15338_v44, %v7020_v15  ;;  %v8210_v34 = vpop.f32.mrb[6].mxu1 }
0x1953   : > { %v7106_v0 = vmax.f32 %v7090_v36, 0.0  ;;  %v7035_v40 = vadd.f32 %v8242_v52, %v8210_v34  ;;  %v6836_v38 = vpop.f32.mrb[7].mxu1 }
0x1954   : > { %v7105_v2 = vmax.f32 %v7089_v56, 0.0  ;;  %v7030_v39 = vadd.f32 %v7029_v54, %v6836_v38 }
0x1955   : > { %7122 = vst.msk [vmem:[%s10210_s24 + $0x28] sm:$0xff] %vm16462_vm12, %v7106_v0  ;;  %v7092_v21 = vadd.f32 %v15338_v44, %v7035_v40 }
0x1956   : > { %7121 = vst.msk [vmem:[%s10210_s24 + $0x20] sm:$0xff] %vm16463_vm13, %v7105_v2  ;;  %v7091_v45 = vadd.f32 %v15338_v44, %v7030_v39 }
0x1957   : > { %v7108_v41 = vmax.f32 %v7092_v21, 0.0 }
0x1958   : > { %v7107_v58 = vmax.f32 %v7091_v45, 0.0 }
0x1959   : > { %7124 = vst.msk [vmem:[%s10210_s24 + $0x38] sm:$0xff] %vm16464_vm14, %v7108_v41 }
0x195a   : > { %7123 = vst.msk [vmem:[%s10210_s24 + $0x30] sm:$0xff] %vm16465_vm15, %v7107_v58 }
0x195b   : > { %v8213_v22 = vpop.f32.mrb[8].mxu1 }
0x195c   : > { %v7045_v30 = vadd.f32 %v8245_v24, %v8213_v22  ;;  %v6846_v43 = vpop.f32.mrb[9].mxu1 }
0x195d   : > { %v7040_v23 = vadd.f32 %v7039_v42, %v6846_v43 }
0x195e   : > { %v7094_v13 = vadd.f32 %v15338_v44, %v7045_v30 }
0x195f   : > { %v7093_v3 = vadd.f32 %v15338_v44, %v7040_v23  ;;  %v8216_v61 = vpop.f32.mrb[10].mxu1 }
0x1960   : > { %v7110_v47 = vmax.f32 %v7094_v13, 0.0  ;;  %v7055_v7 = vadd.f32 %v8248_v10, %v8216_v61  ;;  %v6856_v37 = vpop.f32.mrb[11].mxu1 }
0x1961   : > { %v7109_v55 = vmax.f32 %v7093_v3, 0.0  ;;  %v7050_v12 = vadd.f32 %v7049_v29, %v6856_v37 }
0x1962   : > { %7126 = vst.msk [vmem:[%s10210_s24 + $0x48] sm:$0xff] %vm16466_vm1, %v7110_v47  ;;  %v7096_v4 = vadd.f32 %v15338_v44, %v7055_v7 }
0x1963   : > { %7125 = vst.msk [vmem:[%s10210_s24 + $0x40] sm:$0xff] %vm16467_vm2, %v7109_v55  ;;  %v7095_v11 = vadd.f32 %v15338_v44, %v7050_v12  ;;  %v8219_v25 = vpop.f32.mrb[12].mxu1 }
0x1964   : > { %v7112_v1 = vmax.f32 %v7096_v4, 0.0  ;;  %v7065_v49 = vadd.f32 %v15327_v51, %v8219_v25  ;;  %v6866_v27 = vpop.f32.mrb[13].mxu1 }
0x1965   : > { %v7111_v17 = vmax.f32 %v7095_v11, 0.0  ;;  %v7060_v6 = vadd.f32 %v15329_v8, %v6866_v27 }
0x1966   : > { %7128 = vst.msk [vmem:[%s10210_s24 + $0x58] sm:$0xff] %vm16468_vm3, %v7112_v1  ;;  %v7098_v57 = vadd.f32 %v15338_v44, %v7065_v49 }
0x1967   : > { %7127 = vst.msk [vmem:[%s10210_s24 + $0x50] sm:$0xff] %vm16469_vm4, %v7111_v17  ;;  %v7097_v52 = vadd.f32 %v15338_v44, %v7060_v6 }
0x1968   : > { %v7114_v24 = vmax.f32 %v7098_v57, 0.0 }
0x1969   : > { %v7113_v29 = vmax.f32 %v7097_v52, 0.0 }
0x196a   : > { %7130 = vst.msk [vmem:[%s10210_s24 + $0x68] sm:$0xff] %vm16470_vm5, %v7114_v24 }
0x196b   : > { %7129 = vst.msk [vmem:[%s10210_s24 + $0x60] sm:$0xff] %vm16471_vm6, %v7113_v29 }
0x198f   : > { %v8222_v54 = vpop.f32.mrb[14].mxu1 }
0x1990   : > { %v7075_v42 = vadd.f32 %v15331_v62, %v8222_v54  ;;  %v6876_v10 = vpop.f32.mrb[15].mxu1 }
0x1991   : > { %v7070_v51 = vadd.f32 %v15333_v16, %v6876_v10 }
0x1992   : > { %v7100_v8 = vadd.f32 %v15338_v44, %v7075_v42 }
0x1993   : > { %v7099_v59 = vadd.f32 %v15338_v44, %v7070_v51 }
0x1994   : > { %v7116_v53 = vmax.f32 %v7100_v8, 0.0 }
0x1995   : > { %v7115_v26 = vmax.f32 %v7099_v59, 0.0 }
0x1996   : > { %7132 = vst.msk [vmem:[%s10210_s24 + $0x78] sm:$0xff] %vm16472_vm7, %v7116_v53 }
0x1997   : > { %7131 = vst.msk [vmem:[%s10210_s24 + $0x70] sm:$0xff] %vm16473_vm8, %v7115_v26 }
0x1998 PF: > { %p18_p3 = scmp.ge.s32.totalorder %s10137_s10, 4   ;;  %s16474_s27 = smov %s9913_s28 }
0x1999   : > { %s16475_s28 = smov %s9917_s29  ;;  %s16476_s29 = smov %s10147_s13 }
0x199a   : > { %s16477_s30 = smov %s10137_s10  ;;  %20 = sbr.rel (!%p18_p3) target bundleno = 3 (0x3), region = 113 }
0x19a1   :  { %7155 = vsyncpa [#allocation4], 1 }
0x19a2   :  { %7157 = vsyncpa [#allocation4 + $0x1], 1 }

</bundles_post_ra>
